<compile_context>
chip_gen: v7x
topology: tpu7x:2x2x1
jax: 0.10.0
libtpu: 0.0.40
codegen_flags: <defaults>
</compile_context>

<pallas_src>
import math

import jax
import jax.numpy as jnp
from jax.experimental import pallas as pl
from jax.experimental.pallas import tpu as pltpu

NEG_SLOPE = 0.01  # torch.nn.LeakyReLU default negative_slope


def _leaky_relu(x):
    return jnp.where(x >= 0, x, NEG_SLOPE * x)


def _pick_tile(total, candidates):
    for c in candidates:
        if c <= total and total % c == 0:
            return c
    return total


def time_dyn_att_kernel(td_ref, fkey_ref, wfhT_ref, segneg_ref, segb_ref,
                        h_ref, whhbd_ref, out_ref,
                        g_sc, m_sc, l_sc, acc_sc):
    """One (N-tile, To-tile) grid step.

    Grid axes: i over N ("parallel"), j over To ("arbitrary", reduction).
    Online-softmax state (running max / denom / weighted-H accumulator) lives
    in VMEM scratch and carries across the j axis; output written at last j.
    """
    j = pl.program_id(1)
    last_j = pl.num_programs(1) - 1
    tTo, TN, KH = h_ref.shape

    @pl.when(j == 0)
    def _init():
        # g[n, i*h+a] = sum_f f_key[n, f] * Wfh[i, a, f]: one matmul per N
        # tile, cached in scratch for the remaining To steps.
        g_sc[...] = jnp.dot(fkey_ref[...], wfhT_ref[...],
                            preferred_element_type=jnp.float32)
        m_sc[...] = jnp.full_like(m_sc, -jnp.inf)
        l_sc[...] = jnp.zeros_like(l_sc)
        acc_sc[...] = jnp.zeros_like(acc_sc)

    g = g_sc[...]                     # (TN, KH)
    segneg = segneg_ref[...]          # (KH, k)  -1/sqrt(f_dim) head indicator
    segb = segb_ref[...]              # (k, KH)  0/1 head-broadcast indicator
    td = td_ref[...]                  # (tTo, k) exp((t+1) * theta)

    m = m_sc[...]                     # (TN, k)
    l = l_sc[...]                     # (TN, k)
    acc = acc_sc[...]                 # (TN, KH)

    # Online softmax over the local To chunk, fused with the alpha-weighted-H
    # accumulation -- no (To, TN, *) intermediates are materialized.  tTo is a
    # small static trip count, so this unrolls into straight-line code.
    for t in range(tTo):
        Ht = h_ref[t]                                                 # (TN, KH)
        # Segmented per-head lane reduction via a tiny MXU matmul; the
        # -1/sqrt(f_dim) scale is folded into segneg (leaky_relu is positively
        # homogeneous).
        negf = jnp.dot(Ht * g, segneg,
                       preferred_element_type=jnp.float32)            # (TN, k)
        logit = _leaky_relu(negf) * td[t:t + 1, :]                    # (TN, k)
        m_new = jnp.maximum(m, logit)
        corr = jnp.exp(m - m_new)                                     # (TN, k)
        p = jnp.exp(logit - m_new)                                    # (TN, k)
        l = corr * l + p
        corr_b = jnp.dot(corr, segb, preferred_element_type=jnp.float32)
        p_b = jnp.dot(p, segb, preferred_element_type=jnp.float32)    # (TN, KH)
        acc = corr_b * acc + p_b * Ht
        m = m_new

    m_sc[...] = m
    l_sc[...] = l
    acc_sc[...] = acc

    @pl.when(j == last_j)
    def _finalize():
        # Exact divide (perf review: approx EUP reciprocal bought nothing here).
        inv_l = 1.0 / l_sc[...]                                       # (TN, k)
        inv_b = jnp.dot(inv_l, segb, preferred_element_type=jnp.float32)
        weighted = acc_sc[...] * inv_b                                # (TN, KH)
        # Block-diagonal Whh matmul over the lane-dense (TN, KH) slab.
        # TODO(synk): for KH > 256, switch to per-head (or grouped) Whh matmuls
        # to drop the k-fold zero-block MXU work and the KH^2 weight footprint.
        out_ref[...] = _leaky_relu(
            jnp.dot(weighted, whhbd_ref[...],
                    preferred_element_type=jnp.float32)).astype(out_ref.dtype)


def time_dyn_att(theta, Wfv, Wfh, Whh, V, H, *, tn=None, tto=None):
    """Pallas implementation of TimeDynAtt.forward(V, H)."""
    k, To, N, h_dim = H.shape
    v_dim, f_dim = Wfv.shape
    KH = k * h_dim

    # ---- head-small / head-independent precomputation (wrapper-side) --------
    f_key = jnp.dot(V[-1], Wfv, precision=jax.lax.Precision.HIGHEST)  # (N, f_dim)
    # Lane-dense layout plumbing (pure layout transforms, done once by XLA).
    H2 = jnp.transpose(H, (1, 2, 0, 3)).reshape(To, N, KH)            # (To, N, k*h)
    # TODO(synk): on v6e/v7x H2 (and WfhT/Whh_bd) can be cast to bf16 to halve
    # the dominant HBM traffic; kept f32 here for exact parity with the module.
    WfhT = jnp.transpose(Wfh, (2, 0, 1)).reshape(f_dim, KH)           # (f_dim, k*h)
    Whh_bd = jnp.einsum('kab,kl->kalb', Whh,
                        jnp.eye(k, dtype=Whh.dtype)).reshape(KH, KH)  # block-diag
    # timedecay[t, i] = exp((t+1) * theta[0, i])
    t_lin = jnp.arange(1, To + 1, dtype=jnp.float32)[:, None]
    timedecay = jnp.exp(t_lin * theta.astype(jnp.float32))            # (To, k)
    # Segmented-reduce / broadcast head-indicator matrices (hoisted constants).
    lane_head = jnp.arange(KH, dtype=jnp.int32) // h_dim
    head_ids = jnp.arange(k, dtype=jnp.int32)
    seg_neg = jnp.where(lane_head[:, None] == head_ids[None, :],
                        -1.0 / math.sqrt(float(f_dim)),
                        0.0).astype(jnp.float32)                      # (KH, k)
    seg_bcast = (head_ids[:, None] == lane_head[None, :]).astype(jnp.float32)

    # ---- tile sizes ----------------------------------------------------------
    # TN: lane-dense N tile (>=256 rows fills the v6e/v7x MXU); tTo: To chunk
    # per grid step, bounding VMEM regardless of To.  Fall back to full dims
    # when nothing divides (block == full dim is always legal).
    TN = tn if tn is not None else _pick_tile(N, (512, 256, 128, 64, 32, 16, 8))
    tTo = tto if tto is not None else _pick_tile(To, (16, 8))
    assert N % TN == 0 and To % tTo == 0, (N, TN, To, tTo)
    grid = (N // TN, To // tTo)

    out_flat = pl.pallas_call(
        time_dyn_att_kernel,
        out_shape=jax.ShapeDtypeStruct((N, KH), jnp.float32),
        grid=grid,
        in_specs=[
            pl.BlockSpec((tTo, k), lambda i, j: (j, 0)),            # timedecay
            pl.BlockSpec((TN, f_dim), lambda i, j: (i, 0)),         # f_key
            pl.BlockSpec((f_dim, KH), lambda i, j: (0, 0)),         # Wfh^T (resident)
            pl.BlockSpec((KH, k), lambda i, j: (0, 0)),             # seg_neg (resident)
            pl.BlockSpec((k, KH), lambda i, j: (0, 0)),             # seg_bcast (resident)
            pl.BlockSpec((tTo, TN, KH), lambda i, j: (j, i, 0)),    # H (streamed)
            pl.BlockSpec((KH, KH), lambda i, j: (0, 0)),            # Whh block-diag
        ],
        out_specs=pl.BlockSpec((TN, KH), lambda i, j: (i, 0)),
        scratch_shapes=[
            pltpu.VMEM((TN, KH), jnp.float32),   # g = f_key @ Wfh^T (per N tile)
            pltpu.VMEM((TN, k), jnp.float32),    # running max
            pltpu.VMEM((TN, k), jnp.float32),    # running softmax denominator
            pltpu.VMEM((TN, KH), jnp.float32),   # running weighted-H accumulator
        ],
        compiler_params=pltpu.CompilerParams(
            dimension_semantics=("parallel", "arbitrary")),
    )(timedecay, f_key, WfhT, seg_neg, seg_bcast, H2, Whh_bd)

    # (N, k*h) -> (k, N, h_dim)
    return jnp.transpose(out_flat.reshape(N, k, h_dim), (1, 0, 2))


def time_dyn_att_reference(theta, Wfv, Wfh, Whh, V, H):
    """Pure-JAX mirror of the PyTorch forward (for validation)."""
    To = H.shape[1]
    f_dim = Wfv.shape[1]
    hi = jax.lax.Precision.HIGHEST
    vt = V[-1]
    f_key = jnp.dot(vt, Wfv, precision=hi)                        # (N, f_dim)
    Hp = jnp.transpose(H, (1, 0, 2, 3))                           # (To, k, N, h)
    f_query = jnp.einsum('tknh,khf->tknf', Hp, Wfh, precision=hi)
    f = jnp.einsum('tknf,nf->tkn', f_query, f_key, precision=hi)
    t_lin = jnp.arange(1, To + 1, dtype=jnp.float32)[:, None]     # (To, 1)
    timedecay = jnp.exp(t_lin @ theta)[:, :, None]                # (To, k, 1)
    f = _leaky_relu(-f) / jnp.sqrt(jnp.float32(f_dim)) * timedecay
    f = jnp.exp(f)
    alpha = f / jnp.sum(f, axis=0, keepdims=True)                 # (To, k, N)
    H_trans = jnp.einsum('tknh,khg->tkng', Hp, Whh, precision=hi)
    H_tilde = jnp.einsum('tkn,tkng->kng', alpha, H_trans, precision=hi)
    return _leaky_relu(H_tilde)


if __name__ == "__main__":
    # Small, module-consistent shapes.  With tn=128, tto=8 the grid is (2, 2),
    # exercising both the parallel N axis and the To-accumulator axis; the
    # default-tile call exercises the single-block path.
    k, To, N, h_dim, f_dim, v_dim, Tv = 4, 16, 256, 32, 32, 16, 3

    key = jax.random.PRNGKey(0)
    ks = jax.random.split(key, 6)
    # Deterministic synthetic init (kept small so exp() stays well-conditioned;
    # exp((t+1)*theta) overflowing for huge To / large theta matches the
    # PyTorch reference's own input-domain limitation).
    theta = jax.random.uniform(ks[0], (1, k), jnp.float32, -0.1, 0.1)
    Wfv = jax.random.uniform(ks[1], (v_dim, f_dim), jnp.float32, -0.1, 0.1)
    Wfh = jax.random.uniform(ks[2], (k, h_dim, f_dim), jnp.float32, -0.1, 0.1)
    Whh = jax.random.uniform(ks[3], (k, h_dim, h_dim), jnp.float32, -0.1, 0.1)
    V = jax.random.normal(ks[4], (Tv, N, v_dim), jnp.float32) * 0.5
    H = jax.random.normal(ks[5], (k, To, N, h_dim), jnp.float32) * 0.5

    ref = time_dyn_att_reference(theta, Wfv, Wfh, Whh, V, H)

    # Multi-step grid: 2 N tiles ("parallel") x 2 To chunks ("arbitrary").
    fwd_tiled = jax.jit(lambda *a: time_dyn_att(*a, tn=128, tto=8))
    out = fwd_tiled(theta, Wfv, Wfh, Whh, V, H)
    jax.block_until_ready(out)
    assert out.shape == (k, N, h_dim), out.shape
    err = float(jnp.max(jnp.abs(out - ref)))
    assert jnp.allclose(out, ref, atol=2e-3, rtol=2e-3), err

    # Default (largest-fitting) tiles: single grid step per axis.
    fwd = jax.jit(time_dyn_att)
    out2 = fwd(theta, Wfv, Wfh, Whh, V, H)
    jax.block_until_ready(out2)
    err2 = float(jnp.max(jnp.abs(out2 - ref)))
    assert jnp.allclose(out2, ref, atol=2e-3, rtol=2e-3), err2

    print("KERNEL_OK")
</pallas_src>

<mosaic_0001>
module attributes {stable_mosaic.version = 11 : i64} {
  func.func @time_dyn_att_kernel(%arg0: i32, %arg1: i32, %arg2: memref<8x4xf32, #tpu.memory_space<vmem>>, %arg3: memref<128x32xf32, #tpu.memory_space<vmem>>, %arg4: memref<32x128xf32, #tpu.memory_space<vmem>>, %arg5: memref<128x4xf32, #tpu.memory_space<vmem>>, %arg6: memref<4x128xf32, #tpu.memory_space<vmem>>, %arg7: memref<8x128x128xf32, #tpu.memory_space<vmem>>, %arg8: memref<128x128xf32, #tpu.memory_space<vmem>>, %arg9: memref<128x128xf32, #tpu.memory_space<vmem>>, %arg10: memref<128x128xf32, #tpu.memory_space<vmem>>, %arg11: memref<128x4xf32, #tpu.memory_space<vmem>>, %arg12: memref<128x4xf32, #tpu.memory_space<vmem>>, %arg13: memref<128x128xf32, #tpu.memory_space<vmem>>) attributes {dimension_semantics = [#tpu.dimension_semantics<parallel>, #tpu.dimension_semantics<arbitrary>], iteration_bounds = array<i64: 2, 2>, scalar_prefetch = 0 : i64, scratch_operands = 4 : i64, tpu.core_type = #tpu.core_type<tc>, window_params = [{transform_indices = @transform_0, window_bounds = array<i64: 8, 4>}, {transform_indices = @transform_1, window_bounds = array<i64: 128, 32>}, {pipeline_mode = #tpu.pipeline_mode<synchronous>, transform_indices = @transform_2, window_bounds = array<i64: 32, 128>}, {pipeline_mode = #tpu.pipeline_mode<synchronous>, transform_indices = @transform_3, window_bounds = array<i64: 128, 4>}, {pipeline_mode = #tpu.pipeline_mode<synchronous>, transform_indices = @transform_4, window_bounds = array<i64: 4, 128>}, {transform_indices = @transform_5, window_bounds = array<i64: 8, 128, 128>}, {pipeline_mode = #tpu.pipeline_mode<synchronous>, transform_indices = @transform_6, window_bounds = array<i64: 128, 128>}, {transform_indices = @transform_7, window_bounds = array<i64: 128, 128>}]} {
    %c0_i32 = arith.constant 0 : i32
    %0 = arith.cmpi eq, %arg1, %c0_i32 : i32
    %1 = arith.extui %0 : i1 to i32
    %c0_i32_0 = arith.constant 0 : i32
    %2 = arith.cmpi ne, %1, %c0_i32_0 : i32
    scf.if %2 {
      %c0_77 = arith.constant 0 : index
      %c0_78 = arith.constant 0 : index
      %208 = vector.load %arg3[%c0_77, %c0_78] : memref<128x32xf32, #tpu.memory_space<vmem>>, vector<128x32xf32>
      %c0_79 = arith.constant 0 : index
      %c0_80 = arith.constant 0 : index
      %209 = vector.load %arg4[%c0_79, %c0_80] : memref<32x128xf32, #tpu.memory_space<vmem>>, vector<32x128xf32>
      %cst_81 = arith.constant dense<0.000000e+00> : vector<128x128xf32>
      %210 = tpu.matmul %208, %209, %cst_81 {dimension_numbers = #tpu.dot_dimension_numbers<[1], [0], [0], [1], [0, 0, 1, 1], [], []>} : vector<128x32xf32>, vector<32x128xf32>, vector<128x128xf32> -> vector<128x128xf32>
      %c0_82 = arith.constant 0 : index
      %c0_83 = arith.constant 0 : index
      %211 = vector.load %arg10[%c0_82, %c0_83] : memref<128x128xf32, #tpu.memory_space<vmem>>, vector<128x128xf32>
      tpu.vector_store %arg10[%c0_82, %c0_83], %210 {strides = array<i32>} : memref<128x128xf32, #tpu.memory_space<vmem>>, vector<128x128xf32>,
      %cst_84 = arith.constant 0xFF800000 : f32
      %212 = vector.broadcast %cst_84 : f32 to vector<128x4xf32>
      %c0_85 = arith.constant 0 : index
      %c0_86 = arith.constant 0 : index
      %213 = vector.load %arg11[%c0_85, %c0_86] : memref<128x4xf32, #tpu.memory_space<vmem>>, vector<128x4xf32>
      tpu.vector_store %arg11[%c0_85, %c0_86], %212 {strides = array<i32>} : memref<128x4xf32, #tpu.memory_space<vmem>>, vector<128x4xf32>,
      %cst_87 = arith.constant 0.000000e+00 : f32
      %214 = vector.broadcast %cst_87 : f32 to vector<128x4xf32>
      %c0_88 = arith.constant 0 : index
      %c0_89 = arith.constant 0 : index
      %215 = vector.load %arg12[%c0_88, %c0_89] : memref<128x4xf32, #tpu.memory_space<vmem>>, vector<128x4xf32>
      tpu.vector_store %arg12[%c0_88, %c0_89], %214 {strides = array<i32>} : memref<128x4xf32, #tpu.memory_space<vmem>>, vector<128x4xf32>,
      %cst_90 = arith.constant 0.000000e+00 : f32
      %216 = vector.broadcast %cst_90 : f32 to vector<128x128xf32>
      %c0_91 = arith.constant 0 : index
      %c0_92 = arith.constant 0 : index
      %217 = vector.load %arg13[%c0_91, %c0_92] : memref<128x128xf32, #tpu.memory_space<vmem>>, vector<128x128xf32>
      tpu.vector_store %arg13[%c0_91, %c0_92], %216 {strides = array<i32>} : memref<128x128xf32, #tpu.memory_space<vmem>>, vector<128x128xf32>,
    } else {
    }
    %c0 = arith.constant 0 : index
    %c0_1 = arith.constant 0 : index
    %3 = vector.load %arg10[%c0, %c0_1] : memref<128x128xf32, #tpu.memory_space<vmem>>, vector<128x128xf32>
    %c0_2 = arith.constant 0 : index
    %c0_3 = arith.constant 0 : index
    %4 = vector.load %arg5[%c0_2, %c0_3] : memref<128x4xf32, #tpu.memory_space<vmem>>, vector<128x4xf32>
    %c0_4 = arith.constant 0 : index
    %c0_5 = arith.constant 0 : index
    %5 = vector.load %arg6[%c0_4, %c0_5] : memref<4x128xf32, #tpu.memory_space<vmem>>, vector<4x128xf32>
    %c0_6 = arith.constant 0 : index
    %c0_7 = arith.constant 0 : index
    %6 = vector.load %arg2[%c0_6, %c0_7] : memref<8x4xf32, #tpu.memory_space<vmem>>, vector<8x4xf32>
    %c0_8 = arith.constant 0 : index
    %c0_9 = arith.constant 0 : index
    %7 = vector.load %arg11[%c0_8, %c0_9] : memref<128x4xf32, #tpu.memory_space<vmem>>, vector<128x4xf32>
    %c0_10 = arith.constant 0 : index
    %c0_11 = arith.constant 0 : index
    %8 = vector.load %arg12[%c0_10, %c0_11] : memref<128x4xf32, #tpu.memory_space<vmem>>, vector<128x4xf32>
    %c0_12 = arith.constant 0 : index
    %c0_13 = arith.constant 0 : index
    %9 = vector.load %arg13[%c0_12, %c0_13] : memref<128x128xf32, #tpu.memory_space<vmem>>, vector<128x128xf32>
    %c0_14 = arith.constant 0 : index
    %c0_15 = arith.constant 0 : index
    %c0_16 = arith.constant 0 : index
    %10 = vector.load %arg7[%c0_14, %c0_15, %c0_16] : memref<8x128x128xf32, #tpu.memory_space<vmem>>, vector<1x128x128xf32>
    %11 = vector.shape_cast %10 : vector<1x128x128xf32> to vector<128x128xf32>
    %12 = arith.mulf %11, %3 : vector<128x128xf32>
    %cst = arith.constant dense<0.000000e+00> : vector<128x4xf32>
    %13 = tpu.matmul %12, %4, %cst {dimension_numbers = #tpu.dot_dimension_numbers<[1], [0], [0], [1], [0, 0, 1, 1], [], []>} : vector<128x128xf32>, vector<128x4xf32>, vector<128x4xf32> -> vector<128x4xf32>
    %cst_17 = arith.constant 0.000000e+00 : f32
    %14 = vector.broadcast %cst_17 : f32 to vector<128x4xf32>
    %15 = arith.cmpf oge, %13, %14 : vector<128x4xf32>
    %cst_18 = arith.constant 0.00999999977 : f32
    %16 = vector.broadcast %cst_18 : f32 to vector<128x4xf32>
    %17 = arith.mulf %16, %13 : vector<128x4xf32>
    %18 = arith.select %15, %13, %17 : vector<128x4xi1>, vector<128x4xf32>
    %19 = vector.extract_strided_slice %6 {offsets = [0, 0], sizes = [1, 4], strides = [1, 1]} : vector<8x4xf32> to vector<1x4xf32>
    %20 = vector.broadcast %19 : vector<1x4xf32> to vector<128x4xf32>
    %21 = arith.mulf %18, %20 : vector<128x4xf32>
    %22 = arith.maximumf %7, %21 : vector<128x4xf32>
    %23 = arith.subf %7, %22 : vector<128x4xf32>
    %24 = math.exp %23 : vector<128x4xf32>
    %25 = arith.subf %21, %22 : vector<128x4xf32>
    %26 = math.exp %25 : vector<128x4xf32>
    %27 = arith.mulf %24, %8 : vector<128x4xf32>
    %28 = arith.addf %27, %26 : vector<128x4xf32>
    %cst_19 = arith.constant dense<0.000000e+00> : vector<128x128xf32>
    %29 = tpu.matmul %24, %5, %cst_19 {dimension_numbers = #tpu.dot_dimension_numbers<[1], [0], [0], [1], [0, 0, 1, 1], [], []>} : vector<128x4xf32>, vector<4x128xf32>, vector<128x128xf32> -> vector<128x128xf32>
    %cst_20 = arith.constant dense<0.000000e+00> : vector<128x128xf32>
    %30 = tpu.matmul %26, %5, %cst_20 {dimension_numbers = #tpu.dot_dimension_numbers<[1], [0], [0], [1], [0, 0, 1, 1], [], []>} : vector<128x4xf32>, vector<4x128xf32>, vector<128x128xf32> -> vector<128x128xf32>
    %31 = arith.mulf %29, %9 : vector<128x128xf32>
    %32 = arith.mulf %30, %11 : vector<128x128xf32>
    %33 = arith.addf %31, %32 : vector<128x128xf32>
    %c1 = arith.constant 1 : index
    %c0_21 = arith.constant 0 : index
    %c0_22 = arith.constant 0 : index
    %34 = vector.load %arg7[%c1, %c0_21, %c0_22] : memref<8x128x128xf32, #tpu.memory_space<vmem>>, vector<1x128x128xf32>
    %35 = vector.shape_cast %34 : vector<1x128x128xf32> to vector<128x128xf32>
    %36 = arith.mulf %35, %3 : vector<128x128xf32>
    %cst_23 = arith.constant dense<0.000000e+00> : vector<128x4xf32>
    %37 = tpu.matmul %36, %4, %cst_23 {dimension_numbers = #tpu.dot_dimension_numbers<[1], [0], [0], [1], [0, 0, 1, 1], [], []>} : vector<128x128xf32>, vector<128x4xf32>, vector<128x4xf32> -> vector<128x4xf32>
    %cst_24 = arith.constant 0.000000e+00 : f32
    %38 = vector.broadcast %cst_24 : f32 to vector<128x4xf32>
    %39 = arith.cmpf oge, %37, %38 : vector<128x4xf32>
    %cst_25 = arith.constant 0.00999999977 : f32
    %40 = vector.broadcast %cst_25 : f32 to vector<128x4xf32>
    %41 = arith.mulf %40, %37 : vector<128x4xf32>
    %42 = arith.select %39, %37, %41 : vector<128x4xi1>, vector<128x4xf32>
    %43 = vector.extract_strided_slice %6 {offsets = [1, 0], sizes = [1, 4], strides = [1, 1]} : vector<8x4xf32> to vector<1x4xf32>
    %44 = vector.broadcast %43 : vector<1x4xf32> to vector<128x4xf32>
    %45 = arith.mulf %42, %44 : vector<128x4xf32>
    %46 = arith.maximumf %22, %45 : vector<128x4xf32>
    %47 = arith.subf %22, %46 : vector<128x4xf32>
    %48 = math.exp %47 : vector<128x4xf32>
    %49 = arith.subf %45, %46 : vector<128x4xf32>
    %50 = math.exp %49 : vector<128x4xf32>
    %51 = arith.mulf %48, %28 : vector<128x4xf32>
    %52 = arith.addf %51, %50 : vector<128x4xf32>
    %cst_26 = arith.constant dense<0.000000e+00> : vector<128x128xf32>
    %53 = tpu.matmul %48, %5, %cst_26 {dimension_numbers = #tpu.dot_dimension_numbers<[1], [0], [0], [1], [0, 0, 1, 1], [], []>} : vector<128x4xf32>, vector<4x128xf32>, vector<128x128xf32> -> vector<128x128xf32>
    %cst_27 = arith.constant dense<0.000000e+00> : vector<128x128xf32>
    %54 = tpu.matmul %50, %5, %cst_27 {dimension_numbers = #tpu.dot_dimension_numbers<[1], [0], [0], [1], [0, 0, 1, 1], [], []>} : vector<128x4xf32>, vector<4x128xf32>, vector<128x128xf32> -> vector<128x128xf32>
    %55 = arith.mulf %53, %33 : vector<128x128xf32>
    %56 = arith.mulf %54, %35 : vector<128x128xf32>
    %57 = arith.addf %55, %56 : vector<128x128xf32>
    %c2 = arith.constant 2 : index
    %c0_28 = arith.constant 0 : index
    %c0_29 = arith.constant 0 : index
    %58 = vector.load %arg7[%c2, %c0_28, %c0_29] : memref<8x128x128xf32, #tpu.memory_space<vmem>>, vector<1x128x128xf32>
    %59 = vector.shape_cast %58 : vector<1x128x128xf32> to vector<128x128xf32>
    %60 = arith.mulf %59, %3 : vector<128x128xf32>
    %cst_30 = arith.constant dense<0.000000e+00> : vector<128x4xf32>
    %61 = tpu.matmul %60, %4, %cst_30 {dimension_numbers = #tpu.dot_dimension_numbers<[1], [0], [0], [1], [0, 0, 1, 1], [], []>} : vector<128x128xf32>, vector<128x4xf32>, vector<128x4xf32> -> vector<128x4xf32>
    %cst_31 = arith.constant 0.000000e+00 : f32
    %62 = vector.broadcast %cst_31 : f32 to vector<128x4xf32>
    %63 = arith.cmpf oge, %61, %62 : vector<128x4xf32>
    %cst_32 = arith.constant 0.00999999977 : f32
    %64 = vector.broadcast %cst_32 : f32 to vector<128x4xf32>
    %65 = arith.mulf %64, %61 : vector<128x4xf32>
    %66 = arith.select %63, %61, %65 : vector<128x4xi1>, vector<128x4xf32>
    %67 = vector.extract_strided_slice %6 {offsets = [2, 0], sizes = [1, 4], strides = [1, 1]} : vector<8x4xf32> to vector<1x4xf32>
    %68 = vector.broadcast %67 : vector<1x4xf32> to vector<128x4xf32>
    %69 = arith.mulf %66, %68 : vector<128x4xf32>
    %70 = arith.maximumf %46, %69 : vector<128x4xf32>
    %71 = arith.subf %46, %70 : vector<128x4xf32>
    %72 = math.exp %71 : vector<128x4xf32>
    %73 = arith.subf %69, %70 : vector<128x4xf32>
    %74 = math.exp %73 : vector<128x4xf32>
    %75 = arith.mulf %72, %52 : vector<128x4xf32>
    %76 = arith.addf %75, %74 : vector<128x4xf32>
    %cst_33 = arith.constant dense<0.000000e+00> : vector<128x128xf32>
    %77 = tpu.matmul %72, %5, %cst_33 {dimension_numbers = #tpu.dot_dimension_numbers<[1], [0], [0], [1], [0, 0, 1, 1], [], []>} : vector<128x4xf32>, vector<4x128xf32>, vector<128x128xf32> -> vector<128x128xf32>
    %cst_34 = arith.constant dense<0.000000e+00> : vector<128x128xf32>
    %78 = tpu.matmul %74, %5, %cst_34 {dimension_numbers = #tpu.dot_dimension_numbers<[1], [0], [0], [1], [0, 0, 1, 1], [], []>} : vector<128x4xf32>, vector<4x128xf32>, vector<128x128xf32> -> vector<128x128xf32>
    %79 = arith.mulf %77, %57 : vector<128x128xf32>
    %80 = arith.mulf %78, %59 : vector<128x128xf32>
    %81 = arith.addf %79, %80 : vector<128x128xf32>
    %c3 = arith.constant 3 : index
    %c0_35 = arith.constant 0 : index
    %c0_36 = arith.constant 0 : index
    %82 = vector.load %arg7[%c3, %c0_35, %c0_36] : memref<8x128x128xf32, #tpu.memory_space<vmem>>, vector<1x128x128xf32>
    %83 = vector.shape_cast %82 : vector<1x128x128xf32> to vector<128x128xf32>
    %84 = arith.mulf %83, %3 : vector<128x128xf32>
    %cst_37 = arith.constant dense<0.000000e+00> : vector<128x4xf32>
    %85 = tpu.matmul %84, %4, %cst_37 {dimension_numbers = #tpu.dot_dimension_numbers<[1], [0], [0], [1], [0, 0, 1, 1], [], []>} : vector<128x128xf32>, vector<128x4xf32>, vector<128x4xf32> -> vector<128x4xf32>
    %cst_38 = arith.constant 0.000000e+00 : f32
    %86 = vector.broadcast %cst_38 : f32 to vector<128x4xf32>
    %87 = arith.cmpf oge, %85, %86 : vector<128x4xf32>
    %cst_39 = arith.constant 0.00999999977 : f32
    %88 = vector.broadcast %cst_39 : f32 to vector<128x4xf32>
    %89 = arith.mulf %88, %85 : vector<128x4xf32>
    %90 = arith.select %87, %85, %89 : vector<128x4xi1>, vector<128x4xf32>
    %91 = vector.extract_strided_slice %6 {offsets = [3, 0], sizes = [1, 4], strides = [1, 1]} : vector<8x4xf32> to vector<1x4xf32>
    %92 = vector.broadcast %91 : vector<1x4xf32> to vector<128x4xf32>
    %93 = arith.mulf %90, %92 : vector<128x4xf32>
    %94 = arith.maximumf %70, %93 : vector<128x4xf32>
    %95 = arith.subf %70, %94 : vector<128x4xf32>
    %96 = math.exp %95 : vector<128x4xf32>
    %97 = arith.subf %93, %94 : vector<128x4xf32>
    %98 = math.exp %97 : vector<128x4xf32>
    %99 = arith.mulf %96, %76 : vector<128x4xf32>
    %100 = arith.addf %99, %98 : vector<128x4xf32>
    %cst_40 = arith.constant dense<0.000000e+00> : vector<128x128xf32>
    %101 = tpu.matmul %96, %5, %cst_40 {dimension_numbers = #tpu.dot_dimension_numbers<[1], [0], [0], [1], [0, 0, 1, 1], [], []>} : vector<128x4xf32>, vector<4x128xf32>, vector<128x128xf32> -> vector<128x128xf32>
    %cst_41 = arith.constant dense<0.000000e+00> : vector<128x128xf32>
    %102 = tpu.matmul %98, %5, %cst_41 {dimension_numbers = #tpu.dot_dimension_numbers<[1], [0], [0], [1], [0, 0, 1, 1], [], []>} : vector<128x4xf32>, vector<4x128xf32>, vector<128x128xf32> -> vector<128x128xf32>
    %103 = arith.mulf %101, %81 : vector<128x128xf32>
    %104 = arith.mulf %102, %83 : vector<128x128xf32>
    %105 = arith.addf %103, %104 : vector<128x128xf32>
    %c4 = arith.constant 4 : index
    %c0_42 = arith.constant 0 : index
    %c0_43 = arith.constant 0 : index
    %106 = vector.load %arg7[%c4, %c0_42, %c0_43] : memref<8x128x128xf32, #tpu.memory_space<vmem>>, vector<1x128x128xf32>
    %107 = vector.shape_cast %106 : vector<1x128x128xf32> to vector<128x128xf32>
    %108 = arith.mulf %107, %3 : vector<128x128xf32>
    %cst_44 = arith.constant dense<0.000000e+00> : vector<128x4xf32>
    %109 = tpu.matmul %108, %4, %cst_44 {dimension_numbers = #tpu.dot_dimension_numbers<[1], [0], [0], [1], [0, 0, 1, 1], [], []>} : vector<128x128xf32>, vector<128x4xf32>, vector<128x4xf32> -> vector<128x4xf32>
    %cst_45 = arith.constant 0.000000e+00 : f32
    %110 = vector.broadcast %cst_45 : f32 to vector<128x4xf32>
    %111 = arith.cmpf oge, %109, %110 : vector<128x4xf32>
    %cst_46 = arith.constant 0.00999999977 : f32
    %112 = vector.broadcast %cst_46 : f32 to vector<128x4xf32>
    %113 = arith.mulf %112, %109 : vector<128x4xf32>
    %114 = arith.select %111, %109, %113 : vector<128x4xi1>, vector<128x4xf32>
    %115 = vector.extract_strided_slice %6 {offsets = [4, 0], sizes = [1, 4], strides = [1, 1]} : vector<8x4xf32> to vector<1x4xf32>
    %116 = vector.broadcast %115 : vector<1x4xf32> to vector<128x4xf32>
    %117 = arith.mulf %114, %116 : vector<128x4xf32>
    %118 = arith.maximumf %94, %117 : vector<128x4xf32>
    %119 = arith.subf %94, %118 : vector<128x4xf32>
    %120 = math.exp %119 : vector<128x4xf32>
    %121 = arith.subf %117, %118 : vector<128x4xf32>
    %122 = math.exp %121 : vector<128x4xf32>
    %123 = arith.mulf %120, %100 : vector<128x4xf32>
    %124 = arith.addf %123, %122 : vector<128x4xf32>
    %cst_47 = arith.constant dense<0.000000e+00> : vector<128x128xf32>
    %125 = tpu.matmul %120, %5, %cst_47 {dimension_numbers = #tpu.dot_dimension_numbers<[1], [0], [0], [1], [0, 0, 1, 1], [], []>} : vector<128x4xf32>, vector<4x128xf32>, vector<128x128xf32> -> vector<128x128xf32>
    %cst_48 = arith.constant dense<0.000000e+00> : vector<128x128xf32>
    %126 = tpu.matmul %122, %5, %cst_48 {dimension_numbers = #tpu.dot_dimension_numbers<[1], [0], [0], [1], [0, 0, 1, 1], [], []>} : vector<128x4xf32>, vector<4x128xf32>, vector<128x128xf32> -> vector<128x128xf32>
    %127 = arith.mulf %125, %105 : vector<128x128xf32>
    %128 = arith.mulf %126, %107 : vector<128x128xf32>
    %129 = arith.addf %127, %128 : vector<128x128xf32>
    %c5 = arith.constant 5 : index
    %c0_49 = arith.constant 0 : index
    %c0_50 = arith.constant 0 : index
    %130 = vector.load %arg7[%c5, %c0_49, %c0_50] : memref<8x128x128xf32, #tpu.memory_space<vmem>>, vector<1x128x128xf32>
    %131 = vector.shape_cast %130 : vector<1x128x128xf32> to vector<128x128xf32>
    %132 = arith.mulf %131, %3 : vector<128x128xf32>
    %cst_51 = arith.constant dense<0.000000e+00> : vector<128x4xf32>
    %133 = tpu.matmul %132, %4, %cst_51 {dimension_numbers = #tpu.dot_dimension_numbers<[1], [0], [0], [1], [0, 0, 1, 1], [], []>} : vector<128x128xf32>, vector<128x4xf32>, vector<128x4xf32> -> vector<128x4xf32>
    %cst_52 = arith.constant 0.000000e+00 : f32
    %134 = vector.broadcast %cst_52 : f32 to vector<128x4xf32>
    %135 = arith.cmpf oge, %133, %134 : vector<128x4xf32>
    %cst_53 = arith.constant 0.00999999977 : f32
    %136 = vector.broadcast %cst_53 : f32 to vector<128x4xf32>
    %137 = arith.mulf %136, %133 : vector<128x4xf32>
    %138 = arith.select %135, %133, %137 : vector<128x4xi1>, vector<128x4xf32>
    %139 = vector.extract_strided_slice %6 {offsets = [5, 0], sizes = [1, 4], strides = [1, 1]} : vector<8x4xf32> to vector<1x4xf32>
    %140 = vector.broadcast %139 : vector<1x4xf32> to vector<128x4xf32>
    %141 = arith.mulf %138, %140 : vector<128x4xf32>
    %142 = arith.maximumf %118, %141 : vector<128x4xf32>
    %143 = arith.subf %118, %142 : vector<128x4xf32>
    %144 = math.exp %143 : vector<128x4xf32>
    %145 = arith.subf %141, %142 : vector<128x4xf32>
    %146 = math.exp %145 : vector<128x4xf32>
    %147 = arith.mulf %144, %124 : vector<128x4xf32>
    %148 = arith.addf %147, %146 : vector<128x4xf32>
    %cst_54 = arith.constant dense<0.000000e+00> : vector<128x128xf32>
    %149 = tpu.matmul %144, %5, %cst_54 {dimension_numbers = #tpu.dot_dimension_numbers<[1], [0], [0], [1], [0, 0, 1, 1], [], []>} : vector<128x4xf32>, vector<4x128xf32>, vector<128x128xf32> -> vector<128x128xf32>
    %cst_55 = arith.constant dense<0.000000e+00> : vector<128x128xf32>
    %150 = tpu.matmul %146, %5, %cst_55 {dimension_numbers = #tpu.dot_dimension_numbers<[1], [0], [0], [1], [0, 0, 1, 1], [], []>} : vector<128x4xf32>, vector<4x128xf32>, vector<128x128xf32> -> vector<128x128xf32>
    %151 = arith.mulf %149, %129 : vector<128x128xf32>
    %152 = arith.mulf %150, %131 : vector<128x128xf32>
    %153 = arith.addf %151, %152 : vector<128x128xf32>
    %c6 = arith.constant 6 : index
    %c0_56 = arith.constant 0 : index
    %c0_57 = arith.constant 0 : index
    %154 = vector.load %arg7[%c6, %c0_56, %c0_57] : memref<8x128x128xf32, #tpu.memory_space<vmem>>, vector<1x128x128xf32>
    %155 = vector.shape_cast %154 : vector<1x128x128xf32> to vector<128x128xf32>
    %156 = arith.mulf %155, %3 : vector<128x128xf32>
    %cst_58 = arith.constant dense<0.000000e+00> : vector<128x4xf32>
    %157 = tpu.matmul %156, %4, %cst_58 {dimension_numbers = #tpu.dot_dimension_numbers<[1], [0], [0], [1], [0, 0, 1, 1], [], []>} : vector<128x128xf32>, vector<128x4xf32>, vector<128x4xf32> -> vector<128x4xf32>
    %cst_59 = arith.constant 0.000000e+00 : f32
    %158 = vector.broadcast %cst_59 : f32 to vector<128x4xf32>
    %159 = arith.cmpf oge, %157, %158 : vector<128x4xf32>
    %cst_60 = arith.constant 0.00999999977 : f32
    %160 = vector.broadcast %cst_60 : f32 to vector<128x4xf32>
    %161 = arith.mulf %160, %157 : vector<128x4xf32>
    %162 = arith.select %159, %157, %161 : vector<128x4xi1>, vector<128x4xf32>
    %163 = vector.extract_strided_slice %6 {offsets = [6, 0], sizes = [1, 4], strides = [1, 1]} : vector<8x4xf32> to vector<1x4xf32>
    %164 = vector.broadcast %163 : vector<1x4xf32> to vector<128x4xf32>
    %165 = arith.mulf %162, %164 : vector<128x4xf32>
    %166 = arith.maximumf %142, %165 : vector<128x4xf32>
    %167 = arith.subf %142, %166 : vector<128x4xf32>
    %168 = math.exp %167 : vector<128x4xf32>
    %169 = arith.subf %165, %166 : vector<128x4xf32>
    %170 = math.exp %169 : vector<128x4xf32>
    %171 = arith.mulf %168, %148 : vector<128x4xf32>
    %172 = arith.addf %171, %170 : vector<128x4xf32>
    %cst_61 = arith.constant dense<0.000000e+00> : vector<128x128xf32>
    %173 = tpu.matmul %168, %5, %cst_61 {dimension_numbers = #tpu.dot_dimension_numbers<[1], [0], [0], [1], [0, 0, 1, 1], [], []>} : vector<128x4xf32>, vector<4x128xf32>, vector<128x128xf32> -> vector<128x128xf32>
    %cst_62 = arith.constant dense<0.000000e+00> : vector<128x128xf32>
    %174 = tpu.matmul %170, %5, %cst_62 {dimension_numbers = #tpu.dot_dimension_numbers<[1], [0], [0], [1], [0, 0, 1, 1], [], []>} : vector<128x4xf32>, vector<4x128xf32>, vector<128x128xf32> -> vector<128x128xf32>
    %175 = arith.mulf %173, %153 : vector<128x128xf32>
    %176 = arith.mulf %174, %155 : vector<128x128xf32>
    %177 = arith.addf %175, %176 : vector<128x128xf32>
    %c7 = arith.constant 7 : index
    %c0_63 = arith.constant 0 : index
    %c0_64 = arith.constant 0 : index
    %178 = vector.load %arg7[%c7, %c0_63, %c0_64] : memref<8x128x128xf32, #tpu.memory_space<vmem>>, vector<1x128x128xf32>
    %179 = vector.shape_cast %178 : vector<1x128x128xf32> to vector<128x128xf32>
    %180 = arith.mulf %179, %3 : vector<128x128xf32>
    %cst_65 = arith.constant dense<0.000000e+00> : vector<128x4xf32>
    %181 = tpu.matmul %180, %4, %cst_65 {dimension_numbers = #tpu.dot_dimension_numbers<[1], [0], [0], [1], [0, 0, 1, 1], [], []>} : vector<128x128xf32>, vector<128x4xf32>, vector<128x4xf32> -> vector<128x4xf32>
    %cst_66 = arith.constant 0.000000e+00 : f32
    %182 = vector.broadcast %cst_66 : f32 to vector<128x4xf32>
    %183 = arith.cmpf oge, %181, %182 : vector<128x4xf32>
    %cst_67 = arith.constant 0.00999999977 : f32
    %184 = vector.broadcast %cst_67 : f32 to vector<128x4xf32>
    %185 = arith.mulf %184, %181 : vector<128x4xf32>
    %186 = arith.select %183, %181, %185 : vector<128x4xi1>, vector<128x4xf32>
    %187 = vector.extract_strided_slice %6 {offsets = [7, 0], sizes = [1, 4], strides = [1, 1]} : vector<8x4xf32> to vector<1x4xf32>
    %188 = vector.broadcast %187 : vector<1x4xf32> to vector<128x4xf32>
    %189 = arith.mulf %186, %188 : vector<128x4xf32>
    %190 = arith.maximumf %166, %189 : vector<128x4xf32>
    %191 = arith.subf %166, %190 : vector<128x4xf32>
    %192 = math.exp %191 : vector<128x4xf32>
    %193 = arith.subf %189, %190 : vector<128x4xf32>
    %194 = math.exp %193 : vector<128x4xf32>
    %195 = arith.mulf %192, %172 : vector<128x4xf32>
    %196 = arith.addf %195, %194 : vector<128x4xf32>
    %cst_68 = arith.constant dense<0.000000e+00> : vector<128x128xf32>
    %197 = tpu.matmul %192, %5, %cst_68 {dimension_numbers = #tpu.dot_dimension_numbers<[1], [0], [0], [1], [0, 0, 1, 1], [], []>} : vector<128x4xf32>, vector<4x128xf32>, vector<128x128xf32> -> vector<128x128xf32>
    %cst_69 = arith.constant dense<0.000000e+00> : vector<128x128xf32>
    %198 = tpu.matmul %194, %5, %cst_69 {dimension_numbers = #tpu.dot_dimension_numbers<[1], [0], [0], [1], [0, 0, 1, 1], [], []>} : vector<128x4xf32>, vector<4x128xf32>, vector<128x128xf32> -> vector<128x128xf32>
    %199 = arith.mulf %197, %177 : vector<128x128xf32>
    %200 = arith.mulf %198, %179 : vector<128x128xf32>
    %201 = arith.addf %199, %200 : vector<128x128xf32>
    %c0_70 = arith.constant 0 : index
    %c0_71 = arith.constant 0 : index
    %202 = vector.load %arg11[%c0_70, %c0_71] : memref<128x4xf32, #tpu.memory_space<vmem>>, vector<128x4xf32>
    tpu.vector_store %arg11[%c0_70, %c0_71], %190 {strides = array<i32>} : memref<128x4xf32, #tpu.memory_space<vmem>>, vector<128x4xf32>,
    %c0_72 = arith.constant 0 : index
    %c0_73 = arith.constant 0 : index
    %203 = vector.load %arg12[%c0_72, %c0_73] : memref<128x4xf32, #tpu.memory_space<vmem>>, vector<128x4xf32>
    tpu.vector_store %arg12[%c0_72, %c0_73], %196 {strides = array<i32>} : memref<128x4xf32, #tpu.memory_space<vmem>>, vector<128x4xf32>,
    %c0_74 = arith.constant 0 : index
    %c0_75 = arith.constant 0 : index
    %204 = vector.load %arg13[%c0_74, %c0_75] : memref<128x128xf32, #tpu.memory_space<vmem>>, vector<128x128xf32>
    tpu.vector_store %arg13[%c0_74, %c0_75], %201 {strides = array<i32>} : memref<128x128xf32, #tpu.memory_space<vmem>>, vector<128x128xf32>,
    %c1_i32 = arith.constant 1 : i32
    %205 = arith.cmpi eq, %arg1, %c1_i32 : i32
    %206 = arith.extui %205 : i1 to i32
    %c0_i32_76 = arith.constant 0 : i32
    %207 = arith.cmpi ne, %206, %c0_i32_76 : i32
    scf.if %207 {
      %c0_77 = arith.constant 0 : index
      %c0_78 = arith.constant 0 : index
      %208 = vector.load %arg12[%c0_77, %c0_78] : memref<128x4xf32, #tpu.memory_space<vmem>>, vector<128x4xf32>
      %cst_79 = arith.constant 1.000000e+00 : f32
      %209 = vector.broadcast %cst_79 : f32 to vector<128x4xf32>
      %210 = arith.divf %209, %208 : vector<128x4xf32>
      %cst_80 = arith.constant dense<0.000000e+00> : vector<128x128xf32>
      %211 = tpu.matmul %210, %5, %cst_80 {dimension_numbers = #tpu.dot_dimension_numbers<[1], [0], [0], [1], [0, 0, 1, 1], [], []>} : vector<128x4xf32>, vector<4x128xf32>, vector<128x128xf32> -> vector<128x128xf32>
      %c0_81 = arith.constant 0 : index
      %c0_82 = arith.constant 0 : index
      %212 = vector.load %arg13[%c0_81, %c0_82] : memref<128x128xf32, #tpu.memory_space<vmem>>, vector<128x128xf32>
      %213 = arith.mulf %212, %211 : vector<128x128xf32>
      %c0_83 = arith.constant 0 : index
      %c0_84 = arith.constant 0 : index
      %214 = vector.load %arg8[%c0_83, %c0_84] : memref<128x128xf32, #tpu.memory_space<vmem>>, vector<128x128xf32>
      %cst_85 = arith.constant dense<0.000000e+00> : vector<128x128xf32>
      %215 = tpu.matmul %213, %214, %cst_85 {dimension_numbers = #tpu.dot_dimension_numbers<[1], [0], [0], [1], [0, 0, 1, 1], [], []>} : vector<128x128xf32>, vector<128x128xf32>, vector<128x128xf32> -> vector<128x128xf32>
      %cst_86 = arith.constant 0.000000e+00 : f32
      %216 = vector.broadcast %cst_86 : f32 to vector<128x128xf32>
      %217 = arith.cmpf oge, %215, %216 : vector<128x128xf32>
      %cst_87 = arith.constant 0.00999999977 : f32
      %218 = vector.broadcast %cst_87 : f32 to vector<128x128xf32>
      %219 = arith.mulf %218, %215 : vector<128x128xf32>
      %220 = arith.select %217, %215, %219 : vector<128x128xi1>, vector<128x128xf32>
      %c0_88 = arith.constant 0 : index
      %c0_89 = arith.constant 0 : index
      %221 = vector.load %arg9[%c0_88, %c0_89] : memref<128x128xf32, #tpu.memory_space<vmem>>, vector<128x128xf32>
      tpu.vector_store %arg9[%c0_88, %c0_89], %220 {strides = array<i32>} : memref<128x128xf32, #tpu.memory_space<vmem>>, vector<128x128xf32>,
    } else {
    }
    return
  }
  func.func @transform_0(%arg0: i32, %arg1: i32) -> (i32, i32) {
    %c0_i32 = arith.constant 0 : i32
    %c0_i32_0 = arith.constant 0 : i32
    return %arg1, %c0_i32 : i32, i32
  }
  func.func @transform_1(%arg0: i32, %arg1: i32) -> (i32, i32) {
    %c0_i32 = arith.constant 0 : i32
    %c0_i32_0 = arith.constant 0 : i32
    return %arg0, %c0_i32 : i32, i32
  }
  func.func @transform_2(%arg0: i32, %arg1: i32) -> (i32, i32) {
    %c0_i32 = arith.constant 0 : i32
    %c0_i32_0 = arith.constant 0 : i32
    %c0_i32_1 = arith.constant 0 : i32
    return %c0_i32, %c0_i32_0 : i32, i32
  }
  func.func @transform_3(%arg0: i32, %arg1: i32) -> (i32, i32) {
    %c0_i32 = arith.constant 0 : i32
    %c0_i32_0 = arith.constant 0 : i32
    %c0_i32_1 = arith.constant 0 : i32
    return %c0_i32, %c0_i32_0 : i32, i32
  }
  func.func @transform_4(%arg0: i32, %arg1: i32) -> (i32, i32) {
    %c0_i32 = arith.constant 0 : i32
    %c0_i32_0 = arith.constant 0 : i32
    %c0_i32_1 = arith.constant 0 : i32
    return %c0_i32, %c0_i32_0 : i32, i32
  }
  func.func @transform_5(%arg0: i32, %arg1: i32) -> (i32, i32, i32) {
    %c0_i32 = arith.constant 0 : i32
    %c0_i32_0 = arith.constant 0 : i32
    return %arg1, %arg0, %c0_i32 : i32, i32, i32
  }
  func.func @transform_6(%arg0: i32, %arg1: i32) -> (i32, i32) {
    %c0_i32 = arith.constant 0 : i32
    %c0_i32_0 = arith.constant 0 : i32
    %c0_i32_1 = arith.constant 0 : i32
    return %c0_i32, %c0_i32_0 : i32, i32
  }
  func.func @transform_7(%arg0: i32, %arg1: i32) -> (i32, i32) {
    %c0_i32 = arith.constant 0 : i32
    %c0_i32_0 = arith.constant 0 : i32
    return %arg0, %c0_i32 : i32, i32
  }
}

</mosaic_0001>

<bundles_post_ra>
// kernel: _lambda_.1
= control target key start
LH: loop header
LB: loop body
LE: loop exit
PB: predicated region body
PF: predicated region fallthrough
CT: control target
= control target key end

     0   :  { %s11647_s24 = smov 0   ;;  %s11649_s25 = smov 0   ;;  %s15571_s0 = inlined_call_operand.vmem [shape: f32[16,4], index: 0, kind: input, shape index: {}]   ;;  %s15572_s1 = inlined_call_operand.vmem [shape: f32[256,32], index: 1, kind: input, shape index: {}]   ;;  %s15573_s2 = inlined_call_operand.vmem [shape: f32[32,128], index: 2, kind: input, shape index: {}]   ;;  %s15574_s3 = inlined_call_operand.vmem [shape: f32[128,4], index: 3, kind: input, shape index: {}]   ;;  %s15575_s4 = inlined_call_operand.vmem [shape: f32[4,128], index: 4, kind: input, shape index: {}]   ;;  %s15576_s5 = inlined_call_operand.vmem [shape: f32[16,256,128], index: 5, kind: input, shape index: {}]   ;;  %s15577_s6 = inlined_call_operand.vmem [shape: f32[128,128], index: 6, kind: input, shape index: {}]   ;;  %s15578_s7 = inlined_call_operand.vmem [shape: f32[256,128], index: 7, kind: output, shape index: {}]  }
   0x1   :  { %s11651_s26 = smov 0   ;;  %s11653_s27 = smov 0  }
   0x2   :  { %s11655_s28 = smov 0   ;;  %s11657_s29 = smov 0  }
   0x3   :  { %s11659_s30 = smov 0  }
   0x4 LB: > { %s26_s8 = sadd.s32 1, %s11595_s28  ;;  %s29_s9 = sadd.s32 1, %s11599_s29  ;;  %s11603_s30 = sphi %s11659_s30, %s17_s30   ;;  %s11599_s29 = sphi %s11657_s29, %s16306_s29   ;;  %s11595_s28 = sphi %s11655_s28, %s16305_s28   ;;  %s11591_s27 = sphi %s11653_s27, %s16304_s27   ;;  %s11587_s26 = sphi %s11651_s26, %s16303_s26   ;;  %s11583_s25 = sphi %s11649_s25, %s16302_s25   ;;  %s11579_s24 = sphi %s11647_s24, %s16301_s24  }
   0x5   : > { %p27_p0 = scmp.ge.s32.totalorder %s26_s8, 2  ;;  %p160_p1 = scmp.ne.s32.totalorder %s11583_s25, %s11579_s24 }
   0x6   : > { %p161_p2 = scmp.eq.s32.totalorder %s11603_s30, 0  ;;  %s153_s13 = sadd.s32 1, %s11583_s25 }
   0x7   : > { %s16308_s8 = smov (%p27_p0, %s26_s8), 0  ;;  %s16310_s9 = smov (!%p27_p0, %s29_s9), %s11599_s29 }
   0x8   : > { %p162_p3 = por %p161_p2, %p160_p1  ;;  %p31_p4 = scmp.ge.s32.totalorder %s16310_s9, 2 }
   0x9   : > { %s148_s10 = ssub.s32 %s11595_s28, %s16308_s8  ;;  %p8496_p6 = scmp.ge.s32.totalorder %s11603_s30, 4 }
   0xa   : > { %s16312_s9 = smov (%p31_p4, %s16310_s9), 0 }
   0xb   : > { %s149_s11 = ssub.s32 %s11599_s29, %s16312_s9  ;;  %245 = sbr.rel (%p8496_p6) target bundleno = 89 (0x59), region = 32 }
   0xc   : > { %s150_s12 = sor.u32 %s149_s11, %s148_s10 }
   0xd   : > { %p151_p5 = scmp.eq.s32.totalorder %s150_s12, 0 }
   0xf   : > { %s11698_s14 = scalar_select %p151_p5, %s11583_s25, %s153_s13  }
  0x12   : > { %264 = sbr.rel (!%p162_p3) target bundleno = 89 (0x59), region = 44  ;;  %s266_s15 = sand.u32 (%p162_p3), 1, %s11583_s25  }
  0x13   : > { %s8499_s16 = sshll.u32 (%p162_p3), %s11599_s29, 4  ;;  %s8497_s17 = sshll.u32 (%p162_p3), %s266_s15, 10 }
  0x14   : > { %s8930_s18 = sshll.u32 (%p162_p3), %s11595_s28, 8  ;;  %s11712_s10 = scalar_lea.vmem (%p162_p3), [#allocation6], %s8497_s17 }
  0x15   : > { %s272_s19 = sadd.s32 (%p162_p3), %s8930_s18, %s8499_s16 }
  0x16   : > { %s8501_s20 = sshll.u32 (%p162_p3), %s272_s19, 3 }
  0x17   : > { %s11707_s23 = scalar_lea.vmem (%p162_p3), %s15576_s5, %s8501_s20 }
  0x18   : > { %v556_v0 = vld [vmem:[%s11707_s23] sm:$0xff] (%p162_p3)  ;;  %v558_v1 = vld [vmem:[%s11707_s23 + $0x8] sm:$0xff] (%p162_p3)  ;;  %v560_v2 = vld [vmem:[%s11707_s23 + $0x10] sm:$0xff] (%p162_p3) }
  0x19   : > { %557 = vst [vmem:[%s11712_s10] sm:$0xff] %v556_v0  ;;  %559 = vst [vmem:[%s11712_s10 + $0x8] sm:$0xff] %v558_v1  ;;  %v562_v3 = vld [vmem:[%s11707_s23 + $0x18] sm:$0xff]  ;;  %v564_v4 = vld [vmem:[%s11707_s23 + $0x20] sm:$0xff] }
  0x1a   : > { %561 = vst [vmem:[%s11712_s10 + $0x10] sm:$0xff] %v560_v2  ;;  %v566_v5 = vld [vmem:[%s11707_s23 + $0x28] sm:$0xff]  ;;  %563 = vst [vmem:[%s11712_s10 + $0x18] sm:$0xff] %v562_v3  ;;  %v568_v6 = vld [vmem:[%s11707_s23 + $0x30] sm:$0xff] }
  0x1b   : > { %565 = vst [vmem:[%s11712_s10 + $0x20] sm:$0xff] %v564_v4  ;;  %567 = vst [vmem:[%s11712_s10 + $0x28] sm:$0xff] %v566_v5  ;;  %v570_v7 = vld [vmem:[%s11707_s23 + $0x38] sm:$0xff]  ;;  %v572_v8 = vld [vmem:[%s11707_s23 + $0x40] sm:$0xff] }
  0x1c   : > { %569 = vst [vmem:[%s11712_s10 + $0x30] sm:$0xff] %v568_v6  ;;  %571 = vst [vmem:[%s11712_s10 + $0x38] sm:$0xff] %v570_v7  ;;  %v574_v9 = vld [vmem:[%s11707_s23 + $0x48] sm:$0xff]  ;;  %v576_v10 = vld [vmem:[%s11707_s23 + $0x50] sm:$0xff] }
  0x1d   : > { %573 = vst [vmem:[%s11712_s10 + $0x40] sm:$0xff] %v572_v8  ;;  %v578_v11 = vld [vmem:[%s11707_s23 + $0x58] sm:$0xff]  ;;  %575 = vst [vmem:[%s11712_s10 + $0x48] sm:$0xff] %v574_v9  ;;  %v580_v12 = vld [vmem:[%s11707_s23 + $0x60] sm:$0xff] }
  0x1e   : > { %577 = vst [vmem:[%s11712_s10 + $0x50] sm:$0xff] %v576_v10  ;;  %579 = vst [vmem:[%s11712_s10 + $0x58] sm:$0xff] %v578_v11  ;;  %v582_v13 = vld [vmem:[%s11707_s23 + $0x68] sm:$0xff]  ;;  %v584_v14 = vld [vmem:[%s11707_s23 + $0x70] sm:$0xff] }
  0x1f   : > { %581 = vst [vmem:[%s11712_s10 + $0x60] sm:$0xff] %v580_v12  ;;  %583 = vst [vmem:[%s11712_s10 + $0x68] sm:$0xff] %v582_v13  ;;  %v586_v15 = vld [vmem:[%s11707_s23 + $0x78] sm:$0xff]  ;;  %v588_v16 = vld [vmem:[%s11707_s23 + $0x100] sm:$0xff] }
  0x20   : > { %585 = vst [vmem:[%s11712_s10 + $0x70] sm:$0xff] %v584_v14  ;;  %v590_v17 = vld [vmem:[%s11707_s23 + $0x108] sm:$0xff]  ;;  %587 = vst [vmem:[%s11712_s10 + $0x78] sm:$0xff] %v586_v15  ;;  %v592_v18 = vld [vmem:[%s11707_s23 + $0x110] sm:$0xff] }
  0x21   : > { %589 = vst [vmem:[%s11712_s10 + $0x80] sm:$0xff] %v588_v16  ;;  %591 = vst [vmem:[%s11712_s10 + $0x88] sm:$0xff] %v590_v17  ;;  %v594_v19 = vld [vmem:[%s11707_s23 + $0x118] sm:$0xff]  ;;  %v596_v20 = vld [vmem:[%s11707_s23 + $0x120] sm:$0xff] }
  0x22   : > { %593 = vst [vmem:[%s11712_s10 + $0x90] sm:$0xff] %v592_v18  ;;  %595 = vst [vmem:[%s11712_s10 + $0x98] sm:$0xff] %v594_v19  ;;  %v598_v21 = vld [vmem:[%s11707_s23 + $0x128] sm:$0xff]  ;;  %v600_v22 = vld [vmem:[%s11707_s23 + $0x130] sm:$0xff] }
  0x23   : > { %597 = vst [vmem:[%s11712_s10 + $0xa0] sm:$0xff] %v596_v20  ;;  %v602_v23 = vld [vmem:[%s11707_s23 + $0x138] sm:$0xff]  ;;  %599 = vst [vmem:[%s11712_s10 + $0xa8] sm:$0xff] %v598_v21  ;;  %v604_v24 = vld [vmem:[%s11707_s23 + $0x140] sm:$0xff] }
  0x24   : > { %601 = vst [vmem:[%s11712_s10 + $0xb0] sm:$0xff] %v600_v22  ;;  %603 = vst [vmem:[%s11712_s10 + $0xb8] sm:$0xff] %v602_v23  ;;  %v606_v25 = vld [vmem:[%s11707_s23 + $0x148] sm:$0xff]  ;;  %v608_v26 = vld [vmem:[%s11707_s23 + $0x150] sm:$0xff] }
  0x25   : > { %605 = vst [vmem:[%s11712_s10 + $0xc0] sm:$0xff] %v604_v24  ;;  %607 = vst [vmem:[%s11712_s10 + $0xc8] sm:$0xff] %v606_v25  ;;  %v610_v27 = vld [vmem:[%s11707_s23 + $0x158] sm:$0xff]  ;;  %v612_v28 = vld [vmem:[%s11707_s23 + $0x160] sm:$0xff] }
  0x26   : > { %609 = vst [vmem:[%s11712_s10 + $0xd0] sm:$0xff] %v608_v26  ;;  %v614_v29 = vld [vmem:[%s11707_s23 + $0x168] sm:$0xff]  ;;  %611 = vst [vmem:[%s11712_s10 + $0xd8] sm:$0xff] %v610_v27  ;;  %v616_v30 = vld [vmem:[%s11707_s23 + $0x170] sm:$0xff] }
  0x27   : > { %613 = vst [vmem:[%s11712_s10 + $0xe0] sm:$0xff] %v612_v28  ;;  %615 = vst [vmem:[%s11712_s10 + $0xe8] sm:$0xff] %v614_v29  ;;  %v618_v31 = vld [vmem:[%s11707_s23 + $0x178] sm:$0xff]  ;;  %v620_v32 = vld [vmem:[%s11707_s23 + $0x200] sm:$0xff] }
  0x28   : > { %617 = vst [vmem:[%s11712_s10 + $0xf0] sm:$0xff] %v616_v30  ;;  %619 = vst [vmem:[%s11712_s10 + $0xf8] sm:$0xff] %v618_v31  ;;  %v622_v33 = vld [vmem:[%s11707_s23 + $0x208] sm:$0xff]  ;;  %v624_v34 = vld [vmem:[%s11707_s23 + $0x210] sm:$0xff] }
  0x29   : > { %621 = vst [vmem:[%s11712_s10 + $0x100] sm:$0xff] %v620_v32  ;;  %v626_v35 = vld [vmem:[%s11707_s23 + $0x218] sm:$0xff]  ;;  %623 = vst [vmem:[%s11712_s10 + $0x108] sm:$0xff] %v622_v33  ;;  %v628_v36 = vld [vmem:[%s11707_s23 + $0x220] sm:$0xff] }
  0x2a   : > { %625 = vst [vmem:[%s11712_s10 + $0x110] sm:$0xff] %v624_v34  ;;  %627 = vst [vmem:[%s11712_s10 + $0x118] sm:$0xff] %v626_v35  ;;  %v630_v37 = vld [vmem:[%s11707_s23 + $0x228] sm:$0xff]  ;;  %v632_v38 = vld [vmem:[%s11707_s23 + $0x230] sm:$0xff] }
  0x2b   : > { %629 = vst [vmem:[%s11712_s10 + $0x120] sm:$0xff] %v628_v36  ;;  %631 = vst [vmem:[%s11712_s10 + $0x128] sm:$0xff] %v630_v37  ;;  %v634_v39 = vld [vmem:[%s11707_s23 + $0x238] sm:$0xff]  ;;  %v636_v40 = vld [vmem:[%s11707_s23 + $0x240] sm:$0xff] }
  0x2c   : > { %633 = vst [vmem:[%s11712_s10 + $0x130] sm:$0xff] %v632_v38  ;;  %v638_v41 = vld [vmem:[%s11707_s23 + $0x248] sm:$0xff]  ;;  %635 = vst [vmem:[%s11712_s10 + $0x138] sm:$0xff] %v634_v39  ;;  %v640_v42 = vld [vmem:[%s11707_s23 + $0x250] sm:$0xff] }
  0x2d   : > { %637 = vst [vmem:[%s11712_s10 + $0x140] sm:$0xff] %v636_v40  ;;  %639 = vst [vmem:[%s11712_s10 + $0x148] sm:$0xff] %v638_v41  ;;  %v642_v43 = vld [vmem:[%s11707_s23 + $0x258] sm:$0xff]  ;;  %v644_v44 = vld [vmem:[%s11707_s23 + $0x260] sm:$0xff] }
  0x2e   : > { %641 = vst [vmem:[%s11712_s10 + $0x150] sm:$0xff] %v640_v42  ;;  %643 = vst [vmem:[%s11712_s10 + $0x158] sm:$0xff] %v642_v43  ;;  %v646_v45 = vld [vmem:[%s11707_s23 + $0x268] sm:$0xff]  ;;  %v648_v46 = vld [vmem:[%s11707_s23 + $0x270] sm:$0xff] }
  0x2f   : > { %645 = vst [vmem:[%s11712_s10 + $0x160] sm:$0xff] %v644_v44  ;;  %v650_v47 = vld [vmem:[%s11707_s23 + $0x278] sm:$0xff]  ;;  %647 = vst [vmem:[%s11712_s10 + $0x168] sm:$0xff] %v646_v45  ;;  %v652_v48 = vld [vmem:[%s11707_s23 + $0x300] sm:$0xff] }
  0x30   : > { %649 = vst [vmem:[%s11712_s10 + $0x170] sm:$0xff] %v648_v46  ;;  %651 = vst [vmem:[%s11712_s10 + $0x178] sm:$0xff] %v650_v47  ;;  %v654_v49 = vld [vmem:[%s11707_s23 + $0x308] sm:$0xff]  ;;  %v656_v50 = vld [vmem:[%s11707_s23 + $0x310] sm:$0xff] }
  0x31   : > { %653 = vst [vmem:[%s11712_s10 + $0x180] sm:$0xff] %v652_v48  ;;  %655 = vst [vmem:[%s11712_s10 + $0x188] sm:$0xff] %v654_v49  ;;  %v658_v51 = vld [vmem:[%s11707_s23 + $0x318] sm:$0xff]  ;;  %v660_v52 = vld [vmem:[%s11707_s23 + $0x320] sm:$0xff] }
  0x32   : > { %657 = vst [vmem:[%s11712_s10 + $0x190] sm:$0xff] %v656_v50  ;;  %v662_v53 = vld [vmem:[%s11707_s23 + $0x328] sm:$0xff]  ;;  %659 = vst [vmem:[%s11712_s10 + $0x198] sm:$0xff] %v658_v51  ;;  %v664_v54 = vld [vmem:[%s11707_s23 + $0x330] sm:$0xff] }
  0x33   : > { %661 = vst [vmem:[%s11712_s10 + $0x1a0] sm:$0xff] %v660_v52  ;;  %663 = vst [vmem:[%s11712_s10 + $0x1a8] sm:$0xff] %v662_v53  ;;  %v666_v55 = vld [vmem:[%s11707_s23 + $0x338] sm:$0xff]  ;;  %v668_v56 = vld [vmem:[%s11707_s23 + $0x340] sm:$0xff] }
  0x34   : > { %665 = vst [vmem:[%s11712_s10 + $0x1b0] sm:$0xff] %v664_v54  ;;  %667 = vst [vmem:[%s11712_s10 + $0x1b8] sm:$0xff] %v666_v55  ;;  %v670_v57 = vld [vmem:[%s11707_s23 + $0x348] sm:$0xff]  ;;  %v672_v58 = vld [vmem:[%s11707_s23 + $0x350] sm:$0xff] }
  0x35   : > { %669 = vst [vmem:[%s11712_s10 + $0x1c0] sm:$0xff] %v668_v56  ;;  %v674_v59 = vld [vmem:[%s11707_s23 + $0x358] sm:$0xff]  ;;  %671 = vst [vmem:[%s11712_s10 + $0x1c8] sm:$0xff] %v670_v57  ;;  %v676_v60 = vld [vmem:[%s11707_s23 + $0x360] sm:$0xff] }
  0x36   : > { %673 = vst [vmem:[%s11712_s10 + $0x1d0] sm:$0xff] %v672_v58  ;;  %675 = vst [vmem:[%s11712_s10 + $0x1d8] sm:$0xff] %v674_v59  ;;  %v678_v61 = vld [vmem:[%s11707_s23 + $0x368] sm:$0xff]  ;;  %v680_v62 = vld [vmem:[%s11707_s23 + $0x370] sm:$0xff] }
  0x37   : > { %677 = vst [vmem:[%s11712_s10 + $0x1e0] sm:$0xff] %v676_v60  ;;  %679 = vst [vmem:[%s11712_s10 + $0x1e8] sm:$0xff] %v678_v61  ;;  %v682_v63 = vld [vmem:[%s11707_s23 + $0x378] sm:$0xff]  ;;  %v684_v0 = vld [vmem:[%s11707_s23 + $0x400] sm:$0xff] }
  0x38   : > { %681 = vst [vmem:[%s11712_s10 + $0x1f0] sm:$0xff] %v680_v62  ;;  %v686_v1 = vld [vmem:[%s11707_s23 + $0x408] sm:$0xff]  ;;  %683 = vst [vmem:[%s11712_s10 + $0x1f8] sm:$0xff] %v682_v63  ;;  %v688_v2 = vld [vmem:[%s11707_s23 + $0x410] sm:$0xff] }
  0x39   : > { %685 = vst [vmem:[%s11712_s10 + $0x200] sm:$0xff] %v684_v0  ;;  %687 = vst [vmem:[%s11712_s10 + $0x208] sm:$0xff] %v686_v1  ;;  %v690_v3 = vld [vmem:[%s11707_s23 + $0x418] sm:$0xff]  ;;  %v692_v4 = vld [vmem:[%s11707_s23 + $0x420] sm:$0xff] }
  0x3a   : > { %689 = vst [vmem:[%s11712_s10 + $0x210] sm:$0xff] %v688_v2  ;;  %691 = vst [vmem:[%s11712_s10 + $0x218] sm:$0xff] %v690_v3  ;;  %v694_v5 = vld [vmem:[%s11707_s23 + $0x428] sm:$0xff]  ;;  %v696_v6 = vld [vmem:[%s11707_s23 + $0x430] sm:$0xff] }
  0x3b   : > { %693 = vst [vmem:[%s11712_s10 + $0x220] sm:$0xff] %v692_v4  ;;  %v698_v7 = vld [vmem:[%s11707_s23 + $0x438] sm:$0xff]  ;;  %695 = vst [vmem:[%s11712_s10 + $0x228] sm:$0xff] %v694_v5  ;;  %v700_v8 = vld [vmem:[%s11707_s23 + $0x440] sm:$0xff] }
  0x3c   : > { %697 = vst [vmem:[%s11712_s10 + $0x230] sm:$0xff] %v696_v6  ;;  %699 = vst [vmem:[%s11712_s10 + $0x238] sm:$0xff] %v698_v7  ;;  %v702_v9 = vld [vmem:[%s11707_s23 + $0x448] sm:$0xff]  ;;  %v704_v10 = vld [vmem:[%s11707_s23 + $0x450] sm:$0xff] }
  0x3d   : > { %701 = vst [vmem:[%s11712_s10 + $0x240] sm:$0xff] %v700_v8  ;;  %703 = vst [vmem:[%s11712_s10 + $0x248] sm:$0xff] %v702_v9  ;;  %v706_v11 = vld [vmem:[%s11707_s23 + $0x458] sm:$0xff]  ;;  %v708_v12 = vld [vmem:[%s11707_s23 + $0x460] sm:$0xff] }
  0x3e   : > { %705 = vst [vmem:[%s11712_s10 + $0x250] sm:$0xff] %v704_v10  ;;  %v710_v13 = vld [vmem:[%s11707_s23 + $0x468] sm:$0xff]  ;;  %707 = vst [vmem:[%s11712_s10 + $0x258] sm:$0xff] %v706_v11  ;;  %v712_v14 = vld [vmem:[%s11707_s23 + $0x470] sm:$0xff] }
  0x3f   : > { %709 = vst [vmem:[%s11712_s10 + $0x260] sm:$0xff] %v708_v12  ;;  %711 = vst [vmem:[%s11712_s10 + $0x268] sm:$0xff] %v710_v13  ;;  %v714_v15 = vld [vmem:[%s11707_s23 + $0x478] sm:$0xff]  ;;  %v716_v16 = vld [vmem:[%s11707_s23 + $0x500] sm:$0xff] }
  0x40   : > { %713 = vst [vmem:[%s11712_s10 + $0x270] sm:$0xff] %v712_v14  ;;  %715 = vst [vmem:[%s11712_s10 + $0x278] sm:$0xff] %v714_v15  ;;  %v718_v17 = vld [vmem:[%s11707_s23 + $0x508] sm:$0xff]  ;;  %v720_v18 = vld [vmem:[%s11707_s23 + $0x510] sm:$0xff] }
  0x41   : > { %717 = vst [vmem:[%s11712_s10 + $0x280] sm:$0xff] %v716_v16  ;;  %v722_v19 = vld [vmem:[%s11707_s23 + $0x518] sm:$0xff]  ;;  %719 = vst [vmem:[%s11712_s10 + $0x288] sm:$0xff] %v718_v17  ;;  %v724_v20 = vld [vmem:[%s11707_s23 + $0x520] sm:$0xff] }
  0x42   : > { %721 = vst [vmem:[%s11712_s10 + $0x290] sm:$0xff] %v720_v18  ;;  %723 = vst [vmem:[%s11712_s10 + $0x298] sm:$0xff] %v722_v19  ;;  %v726_v21 = vld [vmem:[%s11707_s23 + $0x528] sm:$0xff]  ;;  %v728_v22 = vld [vmem:[%s11707_s23 + $0x530] sm:$0xff] }
  0x43   : > { %725 = vst [vmem:[%s11712_s10 + $0x2a0] sm:$0xff] %v724_v20  ;;  %727 = vst [vmem:[%s11712_s10 + $0x2a8] sm:$0xff] %v726_v21  ;;  %v730_v23 = vld [vmem:[%s11707_s23 + $0x538] sm:$0xff]  ;;  %v732_v24 = vld [vmem:[%s11707_s23 + $0x540] sm:$0xff] }
  0x44   : > { %729 = vst [vmem:[%s11712_s10 + $0x2b0] sm:$0xff] %v728_v22  ;;  %v734_v25 = vld [vmem:[%s11707_s23 + $0x548] sm:$0xff]  ;;  %731 = vst [vmem:[%s11712_s10 + $0x2b8] sm:$0xff] %v730_v23  ;;  %v736_v26 = vld [vmem:[%s11707_s23 + $0x550] sm:$0xff] }
  0x45   : > { %733 = vst [vmem:[%s11712_s10 + $0x2c0] sm:$0xff] %v732_v24  ;;  %735 = vst [vmem:[%s11712_s10 + $0x2c8] sm:$0xff] %v734_v25  ;;  %v738_v27 = vld [vmem:[%s11707_s23 + $0x558] sm:$0xff]  ;;  %v740_v28 = vld [vmem:[%s11707_s23 + $0x560] sm:$0xff] }
  0x46   : > { %737 = vst [vmem:[%s11712_s10 + $0x2d0] sm:$0xff] %v736_v26  ;;  %739 = vst [vmem:[%s11712_s10 + $0x2d8] sm:$0xff] %v738_v27  ;;  %v742_v29 = vld [vmem:[%s11707_s23 + $0x568] sm:$0xff]  ;;  %v744_v30 = vld [vmem:[%s11707_s23 + $0x570] sm:$0xff] }
  0x47   : > { %741 = vst [vmem:[%s11712_s10 + $0x2e0] sm:$0xff] %v740_v28  ;;  %v746_v31 = vld [vmem:[%s11707_s23 + $0x578] sm:$0xff]  ;;  %743 = vst [vmem:[%s11712_s10 + $0x2e8] sm:$0xff] %v742_v29  ;;  %v748_v32 = vld [vmem:[%s11707_s23 + $0x600] sm:$0xff] }
  0x48   : > { %745 = vst [vmem:[%s11712_s10 + $0x2f0] sm:$0xff] %v744_v30  ;;  %747 = vst [vmem:[%s11712_s10 + $0x2f8] sm:$0xff] %v746_v31  ;;  %v750_v33 = vld [vmem:[%s11707_s23 + $0x608] sm:$0xff]  ;;  %v752_v34 = vld [vmem:[%s11707_s23 + $0x610] sm:$0xff] }
  0x49   : > { %749 = vst [vmem:[%s11712_s10 + $0x300] sm:$0xff] %v748_v32  ;;  %751 = vst [vmem:[%s11712_s10 + $0x308] sm:$0xff] %v750_v33  ;;  %v754_v35 = vld [vmem:[%s11707_s23 + $0x618] sm:$0xff]  ;;  %v756_v36 = vld [vmem:[%s11707_s23 + $0x620] sm:$0xff] }
  0x4a   : > { %753 = vst [vmem:[%s11712_s10 + $0x310] sm:$0xff] %v752_v34  ;;  %v758_v37 = vld [vmem:[%s11707_s23 + $0x628] sm:$0xff]  ;;  %755 = vst [vmem:[%s11712_s10 + $0x318] sm:$0xff] %v754_v35  ;;  %v760_v38 = vld [vmem:[%s11707_s23 + $0x630] sm:$0xff] }
  0x4b   : > { %757 = vst [vmem:[%s11712_s10 + $0x320] sm:$0xff] %v756_v36  ;;  %759 = vst [vmem:[%s11712_s10 + $0x328] sm:$0xff] %v758_v37  ;;  %v762_v39 = vld [vmem:[%s11707_s23 + $0x638] sm:$0xff]  ;;  %v764_v40 = vld [vmem:[%s11707_s23 + $0x640] sm:$0xff] }
  0x4c   : > { %761 = vst [vmem:[%s11712_s10 + $0x330] sm:$0xff] %v760_v38  ;;  %763 = vst [vmem:[%s11712_s10 + $0x338] sm:$0xff] %v762_v39  ;;  %v766_v41 = vld [vmem:[%s11707_s23 + $0x648] sm:$0xff]  ;;  %v768_v42 = vld [vmem:[%s11707_s23 + $0x650] sm:$0xff] }
  0x4d   : > { %765 = vst [vmem:[%s11712_s10 + $0x340] sm:$0xff] %v764_v40  ;;  %v770_v43 = vld [vmem:[%s11707_s23 + $0x658] sm:$0xff]  ;;  %767 = vst [vmem:[%s11712_s10 + $0x348] sm:$0xff] %v766_v41  ;;  %v772_v44 = vld [vmem:[%s11707_s23 + $0x660] sm:$0xff] }
  0x4e   : > { %769 = vst [vmem:[%s11712_s10 + $0x350] sm:$0xff] %v768_v42  ;;  %771 = vst [vmem:[%s11712_s10 + $0x358] sm:$0xff] %v770_v43  ;;  %v774_v45 = vld [vmem:[%s11707_s23 + $0x668] sm:$0xff]  ;;  %v776_v46 = vld [vmem:[%s11707_s23 + $0x670] sm:$0xff] }
  0x4f   : > { %773 = vst [vmem:[%s11712_s10 + $0x360] sm:$0xff] %v772_v44  ;;  %775 = vst [vmem:[%s11712_s10 + $0x368] sm:$0xff] %v774_v45  ;;  %v778_v47 = vld [vmem:[%s11707_s23 + $0x678] sm:$0xff]  ;;  %v780_v48 = vld [vmem:[%s11707_s23 + $0x700] sm:$0xff] }
  0x50   : > { %777 = vst [vmem:[%s11712_s10 + $0x370] sm:$0xff] %v776_v46  ;;  %v782_v49 = vld [vmem:[%s11707_s23 + $0x708] sm:$0xff]  ;;  %779 = vst [vmem:[%s11712_s10 + $0x378] sm:$0xff] %v778_v47  ;;  %v784_v50 = vld [vmem:[%s11707_s23 + $0x710] sm:$0xff] }
  0x51   : > { %781 = vst [vmem:[%s11712_s10 + $0x380] sm:$0xff] %v780_v48  ;;  %783 = vst [vmem:[%s11712_s10 + $0x388] sm:$0xff] %v782_v49  ;;  %v786_v51 = vld [vmem:[%s11707_s23 + $0x718] sm:$0xff]  ;;  %v788_v52 = vld [vmem:[%s11707_s23 + $0x720] sm:$0xff] }
  0x52   : > { %785 = vst [vmem:[%s11712_s10 + $0x390] sm:$0xff] %v784_v50  ;;  %787 = vst [vmem:[%s11712_s10 + $0x398] sm:$0xff] %v786_v51  ;;  %v790_v53 = vld [vmem:[%s11707_s23 + $0x728] sm:$0xff]  ;;  %v792_v54 = vld [vmem:[%s11707_s23 + $0x730] sm:$0xff] }
  0x53   : > { %789 = vst [vmem:[%s11712_s10 + $0x3a0] sm:$0xff] %v788_v52  ;;  %v794_v55 = vld [vmem:[%s11707_s23 + $0x738] sm:$0xff]  ;;  %791 = vst [vmem:[%s11712_s10 + $0x3a8] sm:$0xff] %v790_v53  ;;  %v796_v56 = vld [vmem:[%s11707_s23 + $0x740] sm:$0xff] }
  0x54   : > { %793 = vst [vmem:[%s11712_s10 + $0x3b0] sm:$0xff] %v792_v54  ;;  %795 = vst [vmem:[%s11712_s10 + $0x3b8] sm:$0xff] %v794_v55  ;;  %v798_v57 = vld [vmem:[%s11707_s23 + $0x748] sm:$0xff]  ;;  %v800_v58 = vld [vmem:[%s11707_s23 + $0x750] sm:$0xff] }
  0x55   : > { %797 = vst [vmem:[%s11712_s10 + $0x3c0] sm:$0xff] %v796_v56  ;;  %799 = vst [vmem:[%s11712_s10 + $0x3c8] sm:$0xff] %v798_v57  ;;  %v802_v59 = vld [vmem:[%s11707_s23 + $0x758] sm:$0xff]  ;;  %v804_v60 = vld [vmem:[%s11707_s23 + $0x760] sm:$0xff] }
  0x56   : > { %801 = vst [vmem:[%s11712_s10 + $0x3d0] sm:$0xff] %v800_v58  ;;  %v806_v61 = vld [vmem:[%s11707_s23 + $0x768] sm:$0xff]  ;;  %803 = vst [vmem:[%s11712_s10 + $0x3d8] sm:$0xff] %v802_v59  ;;  %v808_v62 = vld [vmem:[%s11707_s23 + $0x770] sm:$0xff] }
  0x57   : > { %805 = vst [vmem:[%s11712_s10 + $0x3e0] sm:$0xff] %v804_v60  ;;  %807 = vst [vmem:[%s11712_s10 + $0x3e8] sm:$0xff] %v806_v61  ;;  %v810_v63 = vld [vmem:[%s11707_s23 + $0x778] sm:$0xff] }
  0x58   : > { %809 = vst [vmem:[%s11712_s10 + $0x3f0] sm:$0xff] %v808_v62  ;;  %811 = vst [vmem:[%s11712_s10 + $0x3f8] sm:$0xff] %v810_v63 }
  0x59 PF: > { %p8502_p7 = scmp.ge.s32.totalorder %s11603_s30, 1  ;;  %p816_p8 = scmp.lt.s32.totalorder %s11603_s30, 5 }
  0x5b   : > { %p817_p9 = pnand %p8502_p7, %p816_p8 }
  0x5d   : > { %820 = sbr.rel (%p817_p9) target bundleno = 3324 (0xcfc), region = 82 }
  0x64   : > { %s823_s11 = sand.u32 1, %s11579_s24   ;;  %p863_p10 = scmp.lt.s32.totalorder %s11587_s26, 1 }
  0x65   : > { %s8503_s12 = sshll.u32 %s823_s11, 10  ;;  %s8505_s13 = sshll.u32 %s11591_s27, 4 }
  0x66   : > { %p868_p11 = scmp.lt.s32.totalorder %s8505_s13, 31  ;;  %s11988_s27 = scalar_lea.vmem [#allocation6], %s8503_s12 }
  0x67   : > { %s864_s15 = scalar_select %p863_p10, %s11587_s26, 1 }
  0x68   : > { %s16314_s13 = smov (!%p868_p11, %s8505_s13), 31  ;;  %p8509_p12 = scmp.ne.s32.totalorder %s11587_s26, 0 }
  0x69   : > { %s8504_s16 = sshll.u32 %s864_s15, 3  ;;  %s8506_s20 = sshll.u32 %s16314_s13, 3  ;;  %v901_v0 = vld [vmem:[%s15573_s2] sm:$0xff] (!%p8509_p12)  ;;  %v902_v1 = vld [vmem:[%s15573_s2 + $0x8] sm:$0xff] (!%p8509_p12)  ;;  %v903_v2 = vld [vmem:[%s15573_s2 + $0x10] sm:$0xff] (!%p8509_p12)  ;;  %vm905_vm0 = vcmask (!%p8509_p12), 261120  }
  0x6a   : > { %s11976_s19 = scalar_lea.vmem %s15571_s0, %s8504_s16  ;;  %s11981_s23 = scalar_lea.vmem %s15572_s1, %s8506_s20  ;;  %v10506_v3 = vpack.c.bf16 (!%p8509_p12), %v902_v1, %v901_v0  ;;  %v904_v4 = vld [vmem:[%s15573_s2 + $0x18] sm:$0xff] (!%p8509_p12)  ;;  %vm1115_vm1 = vcmask (!%p8509_p12), 31744   ;;  %v11605_v22 = vmov (!%p8509_p12), -inf   ;;  %v11606_v23 = vmov (!%p8509_p12), 0.0  }
  0x6b   : > { %s11986_s11 = scalar_lea.vmem %s15578_s7, %s8506_s20  ;;  %884 = sbr.rel (%p8509_p12) target bundleno = 343 (0x157), region = 90  ;;  %v885_v5 = vld [vmem:[%s11981_s23] sm:$0xff] (!%p8509_p12)  ;;  %v10510_v7 = vpack.c.bf16 (!%p8509_p12), %v904_v4, %v903_v2  ;;  %v886_v8 = vld [vmem:[%s11981_s23 + $0x8] sm:$0xff] (!%p8509_p12)  ;;  %v887_v10 = vld [vmem:[%s11981_s23 + $0x10] sm:$0xff] (!%p8509_p12)  ;;  %1116 = vst.msk [vmem:[#allocation3] sm:$0xff] (!%p8509_p12), %vm1115_vm1, %v11605_v22 }
  0x6c   : > { %v893_v6 = vld [vmem:[%s11981_s23 + $0x40] sm:$0xff] (!%p8509_p12)  ;;  %9536 = vmatprep.mubr.msk.f32.mxu0 (!%p8509_p12), %vm905_vm0, %v885_v5  ;;  %10507 = vmatprep.subr.bf16.mxu0 (!%p8509_p12), %v10506_v3  ;;  %v894_v9 = vld [vmem:[%s11981_s23 + $0x48] sm:$0xff] (!%p8509_p12)  ;;  %v895_v11 = vld [vmem:[%s11981_s23 + $0x50] sm:$0xff] (!%p8509_p12)  ;;  %1117 = vst.msk [vmem:[#allocation3 + $0x8] sm:$0xff] (!%p8509_p12), %vm1115_vm1, %v11605_v22 }
  0x6d   : > { %9548 = vmatprep.mubr.msk.f32.mxu1 (!%p8509_p12), %vm905_vm0, %v893_v6  ;;  %10802 = vmatprep.subr.bf16.mxu1 (!%p8509_p12), %v10506_v3  ;;  %v888_v12 = vld [vmem:[%s11981_s23 + $0x18] sm:$0xff] (!%p8509_p12)  ;;  %v889_v14 = vld [vmem:[%s11981_s23 + $0x20] sm:$0xff] (!%p8509_p12)  ;;  %v890_v16 = vld [vmem:[%s11981_s23 + $0x28] sm:$0xff] (!%p8509_p12)  ;;  %1118 = vst.msk [vmem:[#allocation3 + $0x10] sm:$0xff] (!%p8509_p12), %vm1115_vm1, %v11605_v22 }
  0x6e   : > { %10509 = vmatpush3.bf16.msra.mxu0 (!%p8509_p12), %v10506_v3  ;;  %10804 = vmatpush3.bf16.msra.mxu1 (!%p8509_p12), %v10506_v3  ;;  %v896_v13 = vld [vmem:[%s11981_s23 + $0x58] sm:$0xff] (!%p8509_p12)  ;;  %v897_v15 = vld [vmem:[%s11981_s23 + $0x60] sm:$0xff] (!%p8509_p12)  ;;  %v898_v17 = vld [vmem:[%s11981_s23 + $0x68] sm:$0xff] (!%p8509_p12)  ;;  %1119 = vst.msk [vmem:[#allocation3 + $0x18] sm:$0xff] (!%p8509_p12), %vm1115_vm1, %v11605_v22 }
  0x6f   : > { %10511 = vmatprep.subr.bf16.mxu0 (!%p8509_p12), %v10510_v7  ;;  %10803 = vmatprep.subr.bf16.mxu1 (!%p8509_p12), %v10510_v7  ;;  %v891_v18 = vld [vmem:[%s11981_s23 + $0x30] sm:$0xff] (!%p8509_p12)  ;;  %v892_v20 = vld [vmem:[%s11981_s23 + $0x38] sm:$0xff] (!%p8509_p12)  ;;  %1120 = vst.msk [vmem:[#allocation3 + $0x20] sm:$0xff] (!%p8509_p12), %vm1115_vm1, %v11605_v22  ;;  %1121 = vst.msk [vmem:[#allocation3 + $0x28] sm:$0xff] (!%p8509_p12), %vm1115_vm1, %v11605_v22 }
  0x70   : > { %v899_v19 = vld [vmem:[%s11981_s23 + $0x70] sm:$0xff] (!%p8509_p12)  ;;  %v900_v21 = vld [vmem:[%s11981_s23 + $0x78] sm:$0xff] (!%p8509_p12)  ;;  %1122 = vst.msk [vmem:[#allocation3 + $0x30] sm:$0xff] (!%p8509_p12), %vm1115_vm1, %v11605_v22  ;;  %1123 = vst.msk [vmem:[#allocation3 + $0x38] sm:$0xff] (!%p8509_p12), %vm1115_vm1, %v11605_v22 }
  0x71   : > { %1124 = vst.msk [vmem:[#allocation3 + $0x40] sm:$0xff] (!%p8509_p12), %vm1115_vm1, %v11605_v22  ;;  %1125 = vst.msk [vmem:[#allocation3 + $0x48] sm:$0xff] (!%p8509_p12), %vm1115_vm1, %v11605_v22 }
  0x72   : > { %10513 = vmatpush3.bf16.msra.mxu0 %v10510_v7  ;;  %10805 = vmatpush3.bf16.msra.mxu1 %v10510_v7  ;;  %1126 = vst.msk [vmem:[#allocation3 + $0x50] sm:$0xff] %vm1115_vm1, %v11605_v22  ;;  %1127 = vst.msk [vmem:[#allocation3 + $0x58] sm:$0xff] %vm1115_vm1, %v11605_v22 }
  0x73   : > { %1128 = vst.msk [vmem:[#allocation3 + $0x60] sm:$0xff] %vm1115_vm1, %v11605_v22  ;;  %1129 = vst.msk [vmem:[#allocation3 + $0x68] sm:$0xff] %vm1115_vm1, %v11605_v22 }
  0x74   : > { %1130 = vst.msk [vmem:[#allocation3 + $0x70] sm:$0xff] %vm1115_vm1, %v11605_v22  ;;  %1131 = vst.msk [vmem:[#allocation3 + $0x78] sm:$0xff] %vm1115_vm1, %v11605_v22 }
  0x75   : > { %9537 = vmatmul.mubr.msk.f32.vlgmr.msra.gmra.mrb[0].mxu0 %vm905_vm0, %v886_v8  ;;  %9549 = vmatmul.mubr.msk.f32.vlgmr.msra.gmra.mrb[0].mxu1 %vm905_vm0, %v894_v9  ;;  %1132 = vst.msk [vmem:[#allocation4] sm:$0xff] %vm1115_vm1, %v11606_v23  ;;  %1133 = vst.msk [vmem:[#allocation4 + $0x8] sm:$0xff] %vm1115_vm1, %v11606_v23 }
  0x76   : > { %9539 = vmatprep.mubr.msk.f32.mxu0 %vm905_vm0, %v887_v10  ;;  %9551 = vmatprep.mubr.msk.f32.mxu1 %vm905_vm0, %v895_v11  ;;  %1134 = vst.msk [vmem:[#allocation4 + $0x10] sm:$0xff] %vm1115_vm1, %v11606_v23  ;;  %1135 = vst.msk [vmem:[#allocation4 + $0x18] sm:$0xff] %vm1115_vm1, %v11606_v23 }
  0x77   : > { %1136 = vst.msk [vmem:[#allocation4 + $0x20] sm:$0xff] %vm1115_vm1, %v11606_v23  ;;  %1137 = vst.msk [vmem:[#allocation4 + $0x28] sm:$0xff] %vm1115_vm1, %v11606_v23 }
  0x78   : > { %1138 = vst.msk [vmem:[#allocation4 + $0x30] sm:$0xff] %vm1115_vm1, %v11606_v23  ;;  %1139 = vst.msk [vmem:[#allocation4 + $0x38] sm:$0xff] %vm1115_vm1, %v11606_v23 }
  0x79   : > { %9540 = vmatmul.mubr.msk.f32.gmra.mrb[2].mxu0 %vm905_vm0, %v888_v12  ;;  %9552 = vmatmul.mubr.msk.f32.gmra.mrb[2].mxu1 %vm905_vm0, %v896_v13  ;;  %1140 = vst.msk [vmem:[#allocation4 + $0x40] sm:$0xff] %vm1115_vm1, %v11606_v23  ;;  %1141 = vst.msk [vmem:[#allocation4 + $0x48] sm:$0xff] %vm1115_vm1, %v11606_v23 }
  0x7a   : > { %9542 = vmatprep.mubr.msk.f32.mxu0 %vm905_vm0, %v889_v14  ;;  %9554 = vmatprep.mubr.msk.f32.mxu1 %vm905_vm0, %v897_v15  ;;  %1142 = vst.msk [vmem:[#allocation4 + $0x50] sm:$0xff] %vm1115_vm1, %v11606_v23  ;;  %1143 = vst.msk [vmem:[#allocation4 + $0x58] sm:$0xff] %vm1115_vm1, %v11606_v23 }
  0x7b   : > { %1144 = vst.msk [vmem:[#allocation4 + $0x60] sm:$0xff] %vm1115_vm1, %v11606_v23  ;;  %1145 = vst.msk [vmem:[#allocation4 + $0x68] sm:$0xff] %vm1115_vm1, %v11606_v23 }
  0x7c   : > { %1146 = vst.msk [vmem:[#allocation4 + $0x70] sm:$0xff] %vm1115_vm1, %v11606_v23  ;;  %1147 = vst.msk [vmem:[#allocation4 + $0x78] sm:$0xff] %vm1115_vm1, %v11606_v23 }
  0x7d   : > { %9543 = vmatmul.mubr.msk.f32.gmra.mrb[4].mxu0 %vm905_vm0, %v890_v16  ;;  %9555 = vmatmul.mubr.msk.f32.gmra.mrb[4].mxu1 %vm905_vm0, %v898_v17  ;;  %1148 = vst [vmem:[#allocation5] sm:$0xff] %v11606_v23  ;;  %1149 = vst [vmem:[#allocation5 + $0x8] sm:$0xff] %v11606_v23 }
  0x7e   : > { %9545 = vmatprep.mubr.msk.f32.mxu0 %vm905_vm0, %v891_v18  ;;  %9557 = vmatprep.mubr.msk.f32.mxu1 %vm905_vm0, %v899_v19  ;;  %1150 = vst [vmem:[#allocation5 + $0x10] sm:$0xff] %v11606_v23  ;;  %1151 = vst [vmem:[#allocation5 + $0x18] sm:$0xff] %v11606_v23 }
  0x7f   : > { %1152 = vst [vmem:[#allocation5 + $0x20] sm:$0xff] %v11606_v23  ;;  %1153 = vst [vmem:[#allocation5 + $0x28] sm:$0xff] %v11606_v23 }
  0x80   : > { %1154 = vst [vmem:[#allocation5 + $0x30] sm:$0xff] %v11606_v23  ;;  %1155 = vst [vmem:[#allocation5 + $0x38] sm:$0xff] %v11606_v23 }
  0x81   : > { %9546 = vmatmul.mubr.msk.f32.gmra.mrb[6].mxu0 %vm905_vm0, %v892_v20  ;;  %9558 = vmatmul.mubr.msk.f32.gmra.mrb[6].mxu1 %vm905_vm0, %v900_v21  ;;  %1156 = vst [vmem:[#allocation5 + $0x40] sm:$0xff] %v11606_v23  ;;  %1157 = vst [vmem:[#allocation5 + $0x48] sm:$0xff] %v11606_v23 }
  0x82   : > { %1158 = vst [vmem:[#allocation5 + $0x50] sm:$0xff] %v11606_v23  ;;  %1159 = vst [vmem:[#allocation5 + $0x58] sm:$0xff] %v11606_v23 }
  0x83   : > { %1160 = vst [vmem:[#allocation5 + $0x60] sm:$0xff] %v11606_v23  ;;  %1161 = vst [vmem:[#allocation5 + $0x68] sm:$0xff] %v11606_v23 }
  0x84   : > { %1162 = vst [vmem:[#allocation5 + $0x70] sm:$0xff] %v11606_v23  ;;  %1163 = vst [vmem:[#allocation5 + $0x78] sm:$0xff] %v11606_v23 }
 0x148   : > { %v9538_v24 = vpop.f32.mrb[0].mxu0  ;;  %v9550_v25 = vpop.f32.mrb[0].mxu1 }
 0x149   : > { %1100 = vst [vmem:[#allocation2 + $0x8] sm:$0xff] %v9538_v24  ;;  %1108 = vst [vmem:[#allocation2 + $0x48] sm:$0xff] %v9550_v25  ;;  %v1020_v26 = vpop.f32.mrb[1].mxu0  ;;  %v1060_v27 = vpop.f32.mrb[1].mxu1 }
 0x14a   : > { %1099 = vst [vmem:[#allocation2] sm:$0xff] %v1020_v26  ;;  %1107 = vst [vmem:[#allocation2 + $0x40] sm:$0xff] %v1060_v27 }
 0x14c   : > { %v9541_v28 = vpop.f32.mrb[2].mxu0  ;;  %v9553_v29 = vpop.f32.mrb[2].mxu1 }
 0x14d   : > { %1102 = vst [vmem:[#allocation2 + $0x18] sm:$0xff] %v9541_v28  ;;  %1110 = vst [vmem:[#allocation2 + $0x58] sm:$0xff] %v9553_v29  ;;  %v1030_v30 = vpop.f32.mrb[3].mxu0  ;;  %v1070_v31 = vpop.f32.mrb[3].mxu1 }
 0x14e   : > { %1101 = vst [vmem:[#allocation2 + $0x10] sm:$0xff] %v1030_v30  ;;  %1109 = vst [vmem:[#allocation2 + $0x50] sm:$0xff] %v1070_v31 }
 0x150   : > { %v9544_v32 = vpop.f32.mrb[4].mxu0  ;;  %v9556_v33 = vpop.f32.mrb[4].mxu1 }
 0x151   : > { %1104 = vst [vmem:[#allocation2 + $0x28] sm:$0xff] %v9544_v32  ;;  %1112 = vst [vmem:[#allocation2 + $0x68] sm:$0xff] %v9556_v33  ;;  %v1040_v34 = vpop.f32.mrb[5].mxu0  ;;  %v1080_v35 = vpop.f32.mrb[5].mxu1 }
 0x152   : > { %1103 = vst [vmem:[#allocation2 + $0x20] sm:$0xff] %v1040_v34  ;;  %1111 = vst [vmem:[#allocation2 + $0x60] sm:$0xff] %v1080_v35 }
 0x154   : > { %v9547_v36 = vpop.f32.mrb[6].mxu0  ;;  %v9559_v37 = vpop.f32.mrb[6].mxu1 }
 0x155   : > { %1106 = vst [vmem:[#allocation2 + $0x38] sm:$0xff] %v9547_v36  ;;  %1114 = vst [vmem:[#allocation2 + $0x78] sm:$0xff] %v9559_v37  ;;  %v1050_v38 = vpop.f32.mrb[7].mxu0  ;;  %v1090_v39 = vpop.f32.mrb[7].mxu1 }
 0x156   : > { %1105 = vst [vmem:[#allocation2 + $0x30] sm:$0xff] %v1050_v38  ;;  %1113 = vst [vmem:[#allocation2 + $0x70] sm:$0xff] %v1090_v39 }
 0x157 PF: > { %v1180_v40 = vld [vmem:[%s15574_s3] sm:$0xff]  ;;  %v1181_v41 = vld [vmem:[%s15574_s3 + $0x8] sm:$0xff]  ;;  %v1182_v42 = vld [vmem:[%s15574_s3 + $0x10] sm:$0xff]  ;;  %vm1684_vm2 = vcmask 1043456   ;;  %vm1635_vm0 = vcmask 31744   ;;  %p8910_p13 = scmp.ne.s32.totalorder %s11587_s26, 1 }
 0x158   : > { %v12076_v43 = vpack.c.bf16 %v1181_v41, %v1180_v40  ;;  %v1183_v44 = vld [vmem:[%s15574_s3 + $0x18] sm:$0xff]  ;;  %v1184_v46 = vld [vmem:[%s15574_s3 + $0x20] sm:$0xff]  ;;  %v1185_v47 = vld [vmem:[%s15574_s3 + $0x28] sm:$0xff] }
 0x159   : > { %v12081_v45 = vpack.c.bf16 %v1183_v44, %v1182_v42  ;;  %v12092_v48 = vpack.c.bf16 %v1185_v47, %v1184_v46  ;;  %v12094_v49 = vld [vmem:[#allocation2] sm:$0xff]  ;;  %v1186_v51 = vld [vmem:[%s15574_s3 + $0x30] sm:$0xff]  ;;  %v1187_v52 = vld [vmem:[%s15574_s3 + $0x38] sm:$0xff] }
 0x15a   : > { %15802 = vst [vmem:[#allocation7_spill] sm:$0xff] %v12076_v43  ;;  %10515 = vmatprep.subr.bf16.mxu0 %v12076_v43  ;;  %v1246_v50 = vld [vmem:[%s11988_s27] sm:$0xff]  ;;  %v12106_v54 = vpack.c.bf16 %v1187_v52, %v1186_v51  ;;  %v1189_v56 = vld [vmem:[%s15574_s3 + $0x48] sm:$0xff]  ;;  %v1190_v58 = vld [vmem:[%s15574_s3 + $0x50] sm:$0xff] }
 0x15b   : > { %15803 = vst [vmem:[#allocation8_spill] sm:$0xff] %v12081_v45  ;;  %10517 = vmatpush3.bf16.msra.mxu0 %v12076_v43  ;;  %15804 = vst [vmem:[#allocation9_spill] sm:$0xff] %v12092_v48  ;;  %v1262_v53 = vmul.f32 %v1246_v50, %v12094_v49  ;;  %v1188_v55 = vld [vmem:[%s15574_s3 + $0x40] sm:$0xff]  ;;  %v1191_v59 = vld [vmem:[%s15574_s3 + $0x58] sm:$0xff] }
 0x15c   : > { %10519 = vmatprep.subr.bf16.mxu0 %v12081_v45  ;;  %15805 = vst [vmem:[#allocation10_spill] sm:$0xff] %v12106_v54  ;;  %v12116_v57 = vpack.c.bf16 %v1189_v56, %v1188_v55  ;;  %v12126_v60 = vpack.c.bf16 %v1191_v59, %v1190_v58  ;;  %v1192_v61 = vld [vmem:[%s15574_s3 + $0x60] sm:$0xff]  ;;  %v1193_v62 = vld [vmem:[%s15574_s3 + $0x68] sm:$0xff]  ;;  %v1194_v0 = vld [vmem:[%s15574_s3 + $0x70] sm:$0xff] }
 0x15d   : > { %9592 = vmatprep.mubr.f32.mxu0 %v1262_v53  ;;  %v12136_v63 = vpack.c.bf16 %v1193_v62, %v1192_v61  ;;  %v1195_v1 = vld [vmem:[%s15574_s3 + $0x78] sm:$0xff]  ;;  %v12149_v3 = vld [vmem:[#allocation2 + $0x8] sm:$0xff]  ;;  %v12153_v5 = vld [vmem:[#allocation2 + $0x10] sm:$0xff] }
 0x15e   : > { %15806 = vst [vmem:[#allocation11_spill] sm:$0xff] %v12116_v57  ;;  %15807 = vst [vmem:[#allocation12_spill] sm:$0xff] %v12126_v60  ;;  %v12146_v2 = vpack.c.bf16 %v1195_v1, %v1194_v0  ;;  %v1247_v4 = vld [vmem:[%s11988_s27 + $0x8] sm:$0xff]  ;;  %v1248_v6 = vld [vmem:[%s11988_s27 + $0x10] sm:$0xff] }
 0x15f   : > { %10521 = vmatpush3.bf16.msra.mxu0 %v12081_v45  ;;  %15808 = vst [vmem:[#allocation13_spill] sm:$0xff] %v12136_v63  ;;  %v1263_v7 = vmul.f32 %v1247_v4, %v12149_v3  ;;  %v1264_v8 = vmul.f32 %v1248_v6, %v12153_v5  ;;  %v12159_v9 = vld [vmem:[#allocation2 + $0x18] sm:$0xff]  ;;  %v12163_v11 = vld [vmem:[#allocation2 + $0x20] sm:$0xff]  ;;  %v12169_v15 = vld [vmem:[#allocation2 + $0x28] sm:$0xff] }
 0x160   : > { %10523 = vmatprep.subr.bf16.mxu0 %v12092_v48  ;;  %15809 = vst [vmem:[#allocation14_spill] sm:$0xff] %v12146_v2  ;;  %v1249_v10 = vld [vmem:[%s11988_s27 + $0x18] sm:$0xff]  ;;  %v1250_v12 = vld [vmem:[%s11988_s27 + $0x20] sm:$0xff]  ;;  %v1251_v16 = vld [vmem:[%s11988_s27 + $0x28] sm:$0xff] }
 0x161   : > { %v1265_v13 = vmul.f32 %v1249_v10, %v12159_v9  ;;  %v1266_v14 = vmul.f32 %v1250_v12, %v12163_v11  ;;  %v12173_v17 = vld [vmem:[#allocation2 + $0x30] sm:$0xff]  ;;  %v1267_v19 = vmul.f32 %v1251_v16, %v12169_v15  ;;  %v12179_v21 = vld [vmem:[#allocation2 + $0x38] sm:$0xff]  ;;  %v12183_v23 = vld [vmem:[#allocation2 + $0x40] sm:$0xff] }
 0x162   : > { %v1252_v18 = vld [vmem:[%s11988_s27 + $0x30] sm:$0xff]  ;;  %v1253_v22 = vld [vmem:[%s11988_s27 + $0x38] sm:$0xff]  ;;  %v1254_v24 = vld [vmem:[%s11988_s27 + $0x40] sm:$0xff] }
 0x163   : > { %10525 = vmatpush3.bf16.msra.mxu0 %v12092_v48  ;;  %v1268_v20 = vmul.f32 %v1252_v18, %v12173_v17  ;;  %v1269_v25 = vmul.f32 %v1253_v22, %v12179_v21  ;;  %v1270_v26 = vmul.f32 %v1254_v24, %v12183_v23  ;;  %v12189_v27 = vld [vmem:[#allocation2 + $0x48] sm:$0xff]  ;;  %v1174_v29 = vld [vmem:[#allocation2 + $0x50] sm:$0xff]  ;;  %v1175_v33 = vld [vmem:[#allocation2 + $0x58] sm:$0xff] }
 0x164   : > { %10527 = vmatprep.subr.bf16.mxu0 %v12106_v54  ;;  %v1255_v28 = vld [vmem:[%s11988_s27 + $0x48] sm:$0xff]  ;;  %v1256_v30 = vld [vmem:[%s11988_s27 + $0x50] sm:$0xff]  ;;  %v1257_v34 = vld [vmem:[%s11988_s27 + $0x58] sm:$0xff] }
 0x165   : > { %v1271_v31 = vmul.f32 %v1255_v28, %v12189_v27  ;;  %v1272_v32 = vmul.f32 %v1256_v30, %v1174_v29  ;;  %v1176_v35 = vld [vmem:[#allocation2 + $0x60] sm:$0xff]  ;;  %v1273_v37 = vmul.f32 %v1257_v34, %v1175_v33  ;;  %v1177_v39 = vld [vmem:[#allocation2 + $0x68] sm:$0xff]  ;;  %v1178_v41 = vld [vmem:[#allocation2 + $0x70] sm:$0xff] }
 0x166   : > { %v1258_v36 = vld [vmem:[%s11988_s27 + $0x60] sm:$0xff]  ;;  %v1259_v40 = vld [vmem:[%s11988_s27 + $0x68] sm:$0xff]  ;;  %v1260_v42 = vld [vmem:[%s11988_s27 + $0x70] sm:$0xff] }
 0x167   : > { %10529 = vmatpush3.bf16.msra.mxu0 %v12106_v54  ;;  %v1274_v38 = vmul.f32 %v1258_v36, %v1176_v35  ;;  %v1275_v44 = vmul.f32 %v1259_v40, %v1177_v39  ;;  %v1276_v46 = vmul.f32 %v1260_v42, %v1178_v41  ;;  %v1179_v47 = vld [vmem:[#allocation2 + $0x78] sm:$0xff]  ;;  %v8560_v51 = vld [vmem:[%s11988_s27 + $0x80] sm:$0xff]  ;;  %v8561_v55 = vld [vmem:[%s11988_s27 + $0x88] sm:$0xff] }
 0x168   : > { %10531 = vmatprep.subr.bf16.mxu0 %v12116_v57  ;;  %v1261_v50 = vld [vmem:[%s11988_s27 + $0x78] sm:$0xff]  ;;  %v2091_v53 = vmul.f32 %v8560_v51, %v12094_v49  ;;  %v8562_v56 = vld [vmem:[%s11988_s27 + $0x90] sm:$0xff]  ;;  %v2092_v58 = vmul.f32 %v8561_v55, %v12149_v3  ;;  %v8564_v62 = vld [vmem:[%s11988_s27 + $0xa0] sm:$0xff] }
 0x169   : > { %v1277_v52 = vmul.f32 %v1261_v50, %v1179_v47  ;;  %v2093_v59 = vmul.f32 %v8562_v56, %v12153_v5  ;;  %v8563_v61 = vld [vmem:[%s11988_s27 + $0x98] sm:$0xff]  ;;  %v2095_v0 = vmul.f32 %v8564_v62, %v12163_v11  ;;  %v8565_v1 = vld [vmem:[%s11988_s27 + $0xa8] sm:$0xff]  ;;  %v8566_v4 = vld [vmem:[%s11988_s27 + $0xb0] sm:$0xff] }
 0x16a   : > { %v2094_v49 = vmul.f32 %v8563_v61, %v12159_v9  ;;  %v2096_v3 = vmul.f32 %v8565_v1, %v12169_v15  ;;  %v2097_v6 = vmul.f32 %v8566_v4, %v12173_v17  ;;  %v8569_v9 = vld [vmem:[%s11988_s27 + $0xc8] sm:$0xff]  ;;  %v12232_v12 = vld [vmem:[%s15575_s4] sm:$0xf]  ;;  %v1201_v35 = vld [vmem:[#allocation3 + $0x18] sm:$0xff] }
 0x16b   : > { %10533 = vmatpush3.bf16.msra.mxu0 %v12116_v57  ;;  %v2100_v11 = vmul.f32 %v8569_v9, %v12189_v27  ;;  %15810 = vst [vmem:[#allocation15_spill] sm:$0xff] %v12232_v12  ;;  %9616 = vmatprep.subr.msk.mxu1 %vm1684_vm2, %v12232_v12  ;;  %v1197_v16 = vld [vmem:[%s11976_s19] sm:$0xff]  ;;  %v1199_v22 = vld [vmem:[#allocation3 + $0x8] sm:$0xff]  ;;  %v1200_v41 = vld [vmem:[#allocation3 + $0x10] sm:$0xff] }
 0x16c   : > { %10535 = vmatprep.subr.bf16.mxu0 %v12126_v60  ;;  %9617 = vmatpush3.msk.msra.mxu1 %vm1684_vm2, %v12232_v12  ;;  %v1202_v9 = vld [vmem:[#allocation3 + $0x20] sm:$0xff] }
 0x16d   : > { %9642 = vmatprep.subr.msk.mxu1 %vm1684_vm2, %v12232_v12 }
 0x16f   : > { %10537 = vmatpush3.bf16.msra.mxu0 %v12126_v60 }
 0x170   : > { %10539 = vmatprep.subr.bf16.mxu0 %v12136_v63 }
 0x173   : > { %10541 = vmatpush3.bf16.msra.mxu0 %v12136_v63 }
 0x174   : > { %10543 = vmatprep.subr.bf16.mxu0 %v12146_v2 }
 0x177   : > { %10545 = vmatpush3.bf16.msra.mxu0 %v12146_v2 }
 0x178   : > { %10547 = vmatprep.subr.bf16.mxu0 %v12076_v43 }
 0x17a   : > { %9593 = vmatmul.mubr.f32.vlgmr.msra.gmra.mrb[0].mxu0 %v1263_v7  ;;  %v8567_v7 = vld [vmem:[%s11988_s27 + $0xb8] sm:$0xff] }
 0x17b   : > { %10549 = vmatpush3.bf16.msra.mxu0 %v12076_v43  ;;  %9595 = vmatprep.mubr.f32.mxu0 %v1264_v8  ;;  %v8568_v8 = vld [vmem:[%s11988_s27 + $0xc0] sm:$0xff]  ;;  %v2098_v5 = vmul.f32 %v8567_v7, %v12179_v21 }
 0x17c   : > { %10551 = vmatprep.subr.bf16.mxu0 %v12081_v45  ;;  %v2099_v10 = vmul.f32 %v8568_v8, %v12183_v23 }
 0x17e   : > { %9596 = vmatmul.mubr.f32.gmra.mrb[2].mxu0 %v1265_v13  ;;  %v1471_v13 = vlaneseq }
 0x17f   : > { %10553 = vmatpush3.bf16.msra.mxu0 %v12081_v45  ;;  %9598 = vmatprep.mubr.f32.mxu0 %v1266_v14 }
 0x180   : > { %10555 = vmatprep.subr.bf16.mxu0 %v12092_v48  ;;  %v12246_v14 = vshrl.u32 %v1471_v13, 7 }
 0x182   : > { %9599 = vmatmul.mubr.f32.gmra.mrb[4].mxu0 %v1267_v19  ;;  %15811 = vst [vmem:[#allocation16_spill] sm:$0xff] %v12246_v14  ;;  %v1473_v15 = vsub.s32 0, %v12246_v14  ;;  %v2302_v24 = vsub.s32 1, %v12246_v14 }
 0x183   : > { %10557 = vmatpush3.bf16.msra.mxu0 %v12092_v48  ;;  %9601 = vmatprep.mubr.f32.mxu0 %v1268_v20 }
 0x184   : > { %10559 = vmatprep.subr.bf16.mxu0 %v12106_v54  ;;  %v12250_v18 = vrot.slane %v1197_v16, %v1473_v15 }
 0x186   : > { %9602 = vmatmul.mubr.f32.gmra.mrb[6].mxu0 %v1269_v25 }
 0x187   : > { %10561 = vmatpush3.bf16.msra.mxu0 %v12106_v54  ;;  %9604 = vmatprep.mubr.f32.mxu0 %v1270_v26  ;;  %v12254_v26 = vld [vmem:[#allocation3] sm:$0xff]  ;;  %v1213_v54 = vld [vmem:[#allocation3 + $0x78] sm:$0xff] }
 0x188   : > { %10563 = vmatprep.subr.bf16.mxu0 %v12116_v57 }
 0x18a   : > { %9605 = vmatmul.mubr.f32.gmra.mrb[8].mxu0 %v1271_v31 }
 0x18b   : > { %10565 = vmatpush3.bf16.msra.mxu0 %v12116_v57  ;;  %9607 = vmatprep.mubr.f32.mxu0 %v1272_v32 }
 0x18c   : > { %10567 = vmatprep.subr.bf16.mxu0 %v12126_v60 }
 0x18e   : > { %9608 = vmatmul.mubr.f32.gmra.mrb[10].mxu0 %v1273_v37  ;;  %v12262_v37 = vrot.slane %v1197_v16, %v2302_v24 }
 0x18f   : > { %10569 = vmatpush3.bf16.msra.mxu0 %v12126_v60  ;;  %9610 = vmatprep.mubr.f32.mxu0 %v1274_v38 }
 0x190   : > { %10571 = vmatprep.subr.bf16.mxu0 %v12136_v63 }
 0x192   : > { %9611 = vmatmul.mubr.f32.gmra.mrb[12].mxu0 %v1275_v44 }
 0x193   : > { %10573 = vmatpush3.bf16.msra.mxu0 %v12136_v63  ;;  %9613 = vmatprep.mubr.f32.mxu0 %v1276_v46 }
 0x194   : > { %10575 = vmatprep.subr.bf16.mxu0 %v12146_v2 }
 0x196   : > { %9614 = vmatmul.mubr.f32.gmra.mrb[14].mxu0 %v1277_v52 }
 0x197   : > { %10577 = vmatpush3.bf16.msra.mxu0 %v12146_v2  ;;  %9700 = vmatprep.mubr.f32.mxu0 %v2091_v53 }
 0x198   : > { %9750 = vmatprep.subr.msk.mxu0 %vm1684_vm2, %v12232_v12 }
 0x19a   : > { %9701 = vmatmul.mubr.f32.vlgmr.msra.gmra.mrb[16].mxu0 %v2092_v58 }
 0x19b   : > { %9703 = vmatprep.mubr.f32.mxu0 %v2093_v59  ;;  %9751 = vmatpush3.msk.msra.mxu0 %vm1684_vm2, %v12232_v12 }
 0x19c   : > { %9832 = vmatprep.subr.msk.mxu0 %vm1684_vm2, %v12232_v12 }
 0x19e   : > { %9704 = vmatmul.mubr.f32.gmra.mrb[18].mxu0 %v2094_v49 }
 0x19f   : > { %9706 = vmatprep.mubr.f32.mxu0 %v2095_v0  ;;  %v1203_v0 = vld [vmem:[#allocation3 + $0x28] sm:$0xff] }
 0x1a2   : > { %9707 = vmatmul.mubr.f32.gmra.mrb[20].mxu0 %v2096_v3 }
 0x1a3   : > { %9709 = vmatprep.mubr.f32.mxu0 %v2097_v6 }
 0x1a6   : > { %9710 = vmatmul.mubr.f32.gmra.mrb[22].mxu0 %v2098_v5 }
 0x1a7   : > { %9712 = vmatprep.mubr.f32.mxu0 %v2099_v10 }
 0x1aa   : > { %9713 = vmatmul.mubr.f32.gmra.mrb[24].mxu0 %v2100_v11 }
 0x24d   : > { %v9594_v17 = vpop.f32.mrb[0].mxu0 }
 0x24e   : > { %vm1424_vm3 = vcmp.ge.f32.partialorder %v9594_v17, 0.0  ;;  %v1440_v19 = vmul.f32 0.01, %v9594_v17  ;;  %v1344_v20 = vpop.f32.mrb[1].mxu0 }
 0x24f   : > { %vm1423_vm4 = vcmp.ge.f32.partialorder %v1344_v20, 0.0  ;;  %v1439_v21 = vmul.f32 0.01, %v1344_v20 }
 0x250   : > { %v1456_v23 = vsel %vm1424_vm3, %v9594_v17, %v1440_v19 }
 0x251   : > { %v1476_v25 = vmul.f32 %v12250_v18, %v1456_v23  ;;  %v1455_v27 = vsel %vm1423_vm4, %v1344_v20, %v1439_v21  ;;  %v9597_v28 = vpop.f32.mrb[2].mxu0 }
 0x252   : > { %v1475_v29 = vmul.f32 %v12250_v18, %v1455_v27  ;;  %vm1426_vm5 = vcmp.ge.f32.partialorder %v9597_v28, 0.0  ;;  %v1442_v30 = vmul.f32 0.01, %v9597_v28  ;;  %v1354_v31 = vpop.f32.mrb[3].mxu0 }
 0x253   : > { %v12257_v32 = vmax.f32 %v1199_v22, %v1476_v25  ;;  %vm1425_vm6 = vcmp.ge.f32.partialorder %v1354_v31, 0.0  ;;  %v1441_v33 = vmul.f32 0.01, %v1354_v31 }
 0x254   : > { %v12260_v34 = vmax.f32 %v12254_v26, %v1475_v29  ;;  %v1458_v36 = vsel %vm1426_vm5, %v9597_v28, %v1442_v30 }
 0x255   : > { %v1508_v38 = vsub.f32 %v1199_v22, %v12257_v32  ;;  %v1556_v39 = vsub.f32 %v1476_v25, %v12257_v32  ;;  %v1478_v40 = vmul.f32 %v12250_v18, %v1458_v36  ;;  %v1457_v42 = vsel %vm1425_vm6, %v1354_v31, %v1441_v33  ;;  %v9600_v44 = vpop.f32.mrb[4].mxu0  ;;  %v1205_v31 = vld [vmem:[#allocation3 + $0x38] sm:$0xff]  ;;  %v1215_v33 = vld [vmem:[#allocation4 + $0x8] sm:$0xff] }
 0x256   : > { %v1507_v46 = vsub.f32 %v12254_v26, %v12260_v34  ;;  %v1555_v47 = vsub.f32 %v1475_v29, %v12260_v34  ;;  %v1477_v50 = vmul.f32 %v12250_v18, %v1457_v42  ;;  %vm1428_vm7 = vcmp.ge.f32.partialorder %v9600_v44, 0.0  ;;  %v1364_v51 = vpop.f32.mrb[5].mxu0 }
 0x257   : > { %v1525_v52 = vmul.f32 1.442695, %v1508_v38  ;;  %v1573_v53 = vmul.f32 1.442695, %v1556_v39  ;;  %v12271_v55 = vmax.f32 %v1201_v35, %v1478_v40  ;;  %v1444_v56 = vmul.f32 0.01, %v9600_v44 }
 0x258   : > { %v1571_v58 = vmul.f32 1.442695, %v1555_v47  ;;  %v12273_v59 = vmax.f32 %v1200_v41, %v1477_v50  ;;  %vm1427_vm8 = vcmp.ge.f32.partialorder %v1364_v51, 0.0  ;;  %v1443_v61 = vmul.f32 0.01, %v1364_v51  ;;  %v1204_v38 = vld [vmem:[#allocation3 + $0x30] sm:$0xff] }
 0x259   : > { %10896 = vpow2.f32 %v1525_v52  ;;  %v1510_v62 = vsub.f32 %v1201_v35, %v12271_v55  ;;  %v1558_v49 = vsub.f32 %v1478_v40, %v12271_v55  ;;  %v1460_v1 = vsel %vm1428_vm7, %v9600_v44, %v1444_v56  ;;  %v9603_v4 = vpop.f32.mrb[6].mxu0 }
 0x25a   : > { %10898 = vpow2.f32 %v1573_v53  ;;  %v1509_v3 = vsub.f32 %v1200_v41, %v12273_v59  ;;  %v1557_v6 = vsub.f32 %v1477_v50, %v12273_v59  ;;  %v1480_v7 = vmul.f32 %v12250_v18, %v1460_v1  ;;  %v1374_v8 = vpop.f32.mrb[7].mxu0  ;;  %v1207_v53 = vld [vmem:[#allocation3 + $0x48] sm:$0xff]  ;;  %v1217_v1 = vld [vmem:[#allocation4 + $0x18] sm:$0xff] }
 0x25b   : > { %10900 = vpow2.f32 %v1571_v58  ;;  %v1529_v5 = vmul.f32 1.442695, %v1510_v62  ;;  %v1577_v10 = vmul.f32 1.442695, %v1558_v49  ;;  %v1459_v11 = vsel %vm1427_vm8, %v1364_v51, %v1443_v61 }
 0x25c   : > { %v1527_v13 = vmul.f32 1.442695, %v1509_v3  ;;  %v1575_v15 = vmul.f32 1.442695, %v1557_v6  ;;  %v12281_v16 = vmax.f32 %v1203_v0, %v1480_v7  ;;  %v1479_v17 = vmul.f32 %v12250_v18, %v1459_v11 }
 0x25d   : > { %10902 = vpow2.f32 %v1529_v5  ;;  %vm1430_vm9 = vcmp.ge.f32.partialorder %v9603_v4, 0.0  ;;  %v1446_v19 = vmul.f32 0.01, %v9603_v4  ;;  %vm1429_vm10 = vcmp.ge.f32.partialorder %v1374_v8, 0.0  ;;  %v9606_v20 = vpop.f32.mrb[8].mxu0 }
 0x25e   : > { %10904 = vpow2.f32 %v1577_v10  ;;  %v1512_v21 = vsub.f32 %v1203_v0, %v12281_v16  ;;  %v1560_v22 = vsub.f32 %v1480_v7, %v12281_v16  ;;  %v12286_v23 = vmax.f32 %v1202_v9, %v1479_v17  ;;  %v1384_v24 = vpop.f32.mrb[9].mxu0 }
 0x25f   : > { %10906 = vpow2.f32 %v1527_v13  ;;  %v1462_v25 = vsel %vm1430_vm9, %v9603_v4, %v1446_v19  ;;  %v1445_v27 = vmul.f32 0.01, %v1374_v8  ;;  %vm1432_vm11 = vcmp.ge.f32.partialorder %v9606_v20, 0.0 }
 0x260   : > { %10908 = vpow2.f32 %v1575_v15  ;;  %v1533_v28 = vmul.f32 1.442695, %v1512_v21  ;;  %v1581_v29 = vmul.f32 1.442695, %v1560_v22  ;;  %v1511_v30 = vsub.f32 %v1202_v9, %v12286_v23  ;;  %v1216_v15 = vld [vmem:[#allocation4 + $0x10] sm:$0xff] }
 0x261   : > { %v1559_v35 = vsub.f32 %v1479_v17, %v12286_v23  ;;  %v1482_v36 = vmul.f32 %v12250_v18, %v1462_v25  ;;  %v1461_v39 = vsel %vm1429_vm10, %v1374_v8, %v1445_v27  ;;  %v1448_v40 = vmul.f32 0.01, %v9606_v20  ;;  %v9609_v41 = vpop.f32.mrb[10].mxu0 }
 0x262   : > { %10910 = vpow2.f32 %v1533_v28  ;;  %v1531_v42 = vmul.f32 1.442695, %v1511_v30  ;;  %v1481_v44 = vmul.f32 %v12250_v18, %v1461_v39  ;;  %vm1431_vm12 = vcmp.ge.f32.partialorder %v1384_v24, 0.0  ;;  %v12293_v47 = vpop.f32.mrb[11].mxu0 }
 0x263   : > { %v12295_v50 = vpop.eup %10896  ;;  %10912 = vpow2.f32 %v1581_v29  ;;  %v1579_v51 = vmul.f32 1.442695, %v1559_v35  ;;  %v12297_v52 = vmax.f32 %v1205_v31, %v1482_v36  ;;  %v1464_v56 = vsel %vm1432_vm11, %v9606_v20, %v1448_v40  ;;  %v1206_v29 = vld [vmem:[#allocation3 + $0x40] sm:$0xff]  ;;  %v1219_v40 = vld [vmem:[#allocation4 + $0x28] sm:$0xff] }
 0x264   : > { %v12300_v58 = vpop.eup %10898  ;;  %v1604_v61 = vmul.f32 %v12295_v50, %v1215_v33  ;;  %10914 = vpow2.f32 %v1531_v42  ;;  %v12303_v62 = vmax.f32 %v1204_v38, %v1481_v44  ;;  %v1484_v49 = vmul.f32 %v12250_v18, %v1464_v56  ;;  %v1209_v56 = vld [vmem:[#allocation3 + $0x58] sm:$0xff] }
 0x265   : > { %v12306_v0 = vpop.eup %10900  ;;  %10916 = vpow2.f32 %v1579_v51  ;;  %v1514_v4 = vsub.f32 %v1205_v31, %v12297_v52  ;;  %v1562_v3 = vsub.f32 %v1482_v36, %v12297_v52  ;;  %v1447_v6 = vmul.f32 0.01, %v1384_v24  ;;  %v12310_v7 = vpop.f32.mrb[12].mxu0 }
 0x266   : > { %v12313_v8 = vadd.f32 %v12300_v58, %v1604_v61  ;;  %v1513_v5 = vsub.f32 %v1204_v38, %v12303_v62  ;;  %v1561_v10 = vsub.f32 %v1481_v44, %v12303_v62  ;;  %v12317_v9 = vmax.f32 %v1207_v53, %v1484_v49  ;;  %v12319_v11 = vpop.f32.mrb[13].mxu0 }
 0x267   : > { %v12321_v13 = vpop.eup %10902  ;;  %v1537_v17 = vmul.f32 1.442695, %v1514_v4  ;;  %v1585_v19 = vmul.f32 1.442695, %v1562_v3  ;;  %v1463_v20 = vsel %vm1431_vm12, %v1384_v24, %v1447_v6  ;;  %vm1434_vm13 = vcmp.ge.f32.partialorder %v9609_v41, 0.0  ;;  %v1218_v4 = vld [vmem:[#allocation4 + $0x20] sm:$0xff] }
 0x268   : > { %v12324_v21 = vpop.eup %10904  ;;  %v1606_v22 = vmul.f32 %v12321_v13, %v1217_v1  ;;  %v1535_v25 = vmul.f32 1.442695, %v1513_v5  ;;  %v1583_v27 = vmul.f32 1.442695, %v1561_v10  ;;  %v1516_v28 = vsub.f32 %v1207_v53, %v12317_v9 }
 0x269   : > { %v12328_v30 = vpop.eup %10906  ;;  %10918 = vpow2.f32 %v1537_v17  ;;  %v1564_v31 = vsub.f32 %v1484_v49, %v12317_v9  ;;  %v1483_v33 = vmul.f32 %v12250_v18, %v1463_v20  ;;  %v1450_v35 = vmul.f32 0.01, %v9609_v41  ;;  %v12332_v36 = vpop.f32.mrb[14].mxu0 }
 0x26a   : > { %v12334_v24 = vpop.eup %10908  ;;  %v12337_v38 = vadd.f32 %v12324_v21, %v1606_v22  ;;  %v1605_v39 = vmul.f32 %v12328_v30, %v1216_v15  ;;  %10920 = vpow2.f32 %v1585_v19  ;;  %v1541_v42 = vmul.f32 1.442695, %v1516_v28  ;;  %v12340_v44 = vpop.f32.mrb[15].mxu0 }
 0x26b   : > { %10922 = vpow2.f32 %v1535_v25  ;;  %v1589_v51 = vmul.f32 1.442695, %v1564_v31  ;;  %v12342_v53 = vmax.f32 %v1206_v29, %v1483_v33  ;;  %v1466_v61 = vsel %vm1434_vm13, %v9609_v41, %v1450_v35 }
 0x26c   : > { %v12345_v49 = vpop.eup %10910  ;;  %v12348_v1 = vadd.f32 %v12334_v24, %v1605_v39  ;;  %10924 = vpow2.f32 %v1583_v27  ;;  %v1486_v3 = vmul.f32 %v12250_v18, %v1466_v61  ;;  %vm1433_vm14 = vcmp.ge.f32.partialorder %v12293_v47, 0.0  ;;  %v1208_v39 = vld [vmem:[#allocation3 + $0x50] sm:$0xff]  ;;  %v1221_v61 = vld [vmem:[#allocation4 + $0x38] sm:$0xff] }
 0x26d   : > { %v12352_v6 = vpop.eup %10912  ;;  %v1608_v5 = vmul.f32 %v12345_v49, %v1219_v40  ;;  %10926 = vpow2.f32 %v1541_v42  ;;  %v1515_v10 = vsub.f32 %v1206_v29, %v12342_v53  ;;  %v1563_v41 = vsub.f32 %v1483_v33, %v12342_v53  ;;  %v12357_v15 = vpop.f32.mrb[16].mxu0 }
 0x26e   : > { %15812 = vst [vmem:[#allocation17_spill] sm:$0xff] %v12352_v6  ;;  %v12359_v17 = vpop.eup %10914  ;;  %10928 = vpow2.f32 %v1589_v51  ;;  %v12361_v19 = vmax.f32 %v1209_v56, %v1486_v3  ;;  %v1449_v20 = vmul.f32 0.01, %v12293_v47  ;;  %vm1436_vm15 = vcmp.ge.f32.partialorder %v12310_v7, 0.0  ;;  %v12365_v22 = vpop.f32.mrb[17].mxu0 }
 0x26f   : > { %v12367_v25 = vpop.eup %10916  ;;  %v12370_v27 = vadd.f32 %v12352_v6, %v1608_v5  ;;  %v1607_v28 = vmul.f32 %v12359_v17, %v1218_v4  ;;  %v1539_v29 = vmul.f32 1.442695, %v1515_v10  ;;  %v1587_v31 = vmul.f32 1.442695, %v1563_v41  ;;  %v1211_v41 = vld [vmem:[#allocation3 + $0x68] sm:$0xff] }
 0x270   : > { %15813 = vst [vmem:[#allocation18_spill] sm:$0xff] %v12361_v19  ;;  %15814 = vst [vmem:[#allocation19_spill] sm:$0xff] %v12367_v25  ;;  %v1518_v33 = vsub.f32 %v1209_v56, %v12361_v19  ;;  %v1566_v35 = vsub.f32 %v1486_v3, %v12361_v19  ;;  %v1465_v40 = vsel %vm1433_vm14, %v12293_v47, %v1449_v20  ;;  %v1452_v42 = vmul.f32 0.01, %v12310_v7 }
 0x271   : > { %v12380_v51 = vadd.f32 %v12367_v25, %v1607_v28  ;;  %10930 = vpow2.f32 %v1539_v29  ;;  %v1485_v4 = vmul.f32 %v12250_v18, %v1465_v40  ;;  %v1523_v56 = vmul.f32 1.442695, %v1507_v46  ;;  %v12386_v5 = vpop.f32.mrb[18].mxu0  ;;  %v1220_v29 = vld [vmem:[#allocation4 + $0x30] sm:$0xff] }
 0x272   : > { %10932 = vpow2.f32 %v1587_v31  ;;  %v1545_v3 = vmul.f32 1.442695, %v1518_v33  ;;  %v1593_v10 = vmul.f32 1.442695, %v1566_v35  ;;  %v1468_v47 = vsel %vm1436_vm15, %v12310_v7, %v1452_v42  ;;  %v12391_v20 = vpop.f32.mrb[19].mxu0  ;;  %v1223_v35 = vld [vmem:[#allocation4 + $0x48] sm:$0xff] }
 0x273   : > { %v12393_v28 = vpop.eup %10918  ;;  %v12395_v40 = vmax.f32 %v1208_v39, %v1485_v4  ;;  %v1488_v26 = vmul.f32 %v12250_v18, %v1468_v47  ;;  %10934 = vpow2.f32 %v1523_v56  ;;  %vm1435_vm1 = vcmp.ge.f32.partialorder %v12319_v11, 0.0 }
 0x274   : > { %v12399_v46 = vpop.eup %10920  ;;  %v1610_v31 = vmul.f32 %v12393_v28, %v1221_v61  ;;  %10936 = vpow2.f32 %v1545_v3  ;;  %v1451_v7 = vmul.f32 0.01, %v12319_v11  ;;  %vm1438_vm3 = vcmp.ge.f32.partialorder %v12332_v36, 0.0 }
 0x275   : > { %15815 = vst [vmem:[#allocation20_spill] sm:$0xff] %v12395_v40  ;;  %15816 = vst [vmem:[#allocation21_spill] sm:$0xff] %v12399_v46  ;;  %v12404_v33 = vpop.eup %10922  ;;  %10938 = vpow2.f32 %v1593_v10  ;;  %v1517_v42 = vsub.f32 %v1208_v39, %v12395_v40  ;;  %v1565_v56 = vsub.f32 %v1485_v4, %v12395_v40  ;;  %v12408_v47 = vmax.f32 %v1211_v41, %v1488_v26  ;;  %v12410_v14 = vpop.f32.mrb[20].mxu0 }
 0x276   : > { %v12412_v19 = vpop.eup %10924  ;;  %v12415_v61 = vadd.f32 %v12399_v46, %v1610_v31  ;;  %v1609_v3 = vmul.f32 %v12404_v33, %v1220_v29  ;;  %v1467_v2 = vsel %vm1435_vm1, %v12319_v11, %v1451_v7  ;;  %v1454_v10 = vmul.f32 0.01, %v12332_v36  ;;  %v12422_v39 = vpop.f32.mrb[21].mxu0  ;;  %v1210_v31 = vld [vmem:[#allocation3 + $0x60] sm:$0xff] }
 0x277   : > { %15817 = vst [vmem:[#allocation22_spill] sm:$0xff] %v12408_v47  ;;  %15818 = vst [vmem:[#allocation23_spill] sm:$0xff] %v12412_v19  ;;  %v12424_v4 = vpop.eup %10926  ;;  %v1543_v40 = vmul.f32 1.442695, %v1517_v42  ;;  %v1591_v63 = vmul.f32 1.442695, %v1565_v56  ;;  %v1520_v60 = vsub.f32 %v1211_v41, %v12408_v47  ;;  %v1568_v57 = vsub.f32 %v1488_v26, %v12408_v47 }
 0x278   : > { %15819 = vst [vmem:[#allocation24_spill] sm:$0xff] %v12415_v61  ;;  %v12428_v46 = vpop.eup %10928  ;;  %v12431_v29 = vadd.f32 %v12412_v19, %v1609_v3  ;;  %v1612_v11 = vmul.f32 %v12424_v4, %v1223_v35  ;;  %v1487_v7 = vmul.f32 %v12250_v18, %v1467_v2  ;;  %v1470_v42 = vsel %vm1438_vm3, %v12332_v36, %v1454_v10  ;;  %v1222_v56 = vld [vmem:[#allocation4 + $0x40] sm:$0xff]  ;;  %v1225_v10 = vld [vmem:[#allocation4 + $0x58] sm:$0xff] }
 0x279   : > { %15820 = vst [vmem:[#allocation25_spill] sm:$0xff] %v12428_v46  ;;  %10940 = vpow2.f32 %v1543_v40  ;;  %v1549_v41 = vmul.f32 1.442695, %v1520_v60  ;;  %v1597_v61 = vmul.f32 1.442695, %v1568_v57  ;;  %v1490_v26 = vmul.f32 %v12250_v18, %v1470_v42  ;;  %v12439_v47 = vpop.f32.mrb[22].mxu0 }
 0x27a   : > { %15821 = vst [vmem:[#allocation26_spill] sm:$0xff] %v12431_v29  ;;  %v12442_v3 = vadd.f32 %v12428_v46, %v1612_v11  ;;  %10942 = vpow2.f32 %v1591_v63  ;;  %v12444_v35 = vmax.f32 %v1210_v31, %v1487_v7  ;;  %vm1437_vm4 = vcmp.ge.f32.partialorder %v12340_v44, 0.0  ;;  %v12447_v2 = vpop.f32.mrb[23].mxu0  ;;  %v1214_v36 = vld [vmem:[#allocation4] sm:$0xff] }
 0x27b   : > { %v12449_v29 = vpop.eup %10930  ;;  %10944 = vpow2.f32 %v1549_v41  ;;  %v12451_v60 = vmax.f32 %v1213_v54, %v1490_v26  ;;  %v1453_v57 = vmul.f32 0.01, %v12340_v44  ;;  %vm2253_vm5 = vcmp.ge.f32.partialorder %v12357_v15, 0.0 }
 0x27c   : > { %15822 = vst [vmem:[#allocation27_spill] sm:$0xff] %v12442_v3  ;;  %15823 = vst [vmem:[#allocation28_spill] sm:$0xff] %v12444_v35  ;;  %v12455_v40 = vpop.eup %10932  ;;  %v1611_v63 = vmul.f32 %v12449_v29, %v1222_v56  ;;  %10946 = vpow2.f32 %v1597_v61  ;;  %v1519_v11 = vsub.f32 %v1210_v31, %v12444_v35  ;;  %v1567_v42 = vsub.f32 %v1487_v7, %v12444_v35  ;;  %v1212_v35 = vld [vmem:[#allocation3 + $0x70] sm:$0xff] }
 0x27d   : > { %15824 = vst [vmem:[#allocation29_spill] sm:$0xff] %v12451_v60  ;;  %v10935_v46 = vpop.eup %10934  ;;  %v1522_v41 = vsub.f32 %v1213_v54, %v12451_v60  ;;  %v1570_v3 = vsub.f32 %v1490_v26, %v12451_v60  ;;  %v1469_v19 = vsel %vm1437_vm4, %v12340_v44, %v1453_v57  ;;  %v2269_v6 = vmul.f32 0.01, %v12357_v15  ;;  %v12466_v48 = vpop.f32.mrb[24].mxu0 }
 0x27e   : > { %v12468_v56 = vpop.eup %10936  ;;  %v12471_v61 = vadd.f32 %v12455_v40, %v1611_v63  ;;  %v1603_v31 = vmul.f32 %v10935_v46, %v1214_v36  ;;  %9618 = vmatprep.mubr.msk.f32.mxu1 %vm1635_vm0, %v10935_v46  ;;  %v1547_v7 = vmul.f32 1.442695, %v1519_v11  ;;  %v1595_v54 = vmul.f32 1.442695, %v1567_v42  ;;  %v12474_v26 = vpop.f32.mrb[25].mxu0 }
 0x27f   : > { %v12476_v60 = vpop.eup %10938  ;;  %v1614_v44 = vmul.f32 %v12468_v56, %v1225_v10  ;;  %9619 = vmatmul.mubr.msk.f32.vlgmr.msra.gmra.mrb[0].mxu1 %vm1635_vm0, %v12295_v50  ;;  %v1553_v57 = vmul.f32 1.442695, %v1522_v41  ;;  %v1601_v25 = vmul.f32 1.442695, %v1570_v3  ;;  %v1489_v63 = vmul.f32 %v12250_v18, %v1469_v19  ;;  %v1224_v18 = vld [vmem:[#allocation4 + $0x50] sm:$0xff]  ;;  %v1227_v10 = vld [vmem:[#allocation4 + $0x68] sm:$0xff] }
 0x280   : > { %10948 = vpow2.f32 %v1547_v7  ;;  %9643 = vmatpush3.msk.msra.mxu1 %vm1684_vm2, %v12232_v12  ;;  %9621 = vmatprep.mubr.msk.f32.mxu1 %vm1635_vm0, %v12328_v30  ;;  %v2285_v46 = vsel %vm2253_vm5, %v12357_v15, %v2269_v6  ;;  %v12490_v36 = vadd.f32 %v12306_v0, %v1603_v31  ;;  %vm2252_vm6 = vcmp.ge.f32.partialorder %v12365_v22, 0.0 }
 0x281   : > { %v12494_v50 = vadd.f32 %v12476_v60, %v1614_v44  ;;  %10950 = vpow2.f32 %v1595_v54  ;;  %v12496_v19 = vmax.f32 %v1212_v35, %v1489_v63  ;;  %v2305_v3 = vmul.f32 %v12262_v37, %v2285_v46  ;;  %10806 = vmatprep.subr.bf16.mxu1 %v12076_v43 }
 0x282   : > { %10952 = vpow2.f32 %v1553_v57  ;;  %v2268_v30 = vmul.f32 0.01, %v12365_v22  ;;  %vm2255_vm7 = vcmp.ge.f32.partialorder %v12386_v5, 0.0  ;;  %v2271_v6 = vmul.f32 0.01, %v12386_v5 }
 0x283   : > { %v12503_v15 = vpop.eup %10940  ;;  %10954 = vpow2.f32 %v1601_v25  ;;  %v1521_v11 = vsub.f32 %v1212_v35, %v12496_v19  ;;  %v1569_v42 = vsub.f32 %v1489_v63, %v12496_v19  ;;  %9622 = vmatmul.mubr.msk.f32.gmra.mrb[2].mxu1 %vm1635_vm0, %v12321_v13  ;;  %v12510_v41 = vmax.f32 %v12257_v32, %v2305_v3 }
 0x284   : > { %v12512_v31 = vpop.eup %10942  ;;  %v1613_v7 = vmul.f32 %v12503_v15, %v1224_v18  ;;  %9624 = vmatprep.mubr.msk.f32.mxu1 %vm1635_vm0, %v12359_v17  ;;  %v2284_v25 = vsel %vm2252_vm6, %v12365_v22, %v2268_v30  ;;  %v2287_v35 = vsel %vm2255_vm7, %v12386_v5, %v2271_v6  ;;  %vm2254_vm8 = vcmp.ge.f32.partialorder %v12391_v20, 0.0 }
 0x285   : > { %15825 = vst [vmem:[#allocation30_spill] sm:$0xff] %v12510_v41  ;;  %v12522_v54 = vpop.eup %10944  ;;  %v1551_v13 = vmul.f32 1.442695, %v1521_v11  ;;  %v1599_v44 = vmul.f32 1.442695, %v1569_v42  ;;  %v2337_v57 = vsub.f32 %v12257_v32, %v12510_v41  ;;  %v2385_v63 = vsub.f32 %v2305_v3, %v12510_v41  ;;  %v1226_v11 = vld [vmem:[#allocation4 + $0x60] sm:$0xff] }
 0x286   : > { %v12527_v46 = vpop.eup %10946  ;;  %v12530_v17 = vadd.f32 %v12512_v31, %v1613_v7  ;;  %v1616_v22 = vmul.f32 %v12522_v54, %v1227_v10  ;;  %v2304_v5 = vmul.f32 %v12262_v37, %v2284_v25  ;;  %v2307_v18 = vmul.f32 %v12262_v37, %v2287_v35  ;;  %v1229_v35 = vld [vmem:[#allocation4 + $0x78] sm:$0xff] }
 0x287   : > { %10956 = vpow2.f32 %v1551_v13  ;;  %v2354_v30 = vmul.f32 1.442695, %v2337_v57  ;;  %v2402_v6 = vmul.f32 1.442695, %v2385_v63  ;;  %9625 = vmatmul.mubr.msk.f32.gmra.mrb[4].mxu1 %vm1635_vm0, %v12345_v49  ;;  %v2270_v32 = vmul.f32 0.01, %v12391_v20 }
 0x288   : > { %v12539_v3 = vadd.f32 %v12527_v46, %v1616_v22  ;;  %10958 = vpow2.f32 %v1599_v44  ;;  %v12542_v42 = vmax.f32 %v12260_v34, %v2304_v5  ;;  %9627 = vmatprep.mubr.msk.f32.mxu1 %vm1635_vm0, %v12404_v33  ;;  %v12547_v10 = vmax.f32 %v12271_v55, %v2307_v18  ;;  %v1245_v41 = vld [vmem:[#allocation5 + $0x78] sm:$0xff] }
 0x289   : > { %10960 = vpow2.f32 %v2354_v30  ;;  %v2286_v49 = vsel %vm2254_vm8, %v12391_v20, %v2270_v32  ;;  %vm2257_vm9 = vcmp.ge.f32.partialorder %v12410_v14, 0.0  ;;  %v2273_v7 = vmul.f32 0.01, %v12410_v14 }
 0x28a   : > { %15826 = vst [vmem:[#allocation31_spill] sm:$0xff] %v12542_v42  ;;  %15827 = vst [vmem:[#allocation32_spill] sm:$0xff] %v12547_v10  ;;  %v10949_v25 = vpop.eup %10948  ;;  %10962 = vpow2.f32 %v2402_v6  ;;  %v2336_v13 = vsub.f32 %v12260_v34, %v12542_v42  ;;  %v2384_v33 = vsub.f32 %v2304_v5, %v12542_v42  ;;  %v2339_v44 = vsub.f32 %v12271_v55, %v12547_v10 }
 0x28b   : > { %v12559_v57 = vpop.eup %10950  ;;  %v1615_v63 = vmul.f32 %v10949_v25, %v1226_v11  ;;  %v2387_v20 = vsub.f32 %v2307_v18, %v12547_v10  ;;  %9628 = vmatmul.mubr.msk.f32.gmra.mrb[6].mxu1 %vm1635_vm0, %v12393_v28  ;;  %v2306_v22 = vmul.f32 %v12262_v37, %v2286_v49  ;;  %v2289_v30 = vsel %vm2257_vm9, %v12410_v14, %v2273_v7  ;;  %v11421_v10 = vld [vmem:[%s11988_s27 + $0x38] sm:$0xff] }
 0x28c   : > { %v12566_v6 = vpop.eup %10952  ;;  %v2352_v34 = vmul.f32 1.442695, %v2336_v13  ;;  %v2400_v32 = vmul.f32 1.442695, %v2384_v33  ;;  %v2358_v5 = vmul.f32 1.442695, %v2339_v44  ;;  %9630 = vmatprep.mubr.msk.f32.mxu1 %vm1635_vm0, %v12449_v29  ;;  %v2309_v55 = vmul.f32 %v12262_v37, %v2289_v30 }
 0x28d   : > { %v12571_v11 = vpop.eup %10954  ;;  %v12574_v18 = vadd.f32 %v12559_v57, %v1615_v63  ;;  %v1618_v28 = vmul.f32 %v12566_v6, %v1229_v35  ;;  %v2406_v49 = vmul.f32 1.442695, %v2387_v20  ;;  %v12578_v14 = vmax.f32 %v12273_v59, %v2306_v22  ;;  %v1228_v33 = vld [vmem:[#allocation4 + $0x70] sm:$0xff] }
 0x28e   : > { %10964 = vpow2.f32 %v2352_v34  ;;  %v12581_v7 = vmax.f32 %v12281_v16, %v2309_v55  ;;  %vm2256_vm10 = vcmp.ge.f32.partialorder %v12422_v39, 0.0  ;;  %v2272_v29 = vmul.f32 0.01, %v12422_v39 }
 0x28f   : > { %15828 = vst [vmem:[#allocation33_spill] sm:$0xff] %v12578_v14  ;;  %v12586_v13 = vadd.f32 %v12571_v11, %v1618_v28  ;;  %10966 = vpow2.f32 %v2400_v32  ;;  %v2338_v35 = vsub.f32 %v12273_v59, %v12578_v14  ;;  %v2386_v44 = vsub.f32 %v2306_v22, %v12578_v14  ;;  %9631 = vmatmul.mubr.msk.f32.gmra.mrb[8].mxu1 %vm1635_vm0, %v12424_v4 }
 0x290   : > { %15829 = vst [vmem:[#allocation34_spill] sm:$0xff] %v12581_v7  ;;  %10968 = vpow2.f32 %v2358_v5  ;;  %v2341_v63 = vsub.f32 %v12281_v16, %v12581_v7  ;;  %v2389_v20 = vsub.f32 %v2309_v55, %v12581_v7  ;;  %v2288_v30 = vsel %vm2256_vm10, %v12422_v39, %v2272_v29  ;;  %9633 = vmatprep.mubr.msk.f32.mxu1 %vm1635_vm0, %v12503_v15 }
 0x291   : > { %v10957_v34 = vpop.eup %10956  ;;  %10970 = vpow2.f32 %v2406_v49  ;;  %v2356_v32 = vmul.f32 1.442695, %v2338_v35  ;;  %v2404_v59 = vmul.f32 1.442695, %v2386_v44  ;;  %v2308_v22 = vmul.f32 %v12262_v37, %v2288_v30 }
 0x292   : > { %v12600_v28 = vpop.eup %10958  ;;  %v1617_v4 = vmul.f32 %v10957_v34, %v1228_v33  ;;  %v2362_v5 = vmul.f32 1.442695, %v2341_v63  ;;  %v2410_v14 = vmul.f32 1.442695, %v2389_v20  ;;  %vm2259_vm11 = vcmp.ge.f32.partialorder %v12439_v47, 0.0 }
 0x293   : > { %v12603_v16 = vpop.eup %10960  ;;  %10972 = vpow2.f32 %v2356_v32  ;;  %v12606_v39 = vmax.f32 %v12286_v23, %v2308_v22  ;;  %v2275_v15 = vmul.f32 0.01, %v12439_v47  ;;  %9634 = vmatmul.mubr.msk.f32.gmra.mrb[10].mxu1 %vm1635_vm0, %v12468_v56  ;;  %vm2258_vm12 = vcmp.ge.f32.partialorder %v12447_v2, 0.0 }
 0x294   : > { %v10963_v55 = vpop.eup %10962  ;;  %v12613_v49 = vadd.f32 %v12600_v28, %v1617_v4  ;;  %v2433_v29 = vmul.f32 %v12603_v16, %v12313_v8  ;;  %10974 = vpow2.f32 %v2404_v59  ;;  %v2274_v33 = vmul.f32 0.01, %v12447_v2  ;;  %9636 = vmatprep.mubr.msk.f32.mxu1 %vm1635_vm0, %v10949_v25 }
 0x295   : > { %15830 = vst [vmem:[#allocation35_spill] sm:$0xff] %v12606_v39  ;;  %10976 = vpow2.f32 %v2362_v5  ;;  %v2340_v35 = vsub.f32 %v12286_v23, %v12606_v39  ;;  %v2388_v56 = vsub.f32 %v2308_v22, %v12606_v39  ;;  %v2291_v44 = vsel %vm2259_vm11, %v12439_v47, %v2275_v15 }
 0x296   : > { %v12625_v63 = vadd.f32 %v10963_v55, %v2433_v29  ;;  %10978 = vpow2.f32 %v2410_v14  ;;  %v2311_v8 = vmul.f32 %v12262_v37, %v2291_v44  ;;  %v2290_v20 = vsel %vm2258_vm12, %v12447_v2, %v2274_v33 }
 0x297   : > { %v2360_v30 = vmul.f32 1.442695, %v2340_v35  ;;  %v2408_v32 = vmul.f32 1.442695, %v2388_v56  ;;  %v2310_v25 = vmul.f32 %v12262_v37, %v2290_v20  ;;  %vm2261_vm13 = vcmp.ge.f32.partialorder %v12466_v48, 0.0  ;;  %9637 = vmatmul.mubr.msk.f32.gmra.mrb[12].mxu1 %vm1635_vm0, %v12522_v54 }
 0x298   : > { %15831 = vst [vmem:[#allocation36_spill] sm:$0xff] %v12625_v63  ;;  %v12633_v23 = vpop.eup %10964  ;;  %v12636_v47 = vmax.f32 %v12297_v52, %v2311_v8  ;;  %v2277_v14 = vmul.f32 0.01, %v12466_v48  ;;  %v2276_v59 = vmul.f32 0.01, %v12474_v26  ;;  %9639 = vmatprep.mubr.msk.f32.mxu1 %vm1635_vm0, %v10957_v34  ;;  %vm2260_vm14 = vcmp.ge.f32.partialorder %v12474_v26, 0.0 }
 0x299   : > { %v10967_v2 = vpop.eup %10966  ;;  %v2432_v22 = vmul.f32 %v12633_v23, %v12490_v36  ;;  %10980 = vpow2.f32 %v2360_v30  ;;  %v12644_v4 = vmax.f32 %v12303_v62, %v2310_v25 }
 0x29a   : > { %15832 = vst [vmem:[#allocation37_spill] sm:$0xff] %v12636_v47  ;;  %v12647_v54 = vpop.eup %10968  ;;  %10982 = vpow2.f32 %v2408_v32  ;;  %v2343_v5 = vsub.f32 %v12297_v52, %v12636_v47  ;;  %v2391_v15 = vsub.f32 %v2311_v8, %v12636_v47  ;;  %v2293_v34 = vsel %vm2261_vm13, %v12466_v48, %v2277_v14  ;;  %9752 = vmatprep.mubr.msk.f32.mxu0 %vm1635_vm0, %v10967_v2 }
 0x29b   : > { %15833 = vst [vmem:[#allocation38_spill] sm:$0xff] %v12644_v4  ;;  %v10971_v36 = vpop.eup %10970  ;;  %v12656_v29 = vadd.f32 %v10967_v2, %v2432_v22  ;;  %v2435_v33 = vmul.f32 %v12647_v54, %v12337_v38  ;;  %v2342_v35 = vsub.f32 %v12303_v62, %v12644_v4  ;;  %v2390_v56 = vsub.f32 %v2310_v25, %v12644_v4  ;;  %v11418_v4 = vld [vmem:[%s11988_s27 + $0x10] sm:$0xff] }
 0x29c   : > { %9640 = vmatmul.mubr.msk.f32.gmra.mrb[14].mxu1 %vm1635_vm0, %v12566_v6  ;;  %v2366_v52 = vmul.f32 1.442695, %v2343_v5  ;;  %v2414_v44 = vmul.f32 1.442695, %v2391_v15  ;;  %v2313_v48 = vmul.f32 %v12262_v37, %v2293_v34  ;;  %v2292_v8 = vsel %vm2260_vm14, %v12474_v26, %v2276_v59  ;;  %9753 = vmatmul.mubr.msk.f32.vlgmr.msra.gmra.mrb[26].mxu0 %vm1635_vm0, %v10963_v55 }
 0x29d   : > { %15834 = vst [vmem:[#allocation39_spill] sm:$0xff] %v12656_v29  ;;  %9644 = vmatprep.mubr.msk.f32.mxu1 %vm1635_vm0, %v12306_v0  ;;  %v12672_v38 = vpop.eup %10972  ;;  %v12674_v62 = vadd.f32 %v10971_v36, %v2435_v33  ;;  %v2364_v20 = vmul.f32 1.442695, %v2342_v35  ;;  %v2412_v30 = vmul.f32 1.442695, %v2390_v56  ;;  %v2312_v6 = vmul.f32 %v12262_v37, %v2292_v8  ;;  %9833 = vmatpush3.msk.msra.mxu0 %vm1684_vm2, %v12232_v12  ;;  %v15840_v56 = vld [vmem:[#allocation19_spill] sm:$0xff] }
 0x29e   : > { %v10975_v32 = vpop.eup %10974  ;;  %v2434_v26 = vmul.f32 %v12672_v38, %v12348_v1  ;;  %10984 = vpow2.f32 %v2366_v52  ;;  %v12682_v0 = vmax.f32 %v12317_v9, %v2313_v48  ;;  %10611 = vmatprep.subr.bf16.mxu0 %v12076_v43  ;;  %v15845_v8 = vld [vmem:[#allocation24_spill] sm:$0xff] }
 0x29f   : > { %15835 = vst [vmem:[#allocation40_spill] sm:$0xff] %v12674_v62  ;;  %v12685_v55 = vpop.eup %10976  ;;  %10986 = vpow2.f32 %v2414_v44  ;;  %v12688_v25 = vmax.f32 %v12342_v53, %v2312_v6  ;;  %9755 = vmatprep.mubr.msk.f32.mxu0 %vm1635_vm0, %v10975_v32  ;;  %v15844_v44 = vld [vmem:[#allocation23_spill] sm:$0xff] }
 0x2a0   : > { %15836 = vst [vmem:[#allocation41_spill] sm:$0xff] %v12682_v0  ;;  %9645 = vmatmul.mubr.msk.f32.vlgmr.msra.gmra.mrb[16].mxu1 %vm1635_vm0, %v12300_v58  ;;  %v10979_v14 = vpop.eup %10978  ;;  %v12693_v59 = vadd.f32 %v10975_v32, %v2434_v26  ;;  %v2437_v1 = vmul.f32 %v12685_v55, %v12370_v27  ;;  %10988 = vpow2.f32 %v2364_v20  ;;  %v2345_v2 = vsub.f32 %v12317_v9, %v12682_v0 }
 0x2a1   : > { %15837 = vst [vmem:[#allocation42_spill] sm:$0xff] %v12688_v25  ;;  %10814 = vmatpush3.bf16.msra.mxu1 %v12076_v43  ;;  %9647 = vmatprep.mubr.msk.f32.mxu1 %vm1635_vm0, %v12334_v24  ;;  %10990 = vpow2.f32 %v2412_v30  ;;  %v2393_v58 = vsub.f32 %v2313_v48, %v12682_v0  ;;  %v2344_v22 = vsub.f32 %v12342_v53, %v12688_v25  ;;  %v15846_v30 = vld [vmem:[#allocation10_spill] sm:$0xff] }
 0x2a2   : > { %15838 = vst [vmem:[#allocation43_spill] sm:$0xff] %v12693_v59  ;;  %v2392_v5 = vsub.f32 %v2312_v6, %v12688_v25  ;;  %10807 = vmatprep.subr.bf16.mxu1 %v12081_v45  ;;  %9756 = vmatmul.mubr.msk.f32.gmra.mrb[28].mxu0 %vm1635_vm0, %v10971_v36  ;;  %v12708_v27 = vadd.f32 %v10979_v14, %v2437_v1  ;;  %v2370_v9 = vmul.f32 1.442695, %v2345_v2  ;;  %v15841_v36 = vld [vmem:[#allocation9_spill] sm:$0xff]  ;;  %v11416_v25 = vld [vmem:[%s11988_s27] sm:$0xff] }
 0x2a3   : > { %v12710_v15 = vpop.eup %10980  ;;  %v2418_v34 = vmul.f32 1.442695, %v2393_v58  ;;  %v2368_v33 = vmul.f32 1.442695, %v2344_v22  ;;  %v15849_v2 = vld [vmem:[#allocation21_spill] sm:$0xff] }
 0x2a4   : > { %15839 = vst [vmem:[#allocation44_spill] sm:$0xff] %v12708_v27  ;;  %v2416_v24 = vmul.f32 1.442695, %v2392_v5  ;;  %9648 = vmatmul.mubr.msk.f32.gmra.mrb[18].mxu1 %vm1635_vm0, %v12324_v21  ;;  %v10983_v35 = vpop.eup %10982  ;;  %v2436_v53 = vmul.f32 %v12710_v15, %v12380_v51  ;;  %10992 = vpow2.f32 %v2370_v9  ;;  %v15843_v21 = vld [vmem:[#allocation17_spill] sm:$0xff]  ;;  %v15851_v5 = vld [vmem:[#allocation11_spill] sm:$0xff] }
 0x2a5   : > { %10815 = vmatpush3.bf16.msra.mxu1 %v12081_v45  ;;  %9650 = vmatprep.mubr.msk.f32.mxu1 %vm1635_vm0, %v15840_v56  ;;  %10994 = vpow2.f32 %v2418_v34  ;;  %v15852_v34 = vld [vmem:[#allocation27_spill] sm:$0xff] }
 0x2a6   : > { %10808 = vmatprep.subr.bf16.mxu1 %v15841_v36  ;;  %9758 = vmatprep.mubr.msk.f32.mxu0 %vm1635_vm0, %v10983_v35  ;;  %v12721_v52 = vadd.f32 %v10983_v35, %v2436_v53  ;;  %10996 = vpow2.f32 %v2368_v33 }
 0x2a7   : > { %9759 = vmatmul.mubr.msk.f32.gmra.mrb[30].mxu0 %vm1635_vm0, %v10979_v14  ;;  %10998 = vpow2.f32 %v2416_v24  ;;  %v15848_v14 = vld [vmem:[#allocation26_spill] sm:$0xff]  ;;  %v15853_v24 = vld [vmem:[#allocation25_spill] sm:$0xff] }
 0x2a8   : > { %15842 = vst [vmem:[#allocation19_spill] sm:$0xff] %v12721_v52  ;;  %9651 = vmatmul.mubr.msk.f32.gmra.mrb[20].mxu1 %vm1635_vm0, %v15843_v21  ;;  %v12726_v51 = vpop.eup %10984  ;;  %v15855_v21 = vld [vmem:[#allocation12_spill] sm:$0xff] }
 0x2a9   : > { %10816 = vmatpush3.bf16.msra.mxu1 %v15841_v36  ;;  %9653 = vmatprep.mubr.msk.f32.mxu1 %vm1635_vm0, %v15844_v44  ;;  %v10987_v48 = vpop.eup %10986  ;;  %v2439_v20 = vmul.f32 %v12726_v51, %v15845_v8  ;;  %v15858_v8 = vld [vmem:[#allocation14_spill] sm:$0xff] }
 0x2aa   : > { %10809 = vmatprep.subr.bf16.mxu1 %v15846_v30  ;;  %v12734_v6 = vpop.eup %10988 }
 0x2ab   : > { %v10991_v32 = vpop.eup %10990  ;;  %v12736_v26 = vadd.f32 %v10987_v48, %v2439_v20  ;;  %v2438_v1 = vmul.f32 %v12734_v6, %v15848_v14  ;;  %v12790_v20 = vld [vmem:[%s11988_s27 + $0xe0] sm:$0xff] }
 0x2ac   : > { %9654 = vmatmul.mubr.msk.f32.gmra.mrb[22].mxu1 %vm1635_vm0, %v15849_v2  ;;  %9761 = vmatprep.mubr.msk.f32.mxu0 %vm1635_vm0, %v10991_v32  ;;  %15859 = vst [vmem:[#allocation21_spill] sm:$0xff] %v12790_v20  ;;  %v12807_v2 = vld [vmem:[%s11988_s27 + $0xf0] sm:$0xff] }
 0x2ad   : > { %15847 = vst [vmem:[#allocation17_spill] sm:$0xff] %v12736_v26  ;;  %10817 = vmatpush3.bf16.msra.mxu1 %v15846_v30  ;;  %v12744_v58 = vadd.f32 %v10991_v32, %v2438_v1  ;;  %9762 = vmatmul.mubr.msk.f32.gmra.mrb[32].mxu0 %vm1635_vm0, %v10987_v48  ;;  %v12799_v32 = vld [vmem:[#allocation2 + $0x60] sm:$0xff]  ;;  %v12804_v1 = vld [vmem:[%s11988_s27 + $0xe8] sm:$0xff]  ;;  %15861 = vst [vmem:[#allocation25_spill] sm:$0xff] %v12807_v2 }
 0x2ae   : > { %9656 = vmatprep.mubr.msk.f32.mxu1 %vm1635_vm0, %v12455_v40  ;;  %v12749_v22 = vpop.eup %10992  ;;  %10810 = vmatprep.subr.bf16.mxu1 %v15851_v5  ;;  %v2103_v14 = vmul.f32 %v12799_v32, %v12790_v20  ;;  %15860 = vst [vmem:[#allocation27_spill] sm:$0xff] %v12804_v1 }
 0x2af   : > { %15850 = vst [vmem:[#allocation23_spill] sm:$0xff] %v12744_v58  ;;  %v10995_v9 = vpop.eup %10994  ;;  %v2441_v33 = vmul.f32 %v12749_v22, %v15852_v34 }
 0x2b0   : > { %9657 = vmatmul.mubr.msk.f32.gmra.mrb[24].mxu1 %vm1635_vm0, %v15853_v24  ;;  %v10997_v35 = vpop.eup %10996 }
 0x2b1   : > { %10818 = vmatpush3.bf16.msra.mxu1 %v15851_v5  ;;  %9659 = vmatprep.mubr.msk.f32.mxu1 %vm1635_vm0, %v12512_v31  ;;  %v10999_v53 = vpop.eup %10998  ;;  %v12759_v40 = vadd.f32 %v10995_v9, %v2441_v33  ;;  %v2440_v56 = vmul.f32 %v10997_v35, %v12471_v61  ;;  %v15857_v31 = vld [vmem:[#allocation13_spill] sm:$0xff] }
 0x2b2   : > { %10811 = vmatprep.subr.bf16.mxu1 %v15855_v21  ;;  %9764 = vmatprep.mubr.msk.f32.mxu0 %vm1635_vm0, %v10999_v53  ;;  %v12774_v61 = vld [vmem:[%s11988_s27 + $0xd0] sm:$0xff] }
 0x2b3   : > { %15854 = vst [vmem:[#allocation24_spill] sm:$0xff] %v12759_v40  ;;  %v12764_v44 = vadd.f32 %v10999_v53, %v2440_v56  ;;  %9765 = vmatmul.mubr.msk.f32.gmra.mrb[34].mxu0 %vm1635_vm0, %v10995_v9  ;;  %v12816_v9 = vld [vmem:[#allocation2 + $0x68] sm:$0xff]  ;;  %v12820_v33 = vld [vmem:[#allocation2 + $0x70] sm:$0xff]  ;;  %v12825_v53 = vld [vmem:[%s11988_s27 + $0xf8] sm:$0xff] }
 0x2b4   : > { %9660 = vmatmul.mubr.msk.f32.gmra.mrb[26].mxu1 %vm1635_vm0, %v12476_v60  ;;  %v12781_v60 = vld [vmem:[#allocation2 + $0x50] sm:$0xff]  ;;  %v2104_v34 = vmul.f32 %v12816_v9, %v12804_v1  ;;  %v2105_v24 = vmul.f32 %v12820_v33, %v12807_v2  ;;  %15862 = vst [vmem:[#allocation45_spill] sm:$0xff] %v12825_v53  ;;  %v12830_v56 = vld [vmem:[#allocation2 + $0x78] sm:$0xff] }
 0x2b5   : > { %15856 = vst [vmem:[#allocation26_spill] sm:$0xff] %v12764_v44  ;;  %10819 = vmatpush3.bf16.msra.mxu1 %v15855_v21  ;;  %9662 = vmatprep.mubr.msk.f32.mxu1 %vm1635_vm0, %v12559_v57  ;;  %v2101_v48 = vmul.f32 %v12781_v60, %v12774_v61  ;;  %v12786_v57 = vld [vmem:[%s11988_s27 + $0xd8] sm:$0xff]  ;;  %v1231_v44 = vld [vmem:[#allocation5 + $0x8] sm:$0xff]  ;;  %v1244_v2 = vld [vmem:[#allocation5 + $0x70] sm:$0xff] }
 0x2b6   : > { %10812 = vmatprep.subr.bf16.mxu1 %v15857_v31 }
 0x2b8   : > { %9663 = vmatmul.mubr.msk.f32.gmra.mrb[28].mxu1 %vm1635_vm0, %v12527_v46  ;;  %v12794_v46 = vld [vmem:[#allocation2 + $0x58] sm:$0xff] }
 0x2b9   : > { %10820 = vmatpush3.bf16.msra.mxu1 %v15857_v31  ;;  %9665 = vmatprep.mubr.msk.f32.mxu1 %vm1635_vm0, %v12600_v28  ;;  %v2102_v28 = vmul.f32 %v12794_v46, %v12786_v57 }
 0x2ba   : > { %10813 = vmatprep.subr.bf16.mxu1 %v15858_v8 }
 0x2bc   : > { %9666 = vmatmul.mubr.msk.f32.gmra.mrb[30].mxu1 %vm1635_vm0, %v12571_v11  ;;  %v12812_v11 = vld [vmem:[%s15575_s4] sm:$0xf] }
 0x2bd   : > { %10821 = vmatpush3.bf16.msra.mxu1 %v15858_v8  ;;  %9715 = vmatprep.mubr.f32.mxu1 %v2101_v48  ;;  %v2106_v48 = vmul.f32 %v12830_v56, %v12825_v53 }
 0x2be   : > { %9724 = vmatprep.subr.msk.mxu1 %vm1684_vm2, %v12812_v11 }
 0x2c0   : > { %9716 = vmatmul.mubr.f32.vlgmr.msra.gmra.mrb[32].mxu1 %v2102_v28 }
 0x2c1   : > { %9718 = vmatprep.mubr.f32.mxu1 %v2103_v14  ;;  %9725 = vmatpush3.msk.msra.mxu1 %vm1684_vm2, %v12812_v11 }
 0x2c2   : > { %10579 = vmatprep.subr.bf16.mxu1 %v12076_v43 }
 0x2c4   : > { %9719 = vmatmul.mubr.f32.gmra.mrb[34].mxu1 %v2104_v34 }
 0x2c5   : > { %9721 = vmatprep.mubr.f32.mxu1 %v2105_v24 }
 0x2c8   : > { %9722 = vmatmul.mubr.f32.gmra.mrb[36].mxu1 %v2106_v48 }
 0x2c9   : > { %9726 = vmatprep.mubr.msk.f32.mxu1 %vm1635_vm0, %v12633_v23 }
 0x2cc   : > { %9727 = vmatmul.mubr.msk.f32.vlgmr.msra.gmra.mrb[38].mxu1 %vm1635_vm0, %v12603_v16 }
 0x2cd   : > { %9729 = vmatprep.mubr.msk.f32.mxu1 %vm1635_vm0, %v12672_v38  ;;  %10581 = vmatpush3.bf16.msra.mxu1 %v12076_v43 }
 0x2ce   : > { %10583 = vmatprep.subr.bf16.mxu1 %v12081_v45 }
 0x2d0   : > { %9730 = vmatmul.mubr.msk.f32.gmra.mrb[40].mxu1 %vm1635_vm0, %v12647_v54 }
 0x2d1   : > { %9732 = vmatprep.mubr.msk.f32.mxu1 %vm1635_vm0, %v12710_v15  ;;  %10585 = vmatpush3.bf16.msra.mxu1 %v12081_v45  ;;  %v1232_v45 = vld [vmem:[#allocation5 + $0x10] sm:$0xff] }
 0x2d2   : > { %10587 = vmatprep.subr.bf16.mxu1 %v15841_v36 }
 0x2d4   : > { %9733 = vmatmul.mubr.msk.f32.gmra.mrb[42].mxu1 %vm1635_vm0, %v12685_v55 }
 0x2d5   : > { %9735 = vmatprep.mubr.msk.f32.mxu1 %vm1635_vm0, %v12734_v6  ;;  %10589 = vmatpush3.bf16.msra.mxu1 %v15841_v36  ;;  %v1233_v36 = vld [vmem:[#allocation5 + $0x18] sm:$0xff] }
 0x2d6   : > { %10591 = vmatprep.subr.bf16.mxu1 %v15846_v30 }
 0x2d8   : > { %9736 = vmatmul.mubr.msk.f32.gmra.mrb[44].mxu1 %vm1635_vm0, %v12726_v51 }
 0x2d9   : > { %9738 = vmatprep.mubr.msk.f32.mxu1 %vm1635_vm0, %v10997_v35  ;;  %10593 = vmatpush3.bf16.msra.mxu1 %v15846_v30 }
 0x2da   : > { %10595 = vmatprep.subr.bf16.mxu1 %v15851_v5 }
 0x2dc   : > { %9739 = vmatmul.mubr.msk.f32.gmra.mrb[46].mxu1 %vm1635_vm0, %v12749_v22 }
 0x2dd   : > { %10597 = vmatpush3.bf16.msra.mxu1 %v15851_v5  ;;  %v11415_v5 = vld [vmem:[%s11988_s27 + $0x8] sm:$0xff] }
 0x2de   : > { %10599 = vmatprep.subr.bf16.mxu1 %v15855_v21 }
 0x2e1   : > { %10601 = vmatpush3.bf16.msra.mxu1 %v15855_v21  ;;  %v1230_v21 = vld [vmem:[#allocation5] sm:$0xff] }
 0x2e2   : > { %10603 = vmatprep.subr.bf16.mxu1 %v15857_v31 }
 0x2e5   : > { %10605 = vmatpush3.bf16.msra.mxu1 %v15857_v31 }
 0x2e6   : > { %10607 = vmatprep.subr.bf16.mxu1 %v15858_v8 }
 0x2e9   : > { %10609 = vmatpush3.bf16.msra.mxu1 %v15858_v8 }
 0x2ea   : > { %9858 = vmatprep.subr.msk.mxu1 %vm1684_vm2, %v12812_v11 }
 0x352   : > { %v9620_v16 = vpop.f32.mrb[0].mxu1 }
 0x353   : > { %v1754_v23 = vpop.f32.mrb[1].mxu1  ;;  %v2027_v58 = vmul.f32 %v9620_v16, %v1231_v44  ;;  %v11417_v16 = vld [vmem:[%s11988_s27 + $0x18] sm:$0xff] }
 0x354   : > { %v2026_v52 = vmul.f32 %v1754_v23, %v1230_v21  ;;  %v1235_v23 = vld [vmem:[#allocation5 + $0x28] sm:$0xff] }
 0x356   : > { %v9623_v54 = vpop.f32.mrb[2].mxu1 }
 0x357   : > { %v1764_v38 = vpop.f32.mrb[3].mxu1  ;;  %v2029_v44 = vmul.f32 %v9623_v54, %v1233_v36 }
 0x358   : > { %v2028_v21 = vmul.f32 %v1764_v38, %v1232_v45  ;;  %v1237_v38 = vld [vmem:[#allocation5 + $0x38] sm:$0xff] }
 0x35a   : > { %v9626_v55 = vpop.f32.mrb[4].mxu1 }
 0x35b   : > { %v1774_v15 = vpop.f32.mrb[5].mxu1  ;;  %v2031_v36 = vmul.f32 %v9626_v55, %v1235_v23  ;;  %v1239_v23 = vld [vmem:[#allocation5 + $0x48] sm:$0xff] }
 0x35e   : > { %v9629_v51 = vpop.f32.mrb[6].mxu1 }
 0x35f   : > { %v1784_v6 = vpop.f32.mrb[7].mxu1  ;;  %v2033_v7 = vmul.f32 %v9629_v51, %v1237_v38 }
 0x362   : > { %v12870_v22 = vpop.f32.mrb[8].mxu1 }
 0x363   : > { %v12872_v35 = vpop.f32.mrb[9].mxu1  ;;  %v2035_v51 = vmul.f32 %v12870_v22, %v1239_v23 }
 0x366   : > { %v12874_v28 = vpop.f32.mrb[10].mxu1 }
 0x367   : > { %v12876_v14 = vpop.f32.mrb[11].mxu1 }
 0x36a   : > { %v12878_v34 = vpop.f32.mrb[12].mxu1 }
 0x36b   : > { %v12880_v24 = vpop.f32.mrb[13].mxu1 }
 0x36f   : > { %v12882_v48 = vpop.f32.mrb[14].mxu1  ;;  %v12886_v8 = vpop.f32.mrb[26].mxu0 }
 0x370   : > { %v12884_v12 = vpop.f32.mrb[15].mxu1  ;;  %v12888_v31 = vpop.f32.mrb[27].mxu0 }
 0x373   : > { %v9646_v40 = vpop.f32.mrb[16].mxu1 }
 0x374   : > { %v2043_v26 = vmul.f32 %v11415_v5, %v9646_v40  ;;  %v1947_v30 = vpop.f32.mrb[17].mxu1 }
 0x375   : > { %v2042_v27 = vmul.f32 %v11416_v25, %v1947_v30  ;;  %v12892_v59 = vpop.f32.mrb[28].mxu0  ;;  %v1234_v30 = vld [vmem:[#allocation5 + $0x20] sm:$0xff] }
 0x376   : > { %v12894_v43 = vpop.f32.mrb[29].mxu0  ;;  %v12896_v0 = vadd.f32 %v2043_v26, %v2027_v58  ;;  %v2030_v45 = vmul.f32 %v1774_v15, %v1234_v30  ;;  %v11422_v15 = vld [vmem:[%s11988_s27 + $0x30] sm:$0xff] }
 0x377   : > { %v9649_v62 = vpop.f32.mrb[18].mxu1  ;;  %v12898_v29 = vadd.f32 %v2042_v27, %v2026_v52  ;;  %v11419_v52 = vld [vmem:[%s11988_s27 + $0x28] sm:$0xff] }
 0x378   : > { %v2045_v5 = vmul.f32 %v11417_v16, %v9649_v62  ;;  %v1957_v40 = vpop.f32.mrb[19].mxu1  ;;  %v11420_v16 = vld [vmem:[%s11988_s27 + $0x20] sm:$0xff] }
 0x379   : > { %v2044_v25 = vmul.f32 %v11418_v4, %v1957_v40  ;;  %v1236_v40 = vld [vmem:[#allocation5 + $0x30] sm:$0xff] }
 0x37a   : > { %v12902_v63 = vpop.f32.mrb[30].mxu0  ;;  %v12904_v47 = vadd.f32 %v2045_v5, %v2029_v44  ;;  %v2032_v55 = vmul.f32 %v1784_v6, %v1236_v40  ;;  %v11424_v40 = vld [vmem:[%s11988_s27 + $0x40] sm:$0xff] }
 0x37b   : > { %v9652_v26 = vpop.f32.mrb[20].mxu1  ;;  %v12906_v58 = vpop.f32.mrb[31].mxu0  ;;  %v12908_v27 = vadd.f32 %v2044_v25, %v2028_v21 }
 0x37c   : > { %v2047_v62 = vmul.f32 %v11419_v52, %v9652_v26  ;;  %v1967_v54 = vpop.f32.mrb[21].mxu1  ;;  %v1238_v52 = vld [vmem:[#allocation5 + $0x40] sm:$0xff] }
 0x37d   : > { %v2046_v4 = vmul.f32 %v11420_v16, %v1967_v54  ;;  %v2034_v16 = vmul.f32 %v12872_v35, %v1238_v52 }
 0x37e   : > { %v12912_v39 = vadd.f32 %v2047_v62, %v2031_v36 }
 0x37f   : > { %v9655_v44 = vpop.f32.mrb[22].mxu1  ;;  %v12914_v5 = vadd.f32 %v2046_v4, %v2030_v45  ;;  %v1241_v4 = vld [vmem:[#allocation5 + $0x58] sm:$0xff] }
 0x380   : > { %v2049_v21 = vmul.f32 %v11421_v10, %v9655_v44  ;;  %v1977_v25 = vpop.f32.mrb[23].mxu1  ;;  %v12917_v26 = vpop.f32.mrb[32].mxu0  ;;  %v11423_v10 = vld [vmem:[%s11988_s27 + $0x48] sm:$0xff]  ;;  %v2037_v22 = vmul.f32 %v12874_v28, %v1241_v4 }
 0x381   : > { %v2048_v30 = vmul.f32 %v11422_v15, %v1977_v25  ;;  %v12920_v54 = vpop.f32.mrb[33].mxu0  ;;  %v1240_v25 = vld [vmem:[#allocation5 + $0x50] sm:$0xff]  ;;  %v11427_v4 = vld [vmem:[%s11988_s27 + $0x68] sm:$0xff] }
 0x382   : > { %v12922_v36 = vadd.f32 %v2049_v21, %v2033_v7  ;;  %v2036_v52 = vmul.f32 %v12876_v14, %v1240_v25  ;;  %v11428_v14 = vld [vmem:[%s11988_s27 + $0x60] sm:$0xff] }
 0x383   : > { %v9658_v62 = vpop.f32.mrb[24].mxu1  ;;  %v12924_v45 = vadd.f32 %v2048_v30, %v2032_v55  ;;  %v11425_v30 = vld [vmem:[%s11988_s27 + $0x58] sm:$0xff] }
 0x384   : > { %v2051_v38 = vmul.f32 %v11423_v10, %v9658_v62  ;;  %v1987_v6 = vpop.f32.mrb[25].mxu1  ;;  %v1243_v10 = vld [vmem:[#allocation5 + $0x68] sm:$0xff] }
 0x385   : > { %v2050_v44 = vmul.f32 %v11424_v40, %v1987_v6  ;;  %v11426_v6 = vld [vmem:[%s11988_s27 + $0x50] sm:$0xff]  ;;  %v2039_v28 = vmul.f32 %v12878_v34, %v1243_v10 }
 0x386   : > { %v12930_v15 = vadd.f32 %v2051_v38, %v2035_v51  ;;  %v12932_v7 = vpop.f32.mrb[34].mxu0  ;;  %v1242_v38 = vld [vmem:[#allocation5 + $0x60] sm:$0xff]  ;;  %v11430_v10 = vld [vmem:[%s11988_s27 + $0x70] sm:$0xff] }
 0x387   : > { %v9661_v21 = vpop.f32.mrb[26].mxu1  ;;  %v12934_v55 = vadd.f32 %v2050_v44, %v2034_v16  ;;  %v12937_v23 = vpop.f32.mrb[35].mxu0 }
 0x388   : > { %v2053_v62 = vmul.f32 %v11425_v30, %v9661_v21  ;;  %v1997_v35 = vpop.f32.mrb[27].mxu1  ;;  %v2038_v30 = vmul.f32 %v12880_v24, %v1242_v38 }
 0x389   : > { %v2052_v51 = vmul.f32 %v11426_v6, %v1997_v35  ;;  %v11429_v6 = vld [vmem:[%s11988_s27 + $0x78] sm:$0xff] }
 0x38a   : > { %v12942_v40 = vadd.f32 %v2053_v62, %v2037_v22 }
 0x38b   : > { %v9664_v42 = vpop.f32.mrb[28].mxu1  ;;  %v12944_v16 = vadd.f32 %v2052_v51, %v2036_v52  ;;  %v2041_v52 = vmul.f32 %v12882_v48, %v1245_v41 }
 0x38c   : > { %v2055_v44 = vmul.f32 %v11427_v4, %v9664_v42  ;;  %v2007_v21 = vpop.f32.mrb[29].mxu1  ;;  %v2040_v42 = vmul.f32 %v12884_v12, %v1244_v2  ;;  %v11431_v2 = vld [vmem:[%s11988_s27 + $0x88] sm:$0xff] }
 0x38d   : > { %v2054_v25 = vmul.f32 %v11428_v14, %v2007_v21 }
 0x38e   : > { %v12950_v35 = vadd.f32 %v2055_v44, %v2039_v28 }
 0x38f   : > { %v9667_v22 = vpop.f32.mrb[30].mxu1  ;;  %v12952_v62 = vadd.f32 %v2054_v25, %v2038_v30  ;;  %v12965_v25 = vmul.f32 %v11431_v2, %v12886_v8  ;;  %v11434_v8 = vld [vmem:[%s11988_s27 + $0x90] sm:$0xff] }
 0x390   : > { %15863 = vst [vmem:[#allocation46_spill] sm:$0xff] %v12950_v35  ;;  %v2057_v51 = vmul.f32 %v11429_v6, %v9667_v22  ;;  %v2017_v34 = vpop.f32.mrb[31].mxu1  ;;  %v15873_v35 = vld [vmem:[#allocation29_spill] sm:$0xff] }
 0x391   : > { %15864 = vst [vmem:[#allocation47_spill] sm:$0xff] %v12952_v62  ;;  %v2056_v4 = vmul.f32 %v11430_v10, %v2017_v34 }
 0x392   : > { %v12958_v24 = vadd.f32 %v2057_v51, %v2041_v52  ;;  %v11432_v51 = vld [vmem:[%s11988_s27 + $0x80] sm:$0xff] }
 0x393   : > { %v9717_v38 = vpop.f32.mrb[32].mxu1  ;;  %v12960_v21 = vadd.f32 %v2056_v4, %v2040_v42  ;;  %v12970_v34 = vmul.f32 %v11432_v51, %v12888_v31  ;;  %v15867_v42 = vld [vmem:[#allocation18_spill] sm:$0xff] }
 0x394   : > { %15865 = vst [vmem:[#allocation48_spill] sm:$0xff] %v12958_v24  ;;  %vm2263_vm15 = vcmp.ge.f32.partialorder %v9717_v38, 0.0  ;;  %v2279_v28 = vmul.f32 0.01, %v9717_v38  ;;  %v2223_v44 = vpop.f32.mrb[33].mxu1 }
 0x395   : > { %15866 = vst [vmem:[#allocation49_spill] sm:$0xff] %v12960_v21  ;;  %vm2262_vm1 = vcmp.ge.f32.partialorder %v2223_v44, 0.0  ;;  %v2278_v30 = vmul.f32 0.01, %v2223_v44 }
 0x396   : > { %v2295_v41 = vsel %vm2263_vm15, %v9717_v38, %v2279_v28  ;;  %v11433_v38 = vld [vmem:[%s11988_s27 + $0x98] sm:$0xff] }
 0x397   : > { %v2315_v48 = vmul.f32 %v12262_v37, %v2295_v41  ;;  %v2294_v14 = vsel %vm2262_vm1, %v2223_v44, %v2278_v30  ;;  %v9720_v12 = vpop.f32.mrb[34].mxu1  ;;  %v12977_v28 = vmul.f32 %v11433_v38, %v12892_v59  ;;  %v2868_v44 = vmul.f32 %v11434_v8, %v12894_v43  ;;  %v15869_v30 = vld [vmem:[#allocation20_spill] sm:$0xff] }
 0x398   : > { %v2314_v22 = vmul.f32 %v12262_v37, %v2294_v14  ;;  %vm2265_vm3 = vcmp.ge.f32.partialorder %v9720_v12, 0.0  ;;  %v2281_v52 = vmul.f32 0.01, %v9720_v12  ;;  %v2233_v6 = vpop.f32.mrb[35].mxu1 }
 0x399   : > { %v12973_v10 = vmax.f32 %v15867_v42, %v2315_v48  ;;  %vm2264_vm4 = vcmp.ge.f32.partialorder %v2233_v6, 0.0  ;;  %v2280_v4 = vmul.f32 0.01, %v2233_v6 }
 0x39a   : > { %v12982_v41 = vmax.f32 %v15869_v30, %v2314_v22  ;;  %v2297_v14 = vsel %vm2265_vm3, %v9720_v12, %v2281_v52  ;;  %v15871_v52 = vld [vmem:[#allocation22_spill] sm:$0xff] }
 0x39b   : > { %15868 = vst [vmem:[#allocation18_spill] sm:$0xff] %v12973_v10  ;;  %v2347_v31 = vsub.f32 %v15867_v42, %v12973_v10  ;;  %v2395_v2 = vsub.f32 %v2315_v48, %v12973_v10  ;;  %v2317_v51 = vmul.f32 %v12262_v37, %v2297_v14  ;;  %v2296_v21 = vsel %vm2264_vm4, %v2233_v6, %v2280_v4  ;;  %v9723_v53 = vpop.f32.mrb[36].mxu1  ;;  %v15872_v14 = vld [vmem:[#allocation28_spill] sm:$0xff] }
 0x39c   : > { %15870 = vst [vmem:[#allocation20_spill] sm:$0xff] %v12982_v41  ;;  %v2346_v59 = vsub.f32 %v15869_v30, %v12982_v41  ;;  %v2394_v38 = vsub.f32 %v2314_v22, %v12982_v41  ;;  %v2316_v43 = vmul.f32 %v12262_v37, %v2296_v21  ;;  %vm2267_vm5 = vcmp.ge.f32.partialorder %v9723_v53, 0.0  ;;  %v2243_v8 = vpop.f32.mrb[37].mxu1 }
 0x39d   : > { %v2374_v24 = vmul.f32 1.442695, %v2347_v31  ;;  %v2422_v12 = vmul.f32 1.442695, %v2395_v2  ;;  %v12993_v20 = vmax.f32 %v15871_v52, %v2317_v51  ;;  %v2283_v42 = vmul.f32 0.01, %v9723_v53 }
 0x39e   : > { %v2372_v48 = vmul.f32 1.442695, %v2346_v59  ;;  %v2420_v10 = vmul.f32 1.442695, %v2394_v38  ;;  %v12996_v6 = vmax.f32 %v15872_v14, %v2316_v43  ;;  %vm2266_vm6 = vcmp.ge.f32.partialorder %v2243_v8, 0.0 }
 0x39f   : > { %11000 = vpow2.f32 %v2374_v24  ;;  %v2349_v22 = vsub.f32 %v15871_v52, %v12993_v20  ;;  %v2397_v21 = vsub.f32 %v2317_v51, %v12993_v20  ;;  %v2299_v4 = vsel %vm2267_vm5, %v9723_v53, %v2283_v42  ;;  %v9728_v30 = vpop.f32.mrb[38].mxu1 }
 0x3a0   : > { %11002 = vpow2.f32 %v2422_v12  ;;  %v2348_v31 = vsub.f32 %v15872_v14, %v12996_v6  ;;  %v2396_v2 = vsub.f32 %v2316_v43, %v12996_v6  ;;  %v2319_v59 = vmul.f32 %v12262_v37, %v2299_v4  ;;  %v2578_v38 = vpop.f32.mrb[39].mxu1 }
 0x3a1   : > { %11004 = vpow2.f32 %v2372_v48  ;;  %v2378_v41 = vmul.f32 1.442695, %v2349_v22  ;;  %v2426_v62 = vmul.f32 1.442695, %v2397_v21  ;;  %v2282_v24 = vmul.f32 0.01, %v2243_v8 }
 0x3a2   : > { %11006 = vpow2.f32 %v2420_v10  ;;  %v2376_v1 = vmul.f32 1.442695, %v2348_v31  ;;  %v2424_v52 = vmul.f32 1.442695, %v2396_v2  ;;  %v13006_v51 = vmax.f32 %v15873_v35, %v2319_v59 }
 0x3a3   : > { %11008 = vpow2.f32 %v2378_v41  ;;  %v2298_v53 = vsel %vm2266_vm6, %v2243_v8, %v2282_v24  ;;  %v2851_v12 = vmul.f32 %v9728_v30, %v12896_v0  ;;  %v2850_v43 = vmul.f32 %v2578_v38, %v12898_v29  ;;  %v9731_v42 = vpop.f32.mrb[40].mxu1 }
 0x3a4   : > { %11010 = vpow2.f32 %v2426_v62  ;;  %v2351_v48 = vsub.f32 %v15873_v35, %v13006_v51  ;;  %v2399_v10 = vsub.f32 %v2319_v59, %v13006_v51  ;;  %v2318_v14 = vmul.f32 %v12262_v37, %v2298_v53  ;;  %v2588_v22 = vpop.f32.mrb[41].mxu1  ;;  %v11435_v35 = vld [vmem:[%s11988_s27 + $0xa8] sm:$0xff]  ;;  %v11436_v59 = vld [vmem:[%s11988_s27 + $0xa0] sm:$0xff] }
 0x3a5   : > { %11012 = vpow2.f32 %v2376_v1  ;;  %v2853_v41 = vmul.f32 %v9731_v42, %v12904_v47  ;;  %v2852_v8 = vmul.f32 %v2588_v22, %v12908_v27  ;;  %v13018_v0 = vadd.f32 %v12965_v25, %v2851_v12  ;;  %v11437_v12 = vld [vmem:[%s11988_s27 + $0xb8] sm:$0xff]  ;;  %v11438_v22 = vld [vmem:[%s11988_s27 + $0xb0] sm:$0xff] }
 0x3a6   : > { %11014 = vpow2.f32 %v2424_v52  ;;  %v2382_v29 = vmul.f32 1.442695, %v2351_v48  ;;  %v2430_v62 = vmul.f32 1.442695, %v2399_v10  ;;  %v13021_v21 = vmax.f32 %v12496_v19, %v2318_v14 }
 0x3a7   : > { %v2871_v4 = vmul.f32 %v11435_v35, %v12902_v63  ;;  %v9734_v37 = vpop.f32.mrb[42].mxu1  ;;  %v13026_v1 = vadd.f32 %v12970_v34, %v2850_v43  ;;  %v13029_v47 = vadd.f32 %v12977_v28, %v2853_v41  ;;  %v13031_v27 = vadd.f32 %v2868_v44, %v2852_v8 }
 0x3a8   : > { %11016 = vpow2.f32 %v2382_v29  ;;  %v2350_v25 = vsub.f32 %v12496_v19, %v13021_v21  ;;  %v2398_v30 = vsub.f32 %v2318_v14, %v13021_v21  ;;  %v2855_v31 = vmul.f32 %v9734_v37, %v12912_v39  ;;  %v2598_v2 = vpop.f32.mrb[43].mxu1  ;;  %v11439_v37 = vld [vmem:[%s11988_s27 + $0xc8] sm:$0xff] }
 0x3a9   : > { %v11001_v63 = vpop.eup %11000  ;;  %v2870_v34 = vmul.f32 %v11436_v59, %v12906_v58  ;;  %11018 = vpow2.f32 %v2430_v62  ;;  %v2854_v28 = vmul.f32 %v2598_v2, %v12914_v5  ;;  %v2873_v39 = vmul.f32 %v11437_v12, %v12917_v26  ;;  %v11440_v2 = vld [vmem:[%s11988_s27 + $0xc0] sm:$0xff]  ;;  %v13098_v12 = vld [vmem:[%s11988_s27 + $0x110] sm:$0xff] }
 0x3aa   : > { %v11003_v38 = vpop.eup %11002  ;;  %v2443_v44 = vmul.f32 %v11001_v63, %v12494_v50  ;;  %v2380_v24 = vmul.f32 1.442695, %v2350_v25  ;;  %v2428_v52 = vmul.f32 1.442695, %v2398_v30  ;;  %v13041_v53 = vadd.f32 %v2871_v4, %v2855_v31 }
 0x3ab   : > { %v11005_v19 = vpop.eup %11004  ;;  %v9737_v43 = vpop.f32.mrb[44].mxu1  ;;  %v13045_v42 = vadd.f32 %v2870_v34, %v2854_v28  ;;  %v2872_v41 = vmul.f32 %v11438_v22, %v12920_v54  ;;  %v13121_v22 = vld [vmem:[#allocation2 + $0x18] sm:$0xff] }
 0x3ac   : > { %v11007_v48 = vpop.eup %11006  ;;  %v13047_v58 = vadd.f32 %v11003_v38, %v2443_v44  ;;  %v2442_v5 = vmul.f32 %v11005_v19, %v12530_v17  ;;  %11020 = vpow2.f32 %v2380_v24  ;;  %v2857_v50 = vmul.f32 %v9737_v43, %v12922_v36  ;;  %9741 = vmatprep.mubr.msk.f32.mxu1 %vm1635_vm0, %v11005_v19  ;;  %v2608_v10 = vpop.f32.mrb[45].mxu1  ;;  %v13090_v24 = vld [vmem:[#allocation2] sm:$0xff] }
 0x3ad   : > { %v11009_v14 = vpop.eup %11008  ;;  %11022 = vpow2.f32 %v2428_v52  ;;  %9767 = vmatprep.mubr.msk.f32.mxu0 %vm1635_vm0, %v11007_v48  ;;  %v2856_v26 = vmul.f32 %v2608_v10, %v12924_v45  ;;  %9742 = vmatmul.mubr.msk.f32.gmra.mrb[48].mxu1 %vm1635_vm0, %v11001_v63  ;;  %v2875_v45 = vmul.f32 %v11439_v37, %v12932_v7  ;;  %v2874_v63 = vmul.f32 %v11440_v2, %v12937_v23  ;;  %v13095_v52 = vld [vmem:[%s11988_s27 + $0x108] sm:$0xff]  ;;  %v13116_v10 = vld [vmem:[%s11988_s27 + $0x118] sm:$0xff]  ;;  %v13143_v37 = vld [vmem:[#allocation2 + $0x30] sm:$0xff] }
 0x3ae   : > { %v11011_v8 = vpop.eup %11010  ;;  %v13057_v17 = vadd.f32 %v11007_v48, %v2442_v5  ;;  %v2445_v36 = vmul.f32 %v11009_v14, %v12539_v3  ;;  %9768 = vmatmul.mubr.msk.f32.gmra.mrb[36].mxu0 %vm1635_vm0, %v11003_v38  ;;  %v13061_v29 = vadd.f32 %v2873_v39, %v2857_v50  ;;  %v13111_v50 = vld [vmem:[#allocation2 + $0x10] sm:$0xff] }
 0x3af   : > { %v11013_v62 = vpop.eup %11012  ;;  %v9740_v35 = vpop.f32.mrb[46].mxu1  ;;  %v13063_v54 = vadd.f32 %v2872_v41, %v2856_v26  ;;  %v2918_v41 = vmul.f32 %v13121_v22, %v13116_v10  ;;  %v13125_v26 = vld [vmem:[#allocation2 + $0x20] sm:$0xff] }
 0x3b0   : > { %v11015_v4 = vpop.eup %11014  ;;  %v13067_v25 = vadd.f32 %v11011_v8, %v2445_v36  ;;  %v2444_v30 = vmul.f32 %v11013_v62, %v12574_v18  ;;  %v2859_v31 = vmul.f32 %v9740_v35, %v12930_v15  ;;  %9744 = vmatprep.mubr.msk.f32.mxu1 %vm1635_vm0, %v11013_v62  ;;  %v2618_v3 = vpop.f32.mrb[47].mxu1  ;;  %v13081_v18 = vld [vmem:[%s11988_s27 + $0x100] sm:$0xff]  ;;  %v13130_v36 = vld [vmem:[%s11988_s27 + $0x128] sm:$0xff]  ;;  %v13135_v62 = vld [vmem:[%s11988_s27 + $0x130] sm:$0xff] }
 0x3b1   : > { %15874 = vst [vmem:[#allocation22_spill] sm:$0xff] %v13063_v54  ;;  %9770 = vmatprep.mubr.msk.f32.mxu0 %vm1635_vm0, %v11015_v4  ;;  %v2858_v59 = vmul.f32 %v2618_v3, %v12934_v55  ;;  %9745 = vmatmul.mubr.msk.f32.gmra.mrb[50].mxu1 %vm1635_vm0, %v11009_v14  ;;  %v2915_v55 = vmul.f32 %v13090_v24, %v13081_v18  ;;  %v13119_v14 = vld [vmem:[%s11988_s27 + $0x120] sm:$0xff]  ;;  %15877 = vst [vmem:[#allocation50_spill] sm:$0xff] %v13135_v62  ;;  %v13139_v35 = vld [vmem:[#allocation2 + $0x28] sm:$0xff] }
 0x3b2   : > { %v11017_v7 = vpop.eup %11016  ;;  %v13077_v34 = vadd.f32 %v11015_v4, %v2444_v30  ;;  %9771 = vmatmul.mubr.msk.f32.gmra.mrb[38].mxu0 %vm1635_vm0, %v11011_v8  ;;  %v13083_v15 = vadd.f32 %v2875_v45, %v2859_v31  ;;  %v2919_v8 = vmul.f32 %v13125_v26, %v13119_v14  ;;  %v2920_v4 = vmul.f32 %v13139_v35, %v13130_v36  ;;  %v13148_v30 = vld [vmem:[%s11988_s27 + $0x138] sm:$0xff]  ;;  %v13151_v31 = vld [vmem:[%s11988_s27 + $0x140] sm:$0xff]  ;;  %v15921_v54 = vld [vmem:[#allocation41_spill] sm:$0xff] }
 0x3b3   : > { %v11019_v28 = vpop.eup %11018  ;;  %v2447_v38 = vmul.f32 %v11017_v7, %v12586_v13  ;;  %v13086_v23 = vadd.f32 %v2874_v63, %v2858_v59  ;;  %v13104_v13 = vld [vmem:[#allocation2 + $0x8] sm:$0xff]  ;;  %v2921_v45 = vmul.f32 %v13143_v37, %v13135_v62  ;;  %15878 = vst [vmem:[#allocation51_spill] sm:$0xff] %v13151_v31  ;;  %v13153_v3 = vld [vmem:[#allocation2 + $0x38] sm:$0xff]  ;;  %v13157_v63 = vld [vmem:[#allocation2 + $0x40] sm:$0xff] }
 0x3b4   : > { %15875 = vst [vmem:[#allocation28_spill] sm:$0xff] %v13083_v15  ;;  %v2916_v48 = vmul.f32 %v13104_v13, %v13095_v52  ;;  %v2922_v2 = vmul.f32 %v13153_v3, %v13148_v30  ;;  %v2923_v59 = vmul.f32 %v13157_v63, %v13151_v31 }
 0x3b5   : > { %15876 = vst [vmem:[#allocation29_spill] sm:$0xff] %v13086_v23  ;;  %v13088_v44 = vadd.f32 %v11019_v28, %v2447_v38  ;;  %v13167_v38 = vld [vmem:[#allocation2 + $0x48] sm:$0xff] }
 0x3b6   : > { %v11021_v19 = vpop.eup %11020 }
 0x3b7   : > { %v11023_v39 = vpop.eup %11022  ;;  %v2446_v43 = vmul.f32 %v11021_v19, %v12613_v49  ;;  %9747 = vmatprep.mubr.msk.f32.mxu1 %vm1635_vm0, %v11021_v19  ;;  %v2917_v49 = vmul.f32 %v13111_v50, %v13098_v12 }
 0x3b8   : > { %9773 = vmatprep.mubr.msk.f32.mxu0 %vm1635_vm0, %v11023_v39  ;;  %9748 = vmatmul.mubr.msk.f32.gmra.mrb[52].mxu1 %vm1635_vm0, %v11017_v7  ;;  %v13162_v7 = vld [vmem:[%s11988_s27 + $0x148] sm:$0xff] }
 0x3b9   : > { %v13108_v5 = vadd.f32 %v11023_v39, %v2446_v43  ;;  %9774 = vmatmul.mubr.msk.f32.gmra.mrb[40].mxu0 %vm1635_vm0, %v11019_v28  ;;  %9808 = vmatprep.mubr.f32.mxu1 %v2915_v55  ;;  %15879 = vst [vmem:[#allocation52_spill] sm:$0xff] %v13162_v7  ;;  %v13165_v28 = vld [vmem:[%s11988_s27 + $0x150] sm:$0xff]  ;;  %v2924_v55 = vmul.f32 %v13167_v38, %v13162_v7  ;;  %v13174_v39 = vld [vmem:[%s11988_s27 + $0x158] sm:$0xff]  ;;  %v13177_v43 = vld [vmem:[%s11988_s27 + $0x160] sm:$0xff] }
 0x3ba   : > { %15880 = vst [vmem:[#allocation53_spill] sm:$0xff] %v13165_v28  ;;  %v2925_v19 = vmul.f32 %v12781_v60, %v13165_v28  ;;  %15881 = vst [vmem:[#allocation54_spill] sm:$0xff] %v13174_v39  ;;  %v15910_v7 = vld [vmem:[#allocation34_spill] sm:$0xff] }
 0x3bb   : > { %15882 = vst [vmem:[#allocation55_spill] sm:$0xff] %v13177_v43 }
 0x3bc   : > { %9809 = vmatmul.mubr.f32.vlgmr.msra.gmra.mrb[54].mxu1 %v2916_v48  ;;  %v2926_v48 = vmul.f32 %v12794_v46, %v13174_v39 }
 0x3bd   : > { %9811 = vmatprep.mubr.f32.mxu1 %v2917_v49  ;;  %9859 = vmatpush3.msk.msra.mxu1 %vm1684_vm2, %v12812_v11  ;;  %v2927_v49 = vmul.f32 %v12799_v32, %v13177_v43 }
 0x3be   : > { %9940 = vmatprep.subr.msk.mxu1 %vm1684_vm2, %v12812_v11 }
 0x3c0   : > { %9812 = vmatmul.mubr.f32.gmra.mrb[56].mxu1 %v2918_v41  ;;  %v13184_v41 = vld [vmem:[%s11988_s27 + $0x168] sm:$0xff] }
 0x3c1   : > { %9814 = vmatprep.mubr.f32.mxu1 %v2919_v8  ;;  %15883 = vst [vmem:[#allocation56_spill] sm:$0xff] %v13184_v41  ;;  %v13187_v8 = vld [vmem:[%s11988_s27 + $0x170] sm:$0xff]  ;;  %v2928_v60 = vmul.f32 %v12816_v9, %v13184_v41 }
 0x3c2   : > { %15884 = vst [vmem:[#allocation57_spill] sm:$0xff] %v13187_v8 }
 0x3c4   : > { %9815 = vmatmul.mubr.f32.gmra.mrb[58].mxu1 %v2920_v4  ;;  %v2929_v4 = vmul.f32 %v12820_v33, %v13187_v8 }
 0x3c5   : > { %9817 = vmatprep.mubr.f32.mxu1 %v2921_v45  ;;  %v13194_v45 = vld [vmem:[%s11988_s27 + $0x178] sm:$0xff] }
 0x3c6   : > { %15885 = vst [vmem:[#allocation58_spill] sm:$0xff] %v13194_v45  ;;  %v2930_v46 = vmul.f32 %v12830_v56, %v13194_v45  ;;  %v15889_v45 = vld [vmem:[#allocation27_spill] sm:$0xff] }
 0x3c8   : > { %9818 = vmatmul.mubr.f32.gmra.mrb[60].mxu1 %v2922_v2 }
 0x3c9   : > { %9820 = vmatprep.mubr.f32.mxu1 %v2923_v59 }
 0x3cc   : > { %9821 = vmatmul.mubr.f32.gmra.mrb[62].mxu1 %v2924_v55 }
 0x3cd   : > { %9823 = vmatprep.mubr.f32.mxu1 %v2925_v19 }
 0x3d0   : > { %9824 = vmatmul.mubr.f32.gmra.mrb[64].mxu1 %v2926_v48 }
 0x3d1   : > { %9826 = vmatprep.mubr.f32.mxu1 %v2927_v49 }
 0x3d4   : > { %9827 = vmatmul.mubr.f32.gmra.mrb[66].mxu1 %v2928_v60  ;;  %v15887_v60 = vld [vmem:[#allocation46_spill] sm:$0xff] }
 0x3d5   : > { %9829 = vmatprep.mubr.f32.mxu1 %v2929_v4 }
 0x3d8   : > { %9830 = vmatmul.mubr.f32.gmra.mrb[68].mxu1 %v2930_v46 }
 0x480   : > { %v9743_v32 = vpop.f32.mrb[48].mxu1 }
 0x481   : > { %v2861_v2 = vmul.f32 %v9743_v32, %v12942_v40  ;;  %v9769_v59 = vpop.f32.mrb[36].mxu0  ;;  %v2628_v55 = vpop.f32.mrb[49].mxu1  ;;  %v15890_v32 = vld [vmem:[#allocation47_spill] sm:$0xff] }
 0x482   : > { %v2877_v19 = vmul.f32 %v9769_v59, %v12786_v57  ;;  %v2860_v9 = vmul.f32 %v2628_v55, %v12944_v16  ;;  %v2821_v48 = vpop.f32.mrb[37].mxu0  ;;  %v15891_v59 = vld [vmem:[#allocation21_spill] sm:$0xff] }
 0x483   : > { %v2876_v33 = vmul.f32 %v12774_v61, %v2821_v48 }
 0x484   : > { %v9746_v49 = vpop.f32.mrb[50].mxu1  ;;  %v13202_v8 = vadd.f32 %v2877_v19, %v2861_v2  ;;  %v15894_v19 = vld [vmem:[#allocation16_spill] sm:$0xff] }
 0x485   : > { %v2863_v43 = vmul.f32 %v9746_v49, %v15887_v60  ;;  %v9772_v56 = vpop.f32.mrb[38].mxu0  ;;  %v2638_v4 = vpop.f32.mrb[51].mxu1  ;;  %v13205_v46 = vadd.f32 %v2876_v33, %v2860_v9  ;;  %v3126_v48 = vsub.s32 2, %v15894_v19  ;;  %v15895_v49 = vld [vmem:[#allocation48_spill] sm:$0xff]  ;;  %v15896_v33 = vld [vmem:[#allocation45_spill] sm:$0xff] }
 0x486   : > { %15886 = vst [vmem:[#allocation59_spill] sm:$0xff] %v13202_v8  ;;  %v2879_v40 = vmul.f32 %v9772_v56, %v15889_v45  ;;  %v2862_v41 = vmul.f32 %v2638_v4, %v15890_v32  ;;  %v2831_v57 = vpop.f32.mrb[39].mxu0  ;;  %v15897_v45 = vld [vmem:[#allocation49_spill] sm:$0xff] }
 0x487   : > { %15888 = vst [vmem:[#allocation46_spill] sm:$0xff] %v13205_v46  ;;  %v2878_v16 = vmul.f32 %v15891_v59, %v2831_v57  ;;  %v15898_v4 = vld [vmem:[#allocation25_spill] sm:$0xff]  ;;  %v13220_v57 = vld [vmem:[%s11976_s19] sm:$0xff] }
 0x488   : > { %v13210_v55 = vadd.f32 %v2879_v40, %v2863_v43  ;;  %15899 = vst [vmem:[#allocation21_spill] sm:$0xff] %v13220_v57  ;;  %v13223_v43 = vrot.slane %v13220_v57, %v3126_v48  ;;  %v15904_v57 = vld [vmem:[#allocation31_spill] sm:$0xff] }
 0x489   : > { %v13212_v61 = vadd.f32 %v2878_v16, %v2862_v41 }
 0x48a   : > { %15892 = vst [vmem:[#allocation27_spill] sm:$0xff] %v13210_v55 }
 0x48b   : > { %15893 = vst [vmem:[#allocation47_spill] sm:$0xff] %v13212_v61  ;;  %v9749_v2 = vpop.f32.mrb[52].mxu1 }
 0x48c   : > { %v2865_v60 = vmul.f32 %v9749_v2, %v15895_v49  ;;  %v9775_v28 = vpop.f32.mrb[40].mxu0  ;;  %v2648_v9 = vpop.f32.mrb[53].mxu1 }
 0x48d   : > { %v2881_v46 = vmul.f32 %v9775_v28, %v15896_v33  ;;  %v2864_v56 = vmul.f32 %v2648_v9, %v15897_v45  ;;  %v2841_v39 = vpop.f32.mrb[41].mxu0 }
 0x48e   : > { %v2880_v32 = vmul.f32 %v15898_v4, %v2841_v39  ;;  %v15902_v4 = vld [vmem:[#allocation30_spill] sm:$0xff] }
 0x48f   : > { %v9810_v8 = vpop.f32.mrb[54].mxu1  ;;  %v13225_v41 = vadd.f32 %v2881_v46, %v2865_v60 }
 0x490   : > { %vm3077_vm7 = vcmp.ge.f32.partialorder %v9810_v8, 0.0  ;;  %v3093_v40 = vmul.f32 0.01, %v9810_v8  ;;  %v2997_v59 = vpop.f32.mrb[55].mxu1  ;;  %v13227_v16 = vadd.f32 %v2880_v32, %v2864_v56 }
 0x491   : > { %15900 = vst [vmem:[#allocation48_spill] sm:$0xff] %v13225_v41  ;;  %vm3076_vm8 = vcmp.ge.f32.partialorder %v2997_v59, 0.0  ;;  %v3092_v28 = vmul.f32 0.01, %v2997_v59 }
 0x492   : > { %15901 = vst [vmem:[#allocation45_spill] sm:$0xff] %v13227_v16  ;;  %v3109_v2 = vsel %vm3077_vm7, %v9810_v8, %v3093_v40 }
 0x493   : > { %v3129_v49 = vmul.f32 %v13223_v43, %v3109_v2  ;;  %v3108_v9 = vsel %vm3076_vm8, %v2997_v59, %v3092_v28  ;;  %v9813_v39 = vpop.f32.mrb[56].mxu1 }
 0x494   : > { %v3128_v33 = vmul.f32 %v13223_v43, %v3108_v9  ;;  %vm3079_vm9 = vcmp.ge.f32.partialorder %v9813_v39, 0.0  ;;  %v3095_v45 = vmul.f32 0.01, %v9813_v39  ;;  %v3007_v48 = vpop.f32.mrb[57].mxu1 }
 0x495   : > { %v13232_v46 = vmax.f32 %v15902_v4, %v3129_v49  ;;  %vm3078_vm10 = vcmp.ge.f32.partialorder %v3007_v48, 0.0  ;;  %v3094_v60 = vmul.f32 0.01, %v3007_v48 }
 0x496   : > { %v13235_v56 = vmax.f32 %v15904_v57, %v3128_v33  ;;  %v3111_v32 = vsel %vm3079_vm9, %v9813_v39, %v3095_v45  ;;  %v15906_v45 = vld [vmem:[#allocation32_spill] sm:$0xff] }
 0x497   : > { %15903 = vst [vmem:[#allocation49_spill] sm:$0xff] %v13232_v46  ;;  %v3161_v8 = vsub.f32 %v15902_v4, %v13232_v46  ;;  %v3209_v40 = vsub.f32 %v3129_v49, %v13232_v46  ;;  %v3131_v59 = vmul.f32 %v13223_v43, %v3111_v32  ;;  %v3110_v28 = vsel %vm3078_vm10, %v3007_v48, %v3094_v60  ;;  %v9816_v2 = vpop.f32.mrb[58].mxu1  ;;  %v15908_v32 = vld [vmem:[#allocation33_spill] sm:$0xff] }
 0x498   : > { %15905 = vst [vmem:[#allocation25_spill] sm:$0xff] %v13235_v56  ;;  %v3160_v9 = vsub.f32 %v15904_v57, %v13235_v56  ;;  %v3208_v16 = vsub.f32 %v3128_v33, %v13235_v56  ;;  %v3130_v41 = vmul.f32 %v13223_v43, %v3110_v28  ;;  %vm3081_vm11 = vcmp.ge.f32.partialorder %v9816_v2, 0.0  ;;  %v3017_v19 = vpop.f32.mrb[59].mxu1 }
 0x499   : > { %v3178_v61 = vmul.f32 1.442695, %v3161_v8  ;;  %v3226_v39 = vmul.f32 1.442695, %v3209_v40  ;;  %v13246_v55 = vmax.f32 %v15906_v45, %v3131_v59  ;;  %v3097_v4 = vmul.f32 0.01, %v9816_v2 }
 0x49a   : > { %v3176_v49 = vmul.f32 1.442695, %v3160_v9  ;;  %v3224_v46 = vmul.f32 1.442695, %v3208_v16  ;;  %v13249_v48 = vmax.f32 %v15908_v32, %v3130_v41  ;;  %vm3080_vm12 = vcmp.ge.f32.partialorder %v3017_v19, 0.0 }
 0x49b   : > { %15907 = vst [vmem:[#allocation30_spill] sm:$0xff] %v13246_v55  ;;  %11024 = vpow2.f32 %v3178_v61  ;;  %v3163_v57 = vsub.f32 %v15906_v45, %v13246_v55  ;;  %v3211_v33 = vsub.f32 %v3131_v59, %v13246_v55  ;;  %v3113_v60 = vsel %vm3081_vm11, %v9816_v2, %v3097_v4  ;;  %v9819_v28 = vpop.f32.mrb[60].mxu1 }
 0x49c   : > { %15909 = vst [vmem:[#allocation31_spill] sm:$0xff] %v13249_v48  ;;  %11026 = vpow2.f32 %v3226_v39  ;;  %v3162_v8 = vsub.f32 %v15908_v32, %v13249_v48  ;;  %v3210_v40 = vsub.f32 %v3130_v41, %v13249_v48  ;;  %v3133_v16 = vmul.f32 %v13223_v43, %v3113_v60  ;;  %v3027_v9 = vpop.f32.mrb[61].mxu1  ;;  %v15917_v48 = vld [vmem:[#allocation38_spill] sm:$0xff] }
 0x49d   : > { %11028 = vpow2.f32 %v3176_v49  ;;  %v3182_v56 = vmul.f32 1.442695, %v3163_v57  ;;  %v3230_v31 = vmul.f32 1.442695, %v3211_v33  ;;  %v3096_v61 = vmul.f32 0.01, %v3017_v19 }
 0x49e   : > { %11030 = vpow2.f32 %v3224_v46  ;;  %v3180_v23 = vmul.f32 1.442695, %v3162_v8  ;;  %v3228_v45 = vmul.f32 1.442695, %v3210_v40  ;;  %v13259_v59 = vmax.f32 %v15910_v7, %v3133_v16 }
 0x49f   : > { %11032 = vpow2.f32 %v3182_v56  ;;  %v3112_v2 = vsel %vm3080_vm12, %v3017_v19, %v3096_v61  ;;  %vm3083_vm13 = vcmp.ge.f32.partialorder %v9819_v28, 0.0  ;;  %v3099_v39 = vmul.f32 0.01, %v9819_v28  ;;  %v9822_v4 = vpop.f32.mrb[62].mxu1  ;;  %v15912_v19 = vld [vmem:[#allocation35_spill] sm:$0xff] }
 0x4a0   : > { %15911 = vst [vmem:[#allocation32_spill] sm:$0xff] %v13259_v59  ;;  %11034 = vpow2.f32 %v3230_v31  ;;  %v3165_v41 = vsub.f32 %v15910_v7, %v13259_v59  ;;  %v3213_v49 = vsub.f32 %v3133_v16, %v13259_v59  ;;  %v3132_v32 = vmul.f32 %v13223_v43, %v3112_v2  ;;  %v3037_v46 = vpop.f32.mrb[63].mxu1 }
 0x4a1   : > { %11036 = vpow2.f32 %v3180_v23  ;;  %v3115_v57 = vsel %vm3083_vm13, %v9819_v28, %v3099_v39  ;;  %vm3082_vm14 = vcmp.ge.f32.partialorder %v3027_v9, 0.0  ;;  %v3098_v33 = vmul.f32 0.01, %v3027_v9  ;;  %v15914_v39 = vld [vmem:[#allocation37_spill] sm:$0xff] }
 0x4a2   : > { %11038 = vpow2.f32 %v3228_v45  ;;  %v3186_v56 = vmul.f32 1.442695, %v3165_v41  ;;  %v3234_v60 = vmul.f32 1.442695, %v3213_v49  ;;  %v13267_v8 = vmax.f32 %v15912_v19, %v3132_v32 }
 0x4a3   : > { %v3135_v31 = vmul.f32 %v13223_v43, %v3115_v57  ;;  %v3114_v40 = vsel %vm3082_vm14, %v3027_v9, %v3098_v33  ;;  %vm3085_vm15 = vcmp.ge.f32.partialorder %v9822_v4, 0.0  ;;  %v3101_v7 = vmul.f32 0.01, %v9822_v4  ;;  %v13270_v61 = vpop.f32.mrb[64].mxu1  ;;  %v15916_v57 = vld [vmem:[#allocation36_spill] sm:$0xff] }
 0x4a4   : > { %15913 = vst [vmem:[#allocation33_spill] sm:$0xff] %v13267_v8  ;;  %11040 = vpow2.f32 %v3186_v56  ;;  %v3164_v23 = vsub.f32 %v15912_v19, %v13267_v8  ;;  %v3212_v28 = vsub.f32 %v3132_v32, %v13267_v8  ;;  %v3134_v16 = vmul.f32 %v13223_v43, %v3114_v40  ;;  %v13276_v45 = vpop.f32.mrb[65].mxu1 }
 0x4a5   : > { %v11025_v2 = vpop.eup %11024  ;;  %11042 = vpow2.f32 %v3234_v60  ;;  %v13279_v41 = vmax.f32 %v15914_v39, %v3135_v31  ;;  %v3117_v9 = vsel %vm3085_vm15, %v9822_v4, %v3101_v7  ;;  %vm3084_vm1 = vcmp.ge.f32.partialorder %v3037_v46, 0.0 }
 0x4a6   : > { %v11027_v49 = vpop.eup %11026  ;;  %v3257_v33 = vmul.f32 %v11025_v2, %v15916_v57  ;;  %v3184_v56 = vmul.f32 1.442695, %v3164_v23  ;;  %v3232_v59 = vmul.f32 1.442695, %v3212_v28  ;;  %v13283_v19 = vmax.f32 %v15917_v48, %v3134_v16  ;;  %v15919_v57 = vld [vmem:[#allocation39_spill] sm:$0xff] }
 0x4a7   : > { %15915 = vst [vmem:[#allocation34_spill] sm:$0xff] %v13279_v41  ;;  %v11029_v32 = vpop.eup %11028  ;;  %v3167_v40 = vsub.f32 %v15914_v39, %v13279_v41  ;;  %v3215_v8 = vsub.f32 %v3135_v31, %v13279_v41  ;;  %v3137_v60 = vmul.f32 %v13223_v43, %v3117_v9  ;;  %v3100_v55 = vmul.f32 0.01, %v3037_v46  ;;  %v13289_v15 = vpop.f32.mrb[66].mxu1 }
 0x4a8   : > { %v11031_v4 = vpop.eup %11030  ;;  %v13291_v7 = vadd.f32 %v11027_v49, %v3257_v33  ;;  %v3256_v23 = vmul.f32 %v11029_v32, %v15919_v57  ;;  %11044 = vpow2.f32 %v3184_v56  ;;  %v3166_v28 = vsub.f32 %v15917_v48, %v13283_v19  ;;  %9834 = vmatprep.mubr.msk.f32.mxu0 %vm1635_vm0, %v11029_v32  ;;  %v13297_v62 = vpop.f32.mrb[67].mxu1  ;;  %v15920_v56 = vld [vmem:[#allocation40_spill] sm:$0xff] }
 0x4a9   : > { %v11033_v39 = vpop.eup %11032  ;;  %11046 = vpow2.f32 %v3232_v59  ;;  %v3190_v31 = vmul.f32 1.442695, %v3167_v40  ;;  %v3238_v9 = vmul.f32 1.442695, %v3215_v8  ;;  %v3214_v41 = vsub.f32 %v3134_v16, %v13283_v19  ;;  %9860 = vmatprep.mubr.msk.f32.mxu1 %vm1635_vm0, %v11031_v4  ;;  %9835 = vmatmul.mubr.msk.f32.vlgmr.msra.gmra.mrb[42].mxu0 %vm1635_vm0, %v11025_v2  ;;  %v15922_v59 = vld [vmem:[#allocation7_spill] sm:$0xff] }
 0x4aa   : > { %15918 = vst [vmem:[#allocation35_spill] sm:$0xff] %v13291_v7  ;;  %v11035_v33 = vpop.eup %11034  ;;  %v13302_v57 = vadd.f32 %v11031_v4, %v3256_v23  ;;  %v3259_v7 = vmul.f32 %v11033_v39, %v15920_v56  ;;  %v3188_v48 = vmul.f32 1.442695, %v3166_v28  ;;  %v13306_v32 = vmax.f32 %v15921_v54, %v3137_v60  ;;  %9861 = vmatmul.mubr.msk.f32.vlgmr.msra.gmra.mrb[70].mxu1 %vm1635_vm0, %v11027_v49  ;;  %v15923_v4 = vld [vmem:[#allocation8_spill] sm:$0xff]  ;;  %v15924_v49 = vld [vmem:[#allocation43_spill] sm:$0xff] }
 0x4ab   : > { %10613 = vmatpush3.bf16.msra.mxu0 %v15922_v59  ;;  %v11037_v8 = vpop.eup %11036  ;;  %11048 = vpow2.f32 %v3190_v31  ;;  %v3236_v16 = vmul.f32 1.442695, %v3214_v41  ;;  %v3116_v40 = vsel %vm3084_vm1, %v3037_v46, %v3100_v55  ;;  %vm3087_vm3 = vcmp.ge.f32.partialorder %v13270_v61, 0.0  ;;  %v13312_v2 = vpop.f32.mrb[68].mxu1  ;;  %9941 = vmatpush3.msk.msra.mxu1 %vm1684_vm2, %v12812_v11 }
 0x4ac   : > { %10615 = vmatprep.subr.bf16.mxu0 %v15923_v4  ;;  %v11039_v23 = vpop.eup %11038  ;;  %v13317_v28 = vadd.f32 %v11035_v33, %v3259_v7  ;;  %v3258_v56 = vmul.f32 %v11037_v8, %v15924_v49  ;;  %11050 = vpow2.f32 %v3238_v9  ;;  %v3169_v41 = vsub.f32 %v15921_v54, %v13306_v32  ;;  %9837 = vmatprep.mubr.msk.f32.mxu0 %vm1635_vm0, %v11037_v8  ;;  %v13323_v55 = vpop.f32.mrb[69].mxu1  ;;  %v15927_v49 = vld [vmem:[#allocation42_spill] sm:$0xff] }
 0x4ad   : > { %10643 = vmatprep.subr.bf16.mxu1 %v15922_v59  ;;  %11052 = vpow2.f32 %v3188_v48  ;;  %v3217_v46 = vsub.f32 %v3137_v60, %v13306_v32  ;;  %v3136_v11 = vmul.f32 %v13223_v43, %v3116_v40  ;;  %v3103_v7 = vmul.f32 0.01, %v13270_v61  ;;  %9863 = vmatprep.mubr.msk.f32.mxu1 %vm1635_vm0, %v11039_v23  ;;  %v15926_v48 = vld [vmem:[#allocation44_spill] sm:$0xff] }
 0x4ae   : > { %9838 = vmatmul.mubr.msk.f32.gmra.mrb[44].mxu0 %vm1635_vm0, %v11033_v39  ;;  %v11041_v31 = vpop.eup %11040  ;;  %v13331_v9 = vadd.f32 %v11039_v23, %v3258_v56  ;;  %11054 = vpow2.f32 %v3236_v16  ;;  %v3194_v54 = vmul.f32 1.442695, %v3169_v41  ;;  %vm3086_vm4 = vcmp.ge.f32.partialorder %v13276_v45, 0.0  ;;  %9864 = vmatmul.mubr.msk.f32.gmra.mrb[72].mxu1 %vm1635_vm0, %v11035_v33  ;;  %v15929_v23 = vld [vmem:[#allocation9_spill] sm:$0xff] }
 0x4af   : > { %10617 = vmatpush3.bf16.msra.mxu0 %v15923_v4  ;;  %v11043_v60 = vpop.eup %11042  ;;  %v3261_v8 = vmul.f32 %v11041_v31, %v15926_v48  ;;  %v3242_v40 = vmul.f32 1.442695, %v3217_v46  ;;  %v13338_v59 = vmax.f32 %v15927_v49, %v3136_v11  ;;  %v3119_v39 = vsel %vm3087_vm3, %v13270_v61, %v3103_v7 }
 0x4b0   : > { %15925 = vst [vmem:[#allocation37_spill] sm:$0xff] %v13331_v9  ;;  %10619 = vmatprep.subr.bf16.mxu0 %v15929_v23  ;;  %11056 = vpow2.f32 %v3194_v54  ;;  %v3139_v16 = vmul.f32 %v13223_v43, %v3119_v39  ;;  %v3102_v33 = vmul.f32 0.01, %v13276_v45  ;;  %vm3089_vm5 = vcmp.ge.f32.partialorder %v13289_v15, 0.0  ;;  %v15931_v9 = vld [vmem:[#allocation18_spill] sm:$0xff] }
 0x4b1   : > { %15928 = vst [vmem:[#allocation36_spill] sm:$0xff] %v13338_v59  ;;  %v13347_v56 = vadd.f32 %v11043_v60, %v3261_v8  ;;  %11058 = vpow2.f32 %v3242_v40  ;;  %v3168_v41 = vsub.f32 %v15927_v49, %v13338_v59  ;;  %v3216_v46 = vsub.f32 %v3136_v11, %v13338_v59  ;;  %v15933_v40 = vld [vmem:[#allocation19_spill] sm:$0xff]  ;;  %v15934_v59 = vld [vmem:[#allocation10_spill] sm:$0xff] }
 0x4b2   : > { %v11045_v48 = vpop.eup %11044  ;;  %v13353_v61 = vmax.f32 %v15931_v9, %v3139_v16  ;;  %v3118_v7 = vsel %vm3086_vm4, %v13276_v45, %v3102_v33  ;;  %v3105_v54 = vmul.f32 0.01, %v13289_v15  ;;  %vm3088_vm6 = vcmp.ge.f32.partialorder %v13297_v62, 0.0 }
 0x4b3   : > { %15930 = vst [vmem:[#allocation38_spill] sm:$0xff] %v13347_v56  ;;  %10621 = vmatpush3.bf16.msra.mxu0 %v15929_v23  ;;  %v11047_v8 = vpop.eup %11046  ;;  %v3260_v39 = vmul.f32 %v11045_v48, %v15933_v40  ;;  %v3192_v49 = vmul.f32 1.442695, %v3168_v41  ;;  %v3240_v56 = vmul.f32 1.442695, %v3216_v46  ;;  %v3138_v11 = vmul.f32 %v13223_v43, %v3118_v7  ;;  %9840 = vmatprep.mubr.msk.f32.mxu0 %vm1635_vm0, %v11045_v48  ;;  %v15935_v48 = vld [vmem:[#allocation20_spill] sm:$0xff] }
 0x4b4   : > { %15932 = vst [vmem:[#allocation39_spill] sm:$0xff] %v13353_v61  ;;  %10623 = vmatprep.subr.bf16.mxu0 %v15934_v59  ;;  %v3171_v45 = vsub.f32 %v15931_v9, %v13353_v61  ;;  %v3219_v33 = vsub.f32 %v3139_v16, %v13353_v61  ;;  %v3121_v23 = vsel %vm3089_vm5, %v13289_v15, %v3105_v54  ;;  %v3104_v4 = vmul.f32 0.01, %v13297_v62  ;;  %v15937_v40 = vld [vmem:[#allocation17_spill] sm:$0xff] }
 0x4b5   : > { %9866 = vmatprep.mubr.msk.f32.mxu1 %vm1635_vm0, %v11047_v8  ;;  %9841 = vmatmul.mubr.msk.f32.gmra.mrb[46].mxu0 %vm1635_vm0, %v11041_v31  ;;  %v11049_v41 = vpop.eup %11048  ;;  %v13374_v46 = vadd.f32 %v11047_v8, %v3260_v39  ;;  %11060 = vpow2.f32 %v3192_v49  ;;  %v13377_v7 = vmax.f32 %v15935_v48, %v3138_v11  ;;  %v3141_v9 = vmul.f32 %v13223_v43, %v3121_v23  ;;  %v15938_v23 = vld [vmem:[#allocation11_spill] sm:$0xff] }
 0x4b6   : > { %9867 = vmatmul.mubr.msk.f32.gmra.mrb[74].mxu1 %vm1635_vm0, %v11043_v60  ;;  %v11051_v16 = vpop.eup %11050  ;;  %v3263_v15 = vmul.f32 %v11049_v41, %v15937_v40  ;;  %11062 = vpow2.f32 %v3240_v56  ;;  %v3198_v54 = vmul.f32 1.442695, %v3171_v45  ;;  %v3246_v61 = vmul.f32 1.442695, %v3219_v33  ;;  %v15939_v33 = vld [vmem:[#allocation23_spill] sm:$0xff] }
 0x4b7   : > { %15936 = vst [vmem:[#allocation40_spill] sm:$0xff] %v13377_v7  ;;  %10625 = vmatpush3.bf16.msra.mxu0 %v15934_v59  ;;  %v11053_v31 = vpop.eup %11052  ;;  %v3170_v8 = vsub.f32 %v15935_v48, %v13377_v7  ;;  %v3218_v39 = vsub.f32 %v3138_v11, %v13377_v7  ;;  %v13387_v49 = vmax.f32 %v12993_v20, %v3141_v9  ;;  %vm3091_vm7 = vcmp.ge.f32.partialorder %v13312_v2, 0.0 }
 0x4b8   : > { %v3120_v60 = vsel %vm3088_vm6, %v13297_v62, %v3104_v4  ;;  %10627 = vmatprep.subr.bf16.mxu0 %v15938_v23  ;;  %v11055_v56 = vpop.eup %11054  ;;  %v13393_v45 = vadd.f32 %v11051_v16, %v3263_v15  ;;  %v3262_v40 = vmul.f32 %v11053_v31, %v15939_v33  ;;  %11064 = vpow2.f32 %v3198_v54  ;;  %9843 = vmatprep.mubr.msk.f32.mxu0 %vm1635_vm0, %v11053_v31 }
 0x4b9   : > { %v3140_v59 = vmul.f32 %v13223_v43, %v3120_v60  ;;  %11066 = vpow2.f32 %v3246_v61  ;;  %v3196_v11 = vmul.f32 1.442695, %v3170_v8  ;;  %v3244_v48 = vmul.f32 1.442695, %v3218_v39  ;;  %9869 = vmatprep.mubr.msk.f32.mxu1 %vm1635_vm0, %v11055_v56  ;;  %9844 = vmatmul.mubr.msk.f32.gmra.mrb[48].mxu0 %vm1635_vm0, %v11049_v41  ;;  %v15941_v39 = vld [vmem:[#allocation12_spill] sm:$0xff] }
 0x4ba   : > { %v3173_v7 = vsub.f32 %v12993_v20, %v13387_v49  ;;  %v11057_v62 = vpop.eup %11056  ;;  %v13402_v4 = vadd.f32 %v11055_v56, %v3262_v40  ;;  %v3221_v15 = vsub.f32 %v3141_v9, %v13387_v49  ;;  %9870 = vmatmul.mubr.msk.f32.gmra.mrb[76].mxu1 %vm1635_vm0, %v11051_v16  ;;  %v15940_v20 = vld [vmem:[#allocation24_spill] sm:$0xff]  ;;  %v3107_v41 = vmul.f32 0.01, %v13312_v2 }
 0x4bb   : > { %v13406_v54 = vmax.f32 %v12996_v6, %v3140_v59  ;;  %10629 = vmatpush3.bf16.msra.mxu0 %v15938_v23  ;;  %v11059_v61 = vpop.eup %11058  ;;  %v3265_v31 = vmul.f32 %v11057_v62, %v15940_v20  ;;  %11068 = vpow2.f32 %v3196_v11  ;;  %vm3090_vm8 = vcmp.ge.f32.partialorder %v13323_v55, 0.0 }
 0x4bc   : > { %v3202_v8 = vmul.f32 1.442695, %v3173_v7  ;;  %10631 = vmatprep.subr.bf16.mxu0 %v15941_v39  ;;  %11070 = vpow2.f32 %v3244_v48  ;;  %v3250_v9 = vmul.f32 1.442695, %v3221_v15  ;;  %v3123_v16 = vsel %vm3091_vm7, %v13312_v2, %v3107_v41  ;;  %v15943_v15 = vld [vmem:[#allocation26_spill] sm:$0xff] }
 0x4bd   : > { %v3172_v60 = vsub.f32 %v12996_v6, %v13406_v54  ;;  %v3220_v56 = vsub.f32 %v3140_v59, %v13406_v54  ;;  %v13417_v33 = vadd.f32 %v11059_v61, %v3265_v31  ;;  %v3143_v7 = vmul.f32 %v13223_v43, %v3123_v16  ;;  %v15942_v6 = vld [vmem:[#allocation13_spill] sm:$0xff] }
 0x4be   : > { %11072 = vpow2.f32 %v3202_v8  ;;  %v3106_v48 = vmul.f32 0.01, %v13323_v55 }
 0x4bf   : > { %v3200_v40 = vmul.f32 1.442695, %v3172_v60  ;;  %v3248_v20 = vmul.f32 1.442695, %v3220_v56  ;;  %10633 = vmatpush3.bf16.msra.mxu0 %v15941_v39  ;;  %v11061_v11 = vpop.eup %11060  ;;  %11074 = vpow2.f32 %v3250_v9  ;;  %v13427_v2 = vmax.f32 %v13006_v51, %v3143_v7 }
 0x4c0   : > { %10635 = vmatprep.subr.bf16.mxu0 %v15942_v6  ;;  %v11063_v59 = vpop.eup %11062  ;;  %v3264_v31 = vmul.f32 %v11061_v11, %v15943_v15  ;;  %9846 = vmatprep.mubr.msk.f32.mxu0 %vm1635_vm0, %v11061_v11  ;;  %v3122_v8 = vsel %vm3090_vm8, %v13323_v55, %v3106_v48  ;;  %v15944_v48 = vld [vmem:[#allocation14_spill] sm:$0xff] }
 0x4c1   : > { %11076 = vpow2.f32 %v3200_v40  ;;  %9872 = vmatprep.mubr.msk.f32.mxu1 %vm1635_vm0, %v11063_v59  ;;  %9847 = vmatmul.mubr.msk.f32.gmra.mrb[50].mxu0 %vm1635_vm0, %v11057_v62  ;;  %v3175_v60 = vsub.f32 %v13006_v51, %v13427_v2  ;;  %v3223_v56 = vsub.f32 %v3143_v7, %v13427_v2  ;;  %v3142_v16 = vmul.f32 %v13223_v43, %v3122_v8 }
 0x4c2   : > { %11078 = vpow2.f32 %v3248_v20  ;;  %v11065_v41 = vpop.eup %11064  ;;  %v13433_v9 = vadd.f32 %v11063_v59, %v3264_v31  ;;  %9873 = vmatmul.mubr.msk.f32.gmra.mrb[78].mxu1 %vm1635_vm0, %v11059_v61 }
 0x4c3   : > { %v11067_v40 = vpop.eup %11066  ;;  %v3267_v20 = vmul.f32 %v11065_v41, %v13047_v58  ;;  %10637 = vmatpush3.bf16.msra.mxu0 %v15942_v6  ;;  %v3206_v55 = vmul.f32 1.442695, %v3175_v60  ;;  %v3254_v11 = vmul.f32 1.442695, %v3223_v56  ;;  %v13443_v62 = vmax.f32 %v13021_v21, %v3142_v16  ;;  %v13463_v56 = vld [vmem:[%s15575_s4] sm:$0xf] }
 0x4c4   : > { %10639 = vmatprep.subr.bf16.mxu0 %v15944_v48 }
 0x4c5   : > { %v11069_v59 = vpop.eup %11068  ;;  %v13446_v51 = vadd.f32 %v11067_v40, %v3267_v20  ;;  %11080 = vpow2.f32 %v3206_v55  ;;  %v3174_v61 = vsub.f32 %v13021_v21, %v13443_v62  ;;  %v3222_v58 = vsub.f32 %v3142_v16, %v13443_v62 }
 0x4c6   : > { %v11071_v7 = vpop.eup %11070  ;;  %v3266_v43 = vmul.f32 %v11069_v59, %v13057_v17  ;;  %9849 = vmatprep.mubr.msk.f32.mxu0 %vm1635_vm0, %v11069_v59  ;;  %11082 = vpow2.f32 %v3254_v11  ;;  %v13477_v11 = vld [vmem:[%s11988_s27 + $0x180] sm:$0xff] }
 0x4c7   : > { %9875 = vmatprep.mubr.msk.f32.mxu1 %vm1635_vm0, %v11071_v7  ;;  %9850 = vmatmul.mubr.msk.f32.gmra.mrb[52].mxu0 %vm1635_vm0, %v11065_v41  ;;  %v3204_v60 = vmul.f32 1.442695, %v3174_v61  ;;  %v3252_v17 = vmul.f32 1.442695, %v3222_v58  ;;  %v13485_v61 = vld [vmem:[%s11988_s27 + $0x188] sm:$0xff] }
 0x4c8   : > { %v11073_v15 = vpop.eup %11072  ;;  %v13455_v31 = vadd.f32 %v11071_v7, %v3266_v43  ;;  %9876 = vmatmul.mubr.msk.f32.gmra.mrb[80].mxu1 %vm1635_vm0, %v11067_v40  ;;  %10641 = vmatpush3.bf16.msra.mxu0 %v15944_v48 }
 0x4c9   : > { %v3269_v8 = vmul.f32 %v11073_v15, %v13067_v25  ;;  %v11075_v21 = vpop.eup %11074  ;;  %9966 = vmatprep.subr.msk.mxu0 %vm1684_vm2, %v13463_v56  ;;  %11084 = vpow2.f32 %v3204_v60 }
 0x4ca   : > { %11086 = vpow2.f32 %v3252_v17 }
 0x4cb   : > { %v11077_v41 = vpop.eup %11076  ;;  %v13467_v16 = vadd.f32 %v11075_v21, %v3269_v8 }
 0x4cc   : > { %v11079_v25 = vpop.eup %11078  ;;  %v3268_v40 = vmul.f32 %v11077_v41, %v13077_v34  ;;  %9852 = vmatprep.mubr.msk.f32.mxu0 %vm1635_vm0, %v11077_v41  ;;  %v3739_v34 = vmul.f32 %v13090_v24, %v13477_v11 }
 0x4cd   : > { %9878 = vmatprep.mubr.msk.f32.mxu1 %vm1635_vm0, %v11079_v25  ;;  %9853 = vmatmul.mubr.msk.f32.gmra.mrb[54].mxu0 %vm1635_vm0, %v11073_v15  ;;  %v13488_v15 = vld [vmem:[%s11988_s27 + $0x190] sm:$0xff] }
 0x4ce   : > { %v13473_v20 = vadd.f32 %v11079_v25, %v3268_v40  ;;  %9879 = vmatmul.mubr.msk.f32.gmra.mrb[82].mxu1 %vm1635_vm0, %v11075_v21  ;;  %v3741_v17 = vmul.f32 %v13111_v50, %v13488_v15  ;;  %v13505_v21 = vld [vmem:[%s11988_s27 + $0x1a0] sm:$0xff]  ;;  %v13512_v25 = vld [vmem:[%s11988_s27 + $0x1a8] sm:$0xff]  ;;  %v13517_v50 = vld [vmem:[%s11988_s27 + $0x1b0] sm:$0xff] }
 0x4cf   : > { %v11081_v55 = vpop.eup %11080  ;;  %15945 = vst [vmem:[#allocation41_spill] sm:$0xff] %v13505_v21  ;;  %15946 = vst [vmem:[#allocation43_spill] sm:$0xff] %v13512_v25  ;;  %v13526_v40 = vld [vmem:[%s11988_s27 + $0x1b8] sm:$0xff] }
 0x4d0   : > { %v11083_v59 = vpop.eup %11082  ;;  %v3271_v7 = vmul.f32 %v11081_v55, %v13088_v44  ;;  %v3740_v44 = vmul.f32 %v13104_v13, %v13485_v61  ;;  %v3743_v13 = vmul.f32 %v13125_v26, %v13505_v21  ;;  %15947 = vst [vmem:[#allocation44_spill] sm:$0xff] %v13517_v50  ;;  %v3745_v26 = vmul.f32 %v13143_v37, %v13517_v50  ;;  %v13538_v37 = vld [vmem:[#allocation2 + $0x50] sm:$0xff] }
 0x4d1   : > { %15948 = vst [vmem:[#allocation42_spill] sm:$0xff] %v13526_v40 }
 0x4d2   : > { %v13480_v43 = vadd.f32 %v11083_v59, %v3271_v7 }
 0x4d3   : > { %v11085_v58 = vpop.eup %11084 }
 0x4d4   : > { %v11087_v8 = vpop.eup %11086  ;;  %v3270_v60 = vmul.f32 %v11085_v58, %v13108_v5  ;;  %9855 = vmatprep.mubr.msk.f32.mxu0 %vm1635_vm0, %v11085_v58  ;;  %v13502_v5 = vld [vmem:[%s11988_s27 + $0x198] sm:$0xff] }
 0x4d5   : > { %9881 = vmatprep.mubr.msk.f32.mxu1 %vm1635_vm0, %v11087_v8  ;;  %9856 = vmatmul.mubr.msk.f32.gmra.mrb[56].mxu0 %vm1635_vm0, %v11081_v55  ;;  %v3742_v41 = vmul.f32 %v13121_v22, %v13502_v5  ;;  %v3744_v22 = vmul.f32 %v13139_v35, %v13512_v25  ;;  %v8668_v55 = vld [vmem:[%s11988_s27 + $0x1c0] sm:$0xff]  ;;  %v8670_v35 = vld [vmem:[%s11988_s27 + $0x1d0] sm:$0xff] }
 0x4d6   : > { %v13496_v24 = vadd.f32 %v11087_v8, %v3270_v60  ;;  %9882 = vmatmul.mubr.msk.f32.gmra.mrb[84].mxu1 %vm1635_vm0, %v11083_v59  ;;  %9916 = vmatprep.mubr.f32.mxu0 %v3739_v34  ;;  %v3746_v59 = vmul.f32 %v13153_v3, %v13526_v40  ;;  %v3747_v7 = vmul.f32 %v13157_v63, %v8668_v55  ;;  %v13533_v34 = vld [vmem:[%s11988_s27 + $0x1c8] sm:$0xff]  ;;  %v13542_v60 = vld [vmem:[%s11988_s27 + $0x1d8] sm:$0xff]  ;;  %v8672_v3 = vld [vmem:[%s11988_s27 + $0x1e0] sm:$0xff] }
 0x4d7   : > { %15949 = vst [vmem:[#allocation18_spill] sm:$0xff] %v13533_v34  ;;  %v3748_v58 = vmul.f32 %v13167_v38, %v13533_v34  ;;  %v3749_v8 = vmul.f32 %v13538_v37, %v8670_v35  ;;  %15950 = vst [vmem:[#allocation19_spill] sm:$0xff] %v13542_v60  ;;  %v13545_v63 = vld [vmem:[#allocation2 + $0x58] sm:$0xff]  ;;  %v13557_v55 = vld [vmem:[#allocation2 + $0x70] sm:$0xff] }
 0x4d8   : > { %v13561_v35 = vld [vmem:[#allocation2 + $0x78] sm:$0xff] }
 0x4d9   : > { %9917 = vmatmul.mubr.f32.vlgmr.msra.gmra.mrb[58].mxu0 %v3740_v44  ;;  %v3750_v44 = vmul.f32 %v13545_v63, %v13542_v60 }
 0x4da   : > { %9919 = vmatprep.mubr.f32.mxu0 %v3741_v17  ;;  %9967 = vmatpush3.msk.msra.mxu0 %vm1684_vm2, %v13463_v56  ;;  %v13549_v17 = vld [vmem:[#allocation2 + $0x60] sm:$0xff] }
 0x4db   : > { %10048 = vmatprep.subr.msk.mxu0 %vm1684_vm2, %v13463_v56  ;;  %v3751_v38 = vmul.f32 %v13549_v17, %v8672_v3 }
 0x4dd   : > { %9920 = vmatmul.mubr.f32.gmra.mrb[60].mxu0 %v3742_v41  ;;  %v8673_v41 = vld [vmem:[%s11988_s27 + $0x1e8] sm:$0xff] }
 0x4de   : > { %9922 = vmatprep.mubr.f32.mxu0 %v3743_v13  ;;  %v8674_v13 = vld [vmem:[%s11988_s27 + $0x1f0] sm:$0xff] }
 0x4e1   : > { %9923 = vmatmul.mubr.f32.gmra.mrb[62].mxu0 %v3744_v22  ;;  %v13554_v22 = vld [vmem:[#allocation2 + $0x68] sm:$0xff] }
 0x4e2   : > { %9925 = vmatprep.mubr.f32.mxu0 %v3745_v26  ;;  %v3752_v26 = vmul.f32 %v13554_v22, %v8673_v41 }
 0x4e5   : > { %9926 = vmatmul.mubr.f32.gmra.mrb[64].mxu0 %v3746_v59  ;;  %v3753_v59 = vmul.f32 %v13557_v55, %v8674_v13 }
 0x4e6   : > { %9928 = vmatprep.mubr.f32.mxu0 %v3747_v7  ;;  %v8675_v7 = vld [vmem:[%s11988_s27 + $0x1f8] sm:$0xff] }
 0x4e9   : > { %9929 = vmatmul.mubr.f32.gmra.mrb[66].mxu0 %v3748_v58  ;;  %v3754_v58 = vmul.f32 %v13561_v35, %v8675_v7 }
 0x4ea   : > { %9931 = vmatprep.mubr.f32.mxu0 %v3749_v8 }
 0x4ed   : > { %9932 = vmatmul.mubr.f32.gmra.mrb[68].mxu0 %v3750_v44 }
 0x4ee   : > { %9934 = vmatprep.mubr.f32.mxu0 %v3751_v38 }
 0x4f1   : > { %9935 = vmatmul.mubr.f32.gmra.mrb[70].mxu0 %v3752_v26 }
 0x4f2   : > { %9937 = vmatprep.mubr.f32.mxu0 %v3753_v59 }
 0x4f5   : > { %9938 = vmatmul.mubr.f32.gmra.mrb[72].mxu0 %v3754_v58 }
 0x57c   : > { %v9836_v8 = vpop.f32.mrb[42].mxu0 }
 0x57d   : > { %v3675_v3 = vmul.f32 %v9836_v8, %v13018_v0  ;;  %v9862_v44 = vpop.f32.mrb[70].mxu1  ;;  %v3402_v60 = vpop.f32.mrb[43].mxu0 }
 0x57e   : > { %v3691_v41 = vmul.f32 %v9862_v44, %v13095_v52  ;;  %v3674_v38 = vmul.f32 %v3402_v60, %v13026_v1  ;;  %v3595_v34 = vpop.f32.mrb[71].mxu1 }
 0x57f   : > { %v3690_v13 = vmul.f32 %v13081_v18, %v3595_v34 }
 0x580   : > { %v13568_v26 = vadd.f32 %v3691_v41, %v3675_v3 }
 0x581   : > { %v9839_v50 = vpop.f32.mrb[44].mxu0  ;;  %v9865_v7 = vpop.f32.mrb[72].mxu1  ;;  %v13571_v58 = vadd.f32 %v3690_v13, %v3674_v38 }
 0x582   : > { %v3677_v40 = vmul.f32 %v9839_v50, %v13029_v47  ;;  %v3412_v59 = vpop.f32.mrb[45].mxu0  ;;  %v3693_v0 = vmul.f32 %v9865_v7, %v13116_v10  ;;  %v3605_v21 = vpop.f32.mrb[73].mxu1  ;;  %v15953_v7 = vld [vmem:[#allocation22_spill] sm:$0xff] }
 0x583   : > { %v3676_v8 = vmul.f32 %v3412_v59, %v13031_v27  ;;  %v3692_v52 = vmul.f32 %v13098_v12, %v3605_v21 }
 0x584   : > { %v13576_v1 = vadd.f32 %v3693_v0, %v3677_v40 }
 0x585   : > { %v13578_v60 = vadd.f32 %v3692_v52, %v3676_v8 }
 0x588   : > { %v9842_v18 = vpop.f32.mrb[46].mxu0 }
 0x589   : > { %v3679_v34 = vmul.f32 %v9842_v18, %v13041_v53  ;;  %v9868_v3 = vpop.f32.mrb[74].mxu1  ;;  %v3422_v47 = vpop.f32.mrb[47].mxu0  ;;  %v15957_v18 = vld [vmem:[#allocation28_spill] sm:$0xff] }
 0x58a   : > { %v3695_v50 = vmul.f32 %v9868_v3, %v13130_v36  ;;  %v3678_v44 = vmul.f32 %v3422_v47, %v13045_v42  ;;  %v3615_v41 = vpop.f32.mrb[75].mxu1  ;;  %v15954_v36 = vld [vmem:[#allocation50_spill] sm:$0xff] }
 0x58b   : > { %v3694_v10 = vmul.f32 %v13119_v14, %v3615_v41 }
 0x58c   : > { %v13584_v27 = vadd.f32 %v3695_v50, %v3679_v34  ;;  %v9845_v38 = vpop.f32.mrb[48].mxu0  ;;  %v15958_v50 = vld [vmem:[#allocation52_spill] sm:$0xff] }
 0x58d   : > { %v13586_v12 = vadd.f32 %v3694_v10, %v3678_v44  ;;  %v3681_v21 = vmul.f32 %v9845_v38, %v13061_v29  ;;  %v9871_v40 = vpop.f32.mrb[76].mxu1  ;;  %v3432_v13 = vpop.f32.mrb[49].mxu0  ;;  %v15959_v44 = vld [vmem:[#allocation29_spill] sm:$0xff] }
 0x58e   : > { %15951 = vst [vmem:[#allocation20_spill] sm:$0xff] %v13584_v27  ;;  %v3697_v53 = vmul.f32 %v9871_v40, %v13148_v30  ;;  %v3680_v59 = vmul.f32 %v3432_v13, %v15953_v7  ;;  %v3625_v0 = vpop.f32.mrb[77].mxu1  ;;  %v15960_v30 = vld [vmem:[#allocation51_spill] sm:$0xff]  ;;  %v15991_v27 = vld [vmem:[#allocation32_spill] sm:$0xff] }
 0x58f   : > { %15952 = vst [vmem:[#allocation17_spill] sm:$0xff] %v13586_v12  ;;  %v3696_v8 = vmul.f32 %v15954_v36, %v3625_v0  ;;  %v15964_v36 = vld [vmem:[#allocation54_spill] sm:$0xff] }
 0x590   : > { %v13592_v42 = vadd.f32 %v3697_v53, %v3681_v21  ;;  %v15963_v53 = vld [vmem:[#allocation59_spill] sm:$0xff] }
 0x591   : > { %v13594_v52 = vadd.f32 %v3696_v8, %v3680_v59 }
 0x592   : > { %15955 = vst [vmem:[#allocation11_spill] sm:$0xff] %v13592_v42 }
 0x593   : > { %15956 = vst [vmem:[#allocation23_spill] sm:$0xff] %v13594_v52 }
 0x594   : > { %v9848_v14 = vpop.f32.mrb[50].mxu0 }
 0x595   : > { %v3683_v34 = vmul.f32 %v9848_v14, %v15957_v18  ;;  %v9874_v3 = vpop.f32.mrb[78].mxu1  ;;  %v3442_v47 = vpop.f32.mrb[51].mxu0  ;;  %v15965_v14 = vld [vmem:[#allocation46_spill] sm:$0xff] }
 0x596   : > { %v3699_v29 = vmul.f32 %v9874_v3, %v15958_v50  ;;  %v3682_v41 = vmul.f32 %v3442_v47, %v15959_v44  ;;  %v3635_v10 = vpop.f32.mrb[79].mxu1  ;;  %v15966_v3 = vld [vmem:[#allocation53_spill] sm:$0xff] }
 0x597   : > { %v3698_v38 = vmul.f32 %v15960_v30, %v3635_v10 }
 0x598   : > { %v13600_v40 = vadd.f32 %v3699_v29, %v3683_v34  ;;  %v15969_v34 = vld [vmem:[#allocation27_spill] sm:$0xff] }
 0x599   : > { %v13602_v13 = vadd.f32 %v3698_v38, %v3682_v41  ;;  %v15970_v38 = vld [vmem:[#allocation56_spill] sm:$0xff] }
 0x59a   : > { %15961 = vst [vmem:[#allocation24_spill] sm:$0xff] %v13600_v40  ;;  %v9851_v21 = vpop.f32.mrb[52].mxu0 }
 0x59b   : > { %15962 = vst [vmem:[#allocation12_spill] sm:$0xff] %v13602_v13  ;;  %v3685_v7 = vmul.f32 %v9851_v21, %v15963_v53  ;;  %v9877_v59 = vpop.f32.mrb[80].mxu1  ;;  %v3452_v0 = vpop.f32.mrb[53].mxu0  ;;  %v15971_v53 = vld [vmem:[#allocation47_spill] sm:$0xff] }
 0x59c   : > { %v3701_v8 = vmul.f32 %v9877_v59, %v15964_v36  ;;  %v3684_v18 = vmul.f32 %v3452_v0, %v15965_v14  ;;  %v3645_v52 = vpop.f32.mrb[81].mxu1  ;;  %v15972_v59 = vld [vmem:[#allocation55_spill] sm:$0xff] }
 0x59d   : > { %v3700_v50 = vmul.f32 %v15966_v3, %v3645_v52 }
 0x59e   : > { %v13608_v47 = vadd.f32 %v3701_v8, %v3685_v7  ;;  %v15975_v7 = vld [vmem:[#allocation16_spill] sm:$0xff] }
 0x59f   : > { %v13610_v10 = vadd.f32 %v3700_v50, %v3684_v18  ;;  %v3950_v8 = vsub.s32 3, %v15975_v7  ;;  %v15976_v18 = vld [vmem:[#allocation48_spill] sm:$0xff] }
 0x5a0   : > { %15967 = vst [vmem:[#allocation13_spill] sm:$0xff] %v13608_v47  ;;  %v9854_v44 = vpop.f32.mrb[54].mxu0  ;;  %v15978_v47 = vld [vmem:[#allocation45_spill] sm:$0xff] }
 0x5a1   : > { %15968 = vst [vmem:[#allocation26_spill] sm:$0xff] %v13610_v10  ;;  %v3687_v29 = vmul.f32 %v9854_v44, %v15969_v34  ;;  %v9880_v41 = vpop.f32.mrb[82].mxu1  ;;  %v3462_v30 = vpop.f32.mrb[55].mxu0  ;;  %v15977_v34 = vld [vmem:[#allocation58_spill] sm:$0xff] }
 0x5a2   : > { %v3703_v21 = vmul.f32 %v9880_v41, %v15970_v38  ;;  %v3686_v13 = vmul.f32 %v3462_v30, %v15971_v53  ;;  %v3655_v40 = vpop.f32.mrb[83].mxu1  ;;  %v15979_v30 = vld [vmem:[#allocation57_spill] sm:$0xff] }
 0x5a3   : > { %v3702_v36 = vmul.f32 %v15972_v59, %v3655_v40  ;;  %v15980_v40 = vld [vmem:[#allocation21_spill] sm:$0xff] }
 0x5a4   : > { %v13616_v0 = vadd.f32 %v3703_v21, %v3687_v29  ;;  %v13626_v29 = vrot.slane %v15980_v40, %v3950_v8  ;;  %v15985_v40 = vld [vmem:[#allocation25_spill] sm:$0xff] }
 0x5a5   : > { %v13618_v14 = vadd.f32 %v3702_v36, %v3686_v13 }
 0x5a6   : > { %15973 = vst [vmem:[#allocation14_spill] sm:$0xff] %v13616_v0 }
 0x5a7   : > { %15974 = vst [vmem:[#allocation22_spill] sm:$0xff] %v13618_v14 }
 0x5a8   : > { %v9857_v52 = vpop.f32.mrb[56].mxu0 }
 0x5a9   : > { %v3689_v3 = vmul.f32 %v9857_v52, %v15976_v18  ;;  %v9883_v50 = vpop.f32.mrb[84].mxu1  ;;  %v3472_v44 = vpop.f32.mrb[57].mxu0 }
 0x5aa   : > { %v3705_v10 = vmul.f32 %v9883_v50, %v15977_v34  ;;  %v3688_v41 = vmul.f32 %v3472_v44, %v15978_v47  ;;  %v3665_v38 = vpop.f32.mrb[85].mxu1 }
 0x5ab   : > { %v3704_v53 = vmul.f32 %v15979_v30, %v3665_v38  ;;  %v15983_v30 = vld [vmem:[#allocation49_spill] sm:$0xff] }
 0x5ac   : > { %v9918_v42 = vpop.f32.mrb[58].mxu0  ;;  %v13628_v13 = vadd.f32 %v3705_v10, %v3689_v3 }
 0x5ad   : > { %vm3901_vm9 = vcmp.ge.f32.partialorder %v9918_v42, 0.0  ;;  %v3917_v21 = vmul.f32 0.01, %v9918_v42  ;;  %v3821_v59 = vpop.f32.mrb[59].mxu0  ;;  %v13630_v36 = vadd.f32 %v3704_v53, %v3688_v41 }
 0x5ae   : > { %15981 = vst [vmem:[#allocation50_spill] sm:$0xff] %v13628_v13  ;;  %vm3900_vm10 = vcmp.ge.f32.partialorder %v3821_v59, 0.0  ;;  %v3916_v52 = vmul.f32 0.01, %v3821_v59 }
 0x5af   : > { %15982 = vst [vmem:[#allocation28_spill] sm:$0xff] %v13630_v36  ;;  %v3933_v18 = vsel %vm3901_vm9, %v9918_v42, %v3917_v21 }
 0x5b0   : > { %v3953_v50 = vmul.f32 %v13626_v29, %v3933_v18  ;;  %v3932_v47 = vsel %vm3900_vm10, %v3821_v59, %v3916_v52  ;;  %v9921_v44 = vpop.f32.mrb[60].mxu0 }
 0x5b1   : > { %v3952_v34 = vmul.f32 %v13626_v29, %v3932_v47  ;;  %vm3903_vm11 = vcmp.ge.f32.partialorder %v9921_v44, 0.0  ;;  %v3919_v38 = vmul.f32 0.01, %v9921_v44  ;;  %v3831_v8 = vpop.f32.mrb[61].mxu0 }
 0x5b2   : > { %v13635_v10 = vmax.f32 %v15983_v30, %v3953_v50  ;;  %vm3902_vm12 = vcmp.ge.f32.partialorder %v3831_v8, 0.0  ;;  %v3918_v3 = vmul.f32 0.01, %v3831_v8 }
 0x5b3   : > { %v13638_v41 = vmax.f32 %v15985_v40, %v3952_v34  ;;  %v3935_v53 = vsel %vm3903_vm11, %v9921_v44, %v3919_v38  ;;  %v15987_v38 = vld [vmem:[#allocation30_spill] sm:$0xff] }
 0x5b4   : > { %15984 = vst [vmem:[#allocation52_spill] sm:$0xff] %v13635_v10  ;;  %v3985_v42 = vsub.f32 %v15983_v30, %v13635_v10  ;;  %v4033_v21 = vsub.f32 %v3953_v50, %v13635_v10  ;;  %v3955_v59 = vmul.f32 %v13626_v29, %v3935_v53  ;;  %v3934_v52 = vsel %vm3902_vm12, %v3831_v8, %v3918_v3  ;;  %v9924_v18 = vpop.f32.mrb[62].mxu0  ;;  %v15989_v53 = vld [vmem:[#allocation31_spill] sm:$0xff] }
 0x5b5   : > { %15986 = vst [vmem:[#allocation29_spill] sm:$0xff] %v13638_v41  ;;  %v3984_v47 = vsub.f32 %v15985_v40, %v13638_v41  ;;  %v4032_v36 = vsub.f32 %v3952_v34, %v13638_v41  ;;  %v3954_v13 = vmul.f32 %v13626_v29, %v3934_v52  ;;  %vm3905_vm13 = vcmp.ge.f32.partialorder %v9924_v18, 0.0  ;;  %v3841_v7 = vpop.f32.mrb[63].mxu0 }
 0x5b6   : > { %v4002_v14 = vmul.f32 1.442695, %v3985_v42  ;;  %v4050_v44 = vmul.f32 1.442695, %v4033_v21  ;;  %v13649_v0 = vmax.f32 %v15987_v38, %v3955_v59  ;;  %v3921_v30 = vmul.f32 0.01, %v9924_v18 }
 0x5b7   : > { %v4000_v50 = vmul.f32 1.442695, %v3984_v47  ;;  %v4048_v10 = vmul.f32 1.442695, %v4032_v36  ;;  %v13652_v8 = vmax.f32 %v15989_v53, %v3954_v13  ;;  %vm3904_vm14 = vcmp.ge.f32.partialorder %v3841_v7, 0.0 }
 0x5b8   : > { %15988 = vst [vmem:[#allocation51_spill] sm:$0xff] %v13649_v0  ;;  %11088 = vpow2.f32 %v4002_v14  ;;  %v3987_v34 = vsub.f32 %v15987_v38, %v13649_v0  ;;  %v4035_v3 = vsub.f32 %v3955_v59, %v13649_v0  ;;  %v3937_v40 = vsel %vm3905_vm13, %v9924_v18, %v3921_v30  ;;  %v9927_v52 = vpop.f32.mrb[64].mxu0 }
 0x5b9   : > { %15990 = vst [vmem:[#allocation59_spill] sm:$0xff] %v13652_v8  ;;  %11090 = vpow2.f32 %v4050_v44  ;;  %v3986_v42 = vsub.f32 %v15989_v53, %v13652_v8  ;;  %v4034_v21 = vsub.f32 %v3954_v13, %v13652_v8  ;;  %v3957_v36 = vmul.f32 %v13626_v29, %v3937_v40  ;;  %v3851_v47 = vpop.f32.mrb[65].mxu0 }
 0x5ba   : > { %11092 = vpow2.f32 %v4000_v50  ;;  %v4006_v41 = vmul.f32 1.442695, %v3987_v34  ;;  %v4054_v12 = vmul.f32 1.442695, %v4035_v3  ;;  %v3920_v14 = vmul.f32 0.01, %v3841_v7 }
 0x5bb   : > { %11094 = vpow2.f32 %v4048_v10  ;;  %v4004_v25 = vmul.f32 1.442695, %v3986_v42  ;;  %v4052_v38 = vmul.f32 1.442695, %v4034_v21  ;;  %v13662_v59 = vmax.f32 %v15991_v27, %v3957_v36 }
 0x5bc   : > { %11096 = vpow2.f32 %v4006_v41  ;;  %v3936_v18 = vsel %vm3904_vm14, %v3841_v7, %v3920_v14  ;;  %vm3907_vm15 = vcmp.ge.f32.partialorder %v9927_v52, 0.0  ;;  %v3923_v44 = vmul.f32 0.01, %v9927_v52  ;;  %v9930_v30 = vpop.f32.mrb[66].mxu0  ;;  %v15993_v7 = vld [vmem:[#allocation33_spill] sm:$0xff] }
 0x5bd   : > { %15992 = vst [vmem:[#allocation54_spill] sm:$0xff] %v13662_v59  ;;  %11098 = vpow2.f32 %v4054_v12  ;;  %v3989_v13 = vsub.f32 %v15991_v27, %v13662_v59  ;;  %v4037_v50 = vsub.f32 %v3957_v36, %v13662_v59  ;;  %v3956_v53 = vmul.f32 %v13626_v29, %v3936_v18  ;;  %v3861_v10 = vpop.f32.mrb[67].mxu0 }
 0x5be   : > { %11100 = vpow2.f32 %v4004_v25  ;;  %v3939_v34 = vsel %vm3907_vm15, %v9927_v52, %v3923_v44  ;;  %vm3906_vm1 = vcmp.ge.f32.partialorder %v3851_v47, 0.0  ;;  %v3922_v3 = vmul.f32 0.01, %v3851_v47  ;;  %v15995_v44 = vld [vmem:[#allocation34_spill] sm:$0xff] }
 0x5bf   : > { %11102 = vpow2.f32 %v4052_v38  ;;  %v4010_v41 = vmul.f32 1.442695, %v3989_v13  ;;  %v4058_v40 = vmul.f32 1.442695, %v4037_v50  ;;  %v13670_v42 = vmax.f32 %v15993_v7, %v3956_v53 }
 0x5c0   : > { %v3959_v12 = vmul.f32 %v13626_v29, %v3939_v34  ;;  %v3938_v21 = vsel %vm3906_vm1, %v3851_v47, %v3922_v3  ;;  %vm3909_vm3 = vcmp.ge.f32.partialorder %v9930_v30, 0.0  ;;  %v3925_v27 = vmul.f32 0.01, %v9930_v30  ;;  %v13673_v14 = vpop.f32.mrb[68].mxu0  ;;  %v15997_v34 = vld [vmem:[#allocation35_spill] sm:$0xff] }
 0x5c1   : > { %15994 = vst [vmem:[#allocation46_spill] sm:$0xff] %v13670_v42  ;;  %11104 = vpow2.f32 %v4010_v41  ;;  %v3988_v25 = vsub.f32 %v15993_v7, %v13670_v42  ;;  %v4036_v52 = vsub.f32 %v3956_v53, %v13670_v42  ;;  %v3958_v36 = vmul.f32 %v13626_v29, %v3938_v21  ;;  %v13679_v38 = vpop.f32.mrb[69].mxu0 }
 0x5c2   : > { %v11089_v18 = vpop.eup %11088  ;;  %11106 = vpow2.f32 %v4058_v40  ;;  %v13682_v13 = vmax.f32 %v15995_v44, %v3959_v12  ;;  %v3941_v47 = vsel %vm3909_vm3, %v9930_v30, %v3925_v27  ;;  %vm3908_vm4 = vcmp.ge.f32.partialorder %v3861_v10, 0.0 }
 0x5c3   : > { %v11091_v50 = vpop.eup %11090  ;;  %v4081_v3 = vmul.f32 %v11089_v18, %v15997_v34  ;;  %v4008_v41 = vmul.f32 1.442695, %v3988_v25  ;;  %v4056_v59 = vmul.f32 1.442695, %v4036_v52  ;;  %v13686_v7 = vmax.f32 %v13283_v19, %v3958_v36 }
 0x5c4   : > { %15996 = vst [vmem:[#allocation53_spill] sm:$0xff] %v13682_v13  ;;  %v11093_v53 = vpop.eup %11092  ;;  %v3991_v21 = vsub.f32 %v15995_v44, %v13682_v13  ;;  %v4039_v42 = vsub.f32 %v3959_v12, %v13682_v13  ;;  %v3961_v40 = vmul.f32 %v13626_v29, %v3941_v47  ;;  %v3924_v8 = vmul.f32 0.01, %v3861_v10  ;;  %v13692_v0 = vpop.f32.mrb[70].mxu0 }
 0x5c5   : > { %v11095_v30 = vpop.eup %11094  ;;  %v13694_v27 = vadd.f32 %v11091_v50, %v4081_v3  ;;  %v4080_v25 = vmul.f32 %v11093_v53, %v13302_v57  ;;  %11108 = vpow2.f32 %v4008_v41  ;;  %v3990_v52 = vsub.f32 %v13283_v19, %v13686_v7  ;;  %9942 = vmatprep.mubr.msk.f32.mxu1 %vm1635_vm0, %v11093_v53  ;;  %v13700_v34 = vpop.f32.mrb[71].mxu0 }
 0x5c6   : > { %v11097_v44 = vpop.eup %11096  ;;  %11110 = vpow2.f32 %v4056_v59  ;;  %v4014_v12 = vmul.f32 1.442695, %v3991_v21  ;;  %v4062_v47 = vmul.f32 1.442695, %v4039_v42  ;;  %v4038_v13 = vsub.f32 %v3958_v36, %v13686_v7  ;;  %9968 = vmatprep.mubr.msk.f32.mxu0 %vm1635_vm0, %v11095_v30  ;;  %9943 = vmatmul.mubr.msk.f32.vlgmr.msra.gmra.mrb[86].mxu1 %vm1635_vm0, %v11089_v18  ;;  %v15999_v59 = vld [vmem:[#allocation7_spill] sm:$0xff] }
 0x5c7   : > { %v11099_v3 = vpop.eup %11098  ;;  %v13705_v57 = vadd.f32 %v11095_v30, %v4080_v25  ;;  %v4083_v41 = vmul.f32 %v11097_v44, %v13317_v28  ;;  %v4012_v19 = vmul.f32 1.442695, %v3990_v52  ;;  %v13709_v53 = vmax.f32 %v13306_v32, %v3961_v40  ;;  %9969 = vmatmul.mubr.msk.f32.vlgmr.msra.gmra.mrb[74].mxu0 %vm1635_vm0, %v11091_v50  ;;  %10645 = vmatpush3.bf16.msra.mxu1 %v15999_v59  ;;  %v16000_v30 = vld [vmem:[#allocation8_spill] sm:$0xff]  ;;  %v16001_v50 = vld [vmem:[#allocation37_spill] sm:$0xff] }
 0x5c8   : > { %v11101_v42 = vpop.eup %11100  ;;  %11112 = vpow2.f32 %v4014_v12  ;;  %v4060_v36 = vmul.f32 1.442695, %v4038_v13  ;;  %v3940_v21 = vsel %vm3908_vm4, %v3861_v10, %v3924_v8  ;;  %vm3911_vm5 = vcmp.ge.f32.partialorder %v13673_v14, 0.0  ;;  %v13715_v18 = vpop.f32.mrb[72].mxu0  ;;  %10647 = vmatprep.subr.bf16.mxu1 %v16000_v30  ;;  %10049 = vmatpush3.msk.msra.mxu0 %vm1684_vm2, %v13463_v56 }
 0x5c9   : > { %15998 = vst [vmem:[#allocation27_spill] sm:$0xff] %v13709_v53  ;;  %v11103_v28 = vpop.eup %11102  ;;  %v13720_v25 = vadd.f32 %v11099_v3, %v4083_v41  ;;  %v4082_v52 = vmul.f32 %v11101_v42, %v16001_v50  ;;  %11114 = vpow2.f32 %v4062_v47  ;;  %v3993_v13 = vsub.f32 %v13306_v32, %v13709_v53  ;;  %9945 = vmatprep.mubr.msk.f32.mxu1 %vm1635_vm0, %v11101_v42  ;;  %v13726_v8 = vpop.f32.mrb[73].mxu0 }
 0x5ca   : > { %10675 = vmatprep.subr.bf16.mxu0 %v15999_v59  ;;  %11116 = vpow2.f32 %v4012_v19  ;;  %v4041_v10 = vsub.f32 %v3961_v40, %v13709_v53  ;;  %v3960_v12 = vmul.f32 %v13626_v29, %v3940_v21  ;;  %v3927_v41 = vmul.f32 0.01, %v13673_v14  ;;  %9971 = vmatprep.mubr.msk.f32.mxu0 %vm1635_vm0, %v11103_v28  ;;  %v16003_v19 = vld [vmem:[#allocation38_spill] sm:$0xff]  ;;  %v16004_v59 = vld [vmem:[#allocation36_spill] sm:$0xff] }
 0x5cb   : > { %9946 = vmatmul.mubr.msk.f32.gmra.mrb[88].mxu1 %vm1635_vm0, %v11097_v44  ;;  %v11105_v47 = vpop.eup %11104  ;;  %v13734_v50 = vadd.f32 %v11103_v28, %v4082_v52  ;;  %11118 = vpow2.f32 %v4060_v36  ;;  %v4018_v32 = vmul.f32 1.442695, %v3993_v13  ;;  %vm3910_vm6 = vcmp.ge.f32.partialorder %v13679_v38, 0.0  ;;  %9972 = vmatmul.mubr.msk.f32.gmra.mrb[76].mxu0 %vm1635_vm0, %v11099_v3  ;;  %v16006_v28 = vld [vmem:[#allocation9_spill] sm:$0xff] }
 0x5cc   : > { %10649 = vmatpush3.bf16.msra.mxu1 %v16000_v30  ;;  %v11107_v40 = vpop.eup %11106  ;;  %v4085_v42 = vmul.f32 %v11105_v47, %v16003_v19  ;;  %v4066_v21 = vmul.f32 1.442695, %v4041_v10  ;;  %v13741_v53 = vmax.f32 %v16004_v59, %v3960_v12  ;;  %v3943_v44 = vsel %vm3911_vm5, %v13673_v14, %v3927_v41 }
 0x5cd   : > { %16002 = vst [vmem:[#allocation56_spill] sm:$0xff] %v13734_v50  ;;  %10651 = vmatprep.subr.bf16.mxu1 %v16006_v28  ;;  %11120 = vpow2.f32 %v4018_v32  ;;  %v3963_v36 = vmul.f32 %v13626_v29, %v3943_v44  ;;  %v3926_v3 = vmul.f32 0.01, %v13679_v38  ;;  %vm3913_vm7 = vcmp.ge.f32.partialorder %v13692_v0, 0.0  ;;  %v16008_v50 = vld [vmem:[#allocation39_spill] sm:$0xff] }
 0x5ce   : > { %16005 = vst [vmem:[#allocation47_spill] sm:$0xff] %v13741_v53  ;;  %v13750_v52 = vadd.f32 %v11107_v40, %v4085_v42  ;;  %11122 = vpow2.f32 %v4066_v21  ;;  %v3992_v13 = vsub.f32 %v16004_v59, %v13741_v53  ;;  %v4040_v10 = vsub.f32 %v3960_v12, %v13741_v53  ;;  %v16009_v53 = vld [vmem:[#allocation10_spill] sm:$0xff] }
 0x5cf   : > { %v11109_v19 = vpop.eup %11108  ;;  %v13756_v14 = vmax.f32 %v16008_v50, %v3963_v36  ;;  %v3942_v41 = vsel %vm3910_vm6, %v13679_v38, %v3926_v3  ;;  %v3929_v32 = vmul.f32 0.01, %v13692_v0  ;;  %vm3912_vm8 = vcmp.ge.f32.partialorder %v13700_v34, 0.0 }
 0x5d0   : > { %16007 = vst [vmem:[#allocation55_spill] sm:$0xff] %v13750_v52  ;;  %10653 = vmatpush3.bf16.msra.mxu1 %v16006_v28  ;;  %v11111_v42 = vpop.eup %11110  ;;  %v4084_v21 = vmul.f32 %v11109_v19, %v13374_v46  ;;  %v4016_v59 = vmul.f32 1.442695, %v3992_v13  ;;  %v4064_v44 = vmul.f32 1.442695, %v4040_v10  ;;  %v3962_v12 = vmul.f32 %v13626_v29, %v3942_v41  ;;  %9948 = vmatprep.mubr.msk.f32.mxu1 %vm1635_vm0, %v11109_v19  ;;  %v16010_v10 = vld [vmem:[#allocation40_spill] sm:$0xff] }
 0x5d1   : > { %10655 = vmatprep.subr.bf16.mxu1 %v16009_v53  ;;  %v3995_v38 = vsub.f32 %v16008_v50, %v13756_v14  ;;  %v4043_v3 = vsub.f32 %v3963_v36, %v13756_v14  ;;  %v3945_v28 = vsel %vm3913_vm7, %v13692_v0, %v3929_v32  ;;  %v3928_v52 = vmul.f32 0.01, %v13700_v34  ;;  %9974 = vmatprep.mubr.msk.f32.mxu0 %vm1635_vm0, %v11111_v42 }
 0x5d2   : > { %9949 = vmatmul.mubr.msk.f32.gmra.mrb[90].mxu1 %vm1635_vm0, %v11105_v47  ;;  %v11113_v46 = vpop.eup %11112  ;;  %v13777_v13 = vadd.f32 %v11111_v42, %v4084_v21  ;;  %11124 = vpow2.f32 %v4016_v59  ;;  %v13780_v19 = vmax.f32 %v16010_v10, %v3962_v12  ;;  %v3965_v50 = vmul.f32 %v13626_v29, %v3945_v28  ;;  %9975 = vmatmul.mubr.msk.f32.gmra.mrb[78].mxu0 %vm1635_vm0, %v11107_v40 }
 0x5d3   : > { %v11115_v36 = vpop.eup %11114  ;;  %v4087_v0 = vmul.f32 %v11113_v46, %v13393_v45  ;;  %11126 = vpow2.f32 %v4064_v44  ;;  %v4022_v41 = vmul.f32 1.442695, %v3995_v38  ;;  %v4070_v32 = vmul.f32 1.442695, %v4043_v3 }
 0x5d4   : > { %10657 = vmatpush3.bf16.msra.mxu1 %v16009_v53  ;;  %v11117_v47 = vpop.eup %11116  ;;  %v3994_v42 = vsub.f32 %v16010_v10, %v13780_v19  ;;  %v4042_v21 = vsub.f32 %v3962_v12, %v13780_v19  ;;  %v13790_v59 = vmax.f32 %v13387_v49, %v3965_v50  ;;  %v3944_v40 = vsel %vm3912_vm8, %v13700_v34, %v3928_v52 }
 0x5d5   : > { %10659 = vmatprep.subr.bf16.mxu1 %v15938_v23  ;;  %v11119_v45 = vpop.eup %11118  ;;  %v13796_v28 = vadd.f32 %v11115_v36, %v4087_v0  ;;  %v4086_v44 = vmul.f32 %v11117_v47, %v13402_v4  ;;  %11128 = vpow2.f32 %v4022_v41  ;;  %v3964_v38 = vmul.f32 %v13626_v29, %v3944_v40  ;;  %9951 = vmatprep.mubr.msk.f32.mxu1 %vm1635_vm0, %v11117_v47 }
 0x5d6   : > { %11130 = vpow2.f32 %v4070_v32  ;;  %v4020_v12 = vmul.f32 1.442695, %v3994_v42  ;;  %v4068_v3 = vmul.f32 1.442695, %v4042_v21  ;;  %v3997_v10 = vsub.f32 %v13387_v49, %v13790_v59  ;;  %9977 = vmatprep.mubr.msk.f32.mxu0 %vm1635_vm0, %v11119_v45  ;;  %9952 = vmatmul.mubr.msk.f32.gmra.mrb[92].mxu1 %vm1635_vm0, %v11113_v46 }
 0x5d7   : > { %v11121_v34 = vpop.eup %11120  ;;  %v13805_v52 = vadd.f32 %v11119_v45, %v4086_v44  ;;  %v4045_v4 = vsub.f32 %v3965_v50, %v13790_v59  ;;  %v13809_v0 = vmax.f32 %v13406_v54, %v3964_v38  ;;  %vm3915_vm9 = vcmp.ge.f32.partialorder %v13715_v18, 0.0  ;;  %9978 = vmatmul.mubr.msk.f32.gmra.mrb[80].mxu0 %vm1635_vm0, %v11115_v36 }
 0x5d8   : > { %10661 = vmatpush3.bf16.msra.mxu1 %v15938_v23  ;;  %v11123_v41 = vpop.eup %11122  ;;  %v4089_v49 = vmul.f32 %v11121_v34, %v13417_v33  ;;  %11132 = vpow2.f32 %v4020_v12  ;;  %v4026_v32 = vmul.f32 1.442695, %v3997_v10  ;;  %v3931_v46 = vmul.f32 0.01, %v13715_v18 }
 0x5d9   : > { %10663 = vmatprep.subr.bf16.mxu1 %v15941_v39  ;;  %11134 = vpow2.f32 %v4068_v3  ;;  %v4074_v50 = vmul.f32 1.442695, %v4045_v4  ;;  %v3996_v47 = vsub.f32 %v13406_v54, %v13809_v0  ;;  %v4044_v42 = vsub.f32 %v3964_v38, %v13809_v0 }
 0x5da   : > { %v13820_v21 = vadd.f32 %v11123_v41, %v4089_v49  ;;  %11136 = vpow2.f32 %v4026_v32  ;;  %v3947_v36 = vsel %vm3915_vm9, %v13715_v18, %v3931_v46  ;;  %vm3914_vm10 = vcmp.ge.f32.partialorder %v13726_v8, 0.0 }
 0x5db   : > { %v4024_v40 = vmul.f32 1.442695, %v3996_v47  ;;  %v4072_v33 = vmul.f32 1.442695, %v4044_v42  ;;  %v3967_v45 = vmul.f32 %v13626_v29, %v3947_v36  ;;  %11138 = vpow2.f32 %v4074_v50 }
 0x5dc   : > { %10665 = vmatpush3.bf16.msra.mxu1 %v15941_v39  ;;  %v11125_v44 = vpop.eup %11124  ;;  %v3930_v12 = vmul.f32 0.01, %v13726_v8 }
 0x5dd   : > { %10667 = vmatprep.subr.bf16.mxu1 %v15942_v6  ;;  %v11127_v54 = vpop.eup %11126  ;;  %v4088_v38 = vmul.f32 %v11125_v44, %v13433_v9  ;;  %11140 = vpow2.f32 %v4024_v40  ;;  %v13830_v18 = vmax.f32 %v13427_v2, %v3967_v45  ;;  %9954 = vmatprep.mubr.msk.f32.mxu1 %vm1635_vm0, %v11125_v44 }
 0x5de   : > { %11142 = vpow2.f32 %v4072_v33  ;;  %v3946_v3 = vsel %vm3914_vm10, %v13726_v8, %v3930_v12  ;;  %9980 = vmatprep.mubr.msk.f32.mxu0 %vm1635_vm0, %v11127_v54  ;;  %9955 = vmatmul.mubr.msk.f32.gmra.mrb[94].mxu1 %vm1635_vm0, %v11121_v34 }
 0x5df   : > { %v11129_v10 = vpop.eup %11128  ;;  %v13836_v4 = vadd.f32 %v11127_v54, %v4088_v38  ;;  %v3999_v49 = vsub.f32 %v13427_v2, %v13830_v18  ;;  %v4047_v9 = vsub.f32 %v3967_v45, %v13830_v18  ;;  %v3966_v32 = vmul.f32 %v13626_v29, %v3946_v3  ;;  %9981 = vmatmul.mubr.msk.f32.gmra.mrb[82].mxu0 %vm1635_vm0, %v11123_v41 }
 0x5e0   : > { %v11131_v46 = vpop.eup %11130  ;;  %v4091_v50 = vmul.f32 %v11129_v10, %v13446_v51  ;;  %10669 = vmatpush3.bf16.msra.mxu1 %v15942_v6 }
 0x5e1   : > { %v4030_v8 = vmul.f32 1.442695, %v3999_v49  ;;  %v4078_v47 = vmul.f32 1.442695, %v4047_v9  ;;  %v13846_v34 = vmax.f32 %v13443_v62, %v3966_v32  ;;  %10671 = vmatprep.subr.bf16.mxu1 %v15944_v48  ;;  %v13875_v49 = vld [vmem:[%s11988_s27 + $0x200] sm:$0xff] }
 0x5e2   : > { %v11133_v42 = vpop.eup %11132  ;;  %v13849_v2 = vadd.f32 %v11131_v46, %v4091_v50  ;;  %16011 = vst [vmem:[#allocation48_spill] sm:$0xff] %v13875_v49 }
 0x5e3   : > { %v11135_v36 = vpop.eup %11134  ;;  %v4090_v29 = vmul.f32 %v11133_v42, %v13455_v31  ;;  %11144 = vpow2.f32 %v4030_v8  ;;  %v3998_v41 = vsub.f32 %v13443_v62, %v13846_v34  ;;  %v4046_v51 = vsub.f32 %v3966_v32, %v13846_v34  ;;  %9957 = vmatprep.mubr.msk.f32.mxu1 %vm1635_vm0, %v11133_v42  ;;  %v13885_v8 = vld [vmem:[%s11988_s27 + $0x208] sm:$0xff]  ;;  %v13888_v42 = vld [vmem:[%s11988_s27 + $0x210] sm:$0xff] }
 0x5e4   : > { %v11137_v40 = vpop.eup %11136  ;;  %11146 = vpow2.f32 %v4078_v47  ;;  %9983 = vmatprep.mubr.msk.f32.mxu0 %vm1635_vm0, %v11135_v36  ;;  %9958 = vmatmul.mubr.msk.f32.gmra.mrb[96].mxu1 %vm1635_vm0, %v11129_v10  ;;  %16012 = vst [vmem:[#allocation58_spill] sm:$0xff] %v13885_v8  ;;  %16013 = vst [vmem:[#allocation45_spill] sm:$0xff] %v13888_v42 }
 0x5e5   : > { %v13858_v33 = vadd.f32 %v11135_v36, %v4090_v29  ;;  %v4093_v45 = vmul.f32 %v11137_v40, %v13467_v16  ;;  %v4028_v44 = vmul.f32 1.442695, %v3998_v41  ;;  %v4076_v31 = vmul.f32 1.442695, %v4046_v51  ;;  %9984 = vmatmul.mubr.msk.f32.gmra.mrb[84].mxu0 %vm1635_vm0, %v11131_v46  ;;  %10673 = vmatpush3.bf16.msra.mxu1 %v15944_v48  ;;  %v11139_v62 = vpop.eup %11138 }
 0x5e6   : > { %10074 = vmatprep.subr.msk.mxu1 %vm1684_vm2, %v13463_v56 }
 0x5e7   : > { %v11141_v12 = vpop.eup %11140  ;;  %v13865_v54 = vadd.f32 %v11139_v62, %v4093_v45  ;;  %11148 = vpow2.f32 %v4028_v44  ;;  %v13906_v45 = vld [vmem:[%s11988_s27 + $0x218] sm:$0xff]  ;;  %v13909_v44 = vld [vmem:[%s11988_s27 + $0x220] sm:$0xff] }
 0x5e8   : > { %v11143_v38 = vpop.eup %11142  ;;  %v4092_v3 = vmul.f32 %v11141_v12, %v13473_v20  ;;  %11150 = vpow2.f32 %v4076_v31  ;;  %9960 = vmatprep.mubr.msk.f32.mxu1 %vm1635_vm0, %v11141_v12  ;;  %v13880_v20 = vld [vmem:[#allocation2] sm:$0xff]  ;;  %16014 = vst [vmem:[#allocation57_spill] sm:$0xff] %v13906_v45  ;;  %16015 = vst [vmem:[#allocation21_spill] sm:$0xff] %v13909_v44  ;;  %v13911_v31 = vld [vmem:[#allocation2 + $0x18] sm:$0xff] }
 0x5e9   : > { %9986 = vmatprep.mubr.msk.f32.mxu0 %vm1635_vm0, %v11143_v38  ;;  %9961 = vmatmul.mubr.msk.f32.gmra.mrb[98].mxu1 %vm1635_vm0, %v11137_v40  ;;  %v4563_v50 = vmul.f32 %v13880_v20, %v13875_v49  ;;  %v13901_v40 = vld [vmem:[#allocation2 + $0x10] sm:$0xff]  ;;  %v13915_v12 = vld [vmem:[#allocation2 + $0x20] sm:$0xff] }
 0x5ea   : > { %v13871_v16 = vadd.f32 %v11143_v38, %v4092_v3  ;;  %9987 = vmatmul.mubr.msk.f32.gmra.mrb[86].mxu0 %vm1635_vm0, %v11139_v62  ;;  %v4566_v62 = vmul.f32 %v13911_v31, %v13906_v45  ;;  %v4567_v38 = vmul.f32 %v13915_v12, %v13909_v44  ;;  %v13920_v3 = vld [vmem:[%s11988_s27 + $0x228] sm:$0xff]  ;;  %v8724_v45 = vld [vmem:[%s11988_s27 + $0x270] sm:$0xff] }
 0x5eb   : > { %16016 = vst [vmem:[#allocation49_spill] sm:$0xff] %v13920_v3  ;;  %v13952_v44 = vld [vmem:[#allocation2 + $0x48] sm:$0xff] }
 0x5ed   : > { %v11145_v10 = vpop.eup %11144 }
 0x5ee   : > { %v11147_v9 = vpop.eup %11146  ;;  %v4095_v32 = vmul.f32 %v11145_v10, %v13480_v43  ;;  %v13894_v43 = vld [vmem:[#allocation2 + $0x8] sm:$0xff] }
 0x5ef   : > { %v4564_v41 = vmul.f32 %v13894_v43, %v13885_v8  ;;  %v16063_v8 = vld [vmem:[#allocation54_spill] sm:$0xff] }
 0x5f0   : > { %v13878_v46 = vadd.f32 %v11147_v9, %v4095_v32 }
 0x5f1   : > { %v11149_v47 = vpop.eup %11148 }
 0x5f2   : > { %v11151_v36 = vpop.eup %11150  ;;  %v4094_v29 = vmul.f32 %v11149_v47, %v13496_v24  ;;  %9963 = vmatprep.mubr.msk.f32.mxu1 %vm1635_vm0, %v11149_v47  ;;  %v4565_v24 = vmul.f32 %v13901_v40, %v13888_v42 }
 0x5f3   : > { %9989 = vmatprep.mubr.msk.f32.mxu0 %vm1635_vm0, %v11151_v36  ;;  %9964 = vmatmul.mubr.msk.f32.gmra.mrb[100].mxu1 %vm1635_vm0, %v11145_v10  ;;  %v13925_v10 = vld [vmem:[%s11988_s27 + $0x230] sm:$0xff] }
 0x5f4   : > { %v13898_v51 = vadd.f32 %v11151_v36, %v4094_v29  ;;  %9990 = vmatmul.mubr.msk.f32.gmra.mrb[88].mxu0 %vm1635_vm0, %v11147_v9  ;;  %10024 = vmatprep.mubr.f32.mxu1 %v4563_v50  ;;  %16017 = vst [vmem:[#allocation25_spill] sm:$0xff] %v13925_v10  ;;  %v13929_v9 = vld [vmem:[#allocation2 + $0x28] sm:$0xff]  ;;  %v13933_v50 = vld [vmem:[#allocation2 + $0x30] sm:$0xff]  ;;  %v13938_v36 = vld [vmem:[%s11988_s27 + $0x238] sm:$0xff] }
 0x5f5   : > { %v4568_v32 = vmul.f32 %v13929_v9, %v13920_v3  ;;  %v4569_v47 = vmul.f32 %v13933_v50, %v13925_v10  ;;  %16018 = vst [vmem:[#allocation30_spill] sm:$0xff] %v13938_v36  ;;  %v8718_v29 = vld [vmem:[%s11988_s27 + $0x240] sm:$0xff]  ;;  %v8720_v10 = vld [vmem:[%s11988_s27 + $0x250] sm:$0xff] }
 0x5f6   : > { %v8722_v3 = vld [vmem:[%s11988_s27 + $0x260] sm:$0xff] }
 0x5f7   : > { %10025 = vmatmul.mubr.f32.vlgmr.msra.gmra.mrb[102].mxu1 %v4564_v41  ;;  %v4575_v42 = vmul.f32 %v13549_v17, %v8722_v3 }
 0x5f8   : > { %10027 = vmatprep.mubr.f32.mxu1 %v4565_v24  ;;  %10075 = vmatpush3.msk.msra.mxu1 %vm1684_vm2, %v13463_v56  ;;  %v13945_v24 = vld [vmem:[#allocation2 + $0x40] sm:$0xff] }
 0x5f9   : > { %10156 = vmatprep.subr.msk.mxu1 %vm1684_vm2, %v13463_v56  ;;  %v13941_v56 = vld [vmem:[#allocation2 + $0x38] sm:$0xff] }
 0x5fa   : > { %v4570_v41 = vmul.f32 %v13941_v56, %v13938_v36  ;;  %v4573_v36 = vmul.f32 %v13538_v37, %v8720_v10 }
 0x5fb   : > { %10028 = vmatmul.mubr.f32.gmra.mrb[104].mxu1 %v4566_v62  ;;  %v4571_v62 = vmul.f32 %v13945_v24, %v8718_v29 }
 0x5fc   : > { %10030 = vmatprep.mubr.f32.mxu1 %v4567_v38  ;;  %v13949_v38 = vld [vmem:[%s11988_s27 + $0x248] sm:$0xff] }
 0x5fd   : > { %16019 = vst [vmem:[#allocation31_spill] sm:$0xff] %v13949_v38 }
 0x5ff   : > { %10031 = vmatmul.mubr.f32.gmra.mrb[106].mxu1 %v4568_v32  ;;  %v4572_v32 = vmul.f32 %v13952_v44, %v13949_v38  ;;  %v8725_v38 = vld [vmem:[%s11988_s27 + $0x278] sm:$0xff] }
 0x600   : > { %10033 = vmatprep.mubr.f32.mxu1 %v4569_v47  ;;  %v13958_v47 = vld [vmem:[%s11988_s27 + $0x258] sm:$0xff]  ;;  %v4578_v37 = vmul.f32 %v13561_v35, %v8725_v38 }
 0x601   : > { %16020 = vst [vmem:[#allocation32_spill] sm:$0xff] %v13958_v47  ;;  %v4574_v29 = vmul.f32 %v13545_v63, %v13958_v47  ;;  %v16038_v47 = vld [vmem:[#allocation12_spill] sm:$0xff] }
 0x603   : > { %10034 = vmatmul.mubr.f32.gmra.mrb[108].mxu1 %v4570_v41  ;;  %v8723_v41 = vld [vmem:[%s11988_s27 + $0x268] sm:$0xff] }
 0x604   : > { %10036 = vmatprep.mubr.f32.mxu1 %v4571_v62  ;;  %v4576_v49 = vmul.f32 %v13554_v22, %v8723_v41  ;;  %v4577_v62 = vmul.f32 %v13557_v55, %v8724_v45 }
 0x607   : > { %10037 = vmatmul.mubr.f32.gmra.mrb[110].mxu1 %v4572_v32 }
 0x608   : > { %10039 = vmatprep.mubr.f32.mxu1 %v4573_v36 }
 0x60b   : > { %10040 = vmatmul.mubr.f32.gmra.mrb[112].mxu1 %v4574_v29 }
 0x60c   : > { %10042 = vmatprep.mubr.f32.mxu1 %v4575_v42 }
 0x60f   : > { %10043 = vmatmul.mubr.f32.gmra.mrb[114].mxu1 %v4576_v49 }
 0x610   : > { %10045 = vmatprep.mubr.f32.mxu1 %v4577_v62 }
 0x613   : > { %10046 = vmatmul.mubr.f32.gmra.mrb[116].mxu1 %v4578_v37 }
 0x699   : > { %v9944_v10 = vpop.f32.mrb[86].mxu1 }
 0x69a   : > { %v4499_v63 = vmul.f32 %v9944_v10, %v13568_v26  ;;  %v9970_v36 = vpop.f32.mrb[74].mxu0  ;;  %v4226_v32 = vpop.f32.mrb[87].mxu1  ;;  %v16024_v10 = vld [vmem:[#allocation20_spill] sm:$0xff] }
 0x69b   : > { %v4515_v17 = vmul.f32 %v9970_v36, %v13485_v61  ;;  %v4498_v3 = vmul.f32 %v4226_v32, %v13571_v58  ;;  %v4419_v29 = vpop.f32.mrb[75].mxu0  ;;  %v16025_v32 = vld [vmem:[#allocation43_spill] sm:$0xff] }
 0x69c   : > { %v4514_v22 = vmul.f32 %v13477_v11, %v4419_v29 }
 0x69d   : > { %v13974_v55 = vadd.f32 %v4515_v17, %v4499_v63 }
 0x69e   : > { %v9947_v42 = vpop.f32.mrb[88].mxu1  ;;  %v9973_v35 = vpop.f32.mrb[76].mxu0  ;;  %v13977_v38 = vadd.f32 %v4514_v22, %v4498_v3  ;;  %v16026_v3 = vld [vmem:[#allocation17_spill] sm:$0xff] }
 0x69f   : > { %v4501_v49 = vmul.f32 %v9947_v42, %v13576_v1  ;;  %v4236_v45 = vpop.f32.mrb[89].mxu1  ;;  %v4517_v26 = vmul.f32 %v9973_v35, %v13502_v5  ;;  %v4429_v62 = vpop.f32.mrb[77].mxu0  ;;  %v16027_v5 = vld [vmem:[#allocation41_spill] sm:$0xff] }
 0x6a0   : > { %16021 = vst [vmem:[#allocation33_spill] sm:$0xff] %v13977_v38  ;;  %v4500_v41 = vmul.f32 %v4236_v45, %v13578_v60  ;;  %v4516_v61 = vmul.f32 %v13488_v15, %v4429_v62  ;;  %v16031_v62 = vld [vmem:[#allocation42_spill] sm:$0xff] }
 0x6a1   : > { %v13982_v58 = vadd.f32 %v4517_v26, %v4501_v49  ;;  %v16030_v49 = vld [vmem:[#allocation11_spill] sm:$0xff] }
 0x6a2   : > { %v13984_v37 = vadd.f32 %v4516_v61, %v4500_v41 }
 0x6a3   : > { %16022 = vst [vmem:[#allocation34_spill] sm:$0xff] %v13982_v58 }
 0x6a4   : > { %16023 = vst [vmem:[#allocation35_spill] sm:$0xff] %v13984_v37 }
 0x6a5   : > { %v9950_v11 = vpop.f32.mrb[90].mxu1  ;;  %v9976_v36 = vpop.f32.mrb[78].mxu0 }
 0x6a6   : > { %v4503_v63 = vmul.f32 %v9950_v11, %v16024_v10  ;;  %v4246_v1 = vpop.f32.mrb[91].mxu1  ;;  %v4519_v17 = vmul.f32 %v9976_v36, %v16025_v32  ;;  %v4439_v22 = vpop.f32.mrb[79].mxu0  ;;  %v16032_v11 = vld [vmem:[#allocation23_spill] sm:$0xff]  ;;  %v16033_v32 = vld [vmem:[#allocation44_spill] sm:$0xff] }
 0x6a7   : > { %v4502_v29 = vmul.f32 %v4246_v1, %v16026_v3  ;;  %v4518_v42 = vmul.f32 %v16027_v5, %v4439_v22 }
 0x6a8   : > { %v13990_v60 = vadd.f32 %v4519_v17, %v4503_v63  ;;  %v16036_v17 = vld [vmem:[#allocation24_spill] sm:$0xff] }
 0x6a9   : > { %v9953_v35 = vpop.f32.mrb[92].mxu1  ;;  %v13992_v15 = vadd.f32 %v4518_v42, %v4502_v29 }
 0x6aa   : > { %16028 = vst [vmem:[#allocation8_spill] sm:$0xff] %v13990_v60  ;;  %v4505_v45 = vmul.f32 %v9953_v35, %v16030_v49  ;;  %v9979_v26 = vpop.f32.mrb[80].mxu0  ;;  %v4256_v41 = vpop.f32.mrb[93].mxu1  ;;  %v16037_v35 = vld [vmem:[#allocation18_spill] sm:$0xff] }
 0x6ab   : > { %16029 = vst [vmem:[#allocation37_spill] sm:$0xff] %v13992_v15  ;;  %v4521_v61 = vmul.f32 %v9979_v26, %v16031_v62  ;;  %v4504_v10 = vmul.f32 %v4256_v41, %v16032_v11  ;;  %v4449_v36 = vpop.f32.mrb[81].mxu0  ;;  %v11469_v62 = vld [vmem:[%s11988_s27 + $0x1c0] sm:$0xff] }
 0x6ac   : > { %v4520_v1 = vmul.f32 %v16033_v32, %v4449_v36 }
 0x6ad   : > { %v13998_v3 = vadd.f32 %v4521_v61, %v4505_v45  ;;  %v16041_v61 = vld [vmem:[#allocation13_spill] sm:$0xff] }
 0x6ae   : > { %v14000_v22 = vadd.f32 %v4520_v1, %v4504_v10 }
 0x6af   : > { %16034 = vst [vmem:[#allocation38_spill] sm:$0xff] %v13998_v3 }
 0x6b0   : > { %16035 = vst [vmem:[#allocation36_spill] sm:$0xff] %v14000_v22  ;;  %v16043_v22 = vld [vmem:[#allocation26_spill] sm:$0xff] }
 0x6b1   : > { %v9956_v63 = vpop.f32.mrb[94].mxu1 }
 0x6b2   : > { %v4507_v29 = vmul.f32 %v9956_v63, %v16036_v17  ;;  %v9982_v5 = vpop.f32.mrb[82].mxu0  ;;  %v4266_v42 = vpop.f32.mrb[95].mxu1  ;;  %v16042_v63 = vld [vmem:[#allocation19_spill] sm:$0xff] }
 0x6b3   : > { %v4523_v49 = vmul.f32 %v9982_v5, %v16037_v35  ;;  %v4506_v15 = vmul.f32 %v4266_v42, %v16038_v47  ;;  %v4459_v26 = vpop.f32.mrb[83].mxu0  ;;  %v11470_v47 = vld [vmem:[%s11988_s27 + $0x1d0] sm:$0xff] }
 0x6b4   : > { %v4522_v41 = vmul.f32 %v11469_v62, %v4459_v26 }
 0x6b5   : > { %v14006_v11 = vadd.f32 %v4523_v49, %v4507_v29 }
 0x6b6   : > { %v14008_v36 = vadd.f32 %v4522_v41, %v4506_v15  ;;  %v16046_v15 = vld [vmem:[#allocation14_spill] sm:$0xff] }
 0x6b7   : > { %16039 = vst [vmem:[#allocation39_spill] sm:$0xff] %v14006_v11  ;;  %v9959_v45 = vpop.f32.mrb[96].mxu1 }
 0x6b8   : > { %16040 = vst [vmem:[#allocation10_spill] sm:$0xff] %v14008_v36  ;;  %v4509_v10 = vmul.f32 %v9959_v45, %v16041_v61  ;;  %v9985_v32 = vpop.f32.mrb[84].mxu0  ;;  %v4276_v1 = vpop.f32.mrb[97].mxu1  ;;  %v11471_v45 = vld [vmem:[%s11988_s27 + $0x1e8] sm:$0xff]  ;;  %v16047_v36 = vld [vmem:[#allocation22_spill] sm:$0xff] }
 0x6b9   : > { %v4525_v17 = vmul.f32 %v9985_v32, %v16042_v63  ;;  %v4508_v5 = vmul.f32 %v4276_v1, %v16043_v22  ;;  %v4469_v35 = vpop.f32.mrb[85].mxu0  ;;  %v11472_v22 = vld [vmem:[%s11988_s27 + $0x1e0] sm:$0xff] }
 0x6ba   : > { %v4524_v42 = vmul.f32 %v11470_v47, %v4469_v35 }
 0x6bb   : > { %v14014_v3 = vadd.f32 %v4525_v17, %v4509_v10 }
 0x6bc   : > { %v9962_v29 = vpop.f32.mrb[98].mxu1  ;;  %v14016_v49 = vadd.f32 %v4524_v42, %v4508_v5  ;;  %v16050_v5 = vld [vmem:[#allocation16_spill] sm:$0xff]  ;;  %v16051_v42 = vld [vmem:[#allocation50_spill] sm:$0xff] }
 0x6bd   : > { %16044 = vst [vmem:[#allocation40_spill] sm:$0xff] %v14014_v3  ;;  %v4511_v26 = vmul.f32 %v9962_v29, %v16046_v15  ;;  %v9988_v62 = vpop.f32.mrb[86].mxu0  ;;  %v4286_v41 = vpop.f32.mrb[99].mxu1  ;;  %v4774_v47 = vsub.s32 4, %v16050_v5  ;;  %v11473_v3 = vld [vmem:[%s11988_s27 + $0x1f8] sm:$0xff] }
 0x6be   : > { %16045 = vst [vmem:[#allocation20_spill] sm:$0xff] %v14016_v49  ;;  %v4527_v61 = vmul.f32 %v11471_v45, %v9988_v62  ;;  %v4510_v32 = vmul.f32 %v4286_v41, %v16047_v36  ;;  %v4479_v63 = vpop.f32.mrb[87].mxu0  ;;  %v16052_v45 = vld [vmem:[#allocation28_spill] sm:$0xff]  ;;  %v11474_v41 = vld [vmem:[%s11988_s27 + $0x1f0] sm:$0xff] }
 0x6bf   : > { %v4526_v1 = vmul.f32 %v11472_v22, %v4479_v63  ;;  %v14032_v63 = vld [vmem:[%s11976_s19] sm:$0xff] }
 0x6c0   : > { %v14022_v35 = vadd.f32 %v4527_v61, %v4511_v26  ;;  %16053 = vst [vmem:[#allocation41_spill] sm:$0xff] %v14032_v63  ;;  %v14035_v26 = vrot.slane %v14032_v63, %v4774_v47  ;;  %v16058_v63 = vld [vmem:[#allocation29_spill] sm:$0xff] }
 0x6c1   : > { %v14024_v10 = vadd.f32 %v4526_v1, %v4510_v32 }
 0x6c2   : > { %16048 = vst [vmem:[#allocation43_spill] sm:$0xff] %v14022_v35 }
 0x6c3   : > { %16049 = vst [vmem:[#allocation17_spill] sm:$0xff] %v14024_v10 }
 0x6c6   : > { %v9965_v17 = vpop.f32.mrb[100].mxu1 }
 0x6c7   : > { %v4513_v29 = vmul.f32 %v9965_v17, %v16051_v42  ;;  %v9991_v15 = vpop.f32.mrb[88].mxu0  ;;  %v4296_v49 = vpop.f32.mrb[101].mxu1 }
 0x6c8   : > { %v4529_v62 = vmul.f32 %v11473_v3, %v9991_v15  ;;  %v4512_v11 = vmul.f32 %v4296_v49, %v16052_v45  ;;  %v4489_v36 = vpop.f32.mrb[89].mxu0 }
 0x6c9   : > { %v4528_v60 = vmul.f32 %v11474_v41, %v4489_v36  ;;  %v16056_v41 = vld [vmem:[#allocation52_spill] sm:$0xff] }
 0x6ca   : > { %v10026_v37 = vpop.f32.mrb[102].mxu1  ;;  %v14037_v61 = vadd.f32 %v4529_v62, %v4513_v29 }
 0x6cb   : > { %vm4725_vm11 = vcmp.ge.f32.partialorder %v10026_v37, 0.0  ;;  %v4741_v32 = vmul.f32 0.01, %v10026_v37  ;;  %v4645_v22 = vpop.f32.mrb[103].mxu1  ;;  %v14039_v1 = vadd.f32 %v4528_v60, %v4512_v11 }
 0x6cc   : > { %16054 = vst [vmem:[#allocation11_spill] sm:$0xff] %v14037_v61  ;;  %vm4724_vm12 = vcmp.ge.f32.partialorder %v4645_v22, 0.0  ;;  %v4740_v3 = vmul.f32 0.01, %v4645_v22 }
 0x6cd   : > { %16055 = vst [vmem:[#allocation42_spill] sm:$0xff] %v14039_v1  ;;  %v4757_v17 = vsel %vm4725_vm11, %v10026_v37, %v4741_v32 }
 0x6ce   : > { %v4777_v49 = vmul.f32 %v14035_v26, %v4757_v17  ;;  %v4756_v42 = vsel %vm4724_vm12, %v4645_v22, %v4740_v3  ;;  %v10029_v15 = vpop.f32.mrb[104].mxu1 }
 0x6cf   : > { %v4776_v45 = vmul.f32 %v14035_v26, %v4756_v42  ;;  %vm4727_vm13 = vcmp.ge.f32.partialorder %v10029_v15, 0.0  ;;  %v4743_v36 = vmul.f32 0.01, %v10029_v15  ;;  %v4655_v47 = vpop.f32.mrb[105].mxu1 }
 0x6d0   : > { %v14044_v29 = vmax.f32 %v16056_v41, %v4777_v49  ;;  %vm4726_vm14 = vcmp.ge.f32.partialorder %v4655_v47, 0.0  ;;  %v4742_v62 = vmul.f32 0.01, %v4655_v47 }
 0x6d1   : > { %v14047_v60 = vmax.f32 %v16058_v63, %v4776_v45  ;;  %v4759_v11 = vsel %vm4727_vm13, %v10029_v15, %v4743_v36  ;;  %v16060_v36 = vld [vmem:[#allocation51_spill] sm:$0xff] }
 0x6d2   : > { %16057 = vst [vmem:[#allocation23_spill] sm:$0xff] %v14044_v29  ;;  %v4809_v37 = vsub.f32 %v16056_v41, %v14044_v29  ;;  %v4857_v32 = vsub.f32 %v4777_v49, %v14044_v29  ;;  %v4779_v22 = vmul.f32 %v14035_v26, %v4759_v11  ;;  %v4758_v3 = vsel %vm4726_vm14, %v4655_v47, %v4742_v62  ;;  %v10032_v17 = vpop.f32.mrb[106].mxu1  ;;  %v16061_v11 = vld [vmem:[#allocation59_spill] sm:$0xff] }
 0x6d3   : > { %16059 = vst [vmem:[#allocation44_spill] sm:$0xff] %v14047_v60  ;;  %v4808_v42 = vsub.f32 %v16058_v63, %v14047_v60  ;;  %v4856_v1 = vsub.f32 %v4776_v45, %v14047_v60  ;;  %v4778_v61 = vmul.f32 %v14035_v26, %v4758_v3  ;;  %vm4729_vm15 = vcmp.ge.f32.partialorder %v10032_v17, 0.0  ;;  %v4665_v5 = vpop.f32.mrb[107].mxu1 }
 0x6d4   : > { %v4826_v10 = vmul.f32 1.442695, %v4809_v37  ;;  %v4874_v15 = vmul.f32 1.442695, %v4857_v32  ;;  %v14058_v35 = vmax.f32 %v16060_v36, %v4779_v22  ;;  %v4745_v41 = vmul.f32 0.01, %v10032_v17 }
 0x6d5   : > { %v4824_v49 = vmul.f32 1.442695, %v4808_v42  ;;  %v4872_v29 = vmul.f32 1.442695, %v4856_v1  ;;  %v14061_v47 = vmax.f32 %v16061_v11, %v4778_v61  ;;  %vm4728_vm1 = vcmp.ge.f32.partialorder %v4665_v5, 0.0 }
 0x6d6   : > { %11152 = vpow2.f32 %v4826_v10  ;;  %v4811_v63 = vsub.f32 %v16060_v36, %v14058_v35  ;;  %v4859_v45 = vsub.f32 %v4779_v22, %v14058_v35  ;;  %v4761_v62 = vsel %vm4729_vm15, %v10032_v17, %v4745_v41  ;;  %v10035_v3 = vpop.f32.mrb[108].mxu1 }
 0x6d7   : > { %16062 = vst [vmem:[#allocation24_spill] sm:$0xff] %v14061_v47  ;;  %11154 = vpow2.f32 %v4874_v15  ;;  %v4810_v37 = vsub.f32 %v16061_v11, %v14061_v47  ;;  %v4858_v32 = vsub.f32 %v4778_v61, %v14061_v47  ;;  %v4781_v1 = vmul.f32 %v14035_v26, %v4761_v62  ;;  %v4675_v42 = vpop.f32.mrb[109].mxu1 }
 0x6d8   : > { %11156 = vpow2.f32 %v4824_v49  ;;  %v4830_v60 = vmul.f32 1.442695, %v4811_v63  ;;  %v4878_v58 = vmul.f32 1.442695, %v4859_v45  ;;  %v4744_v10 = vmul.f32 0.01, %v4665_v5 }
 0x6d9   : > { %11158 = vpow2.f32 %v4872_v29  ;;  %v4828_v38 = vmul.f32 1.442695, %v4810_v37  ;;  %v4876_v36 = vmul.f32 1.442695, %v4858_v32  ;;  %v14071_v22 = vmax.f32 %v16063_v8, %v4781_v1 }
 0x6da   : > { %11160 = vpow2.f32 %v4830_v60  ;;  %v4760_v17 = vsel %vm4728_vm1, %v4665_v5, %v4744_v10  ;;  %vm4731_vm3 = vcmp.ge.f32.partialorder %v10035_v3, 0.0  ;;  %v4747_v15 = vmul.f32 0.01, %v10035_v3  ;;  %v10038_v41 = vpop.f32.mrb[110].mxu1  ;;  %v16065_v5 = vld [vmem:[#allocation46_spill] sm:$0xff] }
 0x6db   : > { %16064 = vst [vmem:[#allocation18_spill] sm:$0xff] %v14071_v22  ;;  %11162 = vpow2.f32 %v4878_v58  ;;  %v4813_v61 = vsub.f32 %v16063_v8, %v14071_v22  ;;  %v4861_v49 = vsub.f32 %v4781_v1, %v14071_v22  ;;  %v4780_v11 = vmul.f32 %v14035_v26, %v4760_v17  ;;  %v4685_v29 = vpop.f32.mrb[111].mxu1 }
 0x6dc   : > { %11164 = vpow2.f32 %v4828_v38  ;;  %v4763_v63 = vsel %vm4731_vm3, %v10035_v3, %v4747_v15  ;;  %vm4730_vm4 = vcmp.ge.f32.partialorder %v4675_v42, 0.0  ;;  %v4746_v45 = vmul.f32 0.01, %v4675_v42  ;;  %v16067_v15 = vld [vmem:[#allocation53_spill] sm:$0xff] }
 0x6dd   : > { %11166 = vpow2.f32 %v4876_v36  ;;  %v4834_v60 = vmul.f32 1.442695, %v4813_v61  ;;  %v4882_v62 = vmul.f32 1.442695, %v4861_v49  ;;  %v14079_v37 = vmax.f32 %v16065_v5, %v4780_v11 }
 0x6de   : > { %v4783_v58 = vmul.f32 %v14035_v26, %v4763_v63  ;;  %v4762_v32 = vsel %vm4730_vm4, %v4675_v42, %v4746_v45  ;;  %vm4733_vm5 = vcmp.ge.f32.partialorder %v10038_v41, 0.0  ;;  %v4749_v8 = vmul.f32 0.01, %v10038_v41  ;;  %v14082_v10 = vpop.f32.mrb[112].mxu1 }
 0x6df   : > { %16066 = vst [vmem:[#allocation12_spill] sm:$0xff] %v14079_v37  ;;  %11168 = vpow2.f32 %v4834_v60  ;;  %v4812_v38 = vsub.f32 %v16065_v5, %v14079_v37  ;;  %v4860_v3 = vsub.f32 %v4780_v11, %v14079_v37  ;;  %v4782_v1 = vmul.f32 %v14035_v26, %v4762_v32  ;;  %v14088_v36 = vpop.f32.mrb[113].mxu1 }
 0x6e0   : > { %v11153_v17 = vpop.eup %11152  ;;  %11170 = vpow2.f32 %v4882_v62  ;;  %v14091_v61 = vmax.f32 %v16067_v15, %v4783_v58  ;;  %v4765_v42 = vsel %vm4733_vm5, %v10038_v41, %v4749_v8  ;;  %vm4732_vm6 = vcmp.ge.f32.partialorder %v4685_v29, 0.0 }
 0x6e1   : > { %v11155_v49 = vpop.eup %11154  ;;  %v4905_v63 = vmul.f32 %v11153_v17, %v13694_v27  ;;  %v4832_v45 = vmul.f32 1.442695, %v4812_v38  ;;  %v4880_v60 = vmul.f32 1.442695, %v4860_v3  ;;  %v14095_v5 = vmax.f32 %v13686_v7, %v4782_v1 }
 0x6e2   : > { %16068 = vst [vmem:[#allocation13_spill] sm:$0xff] %v14091_v61  ;;  %v11157_v11 = vpop.eup %11156  ;;  %v4815_v32 = vsub.f32 %v16067_v15, %v14091_v61  ;;  %v4863_v37 = vsub.f32 %v4783_v58, %v14091_v61  ;;  %v4785_v62 = vmul.f32 %v14035_v26, %v4765_v42  ;;  %v4748_v22 = vmul.f32 0.01, %v4685_v29  ;;  %v14101_v47 = vpop.f32.mrb[114].mxu1 }
 0x6e3   : > { %v11159_v41 = vpop.eup %11158  ;;  %v14103_v8 = vadd.f32 %v11155_v49, %v4905_v63  ;;  %v4904_v27 = vmul.f32 %v11157_v11, %v13705_v57  ;;  %11172 = vpow2.f32 %v4832_v45  ;;  %v4814_v38 = vsub.f32 %v13686_v7, %v14095_v5  ;;  %10050 = vmatprep.mubr.msk.f32.mxu0 %vm1635_vm0, %v11157_v11  ;;  %v14109_v3 = vpop.f32.mrb[115].mxu1 }
 0x6e4   : > { %v11161_v15 = vpop.eup %11160  ;;  %11174 = vpow2.f32 %v4880_v60  ;;  %v4838_v58 = vmul.f32 1.442695, %v4815_v32  ;;  %v4886_v42 = vmul.f32 1.442695, %v4863_v37  ;;  %v4862_v61 = vsub.f32 %v4782_v1, %v14095_v5  ;;  %10076 = vmatprep.mubr.msk.f32.mxu1 %vm1635_vm0, %v11159_v41  ;;  %10051 = vmatmul.mubr.msk.f32.vlgmr.msra.gmra.mrb[90].mxu0 %vm1635_vm0, %v11153_v17  ;;  %v16072_v60 = vld [vmem:[#allocation7_spill] sm:$0xff] }
 0x6e5   : > { %16069 = vst [vmem:[#allocation19_spill] sm:$0xff] %v14103_v8  ;;  %v11163_v63 = vpop.eup %11162  ;;  %v14114_v57 = vadd.f32 %v11159_v41, %v4904_v27  ;;  %v4907_v45 = vmul.f32 %v11161_v15, %v13720_v25  ;;  %v4836_v7 = vmul.f32 1.442695, %v4814_v38  ;;  %v16070_v8 = vld [vmem:[#allocation27_spill] sm:$0xff]  ;;  %10077 = vmatmul.mubr.msk.f32.vlgmr.msra.gmra.mrb[118].mxu1 %vm1635_vm0, %v11155_v49  ;;  %10677 = vmatpush3.bf16.msra.mxu0 %v16072_v60  ;;  %vm4735_vm7 = vcmp.ge.f32.partialorder %v14082_v10, 0.0 }
 0x6e6   : > { %v14118_v11 = vmax.f32 %v16070_v8, %v4785_v62  ;;  %v11165_v37 = vpop.eup %11164  ;;  %11176 = vpow2.f32 %v4838_v58  ;;  %v4884_v1 = vmul.f32 1.442695, %v4862_v61  ;;  %v4764_v32 = vsel %vm4732_vm6, %v4685_v29, %v4748_v22  ;;  %v14124_v17 = vpop.f32.mrb[116].mxu1  ;;  %10679 = vmatprep.subr.bf16.mxu0 %v16000_v30  ;;  %v14130_v25 = vld [vmem:[%s15575_s4] sm:$0xf]  ;;  %v16073_v61 = vld [vmem:[#allocation56_spill] sm:$0xff] }
 0x6e7   : > { %10157 = vmatpush3.msk.msra.mxu1 %vm1684_vm2, %v14130_v25  ;;  %v11167_v49 = vpop.eup %11166  ;;  %v14134_v41 = vadd.f32 %v11163_v63, %v4907_v45  ;;  %v4906_v27 = vmul.f32 %v11165_v37, %v16073_v61  ;;  %11178 = vpow2.f32 %v4886_v42  ;;  %10053 = vmatprep.mubr.msk.f32.mxu0 %vm1635_vm0, %v11165_v37  ;;  %v14140_v29 = vpop.f32.mrb[117].mxu1  ;;  %v4784_v58 = vmul.f32 %v14035_v26, %v4764_v32 }
 0x6e8   : > { %16071 = vst [vmem:[#allocation26_spill] sm:$0xff] %v14118_v11  ;;  %v4817_v22 = vsub.f32 %v16070_v8, %v14118_v11  ;;  %10707 = vmatprep.subr.bf16.mxu1 %v16072_v60  ;;  %11180 = vpow2.f32 %v4836_v7  ;;  %v4865_v38 = vsub.f32 %v4785_v62, %v14118_v11  ;;  %v4751_v45 = vmul.f32 0.01, %v14082_v10  ;;  %10079 = vmatprep.mubr.msk.f32.mxu1 %vm1635_vm0, %v11167_v49  ;;  %v16074_v7 = vld [vmem:[#allocation55_spill] sm:$0xff] }
 0x6e9   : > { %10054 = vmatmul.mubr.msk.f32.gmra.mrb[92].mxu0 %vm1635_vm0, %v11161_v15  ;;  %v11169_v42 = vpop.eup %11168  ;;  %v14148_v61 = vadd.f32 %v11167_v49, %v4906_v27  ;;  %11182 = vpow2.f32 %v4884_v1  ;;  %vm4734_vm8 = vcmp.ge.f32.partialorder %v14088_v36, 0.0  ;;  %10080 = vmatmul.mubr.msk.f32.gmra.mrb[120].mxu1 %vm1635_vm0, %v11163_v63  ;;  %v16075_v60 = vld [vmem:[#allocation47_spill] sm:$0xff]  ;;  %v16077_v49 = vld [vmem:[#allocation9_spill] sm:$0xff]  ;;  %v4750_v63 = vmul.f32 0.01, %v14088_v36 }
 0x6ea   : > { %v4842_v8 = vmul.f32 1.442695, %v4817_v22  ;;  %10681 = vmatpush3.bf16.msra.mxu0 %v16000_v30  ;;  %v11171_v62 = vpop.eup %11170  ;;  %v4909_v37 = vmul.f32 %v11169_v42, %v16074_v7  ;;  %v4890_v32 = vmul.f32 1.442695, %v4865_v38  ;;  %v14155_v11 = vmax.f32 %v16075_v60, %v4784_v58 }
 0x6eb   : > { %v4767_v15 = vsel %vm4735_vm7, %v14082_v10, %v4751_v45  ;;  %10683 = vmatprep.subr.bf16.mxu0 %v16077_v49  ;;  %vm4737_vm9 = vcmp.ge.f32.partialorder %v14101_v47, 0.0  ;;  %v4766_v45 = vsel %vm4734_vm8, %v14088_v36, %v4750_v63  ;;  %vm4736_vm10 = vcmp.ge.f32.partialorder %v14109_v3, 0.0 }
 0x6ec   : > { %16076 = vst [vmem:[#allocation14_spill] sm:$0xff] %v14155_v11  ;;  %11184 = vpow2.f32 %v4842_v8  ;;  %v4787_v1 = vmul.f32 %v14035_v26, %v4767_v15  ;;  %v14164_v27 = vadd.f32 %v11171_v62, %v4909_v37  ;;  %v4816_v22 = vsub.f32 %v16075_v60, %v14155_v11 }
 0x6ed   : > { %11186 = vpow2.f32 %v4890_v32  ;;  %v4864_v38 = vsub.f32 %v4784_v58, %v14155_v11  ;;  %v11173_v7 = vpop.eup %11172  ;;  %v4753_v8 = vmul.f32 0.01, %v14101_v47  ;;  %v4786_v58 = vmul.f32 %v14035_v26, %v4766_v45 }
 0x6ee   : > { %v14170_v10 = vmax.f32 %v13756_v14, %v4787_v1  ;;  %10685 = vmatpush3.bf16.msra.mxu0 %v16077_v49  ;;  %v11175_v37 = vpop.eup %11174  ;;  %v4908_v32 = vmul.f32 %v11173_v7, %v13777_v13  ;;  %v4840_v60 = vmul.f32 1.442695, %v4816_v22  ;;  %10056 = vmatprep.mubr.msk.f32.mxu0 %vm1635_vm0, %v11173_v7  ;;  %v4752_v11 = vmul.f32 0.01, %v14109_v3 }
 0x6ef   : > { %v4888_v15 = vmul.f32 1.442695, %v4864_v38  ;;  %10687 = vmatprep.subr.bf16.mxu0 %v16009_v53  ;;  %v4769_v49 = vsel %vm4737_vm9, %v14101_v47, %v4753_v8  ;;  %10082 = vmatprep.mubr.msk.f32.mxu1 %vm1635_vm0, %v11175_v37  ;;  %v14194_v38 = vmax.f32 %v13780_v19, %v4786_v58  ;;  %vm4739_vm11 = vcmp.ge.f32.partialorder %v14124_v17, 0.0 }
 0x6f0   : > { %v4819_v36 = vsub.f32 %v13756_v14, %v14170_v10  ;;  %v4867_v63 = vsub.f32 %v4787_v1, %v14170_v10  ;;  %10057 = vmatmul.mubr.msk.f32.gmra.mrb[94].mxu0 %vm1635_vm0, %v11169_v42  ;;  %v11177_v13 = vpop.eup %11176  ;;  %v14191_v22 = vadd.f32 %v11175_v37, %v4908_v32  ;;  %11188 = vpow2.f32 %v4840_v60  ;;  %10083 = vmatmul.mubr.msk.f32.gmra.mrb[122].mxu1 %vm1635_vm0, %v11171_v62 }
 0x6f1   : > { %v4789_v14 = vmul.f32 %v14035_v26, %v4769_v49  ;;  %v11179_v1 = vpop.eup %11178  ;;  %v4911_v47 = vmul.f32 %v11177_v13, %v13796_v28  ;;  %11190 = vpow2.f32 %v4888_v15  ;;  %v4818_v8 = vsub.f32 %v13780_v19, %v14194_v38 }
 0x6f2   : > { %v4846_v7 = vmul.f32 1.442695, %v4819_v36  ;;  %v4894_v45 = vmul.f32 1.442695, %v4867_v63  ;;  %10689 = vmatpush3.bf16.msra.mxu0 %v16009_v53  ;;  %v11181_v42 = vpop.eup %11180  ;;  %v4866_v37 = vsub.f32 %v4786_v58, %v14194_v38  ;;  %v4768_v62 = vsel %vm4736_vm10, %v14109_v3, %v4752_v11 }
 0x6f3   : > { %v14204_v32 = vmax.f32 %v13790_v59, %v4789_v14  ;;  %10691 = vmatprep.subr.bf16.mxu0 %v15938_v23  ;;  %v11183_v28 = vpop.eup %11182  ;;  %v14210_v49 = vadd.f32 %v11179_v1, %v4911_v47  ;;  %v4910_v60 = vmul.f32 %v11181_v42, %v13805_v52  ;;  %v4788_v15 = vmul.f32 %v14035_v26, %v4768_v62 }
 0x6f4   : > { %11192 = vpow2.f32 %v4846_v7  ;;  %10059 = vmatprep.mubr.msk.f32.mxu0 %vm1635_vm0, %v11181_v42  ;;  %v4844_v19 = vmul.f32 1.442695, %v4818_v8  ;;  %v4892_v58 = vmul.f32 1.442695, %v4866_v37  ;;  %10085 = vmatprep.mubr.msk.f32.mxu1 %vm1635_vm0, %v11183_v28  ;;  %vm4738_vm12 = vcmp.ge.f32.partialorder %v14140_v29, 0.0 }
 0x6f5   : > { %11194 = vpow2.f32 %v4894_v45  ;;  %v4821_v36 = vsub.f32 %v13790_v59, %v14204_v32  ;;  %10060 = vmatmul.mubr.msk.f32.gmra.mrb[96].mxu0 %vm1635_vm0, %v11177_v13  ;;  %v14219_v11 = vadd.f32 %v11183_v28, %v4910_v60  ;;  %v4869_v52 = vsub.f32 %v4789_v14, %v14204_v32  ;;  %10086 = vmatmul.mubr.msk.f32.gmra.mrb[124].mxu1 %vm1635_vm0, %v11179_v1 }
 0x6f6   : > { %v11185_v3 = vpop.eup %11184  ;;  %v14223_v63 = vmax.f32 %v13809_v0, %v4788_v15  ;;  %10693 = vmatpush3.bf16.msra.mxu0 %v15938_v23  ;;  %11196 = vpow2.f32 %v4844_v19  ;;  %v4755_v13 = vmul.f32 0.01, %v14124_v17  ;;  %v4754_v60 = vmul.f32 0.01, %v14140_v29 }
 0x6f7   : > { %v11187_v47 = vpop.eup %11186  ;;  %v4913_v59 = vmul.f32 %v11185_v3, %v13820_v21  ;;  %v4850_v7 = vmul.f32 1.442695, %v4821_v36  ;;  %10695 = vmatprep.subr.bf16.mxu0 %v15941_v39  ;;  %11198 = vpow2.f32 %v4892_v58  ;;  %v4898_v14 = vmul.f32 1.442695, %v4869_v52 }
 0x6f8   : > { %v4820_v45 = vsub.f32 %v13809_v0, %v14223_v63  ;;  %v4868_v42 = vsub.f32 %v4788_v15, %v14223_v63  ;;  %v4771_v1 = vsel %vm4739_vm11, %v14124_v17, %v4755_v13  ;;  %v4770_v19 = vsel %vm4738_vm12, %v14140_v29, %v4754_v60 }
 0x6f9   : > { %v14234_v8 = vadd.f32 %v11187_v47, %v4913_v59  ;;  %11200 = vpow2.f32 %v4850_v7  ;;  %v4791_v62 = vmul.f32 %v14035_v26, %v4771_v1  ;;  %v4790_v59 = vmul.f32 %v14035_v26, %v4770_v19 }
 0x6fa   : > { %v4848_v37 = vmul.f32 1.442695, %v4820_v45  ;;  %v4896_v21 = vmul.f32 1.442695, %v4868_v42  ;;  %10697 = vmatpush3.bf16.msra.mxu0 %v15941_v39  ;;  %v11189_v28 = vpop.eup %11188  ;;  %11202 = vpow2.f32 %v4898_v14 }
 0x6fb   : > { %10699 = vmatprep.subr.bf16.mxu0 %v15942_v6  ;;  %v11191_v0 = vpop.eup %11190  ;;  %v4912_v15 = vmul.f32 %v11189_v28, %v13836_v4  ;;  %v14244_v17 = vmax.f32 %v13830_v18, %v4791_v62  ;;  %10062 = vmatprep.mubr.msk.f32.mxu0 %vm1635_vm0, %v11189_v28 }
 0x6fc   : > { %11204 = vpow2.f32 %v4848_v37  ;;  %10088 = vmatprep.mubr.msk.f32.mxu1 %vm1635_vm0, %v11191_v0  ;;  %10063 = vmatmul.mubr.msk.f32.gmra.mrb[98].mxu0 %vm1635_vm0, %v11185_v3  ;;  %v14260_v3 = vmax.f32 %v13846_v34, %v4790_v59 }
 0x6fd   : > { %11206 = vpow2.f32 %v4896_v21  ;;  %v14250_v36 = vadd.f32 %v11191_v0, %v4912_v15  ;;  %v4823_v52 = vsub.f32 %v13830_v18, %v14244_v17  ;;  %v4871_v4 = vsub.f32 %v4791_v62, %v14244_v17  ;;  %10089 = vmatmul.mubr.msk.f32.gmra.mrb[126].mxu1 %vm1635_vm0, %v11187_v47 }
 0x6fe   : > { %v11193_v58 = vpop.eup %11192  ;;  %10701 = vmatpush3.bf16.msra.mxu0 %v15942_v6  ;;  %v4822_v47 = vsub.f32 %v13846_v34, %v14260_v3 }
 0x6ff   : > { %v11195_v7 = vpop.eup %11194  ;;  %v4915_v13 = vmul.f32 %v11193_v58, %v13849_v2  ;;  %v4854_v29 = vmul.f32 1.442695, %v4823_v52  ;;  %v4902_v14 = vmul.f32 1.442695, %v4871_v4  ;;  %10703 = vmatprep.subr.bf16.mxu0 %v15944_v48  ;;  %v4870_v2 = vsub.f32 %v4790_v59, %v14260_v3 }
 0x700   : > { %v11197_v45 = vpop.eup %11196  ;;  %v4852_v62 = vmul.f32 1.442695, %v4822_v47 }
 0x701   : > { %v14263_v18 = vadd.f32 %v11195_v7, %v4915_v13  ;;  %v11199_v42 = vpop.eup %11198  ;;  %v4914_v26 = vmul.f32 %v11197_v45, %v13858_v33  ;;  %11208 = vpow2.f32 %v4854_v29  ;;  %10065 = vmatprep.mubr.msk.f32.mxu0 %vm1635_vm0, %v11197_v45  ;;  %v4900_v33 = vmul.f32 1.442695, %v4870_v2  ;;  %v14300_v29 = vld [vmem:[%s11988_s27 + $0x290] sm:$0xff]  ;;  %v14324_v2 = vld [vmem:[%s11988_s27 + $0x2a8] sm:$0xff] }
 0x702   : > { %11210 = vpow2.f32 %v4902_v14  ;;  %10091 = vmatprep.mubr.msk.f32.mxu1 %vm1635_vm0, %v11199_v42  ;;  %10066 = vmatmul.mubr.msk.f32.gmra.mrb[100].mxu0 %vm1635_vm0, %v11193_v58  ;;  %v14289_v58 = vld [vmem:[%s11988_s27 + $0x280] sm:$0xff]  ;;  %16079 = vst [vmem:[#allocation50_spill] sm:$0xff] %v14300_v29  ;;  %16082 = vst [vmem:[#allocation29_spill] sm:$0xff] %v14324_v2 }
 0x703   : > { %v11201_v1 = vpop.eup %11200  ;;  %v14272_v37 = vadd.f32 %v11199_v42, %v4914_v26  ;;  %10092 = vmatmul.mubr.msk.f32.gmra.mrb[128].mxu1 %vm1635_vm0, %v11195_v7  ;;  %10705 = vmatpush3.bf16.msra.mxu0 %v15944_v48  ;;  %11212 = vpow2.f32 %v4852_v62  ;;  %16078 = vst [vmem:[#allocation22_spill] sm:$0xff] %v14289_v58  ;;  %v14297_v7 = vld [vmem:[%s11988_s27 + $0x288] sm:$0xff]  ;;  %v5389_v42 = vmul.f32 %v13901_v40, %v14300_v29  ;;  %v14317_v26 = vld [vmem:[%s11988_s27 + $0x2a0] sm:$0xff]  ;;  %v14329_v40 = vld [vmem:[%s11988_s27 + $0x2b0] sm:$0xff] }
 0x704   : > { %v4917_v21 = vmul.f32 %v11201_v1, %v13865_v54  ;;  %v11203_v34 = vpop.eup %11202  ;;  %10182 = vmatprep.subr.msk.mxu0 %vm1684_vm2, %v14130_v25  ;;  %11214 = vpow2.f32 %v4900_v33  ;;  %16081 = vst [vmem:[#allocation52_spill] sm:$0xff] %v14317_v26  ;;  %16083 = vst [vmem:[#allocation51_spill] sm:$0xff] %v14329_v40 }
 0x706   : > { %v11205_v28 = vpop.eup %11204  ;;  %v14279_v60 = vadd.f32 %v11203_v34, %v4917_v21  ;;  %v8768_v21 = vld [vmem:[%s11988_s27 + $0x2c0] sm:$0xff] }
 0x707   : > { %v11207_v0 = vpop.eup %11206  ;;  %v4916_v54 = vmul.f32 %v11205_v28, %v13871_v16  ;;  %10068 = vmatprep.mubr.msk.f32.mxu0 %vm1635_vm0, %v11205_v28  ;;  %v5387_v16 = vmul.f32 %v13880_v20, %v14289_v58  ;;  %v5395_v33 = vmul.f32 %v13945_v24, %v8768_v21  ;;  %v14357_v24 = vld [vmem:[#allocation2 + $0x58] sm:$0xff] }
 0x708   : > { %10094 = vmatprep.mubr.msk.f32.mxu1 %vm1635_vm0, %v11207_v0  ;;  %10069 = vmatmul.mubr.msk.f32.gmra.mrb[102].mxu0 %vm1635_vm0, %v11201_v1  ;;  %v14338_v1 = vld [vmem:[%s11988_s27 + $0x2b8] sm:$0xff] }
 0x709   : > { %v14285_v15 = vadd.f32 %v11207_v0, %v4916_v54  ;;  %10095 = vmatmul.mubr.msk.f32.gmra.mrb[130].mxu1 %vm1635_vm0, %v11203_v34  ;;  %16084 = vst [vmem:[#allocation59_spill] sm:$0xff] %v14338_v1  ;;  %v5394_v62 = vmul.f32 %v13941_v56, %v14338_v1  ;;  %v14345_v34 = vld [vmem:[%s11988_s27 + $0x2c8] sm:$0xff]  ;;  %v14354_v54 = vld [vmem:[%s11988_s27 + $0x2d8] sm:$0xff]  ;;  %v8772_v56 = vld [vmem:[%s11988_s27 + $0x2e0] sm:$0xff] }
 0x70a   : > { %16085 = vst [vmem:[#allocation54_spill] sm:$0xff] %v14345_v34  ;;  %v5396_v28 = vmul.f32 %v13952_v44, %v14345_v34  ;;  %16086 = vst [vmem:[#allocation46_spill] sm:$0xff] %v14354_v54  ;;  %v16091_v34 = vld [vmem:[#allocation57_spill] sm:$0xff]  ;;  %v16135_v58 = vld [vmem:[#allocation18_spill] sm:$0xff] }
 0x70b   : > { %v11209_v19 = vpop.eup %11208 }
 0x70c   : > { %v11211_v52 = vpop.eup %11210  ;;  %v4919_v4 = vmul.f32 %v11209_v19, %v13878_v46  ;;  %v5388_v46 = vmul.f32 %v13894_v43, %v14297_v7  ;;  %v5391_v43 = vmul.f32 %v13915_v12, %v14317_v26  ;;  %v5393_v12 = vmul.f32 %v13933_v50, %v14329_v40  ;;  %v14350_v50 = vld [vmem:[#allocation2 + $0x50] sm:$0xff] }
 0x70d   : > { %v11213_v13 = vpop.eup %11212 }
 0x70e   : > { %v14292_v59 = vadd.f32 %v11211_v52, %v4919_v4  ;;  %v11215_v14 = vpop.eup %11214  ;;  %v4918_v45 = vmul.f32 %v11213_v13, %v13898_v51  ;;  %10071 = vmatprep.mubr.msk.f32.mxu0 %vm1635_vm0, %v11213_v13  ;;  %v14314_v51 = vld [vmem:[%s11988_s27 + $0x298] sm:$0xff]  ;;  %v8773_v4 = vld [vmem:[%s11988_s27 + $0x2e8] sm:$0xff] }
 0x70f   : > { %10097 = vmatprep.mubr.msk.f32.mxu1 %vm1635_vm0, %v11215_v14  ;;  %10072 = vmatmul.mubr.msk.f32.gmra.mrb[104].mxu0 %vm1635_vm0, %v11209_v19  ;;  %16080 = vst [vmem:[#allocation28_spill] sm:$0xff] %v14314_v51  ;;  %v5390_v47 = vmul.f32 %v13911_v31, %v14314_v51  ;;  %v5392_v31 = vmul.f32 %v13929_v9, %v14324_v2  ;;  %v8770_v9 = vld [vmem:[%s11988_s27 + $0x2d0] sm:$0xff]  ;;  %v14366_v13 = vld [vmem:[#allocation2 + $0x68] sm:$0xff] }
 0x710   : > { %v14308_v20 = vadd.f32 %v11215_v14, %v4918_v45  ;;  %10098 = vmatmul.mubr.msk.f32.gmra.mrb[132].mxu1 %vm1635_vm0, %v11211_v52  ;;  %10132 = vmatprep.mubr.f32.mxu0 %v5387_v16  ;;  %v5397_v0 = vmul.f32 %v14350_v50, %v8770_v9  ;;  %v5398_v19 = vmul.f32 %v14357_v24, %v14354_v54  ;;  %v14361_v52 = vld [vmem:[#allocation2 + $0x60] sm:$0xff]  ;;  %v8774_v16 = vld [vmem:[%s11988_s27 + $0x2f0] sm:$0xff] }
 0x711   : > { %v5399_v44 = vmul.f32 %v14361_v52, %v8772_v56  ;;  %v5400_v14 = vmul.f32 %v14366_v13, %v8773_v4  ;;  %v14369_v45 = vld [vmem:[#allocation2 + $0x70] sm:$0xff] }
 0x713   : > { %10133 = vmatmul.mubr.f32.vlgmr.msra.gmra.mrb[106].mxu0 %v5388_v46  ;;  %v5401_v46 = vmul.f32 %v14369_v45, %v8774_v16 }
 0x714   : > { %10135 = vmatprep.mubr.f32.mxu0 %v5389_v42  ;;  %10183 = vmatpush3.msk.msra.mxu0 %vm1684_vm2, %v14130_v25  ;;  %v8775_v42 = vld [vmem:[%s11988_s27 + $0x2f8] sm:$0xff] }
 0x715   : > { %10264 = vmatprep.subr.msk.mxu0 %vm1684_vm2, %v14130_v25 }
 0x717   : > { %10136 = vmatmul.mubr.f32.gmra.mrb[108].mxu0 %v5390_v47  ;;  %v14373_v47 = vld [vmem:[#allocation2 + $0x78] sm:$0xff] }
 0x718   : > { %10138 = vmatprep.mubr.f32.mxu0 %v5391_v43  ;;  %v5402_v43 = vmul.f32 %v14373_v47, %v8775_v42 }
 0x71b   : > { %10139 = vmatmul.mubr.f32.gmra.mrb[110].mxu0 %v5392_v31 }
 0x71c   : > { %10141 = vmatprep.mubr.f32.mxu0 %v5393_v12 }
 0x71f   : > { %10142 = vmatmul.mubr.f32.gmra.mrb[112].mxu0 %v5394_v62 }
 0x720   : > { %10144 = vmatprep.mubr.f32.mxu0 %v5395_v33  ;;  %v16087_v33 = vld [vmem:[#allocation58_spill] sm:$0xff] }
 0x723   : > { %10145 = vmatmul.mubr.f32.gmra.mrb[114].mxu0 %v5396_v28  ;;  %v16088_v28 = vld [vmem:[#allocation33_spill] sm:$0xff] }
 0x724   : > { %10147 = vmatprep.mubr.f32.mxu0 %v5397_v0 }
 0x727   : > { %10148 = vmatmul.mubr.f32.gmra.mrb[116].mxu0 %v5398_v19  ;;  %v16089_v19 = vld [vmem:[#allocation48_spill] sm:$0xff] }
 0x728   : > { %10150 = vmatprep.mubr.f32.mxu0 %v5399_v44 }
 0x72b   : > { %10151 = vmatmul.mubr.f32.gmra.mrb[118].mxu0 %v5400_v14  ;;  %v16090_v14 = vld [vmem:[#allocation34_spill] sm:$0xff] }
 0x72c   : > { %10153 = vmatprep.mubr.f32.mxu0 %v5401_v46 }
 0x72f   : > { %10154 = vmatmul.mubr.f32.gmra.mrb[120].mxu0 %v5402_v43 }
 0x7b7   : > { %v10052_v31 = vpop.f32.mrb[90].mxu0 }
 0x7b8   : > { %v5323_v12 = vmul.f32 %v10052_v31, %v13974_v55  ;;  %v10078_v21 = vpop.f32.mrb[118].mxu1  ;;  %v5050_v62 = vpop.f32.mrb[91].mxu0  ;;  %v16092_v31 = vld [vmem:[#allocation35_spill] sm:$0xff] }
 0x7b9   : > { %v5339_v9 = vmul.f32 %v10078_v21, %v16087_v33  ;;  %v5322_v0 = vmul.f32 %v5050_v62, %v16088_v28  ;;  %v5243_v56 = vpop.f32.mrb[119].mxu1  ;;  %v16093_v21 = vld [vmem:[#allocation45_spill] sm:$0xff] }
 0x7ba   : > { %v5338_v44 = vmul.f32 %v16089_v19, %v5243_v56 }
 0x7bb   : > { %v14380_v16 = vadd.f32 %v5339_v9, %v5323_v12  ;;  %v16096_v12 = vld [vmem:[#allocation8_spill] sm:$0xff] }
 0x7bc   : > { %v10055_v4 = vpop.f32.mrb[92].mxu0  ;;  %v10081_v42 = vpop.f32.mrb[120].mxu1  ;;  %v14383_v43 = vadd.f32 %v5338_v44, %v5322_v0  ;;  %v16098_v0 = vld [vmem:[#allocation37_spill] sm:$0xff] }
 0x7bd   : > { %v5325_v54 = vmul.f32 %v10055_v4, %v16090_v14  ;;  %v5060_v46 = vpop.f32.mrb[93].mxu0  ;;  %v5341_v55 = vmul.f32 %v10081_v42, %v16091_v34  ;;  %v5253_v1 = vpop.f32.mrb[121].mxu1  ;;  %v16097_v14 = vld [vmem:[#allocation49_spill] sm:$0xff] }
 0x7be   : > { %v5324_v40 = vmul.f32 %v5060_v46, %v16092_v31  ;;  %v5340_v33 = vmul.f32 %v16093_v21, %v5253_v1  ;;  %v16099_v34 = vld [vmem:[#allocation21_spill] sm:$0xff] }
 0x7bf   : > { %v14388_v62 = vadd.f32 %v5341_v55, %v5325_v54  ;;  %v16102_v54 = vld [vmem:[#allocation38_spill] sm:$0xff] }
 0x7c0   : > { %v14390_v28 = vadd.f32 %v5340_v33, %v5324_v40  ;;  %v16103_v33 = vld [vmem:[#allocation30_spill] sm:$0xff] }
 0x7c1   : > { %16094 = vst [vmem:[#allocation53_spill] sm:$0xff] %v14388_v62 }
 0x7c2   : > { %16095 = vst [vmem:[#allocation27_spill] sm:$0xff] %v14390_v28 }
 0x7c3   : > { %v10058_v56 = vpop.f32.mrb[94].mxu0  ;;  %v10084_v19 = vpop.f32.mrb[122].mxu1 }
 0x7c4   : > { %v5327_v9 = vmul.f32 %v10058_v56, %v16096_v12  ;;  %v5070_v4 = vpop.f32.mrb[95].mxu0  ;;  %v5343_v26 = vmul.f32 %v10084_v19, %v16097_v14  ;;  %v5263_v2 = vpop.f32.mrb[123].mxu1  ;;  %v16104_v12 = vld [vmem:[#allocation36_spill] sm:$0xff]  ;;  %v16105_v14 = vld [vmem:[#allocation25_spill] sm:$0xff] }
 0x7c5   : > { %v5326_v44 = vmul.f32 %v5070_v4, %v16098_v0  ;;  %v5342_v42 = vmul.f32 %v16099_v34, %v5263_v2 }
 0x7c6   : > { %v14396_v46 = vadd.f32 %v5343_v26, %v5327_v9  ;;  %v16108_v9 = vld [vmem:[#allocation39_spill] sm:$0xff] }
 0x7c7   : > { %v14398_v1 = vadd.f32 %v5342_v42, %v5326_v44 }
 0x7c8   : > { %16100 = vst [vmem:[#allocation56_spill] sm:$0xff] %v14396_v46  ;;  %v10061_v31 = vpop.f32.mrb[96].mxu0  ;;  %v10087_v55 = vpop.f32.mrb[124].mxu1 }
 0x7c9   : > { %16101 = vst [vmem:[#allocation55_spill] sm:$0xff] %v14398_v1  ;;  %v5329_v40 = vmul.f32 %v10061_v31, %v16102_v54  ;;  %v5080_v21 = vpop.f32.mrb[97].mxu0  ;;  %v5345_v56 = vmul.f32 %v10087_v55, %v16103_v33  ;;  %v5273_v19 = vpop.f32.mrb[125].mxu1  ;;  %v16109_v31 = vld [vmem:[#allocation31_spill] sm:$0xff]  ;;  %v16110_v1 = vld [vmem:[#allocation10_spill] sm:$0xff] }
 0x7ca   : > { %v5328_v29 = vmul.f32 %v5080_v21, %v16104_v12  ;;  %v5344_v4 = vmul.f32 %v16105_v14, %v5273_v19  ;;  %v11483_v33 = vld [vmem:[%s11988_s27 + $0x240] sm:$0xff] }
 0x7cb   : > { %v14404_v0 = vadd.f32 %v5345_v56, %v5329_v40  ;;  %v16113_v40 = vld [vmem:[#allocation40_spill] sm:$0xff] }
 0x7cc   : > { %v14406_v2 = vadd.f32 %v5344_v4, %v5328_v29 }
 0x7cd   : > { %16106 = vst [vmem:[#allocation47_spill] sm:$0xff] %v14404_v0 }
 0x7ce   : > { %16107 = vst [vmem:[#allocation58_spill] sm:$0xff] %v14406_v2  ;;  %v16115_v2 = vld [vmem:[#allocation20_spill] sm:$0xff] }
 0x7cf   : > { %v10064_v26 = vpop.f32.mrb[98].mxu0 }
 0x7d0   : > { %v5331_v44 = vmul.f32 %v10064_v26, %v16108_v9  ;;  %v10090_v34 = vpop.f32.mrb[126].mxu1  ;;  %v5090_v42 = vpop.f32.mrb[99].mxu0  ;;  %v16114_v26 = vld [vmem:[#allocation32_spill] sm:$0xff] }
 0x7d1   : > { %v5347_v54 = vmul.f32 %v10090_v34, %v16109_v31  ;;  %v5330_v46 = vmul.f32 %v5090_v42, %v16110_v1  ;;  %v5283_v55 = vpop.f32.mrb[127].mxu1  ;;  %v11484_v1 = vld [vmem:[%s11988_s27 + $0x250] sm:$0xff] }
 0x7d2   : > { %v5346_v21 = vmul.f32 %v11483_v33, %v5283_v55 }
 0x7d3   : > { %v14412_v12 = vadd.f32 %v5347_v54, %v5331_v44 }
 0x7d4   : > { %v14414_v19 = vadd.f32 %v5346_v21, %v5330_v46  ;;  %v16118_v46 = vld [vmem:[#allocation43_spill] sm:$0xff] }
 0x7d5   : > { %16111 = vst [vmem:[#allocation33_spill] sm:$0xff] %v14412_v12  ;;  %v10067_v29 = vpop.f32.mrb[100].mxu0 }
 0x7d6   : > { %16112 = vst [vmem:[#allocation48_spill] sm:$0xff] %v14414_v19  ;;  %v5333_v56 = vmul.f32 %v10067_v29, %v16113_v40  ;;  %v10093_v14 = vpop.f32.mrb[128].mxu1  ;;  %v5100_v4 = vpop.f32.mrb[101].mxu0  ;;  %v11485_v29 = vld [vmem:[%s11988_s27 + $0x268] sm:$0xff]  ;;  %v16119_v19 = vld [vmem:[#allocation17_spill] sm:$0xff] }
 0x7d7   : > { %v5349_v9 = vmul.f32 %v10093_v14, %v16114_v26  ;;  %v5332_v34 = vmul.f32 %v5100_v4, %v16115_v2  ;;  %v5293_v31 = vpop.f32.mrb[129].mxu1  ;;  %v11486_v2 = vld [vmem:[%s11988_s27 + $0x260] sm:$0xff] }
 0x7d8   : > { %v5348_v42 = vmul.f32 %v11484_v1, %v5293_v31  ;;  %v16123_v1 = vld [vmem:[#allocation11_spill] sm:$0xff] }
 0x7d9   : > { %v14420_v0 = vadd.f32 %v5349_v9, %v5333_v56 }
 0x7da   : > { %v14422_v54 = vadd.f32 %v5348_v42, %v5332_v34  ;;  %v16122_v34 = vld [vmem:[#allocation16_spill] sm:$0xff] }
 0x7db   : > { %16116 = vst [vmem:[#allocation34_spill] sm:$0xff] %v14420_v0  ;;  %v10070_v44 = vpop.f32.mrb[102].mxu0  ;;  %v5598_v31 = vsub.s32 5, %v16122_v34 }
 0x7dc   : > { %16117 = vst [vmem:[#allocation57_spill] sm:$0xff] %v14422_v54  ;;  %v5335_v55 = vmul.f32 %v10070_v44, %v16118_v46  ;;  %v10096_v33 = vpop.f32.mrb[130].mxu1  ;;  %v5110_v21 = vpop.f32.mrb[103].mxu0  ;;  %v11487_v54 = vld [vmem:[%s11988_s27 + $0x278] sm:$0xff] }
 0x7dd   : > { %v5351_v40 = vmul.f32 %v11485_v29, %v10096_v33  ;;  %v5334_v14 = vmul.f32 %v5110_v21, %v16119_v19  ;;  %v5303_v26 = vpop.f32.mrb[131].mxu1  ;;  %v16124_v33 = vld [vmem:[#allocation42_spill] sm:$0xff]  ;;  %v11488_v19 = vld [vmem:[%s11988_s27 + $0x270] sm:$0xff] }
 0x7de   : > { %v5350_v4 = vmul.f32 %v11486_v2, %v5303_v26  ;;  %v16125_v26 = vld [vmem:[#allocation41_spill] sm:$0xff] }
 0x7df   : > { %v14428_v12 = vadd.f32 %v5351_v40, %v5335_v55  ;;  %v14438_v55 = vrot.slane %v16125_v26, %v5598_v31  ;;  %v16130_v26 = vld [vmem:[#allocation44_spill] sm:$0xff] }
 0x7e0   : > { %v14430_v56 = vadd.f32 %v5350_v4, %v5334_v14 }
 0x7e1   : > { %16120 = vst [vmem:[#allocation35_spill] sm:$0xff] %v14428_v12 }
 0x7e2   : > { %16121 = vst [vmem:[#allocation45_spill] sm:$0xff] %v14430_v56  ;;  %v10073_v9 = vpop.f32.mrb[104].mxu0 }
 0x7e3   : > { %v5337_v42 = vmul.f32 %v10073_v9, %v16123_v1  ;;  %v10099_v44 = vpop.f32.mrb[132].mxu1  ;;  %v5120_v46 = vpop.f32.mrb[105].mxu0 }
 0x7e4   : > { %v5353_v0 = vmul.f32 %v11487_v54, %v10099_v44  ;;  %v5336_v29 = vmul.f32 %v5120_v46, %v16124_v33  ;;  %v5313_v28 = vpop.f32.mrb[133].mxu1 }
 0x7e5   : > { %v5352_v21 = vmul.f32 %v11488_v19, %v5313_v28  ;;  %v16128_v19 = vld [vmem:[#allocation23_spill] sm:$0xff] }
 0x7e6   : > { %v10134_v51 = vpop.f32.mrb[106].mxu0  ;;  %v14440_v40 = vadd.f32 %v5353_v0, %v5337_v42 }
 0x7e7   : > { %vm5549_vm13 = vcmp.ge.f32.partialorder %v10134_v51, 0.0  ;;  %v5565_v14 = vmul.f32 0.01, %v10134_v51  ;;  %v5469_v2 = vpop.f32.mrb[107].mxu0  ;;  %v14442_v4 = vadd.f32 %v5352_v21, %v5336_v29 }
 0x7e8   : > { %16126 = vst [vmem:[#allocation8_spill] sm:$0xff] %v14440_v40  ;;  %vm5548_vm14 = vcmp.ge.f32.partialorder %v5469_v2, 0.0  ;;  %v5564_v9 = vmul.f32 0.01, %v5469_v2 }
 0x7e9   : > { %16127 = vst [vmem:[#allocation49_spill] sm:$0xff] %v14442_v4  ;;  %v5581_v1 = vsel %vm5549_vm13, %v10134_v51, %v5565_v14 }
 0x7ea   : > { %v5601_v54 = vmul.f32 %v14438_v55, %v5581_v1  ;;  %v5580_v44 = vsel %vm5548_vm14, %v5469_v2, %v5564_v9  ;;  %v10137_v46 = vpop.f32.mrb[108].mxu0 }
 0x7eb   : > { %v5600_v28 = vmul.f32 %v14438_v55, %v5580_v44  ;;  %vm5551_vm15 = vcmp.ge.f32.partialorder %v10137_v46, 0.0  ;;  %v5567_v33 = vmul.f32 0.01, %v10137_v46  ;;  %v5479_v31 = vpop.f32.mrb[109].mxu0 }
 0x7ec   : > { %v14447_v0 = vmax.f32 %v16128_v19, %v5601_v54  ;;  %vm5550_vm1 = vcmp.ge.f32.partialorder %v5479_v31, 0.0  ;;  %v5566_v42 = vmul.f32 0.01, %v5479_v31 }
 0x7ed   : > { %v14450_v29 = vmax.f32 %v16130_v26, %v5600_v28  ;;  %v5583_v21 = vsel %vm5551_vm15, %v10137_v46, %v5567_v33 }
 0x7ee   : > { %16129 = vst [vmem:[#allocation37_spill] sm:$0xff] %v14447_v0  ;;  %v5633_v51 = vsub.f32 %v16128_v19, %v14447_v0  ;;  %v5681_v14 = vsub.f32 %v5601_v54, %v14447_v0  ;;  %v5603_v2 = vmul.f32 %v14438_v55, %v5583_v21  ;;  %v5582_v9 = vsel %vm5550_vm1, %v5479_v31, %v5566_v42  ;;  %v10140_v1 = vpop.f32.mrb[110].mxu0  ;;  %v16133_v21 = vld [vmem:[#allocation24_spill] sm:$0xff] }
 0x7ef   : > { %16131 = vst [vmem:[#allocation21_spill] sm:$0xff] %v14450_v29  ;;  %v5632_v44 = vsub.f32 %v16130_v26, %v14450_v29  ;;  %v5680_v4 = vsub.f32 %v5600_v28, %v14450_v29  ;;  %v5602_v40 = vmul.f32 %v14438_v55, %v5582_v9  ;;  %vm5553_vm3 = vcmp.ge.f32.partialorder %v10140_v1, 0.0  ;;  %v5489_v34 = vpop.f32.mrb[111].mxu0 }
 0x7f0   : > { %v5650_v56 = vmul.f32 1.442695, %v5633_v51  ;;  %v5698_v46 = vmul.f32 1.442695, %v5681_v14  ;;  %v14461_v33 = vmax.f32 %v14058_v35, %v5603_v2  ;;  %v5569_v19 = vmul.f32 0.01, %v10140_v1 }
 0x7f1   : > { %v5648_v54 = vmul.f32 1.442695, %v5632_v44  ;;  %v5696_v0 = vmul.f32 1.442695, %v5680_v4  ;;  %v14464_v31 = vmax.f32 %v16133_v21, %v5602_v40  ;;  %vm5552_vm4 = vcmp.ge.f32.partialorder %v5489_v34, 0.0 }
 0x7f2   : > { %16132 = vst [vmem:[#allocation38_spill] sm:$0xff] %v14461_v33  ;;  %11216 = vpow2.f32 %v5650_v56  ;;  %v5635_v28 = vsub.f32 %v14058_v35, %v14461_v33  ;;  %v5683_v42 = vsub.f32 %v5603_v2, %v14461_v33  ;;  %v5585_v26 = vsel %vm5553_vm3, %v10140_v1, %v5569_v19  ;;  %v10143_v9 = vpop.f32.mrb[112].mxu0 }
 0x7f3   : > { %16134 = vst [vmem:[#allocation30_spill] sm:$0xff] %v14464_v31  ;;  %11218 = vpow2.f32 %v5698_v46  ;;  %v5634_v51 = vsub.f32 %v16133_v21, %v14464_v31  ;;  %v5682_v14 = vsub.f32 %v5602_v40, %v14464_v31  ;;  %v5605_v4 = vmul.f32 %v14438_v55, %v5585_v26  ;;  %v5499_v44 = vpop.f32.mrb[113].mxu0 }
 0x7f4   : > { %11220 = vpow2.f32 %v5648_v54  ;;  %v5654_v29 = vmul.f32 1.442695, %v5635_v28  ;;  %v5702_v12 = vmul.f32 1.442695, %v5683_v42  ;;  %v5568_v56 = vmul.f32 0.01, %v5489_v34 }
 0x7f5   : > { %11222 = vpow2.f32 %v5696_v0  ;;  %v5652_v62 = vmul.f32 1.442695, %v5634_v51  ;;  %v5700_v35 = vmul.f32 1.442695, %v5682_v14  ;;  %v14474_v2 = vmax.f32 %v16135_v58, %v5605_v4 }
 0x7f6   : > { %11224 = vpow2.f32 %v5654_v29  ;;  %v5584_v1 = vsel %vm5552_vm4, %v5489_v34, %v5568_v56  ;;  %vm5555_vm5 = vcmp.ge.f32.partialorder %v10143_v9, 0.0  ;;  %v5571_v46 = vmul.f32 0.01, %v10143_v9  ;;  %v10146_v19 = vpop.f32.mrb[114].mxu0  ;;  %v16137_v34 = vld [vmem:[#allocation12_spill] sm:$0xff] }
 0x7f7   : > { %16136 = vst [vmem:[#allocation36_spill] sm:$0xff] %v14474_v2  ;;  %11226 = vpow2.f32 %v5702_v12  ;;  %v5637_v40 = vsub.f32 %v16135_v58, %v14474_v2  ;;  %v5685_v54 = vsub.f32 %v5605_v4, %v14474_v2  ;;  %v5604_v21 = vmul.f32 %v14438_v55, %v5584_v1  ;;  %v5509_v0 = vpop.f32.mrb[115].mxu0 }
 0x7f8   : > { %11228 = vpow2.f32 %v5652_v62  ;;  %v5587_v28 = vsel %vm5555_vm5, %v10143_v9, %v5571_v46  ;;  %vm5554_vm6 = vcmp.ge.f32.partialorder %v5499_v44, 0.0  ;;  %v5570_v42 = vmul.f32 0.01, %v5499_v44  ;;  %v16139_v46 = vld [vmem:[#allocation13_spill] sm:$0xff] }
 0x7f9   : > { %11230 = vpow2.f32 %v5700_v35  ;;  %v5658_v29 = vmul.f32 1.442695, %v5637_v40  ;;  %v5706_v26 = vmul.f32 1.442695, %v5685_v54  ;;  %v14482_v51 = vmax.f32 %v16137_v34, %v5604_v21 }
 0x7fa   : > { %v5607_v12 = vmul.f32 %v14438_v55, %v5587_v28  ;;  %v5586_v14 = vsel %vm5554_vm6, %v5499_v44, %v5570_v42  ;;  %vm5557_vm7 = vcmp.ge.f32.partialorder %v10146_v19, 0.0  ;;  %v5573_v58 = vmul.f32 0.01, %v10146_v19  ;;  %v14485_v56 = vpop.f32.mrb[116].mxu0  ;;  %v16141_v28 = vld [vmem:[#allocation19_spill] sm:$0xff] }
 0x7fb   : > { %16138 = vst [vmem:[#allocation25_spill] sm:$0xff] %v14482_v51  ;;  %11232 = vpow2.f32 %v5658_v29  ;;  %v5636_v62 = vsub.f32 %v16137_v34, %v14482_v51  ;;  %v5684_v9 = vsub.f32 %v5604_v21, %v14482_v51  ;;  %v5606_v4 = vmul.f32 %v14438_v55, %v5586_v14  ;;  %v14491_v35 = vpop.f32.mrb[117].mxu0 }
 0x7fc   : > { %v11217_v1 = vpop.eup %11216  ;;  %11234 = vpow2.f32 %v5706_v26  ;;  %v14494_v40 = vmax.f32 %v16139_v46, %v5607_v12  ;;  %v5589_v44 = vsel %vm5557_vm7, %v10146_v19, %v5573_v58  ;;  %vm5556_vm8 = vcmp.ge.f32.partialorder %v5509_v0, 0.0 }
 0x7fd   : > { %v11219_v54 = vpop.eup %11218  ;;  %v5729_v42 = vmul.f32 %v11217_v1, %v16141_v28  ;;  %v5656_v29 = vmul.f32 1.442695, %v5636_v62  ;;  %v5704_v2 = vmul.f32 1.442695, %v5684_v9  ;;  %v14498_v34 = vmax.f32 %v14095_v5, %v5606_v4 }
 0x7fe   : > { %16140 = vst [vmem:[#allocation39_spill] sm:$0xff] %v14494_v40  ;;  %v11221_v21 = vpop.eup %11220  ;;  %v5639_v14 = vsub.f32 %v16139_v46, %v14494_v40  ;;  %v5687_v51 = vsub.f32 %v5607_v12, %v14494_v40  ;;  %v5609_v26 = vmul.f32 %v14438_v55, %v5589_v44  ;;  %v5572_v31 = vmul.f32 0.01, %v5509_v0  ;;  %v14504_v33 = vpop.f32.mrb[118].mxu0 }
 0x7ff   : > { %v11223_v19 = vpop.eup %11222  ;;  %v14506_v58 = vadd.f32 %v11219_v54, %v5729_v42  ;;  %v5728_v62 = vmul.f32 %v11221_v21, %v14114_v57  ;;  %11236 = vpow2.f32 %v5656_v29  ;;  %v5638_v9 = vsub.f32 %v14095_v5, %v14498_v34  ;;  %10158 = vmatprep.mubr.msk.f32.mxu1 %vm1635_vm0, %v11221_v21  ;;  %v14512_v28 = vpop.f32.mrb[119].mxu0 }
 0x800   : > { %v11225_v46 = vpop.eup %11224  ;;  %11238 = vpow2.f32 %v5704_v2  ;;  %v5662_v12 = vmul.f32 1.442695, %v5639_v14  ;;  %v5710_v44 = vmul.f32 1.442695, %v5687_v51  ;;  %v5686_v40 = vsub.f32 %v5606_v4, %v14498_v34  ;;  %10184 = vmatprep.mubr.msk.f32.mxu0 %vm1635_vm0, %v11223_v19  ;;  %10159 = vmatmul.mubr.msk.f32.vlgmr.msra.gmra.mrb[134].mxu1 %vm1635_vm0, %v11217_v1  ;;  %v16144_v2 = vld [vmem:[#allocation7_spill] sm:$0xff] }
 0x801   : > { %16142 = vst [vmem:[#allocation31_spill] sm:$0xff] %v14506_v58  ;;  %v11227_v42 = vpop.eup %11226  ;;  %v14517_v57 = vadd.f32 %v11223_v19, %v5728_v62  ;;  %v5731_v29 = vmul.f32 %v11225_v46, %v14134_v41  ;;  %v5660_v5 = vmul.f32 1.442695, %v5638_v9  ;;  %v16143_v58 = vld [vmem:[#allocation26_spill] sm:$0xff]  ;;  %10185 = vmatmul.mubr.msk.f32.vlgmr.msra.gmra.mrb[122].mxu0 %vm1635_vm0, %v11219_v54  ;;  %10709 = vmatpush3.bf16.msra.mxu1 %v16144_v2  ;;  %vm5559_vm9 = vcmp.ge.f32.partialorder %v14485_v56, 0.0 }
 0x802   : > { %v14521_v21 = vmax.f32 %v16143_v58, %v5609_v26  ;;  %v11229_v51 = vpop.eup %11228  ;;  %11240 = vpow2.f32 %v5662_v12  ;;  %v5708_v4 = vmul.f32 1.442695, %v5686_v40  ;;  %v5588_v14 = vsel %vm5556_vm8, %v5509_v0, %v5572_v31  ;;  %v14527_v1 = vpop.f32.mrb[120].mxu0  ;;  %10711 = vmatprep.subr.bf16.mxu1 %v16000_v30  ;;  %10265 = vmatpush3.msk.msra.mxu0 %vm1684_vm2, %v14130_v25 }
 0x803   : > { %v11231_v41 = vpop.eup %11230  ;;  %v14532_v19 = vadd.f32 %v11227_v42, %v5731_v29  ;;  %v5730_v54 = vmul.f32 %v11229_v51, %v14148_v61  ;;  %11242 = vpow2.f32 %v5710_v44  ;;  %10161 = vmatprep.mubr.msk.f32.mxu1 %vm1635_vm0, %v11229_v51  ;;  %v14538_v31 = vpop.f32.mrb[121].mxu0  ;;  %10739 = vmatprep.subr.bf16.mxu0 %v16144_v2  ;;  %v5608_v25 = vmul.f32 %v14438_v55, %v5588_v14  ;;  %v16145_v29 = vld [vmem:[#allocation14_spill] sm:$0xff]  ;;  %v16146_v51 = vld [vmem:[#allocation9_spill] sm:$0xff] }
 0x804   : > { %v5641_v40 = vsub.f32 %v16143_v58, %v14521_v21  ;;  %11244 = vpow2.f32 %v5660_v5  ;;  %v5689_v0 = vsub.f32 %v5609_v26, %v14521_v21  ;;  %v5575_v62 = vmul.f32 0.01, %v14485_v56  ;;  %10187 = vmatprep.mubr.msk.f32.mxu0 %vm1635_vm0, %v11231_v41  ;;  %10162 = vmatmul.mubr.msk.f32.gmra.mrb[136].mxu1 %vm1635_vm0, %v11225_v46 }
 0x805   : > { %v11233_v61 = vpop.eup %11232  ;;  %v14546_v9 = vadd.f32 %v11231_v41, %v5730_v54  ;;  %11246 = vpow2.f32 %v5708_v4  ;;  %vm5558_vm10 = vcmp.ge.f32.partialorder %v14491_v35, 0.0  ;;  %10188 = vmatmul.mubr.msk.f32.gmra.mrb[124].mxu0 %vm1635_vm0, %v11227_v42  ;;  %10713 = vmatpush3.bf16.msra.mxu1 %v16000_v30  ;;  %v14553_v5 = vmax.f32 %v16145_v29, %v5608_v25 }
 0x806   : > { %v5666_v58 = vmul.f32 1.442695, %v5641_v40  ;;  %v11235_v26 = vpop.eup %11234  ;;  %v5733_v12 = vmul.f32 %v11233_v61, %v14164_v27  ;;  %v5714_v44 = vmul.f32 1.442695, %v5689_v0  ;;  %v5591_v46 = vsel %vm5559_vm9, %v14485_v56, %v5575_v62  ;;  %10715 = vmatprep.subr.bf16.mxu1 %v16146_v51 }
 0x807   : > { %v5611_v4 = vmul.f32 %v14438_v55, %v5591_v46  ;;  %v5574_v42 = vmul.f32 0.01, %v14491_v35  ;;  %vm5561_vm11 = vcmp.ge.f32.partialorder %v14504_v33, 0.0  ;;  %v5640_v27 = vsub.f32 %v16145_v29, %v14553_v5 }
 0x808   : > { %11248 = vpow2.f32 %v5666_v58  ;;  %v14562_v14 = vadd.f32 %v11235_v26, %v5733_v12  ;;  %v5688_v41 = vsub.f32 %v5608_v25, %v14553_v5  ;;  %v5577_v0 = vmul.f32 0.01, %v14504_v33 }
 0x809   : > { %11250 = vpow2.f32 %v5714_v44  ;;  %v11237_v54 = vpop.eup %11236  ;;  %v14568_v56 = vmax.f32 %v14170_v10, %v5611_v4  ;;  %v5590_v40 = vsel %vm5558_vm10, %v14491_v35, %v5574_v42  ;;  %vm5560_vm12 = vcmp.ge.f32.partialorder %v14512_v28, 0.0  ;;  %10717 = vmatpush3.bf16.msra.mxu1 %v16146_v51 }
 0x80a   : > { %v11239_v62 = vpop.eup %11238  ;;  %v5732_v58 = vmul.f32 %v11237_v54, %v14191_v22  ;;  %v5664_v12 = vmul.f32 1.442695, %v5640_v27  ;;  %v5712_v44 = vmul.f32 1.442695, %v5688_v41  ;;  %v5610_v25 = vmul.f32 %v14438_v55, %v5590_v40  ;;  %10164 = vmatprep.mubr.msk.f32.mxu1 %vm1635_vm0, %v11237_v54  ;;  %10719 = vmatprep.subr.bf16.mxu1 %v16009_v53 }
 0x80b   : > { %v5643_v35 = vsub.f32 %v14170_v10, %v14568_v56  ;;  %v5691_v29 = vsub.f32 %v5611_v4, %v14568_v56  ;;  %v5593_v46 = vsel %vm5561_vm11, %v14504_v33, %v5577_v0  ;;  %v5576_v42 = vmul.f32 0.01, %v14512_v28  ;;  %10190 = vmatprep.mubr.msk.f32.mxu0 %vm1635_vm0, %v11239_v62  ;;  %10165 = vmatmul.mubr.msk.f32.gmra.mrb[138].mxu1 %vm1635_vm0, %v11233_v61 }
 0x80c   : > { %v11241_v22 = vpop.eup %11240  ;;  %v14589_v27 = vadd.f32 %v11239_v62, %v5732_v58  ;;  %11252 = vpow2.f32 %v5664_v12  ;;  %v14592_v41 = vmax.f32 %v14194_v38, %v5610_v25  ;;  %v5613_v10 = vmul.f32 %v14438_v55, %v5593_v46  ;;  %10191 = vmatmul.mubr.msk.f32.gmra.mrb[126].mxu0 %vm1635_vm0, %v11235_v26 }
 0x80d   : > { %v11243_v4 = vpop.eup %11242  ;;  %v5735_v33 = vmul.f32 %v11241_v22, %v14210_v49  ;;  %11254 = vpow2.f32 %v5712_v44  ;;  %v5670_v54 = vmul.f32 1.442695, %v5643_v35  ;;  %v5718_v40 = vmul.f32 1.442695, %v5691_v29  ;;  %10721 = vmatpush3.bf16.msra.mxu1 %v16009_v53 }
 0x80e   : > { %v11245_v61 = vpop.eup %11244  ;;  %v5642_v0 = vsub.f32 %v14194_v38, %v14592_v41  ;;  %v5690_v62 = vsub.f32 %v5610_v25, %v14592_v41  ;;  %v14602_v58 = vmax.f32 %v14204_v32, %v5613_v10  ;;  %v5592_v26 = vsel %vm5560_vm12, %v14512_v28, %v5576_v42  ;;  %10723 = vmatprep.subr.bf16.mxu1 %v15938_v23 }
 0x80f   : > { %v11247_v49 = vpop.eup %11246  ;;  %v14608_v12 = vadd.f32 %v11243_v4, %v5735_v33  ;;  %v5734_v44 = vmul.f32 %v11245_v61, %v14219_v11  ;;  %11256 = vpow2.f32 %v5670_v54  ;;  %v5612_v35 = vmul.f32 %v14438_v55, %v5592_v26  ;;  %10167 = vmatprep.mubr.msk.f32.mxu1 %vm1635_vm0, %v11245_v61 }
 0x810   : > { %11258 = vpow2.f32 %v5718_v40  ;;  %v5668_v38 = vmul.f32 1.442695, %v5642_v0  ;;  %v5716_v25 = vmul.f32 1.442695, %v5690_v62  ;;  %v5645_v29 = vsub.f32 %v14204_v32, %v14602_v58  ;;  %10193 = vmatprep.mubr.msk.f32.mxu0 %vm1635_vm0, %v11247_v49  ;;  %10168 = vmatmul.mubr.msk.f32.gmra.mrb[140].mxu1 %vm1635_vm0, %v11241_v22 }
 0x811   : > { %v14617_v46 = vadd.f32 %v11247_v49, %v5734_v44  ;;  %v5693_v11 = vsub.f32 %v5613_v10, %v14602_v58  ;;  %v14621_v42 = vmax.f32 %v14223_v63, %v5612_v35  ;;  %vm5563_vm13 = vcmp.ge.f32.partialorder %v14527_v1, 0.0  ;;  %10194 = vmatmul.mubr.msk.f32.gmra.mrb[128].mxu0 %vm1635_vm0, %v11243_v4  ;;  %10725 = vmatpush3.bf16.msra.mxu1 %v15938_v23 }
 0x812   : > { %v11249_v28 = vpop.eup %11248  ;;  %11260 = vpow2.f32 %v5668_v38  ;;  %v5674_v54 = vmul.f32 1.442695, %v5645_v29  ;;  %v5579_v22 = vmul.f32 0.01, %v14527_v1  ;;  %10727 = vmatprep.subr.bf16.mxu1 %v15941_v39  ;;  %vm5562_vm14 = vcmp.ge.f32.partialorder %v14538_v31, 0.0 }
 0x813   : > { %v11251_v33 = vpop.eup %11250  ;;  %v5737_v32 = vmul.f32 %v11249_v28, %v14234_v8  ;;  %11262 = vpow2.f32 %v5716_v25  ;;  %v5722_v10 = vmul.f32 1.442695, %v5693_v11  ;;  %v5644_v40 = vsub.f32 %v14223_v63, %v14621_v42 }
 0x814   : > { %v5692_v61 = vsub.f32 %v5612_v35, %v14621_v42  ;;  %11264 = vpow2.f32 %v5674_v54  ;;  %v5595_v4 = vsel %vm5563_vm13, %v14527_v1, %v5579_v22  ;;  %v5578_v44 = vmul.f32 0.01, %v14538_v31 }
 0x815   : > { %v14632_v0 = vadd.f32 %v11251_v33, %v5737_v32  ;;  %v5672_v62 = vmul.f32 1.442695, %v5644_v40  ;;  %v5615_v26 = vmul.f32 %v14438_v55, %v5595_v4  ;;  %10729 = vmatpush3.bf16.msra.mxu1 %v15941_v39  ;;  %11266 = vpow2.f32 %v5722_v10 }
 0x816   : > { %v5720_v8 = vmul.f32 1.442695, %v5692_v61  ;;  %v11253_v49 = vpop.eup %11252  ;;  %10731 = vmatprep.subr.bf16.mxu1 %v15942_v6  ;;  %v5594_v38 = vsel %vm5562_vm14, %v14538_v31, %v5578_v44 }
 0x817   : > { %v11255_v63 = vpop.eup %11254  ;;  %v5736_v35 = vmul.f32 %v11253_v49, %v14250_v36  ;;  %11268 = vpow2.f32 %v5672_v62  ;;  %v14642_v1 = vmax.f32 %v14244_v17, %v5615_v26  ;;  %10170 = vmatprep.mubr.msk.f32.mxu1 %vm1635_vm0, %v11253_v49  ;;  %v5614_v32 = vmul.f32 %v14438_v55, %v5594_v38  ;;  %v14678_v49 = vld [vmem:[%s15575_s4] sm:$0xf] }
 0x818   : > { %11270 = vpow2.f32 %v5720_v8  ;;  %10196 = vmatprep.mubr.msk.f32.mxu0 %vm1635_vm0, %v11255_v63  ;;  %10171 = vmatmul.mubr.msk.f32.gmra.mrb[142].mxu1 %vm1635_vm0, %v11249_v28 }
 0x819   : > { %v11257_v25 = vpop.eup %11256  ;;  %v14648_v29 = vadd.f32 %v11255_v63, %v5736_v35  ;;  %v5647_v11 = vsub.f32 %v14244_v17, %v14642_v1  ;;  %v5695_v36 = vsub.f32 %v5615_v26, %v14642_v1  ;;  %10197 = vmatmul.mubr.msk.f32.gmra.mrb[130].mxu0 %vm1635_vm0, %v11251_v33  ;;  %10733 = vmatpush3.bf16.msra.mxu1 %v15942_v6 }
 0x81a   : > { %v11259_v54 = vpop.eup %11258  ;;  %v5739_v22 = vmul.f32 %v11257_v25, %v14263_v18  ;;  %v14658_v28 = vmax.f32 %v14260_v3, %v5614_v32  ;;  %10735 = vmatprep.subr.bf16.mxu1 %v15944_v48 }
 0x81b   : > { %v5678_v31 = vmul.f32 1.442695, %v5647_v11  ;;  %v5726_v10 = vmul.f32 1.442695, %v5695_v36  ;;  %v14692_v11 = vld [vmem:[%s11988_s27 + $0x300] sm:$0xff] }
 0x81c   : > { %v11261_v40 = vpop.eup %11260  ;;  %v14661_v17 = vadd.f32 %v11259_v54, %v5739_v22  ;;  %v5646_v33 = vsub.f32 %v14260_v3, %v14658_v28  ;;  %v5694_v18 = vsub.f32 %v5614_v32, %v14658_v28  ;;  %16147 = vst [vmem:[#allocation10_spill] sm:$0xff] %v14692_v11 }
 0x81d   : > { %v11263_v61 = vpop.eup %11262  ;;  %v5738_v55 = vmul.f32 %v11261_v40, %v14272_v37  ;;  %11272 = vpow2.f32 %v5678_v31  ;;  %10173 = vmatprep.mubr.msk.f32.mxu1 %vm1635_vm0, %v11261_v40  ;;  %10737 = vmatpush3.bf16.msra.mxu1 %v15944_v48  ;;  %v14702_v31 = vld [vmem:[%s11988_s27 + $0x308] sm:$0xff]  ;;  %v14705_v40 = vld [vmem:[%s11988_s27 + $0x310] sm:$0xff] }
 0x81e   : > { %v11265_v4 = vpop.eup %11264  ;;  %11274 = vpow2.f32 %v5726_v10  ;;  %10199 = vmatprep.mubr.msk.f32.mxu0 %vm1635_vm0, %v11263_v61  ;;  %10174 = vmatmul.mubr.msk.f32.gmra.mrb[144].mxu1 %vm1635_vm0, %v11257_v25  ;;  %v5676_v26 = vmul.f32 1.442695, %v5646_v33  ;;  %v5724_v37 = vmul.f32 1.442695, %v5694_v18  ;;  %16148 = vst [vmem:[#allocation40_spill] sm:$0xff] %v14702_v31  ;;  %16149 = vst [vmem:[#allocation32_spill] sm:$0xff] %v14705_v40 }
 0x81f   : > { %v14670_v62 = vadd.f32 %v11263_v61, %v5738_v55  ;;  %v5741_v8 = vmul.f32 %v11265_v4, %v14279_v60  ;;  %10200 = vmatmul.mubr.msk.f32.gmra.mrb[132].mxu0 %vm1635_vm0, %v11259_v54  ;;  %v11267_v3 = vpop.eup %11266  ;;  %10290 = vmatprep.subr.msk.mxu1 %vm1684_vm2, %v14678_v49 }
 0x820   : > { %11276 = vpow2.f32 %v5676_v26  ;;  %v14726_v26 = vld [vmem:[%s11988_s27 + $0x320] sm:$0xff] }
 0x821   : > { %v11269_v44 = vpop.eup %11268  ;;  %v14682_v63 = vadd.f32 %v11267_v3, %v5741_v8  ;;  %11278 = vpow2.f32 %v5724_v37  ;;  %v14723_v8 = vld [vmem:[%s11988_s27 + $0x318] sm:$0xff]  ;;  %16151 = vst [vmem:[#allocation43_spill] sm:$0xff] %v14726_v26 }
 0x822   : > { %v11271_v60 = vpop.eup %11270  ;;  %v5740_v35 = vmul.f32 %v11269_v44, %v14285_v15  ;;  %10176 = vmatprep.mubr.msk.f32.mxu1 %vm1635_vm0, %v11269_v44  ;;  %v14697_v15 = vld [vmem:[#allocation2] sm:$0xff]  ;;  %16150 = vst [vmem:[#allocation20_spill] sm:$0xff] %v14723_v8  ;;  %v14728_v37 = vld [vmem:[#allocation2 + $0x18] sm:$0xff] }
 0x823   : > { %10202 = vmatprep.mubr.msk.f32.mxu0 %vm1635_vm0, %v11271_v60  ;;  %10177 = vmatmul.mubr.msk.f32.gmra.mrb[146].mxu1 %vm1635_vm0, %v11265_v4  ;;  %v6211_v22 = vmul.f32 %v14697_v15, %v14692_v11  ;;  %v14718_v4 = vld [vmem:[#allocation2 + $0x10] sm:$0xff]  ;;  %v14732_v44 = vld [vmem:[#allocation2 + $0x20] sm:$0xff] }
 0x824   : > { %v14688_v38 = vadd.f32 %v11271_v60, %v5740_v35  ;;  %10203 = vmatmul.mubr.msk.f32.gmra.mrb[134].mxu0 %vm1635_vm0, %v11267_v3  ;;  %v6214_v3 = vmul.f32 %v14728_v37, %v14723_v8  ;;  %v6215_v60 = vmul.f32 %v14732_v44, %v14726_v26  ;;  %v14737_v35 = vld [vmem:[%s11988_s27 + $0x328] sm:$0xff]  ;;  %v8820_v26 = vld [vmem:[%s11988_s27 + $0x350] sm:$0xff] }
 0x825   : > { %16152 = vst [vmem:[#allocation17_spill] sm:$0xff] %v14737_v35  ;;  %v8824_v11 = vld [vmem:[%s11988_s27 + $0x370] sm:$0xff] }
 0x827   : > { %v11273_v25 = vpop.eup %11272 }
 0x828   : > { %v11275_v36 = vpop.eup %11274  ;;  %v5743_v32 = vmul.f32 %v11273_v25, %v14292_v59  ;;  %v14711_v59 = vld [vmem:[#allocation2 + $0x8] sm:$0xff] }
 0x829   : > { %v6212_v33 = vmul.f32 %v14711_v59, %v14702_v31 }
 0x82a   : > { %v14695_v54 = vadd.f32 %v11275_v36, %v5743_v32  ;;  %v11277_v10 = vpop.eup %11276 }
 0x82b   : > { %v11279_v61 = vpop.eup %11278  ;;  %v5742_v55 = vmul.f32 %v11277_v10, %v14308_v20  ;;  %10179 = vmatprep.mubr.msk.f32.mxu1 %vm1635_vm0, %v11277_v10  ;;  %v6213_v20 = vmul.f32 %v14718_v4, %v14705_v40  ;;  %v8822_v40 = vld [vmem:[%s11988_s27 + $0x360] sm:$0xff] }
 0x82c   : > { %10205 = vmatprep.mubr.msk.f32.mxu0 %vm1635_vm0, %v11279_v61  ;;  %10180 = vmatmul.mubr.msk.f32.gmra.mrb[148].mxu1 %vm1635_vm0, %v11273_v25  ;;  %v14742_v25 = vld [vmem:[%s11988_s27 + $0x330] sm:$0xff]  ;;  %v6223_v8 = vmul.f32 %v14361_v52, %v8822_v40 }
 0x82d   : > { %v14715_v18 = vadd.f32 %v11279_v61, %v5742_v55  ;;  %10206 = vmatmul.mubr.msk.f32.gmra.mrb[136].mxu0 %vm1635_vm0, %v11275_v36  ;;  %10240 = vmatprep.mubr.f32.mxu1 %v6211_v22  ;;  %16153 = vst [vmem:[#allocation11_spill] sm:$0xff] %v14742_v25  ;;  %v14746_v36 = vld [vmem:[#allocation2 + $0x28] sm:$0xff]  ;;  %v14750_v22 = vld [vmem:[#allocation2 + $0x30] sm:$0xff]  ;;  %v14755_v61 = vld [vmem:[%s11988_s27 + $0x338] sm:$0xff] }
 0x82e   : > { %16154 = vst [vmem:[#allocation42_spill] sm:$0xff] %v14746_v36  ;;  %v6216_v32 = vmul.f32 %v14746_v36, %v14737_v35  ;;  %16155 = vst [vmem:[#allocation41_spill] sm:$0xff] %v14750_v22  ;;  %v6217_v10 = vmul.f32 %v14750_v22, %v14742_v25  ;;  %v14758_v55 = vld [vmem:[%s11988_s27 + $0x340] sm:$0xff]  ;;  %v14769_v25 = vld [vmem:[%s11988_s27 + $0x348] sm:$0xff] }
 0x82f   : > { %16156 = vst [vmem:[#allocation23_spill] sm:$0xff] %v14755_v61  ;;  %16157 = vst [vmem:[#allocation44_spill] sm:$0xff] %v14758_v55  ;;  %v14772_v35 = vld [vmem:[#allocation2 + $0x48] sm:$0xff] }
 0x830   : > { %10241 = vmatmul.mubr.f32.vlgmr.msra.gmra.mrb[150].mxu1 %v6212_v33  ;;  %v14760_v33 = vld [vmem:[#allocation2 + $0x38] sm:$0xff]  ;;  %16160 = vst [vmem:[#allocation12_spill] sm:$0xff] %v14769_v25  ;;  %16161 = vst [vmem:[#allocation13_spill] sm:$0xff] %v14772_v35  ;;  %v16213_v36 = vld [vmem:[#allocation36_spill] sm:$0xff] }
 0x831   : > { %10243 = vmatprep.mubr.f32.mxu1 %v6213_v20  ;;  %10291 = vmatpush3.msk.msra.mxu1 %vm1684_vm2, %v14678_v49  ;;  %16158 = vst [vmem:[#allocation24_spill] sm:$0xff] %v14760_v33  ;;  %v6218_v20 = vmul.f32 %v14760_v33, %v14755_v61  ;;  %v14778_v61 = vld [vmem:[%s11988_s27 + $0x358] sm:$0xff] }
 0x832   : > { %10372 = vmatprep.subr.msk.mxu1 %vm1684_vm2, %v14678_v49  ;;  %16162 = vst [vmem:[#allocation19_spill] sm:$0xff] %v14778_v61 }
 0x834   : > { %10244 = vmatmul.mubr.f32.gmra.mrb[152].mxu1 %v6214_v3  ;;  %v14764_v3 = vld [vmem:[#allocation2 + $0x40] sm:$0xff] }
 0x835   : > { %10246 = vmatprep.mubr.f32.mxu1 %v6215_v60  ;;  %16159 = vst [vmem:[#allocation18_spill] sm:$0xff] %v14764_v3  ;;  %v6219_v60 = vmul.f32 %v14764_v3, %v14758_v55  ;;  %v6222_v55 = vmul.f32 %v14357_v24, %v14778_v61 }
 0x838   : > { %10247 = vmatmul.mubr.f32.gmra.mrb[154].mxu1 %v6216_v32  ;;  %v6220_v32 = vmul.f32 %v14772_v35, %v14769_v25 }
 0x839   : > { %10249 = vmatprep.mubr.f32.mxu1 %v6217_v10  ;;  %v6221_v10 = vmul.f32 %v14350_v50, %v8820_v26  ;;  %v6225_v50 = vmul.f32 %v14369_v45, %v8824_v11  ;;  %v8825_v26 = vld [vmem:[%s11988_s27 + $0x378] sm:$0xff]  ;;  %v16166_v11 = vld [vmem:[#allocation53_spill] sm:$0xff] }
 0x83c   : > { %10250 = vmatmul.mubr.f32.gmra.mrb[156].mxu1 %v6218_v20  ;;  %v14785_v20 = vld [vmem:[%s11988_s27 + $0x368] sm:$0xff] }
 0x83d   : > { %10252 = vmatprep.mubr.f32.mxu1 %v6219_v60  ;;  %16163 = vst [vmem:[#allocation26_spill] sm:$0xff] %v14785_v20  ;;  %v6224_v25 = vmul.f32 %v14366_v13, %v14785_v20  ;;  %v6226_v60 = vmul.f32 %v14373_v47, %v8825_v26  ;;  %v16164_v13 = vld [vmem:[#allocation22_spill] sm:$0xff] }
 0x840   : > { %10253 = vmatmul.mubr.f32.gmra.mrb[158].mxu1 %v6220_v32 }
 0x841   : > { %10255 = vmatprep.mubr.f32.mxu1 %v6221_v10 }
 0x844   : > { %10256 = vmatmul.mubr.f32.gmra.mrb[160].mxu1 %v6222_v55 }
 0x845   : > { %10258 = vmatprep.mubr.f32.mxu1 %v6223_v8 }
 0x848   : > { %10259 = vmatmul.mubr.f32.gmra.mrb[162].mxu1 %v6224_v25 }
 0x849   : > { %10261 = vmatprep.mubr.f32.mxu1 %v6225_v50 }
 0x84c   : > { %10262 = vmatmul.mubr.f32.gmra.mrb[164].mxu1 %v6226_v60  ;;  %v16168_v60 = vld [vmem:[#allocation28_spill] sm:$0xff] }
 0x8d3   : > { %v10160_v24 = vpop.f32.mrb[134].mxu1 }
 0x8d4   : > { %v6147_v32 = vmul.f32 %v10160_v24, %v14380_v16  ;;  %v10186_v52 = vpop.f32.mrb[122].mxu0  ;;  %v5874_v40 = vpop.f32.mrb[135].mxu1  ;;  %v16169_v24 = vld [vmem:[#allocation27_spill] sm:$0xff] }
 0x8d5   : > { %v6163_v10 = vmul.f32 %v10186_v52, %v14297_v7  ;;  %v6146_v55 = vmul.f32 %v5874_v40, %v14383_v43  ;;  %v6067_v61 = vpop.f32.mrb[123].mxu0  ;;  %v16170_v7 = vld [vmem:[#allocation50_spill] sm:$0xff] }
 0x8d6   : > { %v6162_v8 = vmul.f32 %v16164_v13, %v6067_v61 }
 0x8d7   : > { %v10163_v20 = vpop.f32.mrb[136].mxu1  ;;  %v14797_v45 = vadd.f32 %v6163_v10, %v6147_v32  ;;  %v16173_v32 = vld [vmem:[#allocation56_spill] sm:$0xff] }
 0x8d8   : > { %v6149_v25 = vmul.f32 %v10163_v20, %v16166_v11  ;;  %v10189_v47 = vpop.f32.mrb[124].mxu0  ;;  %v5884_v50 = vpop.f32.mrb[137].mxu1  ;;  %v14800_v26 = vadd.f32 %v6162_v8, %v6146_v55  ;;  %v16174_v11 = vld [vmem:[#allocation29_spill] sm:$0xff]  ;;  %v16175_v55 = vld [vmem:[#allocation55_spill] sm:$0xff] }
 0x8d9   : > { %16165 = vst [vmem:[#allocation7_spill] sm:$0xff] %v14797_v45  ;;  %v6165_v16 = vmul.f32 %v10189_v47, %v16168_v60  ;;  %v6148_v31 = vmul.f32 %v5884_v50, %v16169_v24  ;;  %v6077_v35 = vpop.f32.mrb[125].mxu0  ;;  %v16176_v47 = vld [vmem:[#allocation52_spill] sm:$0xff] }
 0x8da   : > { %16167 = vst [vmem:[#allocation14_spill] sm:$0xff] %v14800_v26  ;;  %v6164_v52 = vmul.f32 %v16170_v7, %v6077_v35 }
 0x8db   : > { %v14805_v43 = vadd.f32 %v6165_v16, %v6149_v25  ;;  %v16179_v25 = vld [vmem:[#allocation47_spill] sm:$0xff] }
 0x8dc   : > { %v14807_v40 = vadd.f32 %v6164_v52, %v6148_v31  ;;  %v16180_v52 = vld [vmem:[#allocation59_spill] sm:$0xff] }
 0x8dd   : > { %16171 = vst [vmem:[#allocation9_spill] sm:$0xff] %v14805_v43 }
 0x8de   : > { %16172 = vst [vmem:[#allocation22_spill] sm:$0xff] %v14807_v40  ;;  %v10166_v61 = vpop.f32.mrb[138].mxu1 }
 0x8df   : > { %v6151_v10 = vmul.f32 %v10166_v61, %v16173_v32  ;;  %v10192_v13 = vpop.f32.mrb[126].mxu0  ;;  %v5894_v20 = vpop.f32.mrb[139].mxu1  ;;  %v16181_v32 = vld [vmem:[#allocation58_spill] sm:$0xff] }
 0x8e0   : > { %v6167_v45 = vmul.f32 %v10192_v13, %v16174_v11  ;;  %v6150_v8 = vmul.f32 %v5894_v20, %v16175_v55  ;;  %v6087_v26 = vpop.f32.mrb[127].mxu0  ;;  %v16182_v11 = vld [vmem:[#allocation51_spill] sm:$0xff] }
 0x8e1   : > { %v6166_v60 = vmul.f32 %v16176_v47, %v6087_v26 }
 0x8e2   : > { %v14813_v50 = vadd.f32 %v6167_v45, %v6151_v10  ;;  %v16185_v10 = vld [vmem:[#allocation33_spill] sm:$0xff] }
 0x8e3   : > { %v10169_v24 = vpop.f32.mrb[140].mxu1  ;;  %v14815_v35 = vadd.f32 %v6166_v60, %v6150_v8 }
 0x8e4   : > { %16177 = vst [vmem:[#allocation53_spill] sm:$0xff] %v14813_v50  ;;  %v6153_v31 = vmul.f32 %v10169_v24, %v16179_v25  ;;  %v10195_v16 = vpop.f32.mrb[128].mxu0  ;;  %v5904_v7 = vpop.f32.mrb[141].mxu1  ;;  %v16186_v24 = vld [vmem:[#allocation54_spill] sm:$0xff] }
 0x8e5   : > { %16178 = vst [vmem:[#allocation28_spill] sm:$0xff] %v14815_v35  ;;  %v6169_v61 = vmul.f32 %v10195_v16, %v16180_v52  ;;  %v6152_v40 = vmul.f32 %v5904_v7, %v16181_v32  ;;  %v6097_v13 = vpop.f32.mrb[129].mxu0  ;;  %v16187_v35 = vld [vmem:[#allocation48_spill] sm:$0xff]  ;;  %v11500_v52 = vld [vmem:[%s11988_s27 + $0x2c0] sm:$0xff] }
 0x8e6   : > { %v6168_v20 = vmul.f32 %v16182_v11, %v6097_v13 }
 0x8e7   : > { %v14821_v55 = vadd.f32 %v6169_v61, %v6153_v31  ;;  %v16190_v31 = vld [vmem:[#allocation34_spill] sm:$0xff] }
 0x8e8   : > { %v14823_v26 = vadd.f32 %v6168_v20, %v6152_v40 }
 0x8e9   : > { %16183 = vst [vmem:[#allocation27_spill] sm:$0xff] %v14821_v55 }
 0x8ea   : > { %16184 = vst [vmem:[#allocation50_spill] sm:$0xff] %v14823_v26  ;;  %v16192_v26 = vld [vmem:[#allocation57_spill] sm:$0xff] }
 0x8eb   : > { %v10172_v45 = vpop.f32.mrb[142].mxu1 }
 0x8ec   : > { %v6155_v8 = vmul.f32 %v10172_v45, %v16185_v10  ;;  %v10198_v47 = vpop.f32.mrb[130].mxu0  ;;  %v5914_v60 = vpop.f32.mrb[143].mxu1  ;;  %v16191_v45 = vld [vmem:[#allocation46_spill] sm:$0xff] }
 0x8ed   : > { %v6171_v25 = vmul.f32 %v10198_v47, %v16186_v24  ;;  %v6154_v50 = vmul.f32 %v5914_v60, %v16187_v35  ;;  %v6107_v16 = vpop.f32.mrb[131].mxu0  ;;  %v11501_v35 = vld [vmem:[%s11988_s27 + $0x2d0] sm:$0xff] }
 0x8ee   : > { %v6170_v7 = vmul.f32 %v11500_v52, %v6107_v16 }
 0x8ef   : > { %v14829_v32 = vadd.f32 %v6171_v25, %v6155_v8 }
 0x8f0   : > { %v14831_v13 = vadd.f32 %v6170_v7, %v6154_v50  ;;  %v16195_v50 = vld [vmem:[#allocation35_spill] sm:$0xff] }
 0x8f1   : > { %16188 = vst [vmem:[#allocation56_spill] sm:$0xff] %v14829_v32  ;;  %v10175_v40 = vpop.f32.mrb[144].mxu1 }
 0x8f2   : > { %16189 = vst [vmem:[#allocation29_spill] sm:$0xff] %v14831_v13  ;;  %v6157_v61 = vmul.f32 %v10175_v40, %v16190_v31  ;;  %v10201_v11 = vpop.f32.mrb[132].mxu0  ;;  %v5924_v20 = vpop.f32.mrb[145].mxu1  ;;  %v11502_v40 = vld [vmem:[%s11988_s27 + $0x2e8] sm:$0xff]  ;;  %v16196_v13 = vld [vmem:[#allocation45_spill] sm:$0xff] }
 0x8f3   : > { %v6173_v10 = vmul.f32 %v10201_v11, %v16191_v45  ;;  %v6156_v47 = vmul.f32 %v5924_v20, %v16192_v26  ;;  %v6117_v24 = vpop.f32.mrb[133].mxu0  ;;  %v11503_v26 = vld [vmem:[%s11988_s27 + $0x2e0] sm:$0xff] }
 0x8f4   : > { %v6172_v60 = vmul.f32 %v11501_v35, %v6117_v24 }
 0x8f5   : > { %v14837_v55 = vadd.f32 %v6173_v10, %v6157_v61 }
 0x8f6   : > { %v10178_v8 = vpop.f32.mrb[146].mxu1  ;;  %v14839_v25 = vadd.f32 %v6172_v60, %v6156_v47  ;;  %v16199_v47 = vld [vmem:[#allocation16_spill] sm:$0xff] }
 0x8f7   : > { %16193 = vst [vmem:[#allocation55_spill] sm:$0xff] %v14837_v55  ;;  %v6159_v16 = vmul.f32 %v10178_v8, %v16195_v50  ;;  %v10204_v52 = vpop.f32.mrb[134].mxu0  ;;  %v5934_v7 = vpop.f32.mrb[147].mxu1  ;;  %v6422_v35 = vsub.s32 6, %v16199_v47  ;;  %v16200_v60 = vld [vmem:[#allocation8_spill] sm:$0xff]  ;;  %v11504_v55 = vld [vmem:[%s11988_s27 + $0x2f8] sm:$0xff] }
 0x8f8   : > { %16194 = vst [vmem:[#allocation52_spill] sm:$0xff] %v14839_v25  ;;  %v6175_v31 = vmul.f32 %v11502_v40, %v10204_v52  ;;  %v6158_v11 = vmul.f32 %v5934_v7, %v16196_v13  ;;  %v6127_v45 = vpop.f32.mrb[135].mxu0  ;;  %v16201_v40 = vld [vmem:[#allocation49_spill] sm:$0xff] }
 0x8f9   : > { %v6174_v20 = vmul.f32 %v11503_v26, %v6127_v45  ;;  %v11505_v7 = vld [vmem:[%s11988_s27 + $0x2f0] sm:$0xff]  ;;  %v14855_v45 = vld [vmem:[%s11976_s19] sm:$0xff] }
 0x8fa   : > { %v14845_v24 = vadd.f32 %v6175_v31, %v6159_v16  ;;  %16202 = vst [vmem:[#allocation58_spill] sm:$0xff] %v14855_v45  ;;  %v14858_v16 = vrot.slane %v14855_v45, %v6422_v35  ;;  %v16207_v45 = vld [vmem:[#allocation21_spill] sm:$0xff] }
 0x8fb   : > { %v14847_v61 = vadd.f32 %v6174_v20, %v6158_v11 }
 0x8fc   : > { %16197 = vst [vmem:[#allocation47_spill] sm:$0xff] %v14845_v24 }
 0x8fd   : > { %16198 = vst [vmem:[#allocation59_spill] sm:$0xff] %v14847_v61 }
 0x8ff   : > { %v10181_v10 = vpop.f32.mrb[148].mxu1 }
 0x900   : > { %v6161_v8 = vmul.f32 %v10181_v10, %v16200_v60  ;;  %v10207_v50 = vpop.f32.mrb[136].mxu0  ;;  %v5944_v25 = vpop.f32.mrb[149].mxu1 }
 0x901   : > { %v6177_v52 = vmul.f32 %v11504_v55, %v10207_v50  ;;  %v6160_v32 = vmul.f32 %v5944_v25, %v16201_v40  ;;  %v6137_v13 = vpop.f32.mrb[137].mxu0 }
 0x902   : > { %v6176_v43 = vmul.f32 %v11505_v7, %v6137_v13  ;;  %v16205_v7 = vld [vmem:[#allocation37_spill] sm:$0xff] }
 0x903   : > { %v10242_v3 = vpop.f32.mrb[150].mxu1  ;;  %v14860_v31 = vadd.f32 %v6177_v52, %v6161_v8 }
 0x904   : > { %vm6373_vm15 = vcmp.ge.f32.partialorder %v10242_v3, 0.0  ;;  %v6389_v11 = vmul.f32 0.01, %v10242_v3  ;;  %v6293_v26 = vpop.f32.mrb[151].mxu1  ;;  %v14862_v20 = vadd.f32 %v6176_v43, %v6160_v32 }
 0x905   : > { %16203 = vst [vmem:[#allocation51_spill] sm:$0xff] %v14860_v31  ;;  %vm6372_vm1 = vcmp.ge.f32.partialorder %v6293_v26, 0.0  ;;  %v6388_v55 = vmul.f32 0.01, %v6293_v26 }
 0x906   : > { %16204 = vst [vmem:[#allocation33_spill] sm:$0xff] %v14862_v20  ;;  %v6405_v10 = vsel %vm6373_vm15, %v10242_v3, %v6389_v11 }
 0x907   : > { %v6425_v25 = vmul.f32 %v14858_v16, %v6405_v10  ;;  %v6404_v60 = vsel %vm6372_vm1, %v6293_v26, %v6388_v55  ;;  %v10245_v50 = vpop.f32.mrb[152].mxu1 }
 0x908   : > { %v6424_v40 = vmul.f32 %v14858_v16, %v6404_v60  ;;  %vm6375_vm3 = vcmp.ge.f32.partialorder %v10245_v50, 0.0  ;;  %v6391_v13 = vmul.f32 0.01, %v10245_v50  ;;  %v6303_v35 = vpop.f32.mrb[153].mxu1 }
 0x909   : > { %v14867_v8 = vmax.f32 %v16205_v7, %v6425_v25  ;;  %vm6374_vm4 = vcmp.ge.f32.partialorder %v6303_v35, 0.0  ;;  %v6390_v52 = vmul.f32 0.01, %v6303_v35 }
 0x90a   : > { %v14870_v43 = vmax.f32 %v16207_v45, %v6424_v40  ;;  %v6407_v32 = vsel %vm6375_vm3, %v10245_v50, %v6391_v13  ;;  %v16209_v13 = vld [vmem:[#allocation38_spill] sm:$0xff] }
 0x90b   : > { %16206 = vst [vmem:[#allocation54_spill] sm:$0xff] %v14867_v8  ;;  %v6457_v3 = vsub.f32 %v16205_v7, %v14867_v8  ;;  %v6505_v11 = vsub.f32 %v6425_v25, %v14867_v8  ;;  %v6427_v26 = vmul.f32 %v14858_v16, %v6407_v32  ;;  %v6406_v55 = vsel %vm6374_vm4, %v6303_v35, %v6390_v52  ;;  %v10248_v10 = vpop.f32.mrb[154].mxu1  ;;  %v16211_v32 = vld [vmem:[#allocation30_spill] sm:$0xff] }
 0x90c   : > { %16208 = vst [vmem:[#allocation48_spill] sm:$0xff] %v14870_v43  ;;  %v6456_v60 = vsub.f32 %v16207_v45, %v14870_v43  ;;  %v6504_v20 = vsub.f32 %v6424_v40, %v14870_v43  ;;  %v6426_v31 = vmul.f32 %v14858_v16, %v6406_v55  ;;  %vm6377_vm5 = vcmp.ge.f32.partialorder %v10248_v10, 0.0  ;;  %v6313_v47 = vpop.f32.mrb[155].mxu1 }
 0x90d   : > { %v6474_v61 = vmul.f32 1.442695, %v6457_v3  ;;  %v6522_v50 = vmul.f32 1.442695, %v6505_v11  ;;  %v14881_v24 = vmax.f32 %v16209_v13, %v6427_v26  ;;  %v6393_v7 = vmul.f32 0.01, %v10248_v10 }
 0x90e   : > { %v6472_v25 = vmul.f32 1.442695, %v6456_v60  ;;  %v6520_v8 = vmul.f32 1.442695, %v6504_v20  ;;  %v14884_v35 = vmax.f32 %v16211_v32, %v6426_v31  ;;  %vm6376_vm6 = vcmp.ge.f32.partialorder %v6313_v47, 0.0 }
 0x90f   : > { %16210 = vst [vmem:[#allocation34_spill] sm:$0xff] %v14881_v24  ;;  %11280 = vpow2.f32 %v6474_v61  ;;  %v6459_v45 = vsub.f32 %v16209_v13, %v14881_v24  ;;  %v6507_v40 = vsub.f32 %v6427_v26, %v14881_v24  ;;  %v6409_v52 = vsel %vm6377_vm5, %v10248_v10, %v6393_v7  ;;  %v10251_v55 = vpop.f32.mrb[156].mxu1 }
 0x910   : > { %16212 = vst [vmem:[#allocation46_spill] sm:$0xff] %v14884_v35  ;;  %11282 = vpow2.f32 %v6522_v50  ;;  %v6458_v3 = vsub.f32 %v16211_v32, %v14884_v35  ;;  %v6506_v11 = vsub.f32 %v6426_v31, %v14884_v35  ;;  %v6429_v20 = vmul.f32 %v14858_v16, %v6409_v52  ;;  %v6323_v60 = vpop.f32.mrb[157].mxu1 }
 0x911   : > { %11284 = vpow2.f32 %v6472_v25  ;;  %v6478_v43 = vmul.f32 1.442695, %v6459_v45  ;;  %v6526_v33 = vmul.f32 1.442695, %v6507_v40  ;;  %v6392_v61 = vmul.f32 0.01, %v6313_v47 }
 0x912   : > { %11286 = vpow2.f32 %v6520_v8  ;;  %v6476_v22 = vmul.f32 1.442695, %v6458_v3  ;;  %v6524_v13 = vmul.f32 1.442695, %v6506_v11  ;;  %v14894_v26 = vmax.f32 %v16213_v36, %v6429_v20 }
 0x913   : > { %11288 = vpow2.f32 %v6478_v43  ;;  %v6408_v10 = vsel %vm6376_vm6, %v6313_v47, %v6392_v61  ;;  %vm6379_vm7 = vcmp.ge.f32.partialorder %v10251_v55, 0.0  ;;  %v6395_v50 = vmul.f32 0.01, %v10251_v55  ;;  %v10254_v7 = vpop.f32.mrb[158].mxu1  ;;  %v16215_v47 = vld [vmem:[#allocation25_spill] sm:$0xff] }
 0x914   : > { %16214 = vst [vmem:[#allocation57_spill] sm:$0xff] %v14894_v26  ;;  %11290 = vpow2.f32 %v6526_v33  ;;  %v6461_v31 = vsub.f32 %v16213_v36, %v14894_v26  ;;  %v6509_v25 = vsub.f32 %v6429_v20, %v14894_v26  ;;  %v6428_v32 = vmul.f32 %v14858_v16, %v6408_v10  ;;  %v6333_v8 = vpop.f32.mrb[159].mxu1 }
 0x915   : > { %11292 = vpow2.f32 %v6476_v22  ;;  %v6411_v45 = vsel %vm6379_vm7, %v10251_v55, %v6395_v50  ;;  %vm6378_vm8 = vcmp.ge.f32.partialorder %v6323_v60, 0.0  ;;  %v6394_v40 = vmul.f32 0.01, %v6323_v60  ;;  %v16217_v50 = vld [vmem:[#allocation39_spill] sm:$0xff] }
 0x916   : > { %11294 = vpow2.f32 %v6524_v13  ;;  %v6482_v43 = vmul.f32 1.442695, %v6461_v31  ;;  %v6530_v52 = vmul.f32 1.442695, %v6509_v25  ;;  %v14902_v3 = vmax.f32 %v16215_v47, %v6428_v32 }
 0x917   : > { %v6431_v33 = vmul.f32 %v14858_v16, %v6411_v45  ;;  %v6410_v11 = vsel %vm6378_vm8, %v6323_v60, %v6394_v40  ;;  %vm6381_vm9 = vcmp.ge.f32.partialorder %v10254_v7, 0.0  ;;  %v6397_v36 = vmul.f32 0.01, %v10254_v7  ;;  %v14905_v61 = vpop.f32.mrb[160].mxu1  ;;  %v16219_v45 = vld [vmem:[#allocation31_spill] sm:$0xff] }
 0x918   : > { %16216 = vst [vmem:[#allocation35_spill] sm:$0xff] %v14902_v3  ;;  %11296 = vpow2.f32 %v6482_v43  ;;  %v6460_v22 = vsub.f32 %v16215_v47, %v14902_v3  ;;  %v6508_v55 = vsub.f32 %v6428_v32, %v14902_v3  ;;  %v6430_v20 = vmul.f32 %v14858_v16, %v6410_v11  ;;  %v14911_v13 = vpop.f32.mrb[161].mxu1 }
 0x919   : > { %v11281_v10 = vpop.eup %11280  ;;  %11298 = vpow2.f32 %v6530_v52  ;;  %v14914_v31 = vmax.f32 %v16217_v50, %v6431_v33  ;;  %v6413_v60 = vsel %vm6381_vm9, %v10254_v7, %v6397_v36  ;;  %vm6380_vm10 = vcmp.ge.f32.partialorder %v6333_v8, 0.0 }
 0x91a   : > { %v11283_v25 = vpop.eup %11282  ;;  %v6553_v40 = vmul.f32 %v11281_v10, %v16219_v45  ;;  %v6480_v43 = vmul.f32 1.442695, %v6460_v22  ;;  %v6528_v26 = vmul.f32 1.442695, %v6508_v55  ;;  %v14918_v47 = vmax.f32 %v14498_v34, %v6430_v20 }
 0x91b   : > { %16218 = vst [vmem:[#allocation45_spill] sm:$0xff] %v14914_v31  ;;  %v11285_v32 = vpop.eup %11284  ;;  %v6463_v11 = vsub.f32 %v16217_v50, %v14914_v31  ;;  %v6511_v3 = vsub.f32 %v6431_v33, %v14914_v31  ;;  %v6433_v52 = vmul.f32 %v14858_v16, %v6413_v60  ;;  %v6396_v35 = vmul.f32 0.01, %v6333_v8  ;;  %v14924_v24 = vpop.f32.mrb[162].mxu1 }
 0x91c   : > { %v11287_v7 = vpop.eup %11286  ;;  %v14926_v36 = vadd.f32 %v11283_v25, %v6553_v40  ;;  %v6552_v22 = vmul.f32 %v11285_v32, %v14517_v57  ;;  %11300 = vpow2.f32 %v6480_v43  ;;  %v6462_v55 = vsub.f32 %v14498_v34, %v14918_v47  ;;  %10266 = vmatprep.mubr.msk.f32.mxu0 %vm1635_vm0, %v11285_v32  ;;  %v14932_v45 = vpop.f32.mrb[163].mxu1 }
 0x91d   : > { %v11289_v50 = vpop.eup %11288  ;;  %11302 = vpow2.f32 %v6528_v26  ;;  %v6486_v33 = vmul.f32 1.442695, %v6463_v11  ;;  %v6534_v60 = vmul.f32 1.442695, %v6511_v3  ;;  %v6510_v31 = vsub.f32 %v6430_v20, %v14918_v47  ;;  %10292 = vmatprep.mubr.msk.f32.mxu1 %vm1635_vm0, %v11287_v7  ;;  %10267 = vmatmul.mubr.msk.f32.vlgmr.msra.gmra.mrb[138].mxu0 %vm1635_vm0, %v11281_v10 }
 0x91e   : > { %v11291_v40 = vpop.eup %11290  ;;  %v14937_v57 = vadd.f32 %v11287_v7, %v6552_v22  ;;  %v6555_v43 = vmul.f32 %v11289_v50, %v14532_v19  ;;  %v6484_v34 = vmul.f32 1.442695, %v6462_v55  ;;  %v14941_v32 = vmax.f32 %v14521_v21, %v6433_v52  ;;  %10293 = vmatmul.mubr.msk.f32.vlgmr.msra.gmra.mrb[166].mxu1 %vm1635_vm0, %v11283_v25  ;;  %10741 = vmatpush3.bf16.msra.mxu0 %v16144_v2 }
 0x91f   : > { %v11293_v26 = vpop.eup %11292  ;;  %11304 = vpow2.f32 %v6486_v33  ;;  %v6532_v3 = vmul.f32 1.442695, %v6510_v31  ;;  %v6412_v20 = vsel %vm6380_vm10, %v6333_v8, %v6396_v35  ;;  %vm6383_vm11 = vcmp.ge.f32.partialorder %v14905_v61, 0.0  ;;  %v14947_v10 = vpop.f32.mrb[164].mxu1  ;;  %10743 = vmatprep.subr.bf16.mxu0 %v16000_v30  ;;  %10373 = vmatpush3.msk.msra.mxu1 %vm1684_vm2, %v14678_v49 }
 0x920   : > { %v11295_v19 = vpop.eup %11294  ;;  %v14952_v11 = vadd.f32 %v11291_v40, %v6555_v43  ;;  %v6554_v25 = vmul.f32 %v11293_v26, %v14546_v9  ;;  %11306 = vpow2.f32 %v6534_v60  ;;  %v6465_v2 = vsub.f32 %v14521_v21, %v14941_v32  ;;  %10269 = vmatprep.mubr.msk.f32.mxu0 %vm1635_vm0, %v11293_v26  ;;  %v14958_v35 = vpop.f32.mrb[165].mxu1 }
 0x921   : > { %11308 = vpow2.f32 %v6484_v34  ;;  %v6513_v8 = vsub.f32 %v6433_v52, %v14941_v32  ;;  %v6432_v31 = vmul.f32 %v14858_v16, %v6412_v20  ;;  %v6399_v7 = vmul.f32 0.01, %v14905_v61  ;;  %10295 = vmatprep.mubr.msk.f32.mxu1 %vm1635_vm0, %v11295_v19  ;;  %10270 = vmatmul.mubr.msk.f32.gmra.mrb[140].mxu0 %vm1635_vm0, %v11289_v50 }
 0x922   : > { %v11297_v9 = vpop.eup %11296  ;;  %v14965_v22 = vadd.f32 %v11295_v19, %v6554_v25  ;;  %11310 = vpow2.f32 %v6532_v3  ;;  %v6490_v21 = vmul.f32 1.442695, %v6465_v2  ;;  %vm6382_vm12 = vcmp.ge.f32.partialorder %v14911_v13, 0.0  ;;  %10296 = vmatmul.mubr.msk.f32.gmra.mrb[168].mxu1 %vm1635_vm0, %v11291_v40  ;;  %10745 = vmatpush3.bf16.msra.mxu0 %v16000_v30 }
 0x923   : > { %v11299_v52 = vpop.eup %11298  ;;  %v6557_v55 = vmul.f32 %v11297_v9, %v14562_v14  ;;  %v6538_v33 = vmul.f32 1.442695, %v6513_v8  ;;  %v14972_v60 = vmax.f32 %v14553_v5, %v6432_v31  ;;  %v6415_v50 = vsel %vm6383_vm11, %v14905_v61, %v6399_v7  ;;  %10747 = vmatprep.subr.bf16.mxu0 %v16146_v51 }
 0x924   : > { %11312 = vpow2.f32 %v6490_v21  ;;  %v6435_v43 = vmul.f32 %v14858_v16, %v6415_v50  ;;  %v6398_v40 = vmul.f32 0.01, %v14911_v13  ;;  %vm6385_vm13 = vcmp.ge.f32.partialorder %v14924_v24, 0.0 }
 0x925   : > { %v14981_v30 = vadd.f32 %v11299_v52, %v6557_v55  ;;  %11314 = vpow2.f32 %v6538_v33  ;;  %v6464_v14 = vsub.f32 %v14553_v5, %v14972_v60  ;;  %v6512_v34 = vsub.f32 %v6432_v31, %v14972_v60 }
 0x926   : > { %v11301_v26 = vpop.eup %11300  ;;  %v14987_v61 = vmax.f32 %v14568_v56, %v6435_v43  ;;  %v6414_v3 = vsel %vm6382_vm12, %v14911_v13, %v6398_v40  ;;  %v6401_v20 = vmul.f32 0.01, %v14924_v24  ;;  %vm6384_vm14 = vcmp.ge.f32.partialorder %v14932_v45, 0.0  ;;  %10749 = vmatpush3.bf16.msra.mxu0 %v16146_v51 }
 0x927   : > { %v11303_v19 = vpop.eup %11302  ;;  %v6556_v25 = vmul.f32 %v11301_v26, %v14589_v27  ;;  %v6488_v5 = vmul.f32 1.442695, %v6464_v14  ;;  %v6536_v2 = vmul.f32 1.442695, %v6512_v34  ;;  %v6434_v8 = vmul.f32 %v14858_v16, %v6414_v3  ;;  %10272 = vmatprep.mubr.msk.f32.mxu0 %vm1635_vm0, %v11301_v26  ;;  %10751 = vmatprep.subr.bf16.mxu0 %v16009_v53 }
 0x928   : > { %v6467_v13 = vsub.f32 %v14568_v56, %v14987_v61  ;;  %v6515_v31 = vsub.f32 %v6435_v43, %v14987_v61  ;;  %v6417_v51 = vsel %vm6385_vm13, %v14924_v24, %v6401_v20  ;;  %v6400_v7 = vmul.f32 0.01, %v14932_v45  ;;  %10298 = vmatprep.mubr.msk.f32.mxu1 %vm1635_vm0, %v11303_v19  ;;  %10273 = vmatmul.mubr.msk.f32.gmra.mrb[142].mxu0 %vm1635_vm0, %v11297_v9 }
 0x929   : > { %v11305_v27 = vpop.eup %11304  ;;  %v15008_v21 = vadd.f32 %v11303_v19, %v6556_v25  ;;  %11316 = vpow2.f32 %v6488_v5  ;;  %v15011_v55 = vmax.f32 %v14592_v41, %v6434_v8  ;;  %v6437_v56 = vmul.f32 %v14858_v16, %v6417_v51  ;;  %10299 = vmatmul.mubr.msk.f32.gmra.mrb[170].mxu1 %vm1635_vm0, %v11299_v52 }
 0x92a   : > { %v11307_v33 = vpop.eup %11306  ;;  %v6559_v24 = vmul.f32 %v11305_v27, %v14608_v12  ;;  %11318 = vpow2.f32 %v6536_v2  ;;  %v6494_v50 = vmul.f32 1.442695, %v6467_v13  ;;  %v6542_v43 = vmul.f32 1.442695, %v6515_v31  ;;  %10753 = vmatpush3.bf16.msra.mxu0 %v16009_v53 }
 0x92b   : > { %v11309_v9 = vpop.eup %11308  ;;  %v6466_v40 = vsub.f32 %v14592_v41, %v15011_v55  ;;  %v6514_v14 = vsub.f32 %v6434_v8, %v15011_v55  ;;  %v15021_v34 = vmax.f32 %v14602_v58, %v6437_v56  ;;  %v6416_v52 = vsel %vm6384_vm14, %v14932_v45, %v6400_v7  ;;  %10755 = vmatprep.subr.bf16.mxu0 %v15938_v23 }
 0x92c   : > { %v11311_v12 = vpop.eup %11310  ;;  %v15027_v26 = vadd.f32 %v11307_v33, %v6559_v24  ;;  %v6558_v53 = vmul.f32 %v11309_v9, %v14617_v46  ;;  %11320 = vpow2.f32 %v6494_v50  ;;  %v6436_v3 = vmul.f32 %v14858_v16, %v6416_v52  ;;  %10275 = vmatprep.mubr.msk.f32.mxu0 %vm1635_vm0, %v11309_v9 }
 0x92d   : > { %11322 = vpow2.f32 %v6542_v43  ;;  %v6492_v41 = vmul.f32 1.442695, %v6466_v40  ;;  %v6540_v20 = vmul.f32 1.442695, %v6514_v14  ;;  %v6469_v19 = vsub.f32 %v14602_v58, %v15021_v34  ;;  %10301 = vmatprep.mubr.msk.f32.mxu1 %vm1635_vm0, %v11311_v12  ;;  %10276 = vmatmul.mubr.msk.f32.gmra.mrb[144].mxu0 %vm1635_vm0, %v11305_v27 }
 0x92e   : > { %v11313_v45 = vpop.eup %11312  ;;  %v15036_v25 = vadd.f32 %v11311_v12, %v6558_v53  ;;  %v6517_v46 = vsub.f32 %v6437_v56, %v15021_v34  ;;  %v15040_v5 = vmax.f32 %v14621_v42, %v6436_v3  ;;  %vm6387_vm15 = vcmp.ge.f32.partialorder %v14947_v10, 0.0  ;;  %10302 = vmatmul.mubr.msk.f32.gmra.mrb[172].mxu1 %vm1635_vm0, %v11307_v33  ;;  %10757 = vmatpush3.bf16.msra.mxu0 %v15938_v23 }
 0x92f   : > { %v11315_v2 = vpop.eup %11314  ;;  %v6561_v58 = vmul.f32 %v11313_v45, %v14632_v0  ;;  %11324 = vpow2.f32 %v6492_v41  ;;  %v6498_v8 = vmul.f32 1.442695, %v6469_v19  ;;  %v6403_v13 = vmul.f32 0.01, %v14947_v10  ;;  %10759 = vmatprep.subr.bf16.mxu0 %v15941_v39 }
 0x930   : > { %11326 = vpow2.f32 %v6540_v20  ;;  %v6546_v31 = vmul.f32 1.442695, %v6517_v46  ;;  %v6468_v51 = vsub.f32 %v14621_v42, %v15040_v5  ;;  %v6516_v7 = vsub.f32 %v6436_v3, %v15040_v5 }
 0x931   : > { %v15051_v27 = vadd.f32 %v11315_v2, %v6561_v58  ;;  %11328 = vpow2.f32 %v6498_v8  ;;  %v6419_v23 = vsel %vm6387_vm15, %v14947_v10, %v6403_v13  ;;  %vm6386_vm1 = vcmp.ge.f32.partialorder %v14958_v35, 0.0 }
 0x932   : > { %v6496_v56 = vmul.f32 1.442695, %v6468_v51  ;;  %v6544_v0 = vmul.f32 1.442695, %v6516_v7  ;;  %v6439_v33 = vmul.f32 %v14858_v16, %v6419_v23  ;;  %10761 = vmatpush3.bf16.msra.mxu0 %v15941_v39  ;;  %11330 = vpow2.f32 %v6546_v31  ;;  %v15106_v7 = vld [vmem:[%s11988_s27 + $0x380] sm:$0xff] }
 0x933   : > { %v11317_v24 = vpop.eup %11316  ;;  %v6402_v50 = vmul.f32 0.01, %v14958_v35  ;;  %10763 = vmatprep.subr.bf16.mxu0 %v15942_v6 }
 0x934   : > { %v11319_v42 = vpop.eup %11318  ;;  %v6560_v43 = vmul.f32 %v11317_v24, %v14648_v29  ;;  %11332 = vpow2.f32 %v6496_v56  ;;  %v15061_v10 = vmax.f32 %v14642_v1, %v6439_v33  ;;  %10278 = vmatprep.mubr.msk.f32.mxu0 %vm1635_vm0, %v11317_v24 }
 0x935   : > { %11334 = vpow2.f32 %v6544_v0  ;;  %v6418_v9 = vsel %vm6386_vm1, %v14958_v35, %v6402_v50  ;;  %10304 = vmatprep.mubr.msk.f32.mxu1 %vm1635_vm0, %v11319_v42  ;;  %10279 = vmatmul.mubr.msk.f32.gmra.mrb[146].mxu0 %vm1635_vm0, %v11313_v45  ;;  %v15117_v50 = vld [vmem:[%s11988_s27 + $0x390] sm:$0xff] }
 0x936   : > { %v11321_v39 = vpop.eup %11320  ;;  %v15067_v40 = vadd.f32 %v11319_v42, %v6560_v43  ;;  %v6471_v14 = vsub.f32 %v14642_v1, %v15061_v10  ;;  %v6519_v29 = vsub.f32 %v6439_v33, %v15061_v10  ;;  %v6438_v52 = vmul.f32 %v14858_v16, %v6418_v9  ;;  %10305 = vmatmul.mubr.msk.f32.gmra.mrb[174].mxu1 %vm1635_vm0, %v11315_v2  ;;  %v15114_v33 = vld [vmem:[%s11988_s27 + $0x388] sm:$0xff]  ;;  %v15131_v9 = vld [vmem:[%s11988_s27 + $0x398] sm:$0xff] }
 0x937   : > { %v11323_v12 = vpop.eup %11322  ;;  %v6563_v53 = vmul.f32 %v11321_v39, %v14661_v17  ;;  %10765 = vmatpush3.bf16.msra.mxu0 %v15942_v6 }
 0x938   : > { %v6502_v35 = vmul.f32 1.442695, %v6471_v14  ;;  %v6550_v3 = vmul.f32 1.442695, %v6519_v29  ;;  %v15077_v41 = vmax.f32 %v14658_v28, %v6438_v52  ;;  %10767 = vmatprep.subr.bf16.mxu0 %v15944_v48  ;;  %v7038_v14 = vmul.f32 %v14728_v37, %v15131_v9  ;;  %v15141_v29 = vld [vmem:[%s11988_s27 + $0x3a8] sm:$0xff]  ;;  %v16222_v37 = vld [vmem:[#allocation41_spill] sm:$0xff] }
 0x939   : > { %v11325_v20 = vpop.eup %11324  ;;  %v15080_v1 = vadd.f32 %v11323_v12, %v6563_v53 }
 0x93a   : > { %v11327_v19 = vpop.eup %11326  ;;  %v6562_v16 = vmul.f32 %v11325_v20, %v14670_v62  ;;  %11336 = vpow2.f32 %v6502_v35  ;;  %v6470_v45 = vsub.f32 %v14658_v28, %v15077_v41  ;;  %v6518_v17 = vsub.f32 %v6438_v52, %v15077_v41  ;;  %10281 = vmatprep.mubr.msk.f32.mxu0 %vm1635_vm0, %v11325_v20  ;;  %v16221_v52 = vld [vmem:[#allocation42_spill] sm:$0xff] }
 0x93b   : > { %v11329_v6 = vpop.eup %11328  ;;  %11338 = vpow2.f32 %v6550_v3  ;;  %10307 = vmatprep.mubr.msk.f32.mxu1 %vm1635_vm0, %v11327_v19  ;;  %10282 = vmatmul.mubr.msk.f32.gmra.mrb[148].mxu0 %vm1635_vm0, %v11321_v39  ;;  %v15134_v39 = vld [vmem:[%s11988_s27 + $0x3a0] sm:$0xff]  ;;  %v15153_v35 = vld [vmem:[%s11988_s27 + $0x3b8] sm:$0xff]  ;;  %v16225_v3 = vld [vmem:[#allocation24_spill] sm:$0xff] }
 0x93c   : > { %v15089_v46 = vadd.f32 %v11327_v19, %v6562_v16  ;;  %v6565_v2 = vmul.f32 %v11329_v6, %v14682_v63  ;;  %v6500_v58 = vmul.f32 1.442695, %v6470_v45  ;;  %v6548_v62 = vmul.f32 1.442695, %v6518_v17  ;;  %10308 = vmatmul.mubr.msk.f32.gmra.mrb[176].mxu1 %vm1635_vm0, %v11323_v12  ;;  %10769 = vmatpush3.bf16.msra.mxu0 %v15944_v48  ;;  %v11331_v28 = vpop.eup %11330  ;;  %16223 = vst [vmem:[#allocation49_spill] sm:$0xff] %v15153_v35  ;;  %v16226_v20 = vld [vmem:[#allocation18_spill] sm:$0xff] }
 0x93d   : > { %10398 = vmatprep.subr.msk.mxu0 %vm1684_vm2, %v14678_v49  ;;  %v7040_v12 = vmul.f32 %v16221_v52, %v15141_v29  ;;  %v15163_v16 = vld [vmem:[%s11988_s27 + $0x3c8] sm:$0xff]  ;;  %v15166_v45 = vld [vmem:[%s11988_s27 + $0x3d0] sm:$0xff]  ;;  %v16235_v52 = vld [vmem:[#allocation7_spill] sm:$0xff] }
 0x93e   : > { %v11333_v8 = vpop.eup %11332  ;;  %v15096_v13 = vadd.f32 %v11331_v28, %v6565_v2  ;;  %11340 = vpow2.f32 %v6500_v58  ;;  %16227 = vst [vmem:[#allocation21_spill] sm:$0xff] %v15163_v16  ;;  %16228 = vst [vmem:[#allocation38_spill] sm:$0xff] %v15166_v45  ;;  %v16229_v17 = vld [vmem:[#allocation13_spill] sm:$0xff] }
 0x93f   : > { %v11335_v31 = vpop.eup %11334  ;;  %v6564_v63 = vmul.f32 %v11333_v8, %v14688_v38  ;;  %11342 = vpow2.f32 %v6548_v62  ;;  %10284 = vmatprep.mubr.msk.f32.mxu0 %vm1635_vm0, %v11333_v8  ;;  %v7035_v38 = vmul.f32 %v14697_v15, %v15106_v7  ;;  %v11507_v2 = vld [vmem:[#allocation2 + $0x50] sm:$0xff]  ;;  %v15172_v62 = vld [vmem:[%s11988_s27 + $0x3d8] sm:$0xff] }
 0x940   : > { %10310 = vmatprep.mubr.msk.f32.mxu1 %vm1635_vm0, %v11335_v31  ;;  %10285 = vmatmul.mubr.msk.f32.gmra.mrb[150].mxu0 %vm1635_vm0, %v11329_v6  ;;  %v7044_v6 = vmul.f32 %v16229_v17, %v15163_v16  ;;  %v7045_v58 = vmul.f32 %v11507_v2, %v15166_v45  ;;  %16230 = vst [vmem:[#allocation30_spill] sm:$0xff] %v15172_v62  ;;  %v11508_v8 = vld [vmem:[#allocation2 + $0x58] sm:$0xff]  ;;  %v16260_v45 = vld [vmem:[#allocation52_spill] sm:$0xff] }
 0x941   : > { %v15102_v48 = vadd.f32 %v11335_v31, %v6564_v63  ;;  %10311 = vmatmul.mubr.msk.f32.gmra.mrb[178].mxu1 %vm1635_vm0, %v11331_v28  ;;  %v15175_v28 = vld [vmem:[%s11988_s27 + $0x3e0] sm:$0xff]  ;;  %v7046_v31 = vmul.f32 %v11508_v8, %v15172_v62 }
 0x942   : > { %16231 = vst [vmem:[#allocation36_spill] sm:$0xff] %v15175_v28  ;;  %v11509_v63 = vld [vmem:[#allocation2 + $0x60] sm:$0xff] }
 0x944   : > { %v11337_v51 = vpop.eup %11336 }
 0x945   : > { %v11339_v23 = vpop.eup %11338  ;;  %v6567_v56 = vmul.f32 %v11337_v51, %v14695_v54  ;;  %v7036_v54 = vmul.f32 %v14711_v59, %v15114_v33  ;;  %v7039_v59 = vmul.f32 %v14732_v44, %v15134_v39  ;;  %v15156_v44 = vld [vmem:[%s11988_s27 + $0x3c0] sm:$0xff] }
 0x946   : > { %16224 = vst [vmem:[#allocation37_spill] sm:$0xff] %v15156_v44  ;;  %v7043_v19 = vmul.f32 %v16226_v20, %v15156_v44  ;;  %v16237_v20 = vld [vmem:[#allocation14_spill] sm:$0xff]  ;;  %v16265_v44 = vld [vmem:[#allocation59_spill] sm:$0xff] }
 0x947   : > { %v15109_v0 = vadd.f32 %v11339_v23, %v6567_v56  ;;  %v15183_v56 = vld [vmem:[%s11988_s27 + $0x3f0] sm:$0xff] }
 0x948   : > { %v11341_v24 = vpop.eup %11340  ;;  %16233 = vst [vmem:[#allocation39_spill] sm:$0xff] %v15183_v56 }
 0x949   : > { %v11343_v42 = vpop.eup %11342  ;;  %v6566_v43 = vmul.f32 %v11341_v24, %v14715_v18  ;;  %10287 = vmatprep.mubr.msk.f32.mxu0 %vm1635_vm0, %v11341_v24  ;;  %v7037_v18 = vmul.f32 %v14718_v4, %v15117_v50  ;;  %v15146_v4 = vld [vmem:[%s11988_s27 + $0x3b0] sm:$0xff] }
 0x94a   : > { %10313 = vmatprep.mubr.msk.f32.mxu1 %vm1635_vm0, %v11343_v42  ;;  %10288 = vmatmul.mubr.msk.f32.gmra.mrb[152].mxu0 %vm1635_vm0, %v11337_v51  ;;  %16220 = vst [vmem:[#allocation8_spill] sm:$0xff] %v15146_v4  ;;  %v7041_v53 = vmul.f32 %v16222_v37, %v15146_v4  ;;  %v7047_v51 = vmul.f32 %v11509_v63, %v15175_v28  ;;  %v16277_v4 = vld [vmem:[#allocation46_spill] sm:$0xff] }
 0x94b   : > { %v15125_v15 = vadd.f32 %v11343_v42, %v6566_v43  ;;  %10314 = vmatmul.mubr.msk.f32.gmra.mrb[180].mxu1 %vm1635_vm0, %v11339_v23  ;;  %10348 = vmatprep.mubr.f32.mxu0 %v7035_v38  ;;  %v15180_v23 = vld [vmem:[%s11988_s27 + $0x3e8] sm:$0xff]  ;;  %v11511_v42 = vld [vmem:[#allocation2 + $0x70] sm:$0xff] }
 0x94c   : > { %16232 = vst [vmem:[#allocation25_spill] sm:$0xff] %v15180_v23  ;;  %v11510_v38 = vld [vmem:[#allocation2 + $0x68] sm:$0xff]  ;;  %v7049_v43 = vmul.f32 %v11511_v42, %v15183_v56 }
 0x94d   : > { %v7048_v24 = vmul.f32 %v11510_v38, %v15180_v23  ;;  %v16240_v42 = vld [vmem:[#allocation20_spill] sm:$0xff] }
 0x94e   : > { %10349 = vmatmul.mubr.f32.vlgmr.msra.gmra.mrb[154].mxu0 %v7036_v54  ;;  %v15188_v54 = vld [vmem:[%s11988_s27 + $0x3f8] sm:$0xff] }
 0x94f   : > { %10351 = vmatprep.mubr.f32.mxu0 %v7037_v18  ;;  %10399 = vmatpush3.msk.msra.mxu0 %vm1684_vm2, %v14678_v49  ;;  %v7042_v49 = vmul.f32 %v16225_v3, %v15153_v35  ;;  %16234 = vst [vmem:[#allocation31_spill] sm:$0xff] %v15188_v54  ;;  %v11512_v18 = vld [vmem:[#allocation2 + $0x78] sm:$0xff]  ;;  %v16236_v3 = vld [vmem:[#allocation40_spill] sm:$0xff] }
 0x952   : > { %10352 = vmatmul.mubr.f32.gmra.mrb[156].mxu0 %v7038_v14  ;;  %v7050_v14 = vmul.f32 %v11512_v18, %v15188_v54  ;;  %v16241_v18 = vld [vmem:[#allocation22_spill] sm:$0xff] }
 0x953   : > { %10354 = vmatprep.mubr.f32.mxu0 %v7039_v59 }
 0x956   : > { %10355 = vmatmul.mubr.f32.gmra.mrb[158].mxu0 %v7040_v12 }
 0x957   : > { %10357 = vmatprep.mubr.f32.mxu0 %v7041_v53 }
 0x95a   : > { %10358 = vmatmul.mubr.f32.gmra.mrb[160].mxu0 %v7042_v49 }
 0x95b   : > { %10360 = vmatprep.mubr.f32.mxu0 %v7043_v19 }
 0x95e   : > { %10361 = vmatmul.mubr.f32.gmra.mrb[162].mxu0 %v7044_v6  ;;  %v16238_v6 = vld [vmem:[#allocation10_spill] sm:$0xff] }
 0x95f   : > { %10363 = vmatprep.mubr.f32.mxu0 %v7045_v58 }
 0x962   : > { %10364 = vmatmul.mubr.f32.gmra.mrb[164].mxu0 %v7046_v31  ;;  %v16239_v31 = vld [vmem:[#allocation9_spill] sm:$0xff] }
 0x963   : > { %10366 = vmatprep.mubr.f32.mxu0 %v7047_v51 }
 0x966   : > { %10367 = vmatmul.mubr.f32.gmra.mrb[166].mxu0 %v7048_v24 }
 0x967   : > { %10369 = vmatprep.mubr.f32.mxu0 %v7049_v43 }
 0x96a   : > { %10370 = vmatmul.mubr.f32.gmra.mrb[168].mxu0 %v7050_v14 }
 0x9f0   : > { %v10268_v59 = vpop.f32.mrb[138].mxu0 }
 0x9f1   : > { %v6971_v12 = vmul.f32 %v10268_v59, %v16235_v52  ;;  %v10294_v37 = vpop.f32.mrb[166].mxu1  ;;  %v6698_v53 = vpop.f32.mrb[139].mxu0  ;;  %v16242_v52 = vld [vmem:[#allocation32_spill] sm:$0xff] }
 0x9f2   : > { %v6987_v49 = vmul.f32 %v10294_v37, %v16236_v3  ;;  %v6970_v19 = vmul.f32 %v6698_v53, %v16237_v20  ;;  %v6891_v17 = vpop.f32.mrb[167].mxu1 }
 0x9f3   : > { %v6986_v2 = vmul.f32 %v16238_v6, %v6891_v17 }
 0x9f4   : > { %v10271_v58 = vpop.f32.mrb[140].mxu0  ;;  %v15195_v8 = vadd.f32 %v6987_v49, %v6971_v12  ;;  %v16243_v12 = vld [vmem:[#allocation53_spill] sm:$0xff] }
 0x9f5   : > { %v6973_v63 = vmul.f32 %v10271_v58, %v16239_v31  ;;  %v10297_v51 = vpop.f32.mrb[168].mxu1  ;;  %v6708_v38 = vpop.f32.mrb[141].mxu0  ;;  %v15198_v24 = vadd.f32 %v6986_v2, %v6970_v19  ;;  %v16244_v58 = vld [vmem:[#allocation17_spill] sm:$0xff]  ;;  %v16245_v19 = vld [vmem:[#allocation28_spill] sm:$0xff] }
 0x9f6   : > { %v6989_v43 = vmul.f32 %v10297_v51, %v16240_v42  ;;  %v6972_v14 = vmul.f32 %v6708_v38, %v16241_v18  ;;  %v6901_v59 = vpop.f32.mrb[169].mxu1  ;;  %v16246_v51 = vld [vmem:[#allocation43_spill] sm:$0xff] }
 0x9f7   : > { %v6988_v37 = vmul.f32 %v16242_v52, %v6901_v59 }
 0x9f8   : > { %v15203_v53 = vadd.f32 %v6989_v43, %v6973_v63  ;;  %v16247_v63 = vld [vmem:[#allocation27_spill] sm:$0xff] }
 0x9f9   : > { %v15205_v3 = vadd.f32 %v6988_v37, %v6972_v14  ;;  %v16248_v37 = vld [vmem:[#allocation23_spill] sm:$0xff] }
 0x9fb   : > { %v10274_v20 = vpop.f32.mrb[142].mxu0 }
 0x9fc   : > { %v6975_v49 = vmul.f32 %v10274_v20, %v16243_v12  ;;  %v10300_v17 = vpop.f32.mrb[170].mxu1  ;;  %v6718_v6 = vpop.f32.mrb[143].mxu0  ;;  %v16249_v12 = vld [vmem:[#allocation50_spill] sm:$0xff] }
 0x9fd   : > { %v6991_v31 = vmul.f32 %v10300_v17, %v16244_v58  ;;  %v6974_v2 = vmul.f32 %v6718_v6, %v16245_v19  ;;  %v6911_v56 = vpop.f32.mrb[171].mxu1  ;;  %v16250_v17 = vld [vmem:[#allocation11_spill] sm:$0xff] }
 0x9fe   : > { %v6990_v42 = vmul.f32 %v16246_v51, %v6911_v56 }
 0x9ff   : > { %v15211_v38 = vadd.f32 %v6991_v31, %v6975_v49  ;;  %v16252_v49 = vld [vmem:[#allocation56_spill] sm:$0xff] }
 0xa00   : > { %v10277_v18 = vpop.f32.mrb[144].mxu0  ;;  %v15213_v59 = vadd.f32 %v6990_v42, %v6974_v2  ;;  %v16253_v42 = vld [vmem:[#allocation12_spill] sm:$0xff] }
 0xa01   : > { %v6977_v43 = vmul.f32 %v10277_v18, %v16247_v63  ;;  %v10303_v14 = vpop.f32.mrb[172].mxu1  ;;  %v6728_v52 = vpop.f32.mrb[145].mxu0  ;;  %v16254_v63 = vld [vmem:[#allocation29_spill] sm:$0xff] }
 0xa02   : > { %v6993_v20 = vmul.f32 %v10303_v14, %v16248_v37  ;;  %v6976_v54 = vmul.f32 %v6728_v52, %v16249_v12  ;;  %v6921_v28 = vpop.f32.mrb[173].mxu1  ;;  %v16255_v37 = vld [vmem:[#allocation44_spill] sm:$0xff] }
 0xa03   : > { %v6992_v58 = vmul.f32 %v16250_v17, %v6921_v28 }
 0xa04   : > { %v15219_v6 = vadd.f32 %v6993_v20, %v6977_v43 }
 0xa05   : > { %v15221_v19 = vadd.f32 %v6992_v58, %v6976_v54  ;;  %v16258_v54 = vld [vmem:[#allocation55_spill] sm:$0xff] }
 0xa07   : > { %16251 = vst [vmem:[#allocation42_spill] sm:$0xff] %v15221_v19  ;;  %v16278_v19 = vld [vmem:[#allocation57_spill] sm:$0xff] }
 0xa08   : > { %v10280_v56 = vpop.f32.mrb[146].mxu0 }
 0xa09   : > { %v6979_v31 = vmul.f32 %v10280_v56, %v16252_v49  ;;  %v10306_v2 = vpop.f32.mrb[174].mxu1  ;;  %v6738_v51 = vpop.f32.mrb[147].mxu0  ;;  %v16259_v56 = vld [vmem:[#allocation19_spill] sm:$0xff] }
 0xa0a   : > { %v6995_v18 = vmul.f32 %v10306_v2, %v16253_v42  ;;  %v6978_v23 = vmul.f32 %v6738_v51, %v16254_v63  ;;  %v6931_v14 = vpop.f32.mrb[175].mxu1  ;;  %v11513_v42 = vld [vmem:[%s11988_s27 + $0x350] sm:$0xff] }
 0xa0b   : > { %v6994_v52 = vmul.f32 %v16255_v37, %v6931_v14 }
 0xa0c   : > { %v15227_v12 = vadd.f32 %v6995_v18, %v6979_v31 }
 0xa0d   : > { %v15229_v28 = vadd.f32 %v6994_v52, %v6978_v23  ;;  %v16263_v23 = vld [vmem:[#allocation47_spill] sm:$0xff] }
 0xa0e   : > { %16256 = vst [vmem:[#allocation41_spill] sm:$0xff] %v15227_v12  ;;  %v10283_v43 = vpop.f32.mrb[148].mxu0 }
 0xa0f   : > { %16257 = vst [vmem:[#allocation24_spill] sm:$0xff] %v15229_v28  ;;  %v6981_v20 = vmul.f32 %v10283_v43, %v16258_v54  ;;  %v10309_v17 = vpop.f32.mrb[176].mxu1  ;;  %v6748_v58 = vpop.f32.mrb[149].mxu0  ;;  %v16264_v43 = vld [vmem:[#allocation26_spill] sm:$0xff] }
 0xa10   : > { %v6997_v49 = vmul.f32 %v10309_v17, %v16259_v56  ;;  %v6980_v62 = vmul.f32 %v6748_v58, %v16260_v45  ;;  %v6941_v2 = vpop.f32.mrb[177].mxu1  ;;  %v11514_v45 = vld [vmem:[%s11988_s27 + $0x360] sm:$0xff] }
 0xa11   : > { %v6996_v51 = vmul.f32 %v11513_v42, %v6941_v2  ;;  %v16269_v42 = vld [vmem:[#allocation51_spill] sm:$0xff] }
 0xa12   : > { %v15235_v63 = vadd.f32 %v6997_v49, %v6981_v20 }
 0xa13   : > { %v10286_v14 = vpop.f32.mrb[150].mxu0  ;;  %v15237_v31 = vadd.f32 %v6996_v51, %v6980_v62  ;;  %v16268_v62 = vld [vmem:[#allocation16_spill] sm:$0xff] }
 0xa14   : > { %16261 = vst [vmem:[#allocation18_spill] sm:$0xff] %v15235_v63  ;;  %v6983_v18 = vmul.f32 %v10286_v14, %v16263_v23  ;;  %v10312_v37 = vpop.f32.mrb[178].mxu1  ;;  %v6758_v52 = vpop.f32.mrb[151].mxu0  ;;  %v7246_v2 = vsub.s32 7, %v16268_v62 }
 0xa15   : > { %16262 = vst [vmem:[#allocation13_spill] sm:$0xff] %v15237_v31  ;;  %v6999_v54 = vmul.f32 %v10312_v37, %v16264_v43  ;;  %v6982_v17 = vmul.f32 %v6758_v52, %v16265_v44  ;;  %v6951_v56 = vpop.f32.mrb[179].mxu1  ;;  %v11515_v31 = vld [vmem:[%s11988_s27 + $0x378] sm:$0xff]  ;;  %v16270_v37 = vld [vmem:[#allocation33_spill] sm:$0xff] }
 0xa16   : > { %v6998_v58 = vmul.f32 %v11514_v45, %v6951_v56  ;;  %v11516_v44 = vld [vmem:[%s11988_s27 + $0x370] sm:$0xff]  ;;  %v16271_v56 = vld [vmem:[#allocation58_spill] sm:$0xff] }
 0xa17   : > { %v15243_v28 = vadd.f32 %v6999_v54, %v6983_v18  ;;  %v15253_v18 = vrot.slane %v16271_v56, %v7246_v2 }
 0xa18   : > { %v15245_v20 = vadd.f32 %v6998_v58, %v6982_v17 }
 0xa19   : > { %16266 = vst [vmem:[#allocation7_spill] sm:$0xff] %v15243_v28 }
 0xa1a   : > { %16267 = vst [vmem:[#allocation40_spill] sm:$0xff] %v15245_v20 }
 0xa1d   : > { %v10289_v49 = vpop.f32.mrb[152].mxu0 }
 0xa1e   : > { %v6985_v51 = vmul.f32 %v10289_v49, %v16269_v42  ;;  %v10315_v14 = vpop.f32.mrb[180].mxu1  ;;  %v6768_v23 = vpop.f32.mrb[153].mxu0 }
 0xa1f   : > { %v7001_v63 = vmul.f32 %v11515_v31, %v10315_v14  ;;  %v6984_v43 = vmul.f32 %v6768_v23, %v16270_v37  ;;  %v6961_v16 = vpop.f32.mrb[181].mxu1  ;;  %v16274_v37 = vld [vmem:[#allocation54_spill] sm:$0xff] }
 0xa20   : > { %v7000_v52 = vmul.f32 %v11516_v44, %v6961_v16  ;;  %v16275_v44 = vld [vmem:[#allocation48_spill] sm:$0xff] }
 0xa21   : > { %v10350_v12 = vpop.f32.mrb[154].mxu0  ;;  %v15255_v54 = vadd.f32 %v7001_v63, %v6985_v51 }
 0xa22   : > { %vm7197_vm3 = vcmp.ge.f32.partialorder %v10350_v12, 0.0  ;;  %v7213_v17 = vmul.f32 0.01, %v10350_v12  ;;  %v7117_v45 = vpop.f32.mrb[155].mxu0  ;;  %v15257_v58 = vadd.f32 %v7000_v52, %v6984_v43 }
 0xa23   : > { %16272 = vst [vmem:[#allocation14_spill] sm:$0xff] %v15255_v54  ;;  %vm7196_vm4 = vcmp.ge.f32.partialorder %v7117_v45, 0.0  ;;  %v7212_v49 = vmul.f32 0.01, %v7117_v45 }
 0xa24   : > { %16273 = vst [vmem:[#allocation10_spill] sm:$0xff] %v15257_v58  ;;  %v7229_v62 = vsel %vm7197_vm3, %v10350_v12, %v7213_v17 }
 0xa25   : > { %v7249_v31 = vmul.f32 %v15253_v18, %v7229_v62  ;;  %v7228_v42 = vsel %vm7196_vm4, %v7117_v45, %v7212_v49  ;;  %v10353_v14 = vpop.f32.mrb[156].mxu0 }
 0xa26   : > { %v7248_v16 = vmul.f32 %v15253_v18, %v7228_v42  ;;  %vm7199_vm5 = vcmp.ge.f32.partialorder %v10353_v14, 0.0  ;;  %v7215_v23 = vmul.f32 0.01, %v10353_v14  ;;  %v7127_v2 = vpop.f32.mrb[157].mxu0 }
 0xa27   : > { %v7265_v63 = vmax.f32 %v16274_v37, %v7249_v31  ;;  %vm7198_vm6 = vcmp.ge.f32.partialorder %v7127_v2, 0.0  ;;  %v7214_v51 = vmul.f32 0.01, %v7127_v2 }
 0xa28   : > { %v7264_v56 = vmax.f32 %v16275_v44, %v7248_v16  ;;  %v7231_v43 = vsel %vm7199_vm5, %v10353_v14, %v7215_v23  ;;  %v16276_v23 = vld [vmem:[#allocation34_spill] sm:$0xff] }
 0xa29   : > { %v7281_v52 = vsub.f32 %v16274_v37, %v7265_v63  ;;  %v7329_v58 = vsub.f32 %v7249_v31, %v7265_v63  ;;  %7843 = vst.msk [vmem:[#allocation3 + $0x8] sm:$0xff] %vm1635_vm0, %v7265_v63  ;;  %v7251_v12 = vmul.f32 %v15253_v18, %v7231_v43  ;;  %v7230_v17 = vsel %vm7198_vm6, %v7127_v2, %v7214_v51  ;;  %v10356_v45 = vpop.f32.mrb[158].mxu0 }
 0xa2a   : > { %v7280_v49 = vsub.f32 %v16275_v44, %v7264_v56  ;;  %v7328_v62 = vsub.f32 %v7248_v16, %v7264_v56  ;;  %7842 = vst.msk [vmem:[#allocation3] sm:$0xff] %vm1635_vm0, %v7264_v56  ;;  %v7250_v42 = vmul.f32 %v15253_v18, %v7230_v17  ;;  %vm7201_vm7 = vcmp.ge.f32.partialorder %v10356_v45, 0.0  ;;  %v7137_v54 = vpop.f32.mrb[159].mxu0 }
 0xa2b   : > { %v7298_v20 = vmul.f32 1.442695, %v7281_v52  ;;  %v7346_v14 = vmul.f32 1.442695, %v7329_v58  ;;  %v7267_v37 = vmax.f32 %v16276_v23, %v7251_v12  ;;  %v7217_v31 = vmul.f32 0.01, %v10356_v45 }
 0xa2c   : > { %v7296_v28 = vmul.f32 1.442695, %v7280_v49  ;;  %v7344_v63 = vmul.f32 1.442695, %v7328_v62  ;;  %v7266_v43 = vmax.f32 %v16277_v4, %v7250_v42  ;;  %vm7200_vm8 = vcmp.ge.f32.partialorder %v7137_v54, 0.0 }
 0xa2d   : > { %11344 = vpow2.f32 %v7298_v20  ;;  %v7283_v2 = vsub.f32 %v16276_v23, %v7267_v37  ;;  %v7331_v16 = vsub.f32 %v7251_v12, %v7267_v37  ;;  %7845 = vst.msk [vmem:[#allocation3 + $0x18] sm:$0xff] %vm1635_vm0, %v7267_v37  ;;  %v7233_v51 = vsel %vm7201_vm7, %v10356_v45, %v7217_v31  ;;  %v10359_v44 = vpop.f32.mrb[160].mxu0 }
 0xa2e   : > { %11346 = vpow2.f32 %v7346_v14  ;;  %v7282_v56 = vsub.f32 %v16277_v4, %v7266_v43  ;;  %v7330_v58 = vsub.f32 %v7250_v42, %v7266_v43  ;;  %7844 = vst.msk [vmem:[#allocation3 + $0x10] sm:$0xff] %vm1635_vm0, %v7266_v43  ;;  %v7253_v52 = vmul.f32 %v15253_v18, %v7233_v51  ;;  %v7147_v17 = vpop.f32.mrb[161].mxu0  ;;  %v16279_v51 = vld [vmem:[#allocation35_spill] sm:$0xff] }
 0xa2f   : > { %11348 = vpow2.f32 %v7296_v28  ;;  %v7302_v49 = vmul.f32 1.442695, %v7283_v2  ;;  %v7350_v62 = vmul.f32 1.442695, %v7331_v16  ;;  %v7216_v20 = vmul.f32 0.01, %v7137_v54 }
 0xa30   : > { %11350 = vpow2.f32 %v7344_v63  ;;  %v7300_v23 = vmul.f32 1.442695, %v7282_v56  ;;  %v7348_v12 = vmul.f32 1.442695, %v7330_v58  ;;  %v7269_v37 = vmax.f32 %v16278_v19, %v7253_v52 }
 0xa31   : > { %11352 = vpow2.f32 %v7302_v49  ;;  %v7232_v45 = vsel %vm7200_vm8, %v7137_v54, %v7216_v20  ;;  %vm7203_vm9 = vcmp.ge.f32.partialorder %v10359_v44, 0.0  ;;  %v7219_v4 = vmul.f32 0.01, %v10359_v44  ;;  %v10362_v42 = vpop.f32.mrb[162].mxu0 }
 0xa32   : > { %11354 = vpow2.f32 %v7350_v62  ;;  %v7285_v14 = vsub.f32 %v16278_v19, %v7269_v37  ;;  %v7333_v31 = vsub.f32 %v7253_v52, %v7269_v37  ;;  %7847 = vst.msk [vmem:[#allocation3 + $0x28] sm:$0xff] %vm1635_vm0, %v7269_v37  ;;  %v7252_v28 = vmul.f32 %v15253_v18, %v7232_v45  ;;  %v15281_v43 = vpop.f32.mrb[163].mxu0  ;;  %v16280_v37 = vld [vmem:[#allocation45_spill] sm:$0xff] }
 0xa33   : > { %11356 = vpow2.f32 %v7300_v23  ;;  %v7235_v63 = vsel %vm7203_vm9, %v10359_v44, %v7219_v4  ;;  %vm7202_vm10 = vcmp.ge.f32.partialorder %v7147_v17, 0.0  ;;  %v7218_v2 = vmul.f32 0.01, %v7147_v17 }
 0xa34   : > { %11358 = vpow2.f32 %v7348_v12  ;;  %v7306_v16 = vmul.f32 1.442695, %v7285_v14  ;;  %v7354_v54 = vmul.f32 1.442695, %v7333_v31  ;;  %v7268_v56 = vmax.f32 %v16279_v51, %v7252_v28 }
 0xa35   : > { %v7255_v58 = vmul.f32 %v15253_v18, %v7235_v63  ;;  %v7234_v49 = vsel %vm7202_vm10, %v7147_v17, %v7218_v2  ;;  %vm7205_vm11 = vcmp.ge.f32.partialorder %v10362_v42, 0.0  ;;  %v7221_v19 = vmul.f32 0.01, %v10362_v42  ;;  %v15285_v52 = vpop.f32.mrb[164].mxu0 }
 0xa36   : > { %11360 = vpow2.f32 %v7306_v16  ;;  %v7284_v62 = vsub.f32 %v16279_v51, %v7268_v56  ;;  %v7332_v20 = vsub.f32 %v7252_v28, %v7268_v56  ;;  %7846 = vst.msk [vmem:[#allocation3 + $0x20] sm:$0xff] %vm1635_vm0, %v7268_v56  ;;  %v7254_v44 = vmul.f32 %v15253_v18, %v7234_v49  ;;  %v15290_v23 = vpop.f32.mrb[165].mxu0 }
 0xa37   : > { %v11345_v12 = vpop.eup %11344  ;;  %11362 = vpow2.f32 %v7354_v54  ;;  %v7271_v45 = vmax.f32 %v16280_v37, %v7255_v58  ;;  %v7237_v4 = vsel %vm7205_vm11, %v10362_v42, %v7221_v19  ;;  %vm7204_vm12 = vcmp.ge.f32.partialorder %v15281_v43, 0.0 }
 0xa38   : > { %v11347_v17 = vpop.eup %11346  ;;  %v7377_v14 = vmul.f32 %v11345_v12, %v14926_v36  ;;  %v7304_v31 = vmul.f32 1.442695, %v7284_v62  ;;  %v7352_v63 = vmul.f32 1.442695, %v7332_v20  ;;  %v7270_v28 = vmax.f32 %v14918_v47, %v7254_v44 }
 0xa39   : > { %v11349_v2 = vpop.eup %11348  ;;  %v7287_v16 = vsub.f32 %v16280_v37, %v7271_v45  ;;  %v7335_v51 = vsub.f32 %v7255_v58, %v7271_v45  ;;  %7849 = vst.msk [vmem:[#allocation3 + $0x38] sm:$0xff] %vm1635_vm0, %v7271_v45  ;;  %v7257_v54 = vmul.f32 %v15253_v18, %v7237_v4  ;;  %v7220_v56 = vmul.f32 0.01, %v15281_v43  ;;  %v15300_v42 = vpop.f32.mrb[166].mxu0 }
 0xa3a   : > { %v11351_v49 = vpop.eup %11350  ;;  %v7393_v19 = vadd.f32 %v11347_v17, %v7377_v14  ;;  %v7376_v36 = vmul.f32 %v11349_v2, %v14937_v57  ;;  %11364 = vpow2.f32 %v7304_v31  ;;  %v7286_v62 = vsub.f32 %v14918_v47, %v7270_v28  ;;  %7848 = vst.msk [vmem:[#allocation3 + $0x30] sm:$0xff] %vm1635_vm0, %v7270_v28  ;;  %10374 = vmatprep.mubr.msk.f32.mxu1 %vm1635_vm0, %v11349_v2  ;;  %v15306_v58 = vpop.f32.mrb[167].mxu0 }
 0xa3b   : > { %v11353_v20 = vpop.eup %11352  ;;  %11366 = vpow2.f32 %v7352_v63  ;;  %v7310_v37 = vmul.f32 1.442695, %v7287_v16  ;;  %v7358_v45 = vmul.f32 1.442695, %v7335_v51  ;;  %v7334_v4 = vsub.f32 %v7254_v44, %v7270_v28  ;;  %10400 = vmatprep.mubr.msk.f32.mxu0 %vm1635_vm0, %v11351_v49  ;;  %10375 = vmatmul.mubr.msk.f32.vlgmr.msra.gmra.mrb[182].mxu1 %vm1635_vm0, %v11345_v12 }
 0xa3c   : > { %v11355_v14 = vpop.eup %11354  ;;  %7859 = vst.msk [vmem:[#allocation4 + $0x8] sm:$0xff] %vm1635_vm0, %v7393_v19  ;;  %v7392_v57 = vadd.f32 %v11351_v49, %v7376_v36  ;;  %v7379_v47 = vmul.f32 %v11353_v20, %v14952_v11  ;;  %v7308_v31 = vmul.f32 1.442695, %v7286_v62  ;;  %v7273_v2 = vmax.f32 %v14941_v32, %v7257_v54  ;;  %10401 = vmatmul.mubr.msk.f32.vlgmr.msra.gmra.mrb[170].mxu0 %vm1635_vm0, %v11347_v17 }
 0xa3d   : > { %v11357_v35 = vpop.eup %11356  ;;  %11368 = vpow2.f32 %v7310_v37  ;;  %v7356_v63 = vmul.f32 1.442695, %v7334_v4  ;;  %v7236_v44 = vsel %vm7204_vm12, %v15281_v43, %v7220_v56  ;;  %vm7207_vm13 = vcmp.ge.f32.partialorder %v15285_v52, 0.0  ;;  %v15318_v12 = vpop.f32.mrb[168].mxu0 }
 0xa3e   : > { %v11359_v28 = vpop.eup %11358  ;;  %7858 = vst.msk [vmem:[#allocation4] sm:$0xff] %vm1635_vm0, %v7392_v57  ;;  %v7395_v11 = vadd.f32 %v11355_v14, %v7379_v47  ;;  %v7378_v16 = vmul.f32 %v11357_v35, %v14965_v22  ;;  %11370 = vpow2.f32 %v7358_v45  ;;  %v7289_v17 = vsub.f32 %v14941_v32, %v7273_v2  ;;  %7851 = vst.msk [vmem:[#allocation3 + $0x48] sm:$0xff] %vm1635_vm0, %v7273_v2  ;;  %v15325_v51 = vpop.f32.mrb[169].mxu0 }
 0xa3f   : > { %10377 = vmatprep.mubr.msk.f32.mxu1 %vm1635_vm0, %v11357_v35  ;;  %11372 = vpow2.f32 %v7308_v31  ;;  %v7337_v43 = vsub.f32 %v7257_v54, %v7273_v2  ;;  %v7256_v56 = vmul.f32 %v15253_v18, %v7236_v44  ;;  %v7223_v49 = vmul.f32 0.01, %v15285_v52  ;;  %10403 = vmatprep.mubr.msk.f32.mxu0 %vm1635_vm0, %v11359_v28 }
 0xa40   : > { %10378 = vmatmul.mubr.msk.f32.gmra.mrb[184].mxu1 %vm1635_vm0, %v11353_v20  ;;  %v11361_v22 = vpop.eup %11360  ;;  %7861 = vst.msk [vmem:[#allocation4 + $0x18] sm:$0xff] %vm1635_vm0, %v7395_v11  ;;  %v7394_v32 = vadd.f32 %v11359_v28, %v7378_v16  ;;  %11374 = vpow2.f32 %v7356_v63  ;;  %v7314_v19 = vmul.f32 1.442695, %v7289_v17  ;;  %vm7206_vm14 = vcmp.ge.f32.partialorder %v15290_v23, 0.0  ;;  %10404 = vmatmul.mubr.msk.f32.gmra.mrb[172].mxu0 %vm1635_vm0, %v11355_v14 }
 0xa41   : > { %v11363_v35 = vpop.eup %11362  ;;  %v7381_v54 = vmul.f32 %v11361_v22, %v14981_v30  ;;  %v7362_v36 = vmul.f32 1.442695, %v7337_v43  ;;  %v7272_v62 = vmax.f32 %v14972_v60, %v7256_v56  ;;  %v7239_v20 = vsel %vm7207_vm13, %v15285_v52, %v7223_v49 }
 0xa42   : > { %7860 = vst.msk [vmem:[#allocation4 + $0x10] sm:$0xff] %vm1635_vm0, %v7394_v32  ;;  %11376 = vpow2.f32 %v7314_v19  ;;  %v7259_v37 = vmul.f32 %v15253_v18, %v7239_v20  ;;  %v7222_v45 = vmul.f32 0.01, %v15290_v23  ;;  %vm7209_vm15 = vcmp.ge.f32.partialorder %v15300_v42, 0.0 }
 0xa43   : > { %v7397_v4 = vadd.f32 %v11363_v35, %v7381_v54  ;;  %11378 = vpow2.f32 %v7362_v36  ;;  %v7288_v30 = vsub.f32 %v14972_v60, %v7272_v62  ;;  %v7336_v14 = vsub.f32 %v7256_v56, %v7272_v62  ;;  %7850 = vst.msk [vmem:[#allocation3 + $0x40] sm:$0xff] %vm1635_vm0, %v7272_v62 }
 0xa44   : > { %v11365_v57 = vpop.eup %11364  ;;  %v7275_v47 = vmax.f32 %v14987_v61, %v7259_v37  ;;  %v7238_v52 = vsel %vm7206_vm14, %v15290_v23, %v7222_v45  ;;  %v7225_v31 = vmul.f32 0.01, %v15300_v42  ;;  %vm7208_vm1 = vcmp.ge.f32.partialorder %v15306_v58, 0.0 }
 0xa45   : > { %v11367_v2 = vpop.eup %11366  ;;  %7863 = vst.msk [vmem:[#allocation4 + $0x28] sm:$0xff] %vm1635_vm0, %v7397_v4  ;;  %v7380_v63 = vmul.f32 %v11365_v57, %v15008_v21  ;;  %v7312_v60 = vmul.f32 1.442695, %v7288_v30  ;;  %v7360_v44 = vmul.f32 1.442695, %v7336_v14  ;;  %v7258_v28 = vmul.f32 %v15253_v18, %v7238_v52  ;;  %10380 = vmatprep.mubr.msk.f32.mxu1 %vm1635_vm0, %v11365_v57 }
 0xa46   : > { %v7291_v11 = vsub.f32 %v14987_v61, %v7275_v47  ;;  %v7339_v16 = vsub.f32 %v7259_v37, %v7275_v47  ;;  %7853 = vst.msk [vmem:[#allocation3 + $0x58] sm:$0xff] %vm1635_vm0, %v7275_v47  ;;  %v7241_v23 = vsel %vm7209_vm15, %v15300_v42, %v7225_v31  ;;  %v7224_v17 = vmul.f32 0.01, %v15306_v58  ;;  %10406 = vmatprep.mubr.msk.f32.mxu0 %vm1635_vm0, %v11367_v2 }
 0xa47   : > { %10381 = vmatmul.mubr.msk.f32.gmra.mrb[186].mxu1 %vm1635_vm0, %v11361_v22  ;;  %v11369_v21 = vpop.eup %11368  ;;  %v7396_v43 = vadd.f32 %v11367_v2, %v7380_v63  ;;  %11380 = vpow2.f32 %v7312_v60  ;;  %v7274_v56 = vmax.f32 %v15011_v55, %v7258_v28  ;;  %v7261_v61 = vmul.f32 %v15253_v18, %v7241_v23  ;;  %10407 = vmatmul.mubr.msk.f32.gmra.mrb[174].mxu0 %vm1635_vm0, %v11363_v35 }
 0xa48   : > { %v11371_v49 = vpop.eup %11370  ;;  %v7383_v32 = vmul.f32 %v11369_v21, %v15027_v26  ;;  %11382 = vpow2.f32 %v7360_v44  ;;  %v7318_v42 = vmul.f32 1.442695, %v7291_v11  ;;  %v7366_v19 = vmul.f32 1.442695, %v7339_v16 }
 0xa49   : > { %v11373_v54 = vpop.eup %11372  ;;  %7862 = vst.msk [vmem:[#allocation4 + $0x20] sm:$0xff] %vm1635_vm0, %v7396_v43  ;;  %v7290_v22 = vsub.f32 %v15011_v55, %v7274_v56  ;;  %v7338_v36 = vsub.f32 %v7258_v28, %v7274_v56  ;;  %7852 = vst.msk [vmem:[#allocation3 + $0x50] sm:$0xff] %vm1635_vm0, %v7274_v56  ;;  %v7277_v62 = vmax.f32 %v15021_v34, %v7261_v61  ;;  %vm7211_vm3 = vcmp.ge.f32.partialorder %v15318_v12, 0.0 }
 0xa4a   : > { %v7240_v35 = vsel %vm7208_vm1, %v15306_v58, %v7224_v17  ;;  %v11375_v20 = vpop.eup %11374  ;;  %v7399_v37 = vadd.f32 %v11371_v49, %v7383_v32  ;;  %v7382_v26 = vmul.f32 %v11373_v54, %v15036_v25  ;;  %11384 = vpow2.f32 %v7318_v42  ;;  %10383 = vmatprep.mubr.msk.f32.mxu1 %vm1635_vm0, %v11373_v54 }
 0xa4b   : > { %v7260_v45 = vmul.f32 %v15253_v18, %v7240_v35  ;;  %11386 = vpow2.f32 %v7366_v19  ;;  %v7316_v55 = vmul.f32 1.442695, %v7290_v22  ;;  %v7364_v4 = vmul.f32 1.442695, %v7338_v36  ;;  %7855 = vst.msk [vmem:[#allocation3 + $0x68] sm:$0xff] %vm1635_vm0, %v7277_v62  ;;  %10409 = vmatprep.mubr.msk.f32.mxu0 %vm1635_vm0, %v11375_v20  ;;  %10384 = vmatmul.mubr.msk.f32.gmra.mrb[188].mxu1 %vm1635_vm0, %v11369_v21 }
 0xa4c   : > { %v7293_v30 = vsub.f32 %v15021_v34, %v7277_v62  ;;  %v11377_v58 = vpop.eup %11376  ;;  %7865 = vst.msk [vmem:[#allocation4 + $0x38] sm:$0xff] %vm1635_vm0, %v7399_v37  ;;  %v7398_v25 = vadd.f32 %v11375_v20, %v7382_v26  ;;  %v7341_v14 = vsub.f32 %v7261_v61, %v7277_v62  ;;  %10410 = vmatmul.mubr.msk.f32.gmra.mrb[176].mxu0 %vm1635_vm0, %v11371_v49  ;;  %v7227_v31 = vmul.f32 0.01, %v15318_v12 }
 0xa4d   : > { %v7276_v57 = vmax.f32 %v15040_v5, %v7260_v45  ;;  %v11379_v47 = vpop.eup %11378  ;;  %v7385_v34 = vmul.f32 %v11377_v58, %v15051_v27  ;;  %11388 = vpow2.f32 %v7316_v55  ;;  %vm7210_vm4 = vcmp.ge.f32.partialorder %v15325_v51, 0.0 }
 0xa4e   : > { %v7322_v52 = vmul.f32 1.442695, %v7293_v30  ;;  %7864 = vst.msk [vmem:[#allocation4 + $0x30] sm:$0xff] %vm1635_vm0, %v7398_v25  ;;  %11390 = vpow2.f32 %v7364_v4  ;;  %v7370_v2 = vmul.f32 1.442695, %v7341_v14  ;;  %v7243_v28 = vsel %vm7211_vm3, %v15318_v12, %v7227_v31 }
 0xa4f   : > { %v7292_v63 = vsub.f32 %v15040_v5, %v7276_v57  ;;  %v7340_v60 = vsub.f32 %v7260_v45, %v7276_v57  ;;  %7854 = vst.msk [vmem:[#allocation3 + $0x60] sm:$0xff] %vm1635_vm0, %v7276_v57  ;;  %v7401_v44 = vadd.f32 %v11379_v47, %v7385_v34  ;;  %v7263_v27 = vmul.f32 %v15253_v18, %v7243_v28 }
 0xa50   : > { %11392 = vpow2.f32 %v7322_v52  ;;  %v7226_v17 = vmul.f32 0.01, %v15325_v51 }
 0xa51   : > { %v7320_v11 = vmul.f32 1.442695, %v7292_v63  ;;  %v7368_v16 = vmul.f32 1.442695, %v7340_v60  ;;  %v11381_v23 = vpop.eup %11380  ;;  %7867 = vst.msk [vmem:[#allocation4 + $0x48] sm:$0xff] %vm1635_vm0, %v7401_v44  ;;  %11394 = vpow2.f32 %v7370_v2  ;;  %v7279_v43 = vmax.f32 %v15061_v10, %v7263_v27 }
 0xa52   : > { %v11383_v5 = vpop.eup %11382  ;;  %v7384_v21 = vmul.f32 %v11381_v23, %v15067_v40  ;;  %10386 = vmatprep.mubr.msk.f32.mxu1 %vm1635_vm0, %v11381_v23  ;;  %v7242_v12 = vsel %vm7210_vm4, %v15325_v51, %v7226_v17 }
 0xa53   : > { %11396 = vpow2.f32 %v7320_v11  ;;  %10412 = vmatprep.mubr.msk.f32.mxu0 %vm1635_vm0, %v11383_v5  ;;  %10387 = vmatmul.mubr.msk.f32.gmra.mrb[190].mxu1 %vm1635_vm0, %v11377_v58  ;;  %v7295_v49 = vsub.f32 %v15061_v10, %v7279_v43  ;;  %v7343_v32 = vsub.f32 %v7263_v27, %v7279_v43  ;;  %7857 = vst.msk [vmem:[#allocation3 + $0x78] sm:$0xff] %vm1635_vm0, %v7279_v43 }
 0xa54   : > { %11398 = vpow2.f32 %v7368_v16  ;;  %v11385_v56 = vpop.eup %11384  ;;  %v7400_v61 = vadd.f32 %v11383_v5, %v7384_v21  ;;  %v7262_v40 = vmul.f32 %v15253_v18, %v7242_v12  ;;  %10413 = vmatmul.mubr.msk.f32.gmra.mrb[178].mxu0 %vm1635_vm0, %v11379_v47 }
 0xa55   : > { %v11387_v42 = vpop.eup %11386  ;;  %v7387_v19 = vmul.f32 %v11385_v56, %v15080_v1  ;;  %v7326_v51 = vmul.f32 1.442695, %v7295_v49  ;;  %v7374_v54 = vmul.f32 1.442695, %v7343_v32 }
 0xa56   : > { %7866 = vst.msk [vmem:[#allocation4 + $0x40] sm:$0xff] %vm1635_vm0, %v7400_v61  ;;  %v7278_v22 = vmax.f32 %v15077_v41, %v7262_v40 }
 0xa57   : > { %v11389_v36 = vpop.eup %11388  ;;  %v7403_v62 = vadd.f32 %v11387_v42, %v7387_v19  ;;  %11400 = vpow2.f32 %v7326_v51 }
 0xa58   : > { %v11391_v35 = vpop.eup %11390  ;;  %v7386_v10 = vmul.f32 %v11389_v36, %v15089_v46  ;;  %v7294_v20 = vsub.f32 %v15077_v41, %v7278_v22  ;;  %v7342_v18 = vsub.f32 %v7262_v40, %v7278_v22  ;;  %7856 = vst.msk [vmem:[#allocation3 + $0x70] sm:$0xff] %vm1635_vm0, %v7278_v22  ;;  %10389 = vmatprep.mubr.msk.f32.mxu1 %vm1635_vm0, %v11389_v36  ;;  %11402 = vpow2.f32 %v7374_v54  ;;  %v16281_v36 = vld [vmem:[#allocation49_spill] sm:$0xff] }
 0xa59   : > { %7869 = vst.msk [vmem:[#allocation4 + $0x58] sm:$0xff] %vm1635_vm0, %v7403_v62  ;;  %10415 = vmatprep.mubr.msk.f32.mxu0 %vm1635_vm0, %v11391_v35  ;;  %10390 = vmatmul.mubr.msk.f32.gmra.mrb[192].mxu1 %vm1635_vm0, %v11385_v56  ;;  %v16282_v62 = vld [vmem:[#allocation42_spill] sm:$0xff] }
 0xa5a   : > { %v11393_v1 = vpop.eup %11392  ;;  %v7402_v37 = vadd.f32 %v11391_v35, %v7386_v10  ;;  %v7324_v46 = vmul.f32 1.442695, %v7294_v20  ;;  %v7372_v45 = vmul.f32 1.442695, %v7342_v18  ;;  %10416 = vmatmul.mubr.msk.f32.gmra.mrb[180].mxu0 %vm1635_vm0, %v11387_v42 }
 0xa5b   : > { %v7389_v26 = vmul.f32 %v11393_v1, %v15096_v13  ;;  %v11395_v41 = vpop.eup %11394 }
 0xa5c   : > { %7868 = vst.msk [vmem:[#allocation4 + $0x50] sm:$0xff] %vm1635_vm0, %v7402_v37  ;;  %11404 = vpow2.f32 %v7324_v46 }
 0xa5d   : > { %v11397_v55 = vpop.eup %11396  ;;  %v7405_v4 = vadd.f32 %v11395_v41, %v7389_v26  ;;  %11406 = vpow2.f32 %v7372_v45 }
 0xa5e   : > { %v11399_v30 = vpop.eup %11398  ;;  %v7388_v58 = vmul.f32 %v11397_v55, %v15102_v48  ;;  %10392 = vmatprep.mubr.msk.f32.mxu1 %vm1635_vm0, %v11397_v55 }
 0xa5f   : > { %7871 = vst.msk [vmem:[#allocation4 + $0x68] sm:$0xff] %vm1635_vm0, %v7405_v4  ;;  %10418 = vmatprep.mubr.msk.f32.mxu0 %vm1635_vm0, %v11399_v30  ;;  %10393 = vmatmul.mubr.msk.f32.gmra.mrb[194].mxu1 %vm1635_vm0, %v11393_v1  ;;  %v16284_v1 = vld [vmem:[#allocation41_spill] sm:$0xff] }
 0xa60   : > { %v7404_v13 = vadd.f32 %v11399_v30, %v7388_v58  ;;  %10419 = vmatmul.mubr.msk.f32.gmra.mrb[182].mxu0 %vm1635_vm0, %v11395_v41  ;;  %v16286_v41 = vld [vmem:[#allocation24_spill] sm:$0xff]  ;;  %v16287_v30 = vld [vmem:[#allocation37_spill] sm:$0xff] }
 0xa61   : > { %v11401_v25 = vpop.eup %11400 }
 0xa62   : > { %7870 = vst.msk [vmem:[#allocation4 + $0x60] sm:$0xff] %vm1635_vm0, %v7404_v13  ;;  %v11403_v14 = vpop.eup %11402  ;;  %v7391_v57 = vmul.f32 %v11401_v25, %v15109_v0 }
 0xa64   : > { %v7407_v47 = vadd.f32 %v11403_v14, %v7391_v57  ;;  %v16288_v57 = vld [vmem:[#allocation18_spill] sm:$0xff] }
 0xa66   : > { %v11405_v48 = vpop.eup %11404  ;;  %7873 = vst.msk [vmem:[#allocation4 + $0x78] sm:$0xff] %vm1635_vm0, %v7407_v47 }
 0xa67   : > { %v11407_v34 = vpop.eup %11406  ;;  %v7390_v52 = vmul.f32 %v11405_v48, %v15125_v15  ;;  %10395 = vmatprep.mubr.msk.f32.mxu1 %vm1635_vm0, %v11405_v48 }
 0xa68   : > { %10421 = vmatprep.mubr.msk.f32.mxu0 %vm1635_vm0, %v11407_v34  ;;  %10396 = vmatmul.mubr.msk.f32.gmra.mrb[196].mxu1 %vm1635_vm0, %v11401_v25 }
 0xa69   : > { %v7406_v31 = vadd.f32 %v11407_v34, %v7390_v52  ;;  %10422 = vmatmul.mubr.msk.f32.gmra.mrb[184].mxu0 %vm1635_vm0, %v11403_v14  ;;  %v16289_v52 = vld [vmem:[#allocation30_spill] sm:$0xff] }
 0xa6b   : > { %7872 = vst.msk [vmem:[#allocation4 + $0x70] sm:$0xff] %vm1635_vm0, %v7406_v31 }
 0xb0e   : > { %v10376_v2 = vpop.f32.mrb[182].mxu1 }
 0xb0f   : > { %v7795_v0 = vmul.f32 %v10376_v2, %v15195_v8  ;;  %v10402_v63 = vpop.f32.mrb[170].mxu0  ;;  %v7522_v60 = vpop.f32.mrb[183].mxu1  ;;  %v16290_v2 = vld [vmem:[#allocation13_spill] sm:$0xff] }
 0xb10   : > { %v7811_v44 = vmul.f32 %v10402_v63, %v15114_v33  ;;  %v7794_v15 = vmul.f32 %v7522_v60, %v15198_v24  ;;  %v7715_v28 = vpop.f32.mrb[171].mxu0  ;;  %v16291_v60 = vld [vmem:[#allocation38_spill] sm:$0xff] }
 0xb11   : > { %v7810_v11 = vmul.f32 %v15106_v7, %v7715_v28 }
 0xb12   : > { %v7827_v16 = vadd.f32 %v7811_v44, %v7795_v0 }
 0xb13   : > { %v10379_v27 = vpop.f32.mrb[184].mxu1  ;;  %v7826_v23 = vadd.f32 %v7810_v11, %v7794_v15  ;;  %v10405_v5 = vpop.f32.mrb[172].mxu0 }
 0xb14   : > { %v7797_v17 = vmul.f32 %v10379_v27, %v15203_v53  ;;  %v7532_v21 = vpop.f32.mrb[185].mxu1  ;;  %7875 = vst [vmem:[#allocation5 + $0x8] sm:$0xff] %v7827_v16  ;;  %v7813_v43 = vmul.f32 %v10405_v5, %v15131_v9  ;;  %v7725_v12 = vpop.f32.mrb[173].mxu0  ;;  %v16292_v16 = vld [vmem:[#allocation7_spill] sm:$0xff]  ;;  %v16293_v5 = vld [vmem:[#allocation25_spill] sm:$0xff] }
 0xb15   : > { %v7796_v8 = vmul.f32 %v7532_v21, %v15205_v3  ;;  %7874 = vst [vmem:[#allocation5] sm:$0xff] %v7826_v23  ;;  %v7812_v33 = vmul.f32 %v15117_v50, %v7725_v12 }
 0xb16   : > { %v7829_v24 = vadd.f32 %v7813_v43, %v7797_v17  ;;  %v16294_v43 = vld [vmem:[#allocation40_spill] sm:$0xff] }
 0xb17   : > { %v7828_v56 = vadd.f32 %v7812_v33, %v7796_v8  ;;  %v16295_v33 = vld [vmem:[#allocation36_spill] sm:$0xff] }
 0xb18   : > { %7877 = vst [vmem:[#allocation5 + $0x18] sm:$0xff] %v7829_v24 }
 0xb19   : > { %7876 = vst [vmem:[#allocation5 + $0x10] sm:$0xff] %v7828_v56 }
 0xb1a   : > { %v10382_v7 = vpop.f32.mrb[186].mxu1  ;;  %v10408_v49 = vpop.f32.mrb[174].mxu0 }
 0xb1b   : > { %v7799_v61 = vmul.f32 %v10382_v7, %v15211_v38  ;;  %v7542_v53 = vpop.f32.mrb[187].mxu1  ;;  %v7815_v32 = vmul.f32 %v10408_v49, %v15141_v29  ;;  %v7735_v9 = vpop.f32.mrb[175].mxu0  ;;  %v16283_v29 = vld [vmem:[#allocation8_spill] sm:$0xff]  ;;  %v16296_v49 = vld [vmem:[#allocation14_spill] sm:$0xff] }
 0xb1c   : > { %v7798_v40 = vmul.f32 %v7542_v53, %v15213_v59  ;;  %v7814_v3 = vmul.f32 %v15134_v39, %v7735_v9  ;;  %v16297_v9 = vld [vmem:[#allocation31_spill] sm:$0xff] }
 0xb1d   : > { %v7831_v42 = vadd.f32 %v7815_v32, %v7799_v61 }
 0xb1e   : > { %v7830_v19 = vadd.f32 %v7814_v3, %v7798_v40  ;;  %v10385_v51 = vpop.f32.mrb[188].mxu1 }
 0xb1f   : > { %7879 = vst [vmem:[#allocation5 + $0x28] sm:$0xff] %v7831_v42  ;;  %v7801_v50 = vmul.f32 %v10385_v51, %v15219_v6  ;;  %v10411_v54 = vpop.f32.mrb[176].mxu0  ;;  %v7552_v22 = vpop.f32.mrb[189].mxu1  ;;  %v16285_v6 = vld [vmem:[#allocation21_spill] sm:$0xff]  ;;  %v16298_v42 = vld [vmem:[#allocation10_spill] sm:$0xff] }
 0xb20   : > { %7878 = vst [vmem:[#allocation5 + $0x20] sm:$0xff] %v7830_v19  ;;  %v7817_v38 = vmul.f32 %v10411_v54, %v16281_v36  ;;  %v7800_v35 = vmul.f32 %v7552_v22, %v16282_v62  ;;  %v7745_v10 = vpop.f32.mrb[177].mxu0  ;;  %v7894_v62 = vld [vmem:[#allocation4] sm:$0xff] (!%p8910_p13) }
 0xb21   : > { %v7816_v20 = vmul.f32 %v16283_v29, %v7745_v10  ;;  %v7896_v10 = vld [vmem:[#allocation4 + $0x10] sm:$0xff] (!%p8910_p13)  ;;  %11517 = vrcp.f32 (!%p8910_p13), %v7894_v62  ;;  %v7897_v29 = vld [vmem:[#allocation4 + $0x18] sm:$0xff] (!%p8910_p13) }
 0xb22   : > { %v7833_v59 = vadd.f32 %v7817_v38, %v7801_v50  ;;  %v16299_v50 = vld [vmem:[#allocation39_spill] sm:$0xff]  ;;  %v8138_v62 = vld [vmem:[#allocation5 + $0x18] sm:$0xff] (!%p8910_p13) }
 0xb23   : > { %v7832_v18 = vadd.f32 %v7816_v20, %v7800_v35  ;;  %v16300_v38 = vld [vmem:[#allocation15_spill] sm:$0xff] (!%p8910_p13)  ;;  %v7895_v35 = vld [vmem:[#allocation4 + $0x8] sm:$0xff] (!%p8910_p13) }
 0xb24   : > { %7881 = vst [vmem:[#allocation5 + $0x38] sm:$0xff] %v7833_v59  ;;  %10424 = vmatprep.subr.msk.mxu0 (!%p8910_p13), %vm1684_vm2, %v16300_v38  ;;  %11519 = vrcp.f32 (!%p8910_p13), %v7895_v35  ;;  %v7898_v20 = vld [vmem:[#allocation4 + $0x20] sm:$0xff] (!%p8910_p13)  ;;  %v7899_v59 = vld [vmem:[#allocation4 + $0x28] sm:$0xff] (!%p8910_p13) }
 0xb25   : > { %7880 = vst [vmem:[#allocation5 + $0x30] sm:$0xff] %v7832_v18  ;;  %10425 = vmatpush3.msk.msra.mxu0 (!%p8910_p13), %vm1684_vm2, %v16300_v38  ;;  %11521 = vrcp.f32 (!%p8910_p13), %v7896_v10  ;;  %v8167_v18 = vld [vmem:[%s15577_s6] sm:$0xff] (!%p8910_p13) }
 0xb26   : > { %v10388_v39 = vpop.f32.mrb[190].mxu1  ;;  %11523 = vrcp.f32 (!%p8910_p13), %v7897_v29 }
 0xb27   : > { %v7803_v37 = vmul.f32 %v10388_v39, %v16284_v1  ;;  %v10414_v26 = vpop.f32.mrb[178].mxu0  ;;  %v7562_v46 = vpop.f32.mrb[191].mxu1  ;;  %11525 = vrcp.f32 (!%p8910_p13), %v7898_v20  ;;  %v8168_v39 = vld [vmem:[%s15577_s6 + $0x8] sm:$0xff] (!%p8910_p13)  ;;  %v7900_v1 = vld [vmem:[#allocation4 + $0x30] sm:$0xff] (!%p8910_p13)  ;;  %v8139_v20 = vld [vmem:[#allocation5 + $0x20] sm:$0xff] (!%p8910_p13) }
 0xb28   : > { %v7819_v45 = vmul.f32 %v10414_v26, %v16285_v6  ;;  %v7802_v55 = vmul.f32 %v7562_v46, %v16286_v41  ;;  %v7755_v4 = vpop.f32.mrb[179].mxu0  ;;  %v8169_v26 = vld [vmem:[%s15577_s6 + $0x10] sm:$0xff] (!%p8910_p13)  ;;  %v8170_v46 = vld [vmem:[%s15577_s6 + $0x18] sm:$0xff] (!%p8910_p13)  ;;  %11527 = vrcp.f32 (!%p8910_p13), %v7899_v59  ;;  %v7902_v41 = vld [vmem:[#allocation4 + $0x40] sm:$0xff] (!%p8910_p13) }
 0xb29   : > { %v7818_v58 = vmul.f32 %v16287_v30, %v7755_v4  ;;  %v10774_v6 = vpack.c.bf16 (!%p8910_p13), %v8170_v46, %v8169_v26  ;;  %11529 = vrcp.f32 (!%p8910_p13), %v7900_v1  ;;  %v8172_v4 = vld [vmem:[%s15577_s6 + $0x28] sm:$0xff] (!%p8910_p13) }
 0xb2a   : > { %v7835_v13 = vadd.f32 %v7819_v45, %v7803_v37  ;;  %v10770_v37 = vpack.c.bf16 (!%p8910_p13), %v8168_v39, %v8167_v18  ;;  %v7901_v45 = vld [vmem:[#allocation4 + $0x38] sm:$0xff] (!%p8910_p13)  ;;  %v8140_v18 = vld [vmem:[#allocation5 + $0x28] sm:$0xff] (!%p8910_p13) }
 0xb2b   : > { %v7834_v25 = vadd.f32 %v7818_v58, %v7802_v55  ;;  %v8171_v55 = vld [vmem:[%s15577_s6 + $0x20] sm:$0xff] (!%p8910_p13)  ;;  %v11518_v30 = vpop.eup (!%p8910_p13), %11517  ;;  %11531 = vrcp.f32 (!%p8910_p13), %v7901_v45 }
 0xb2c   : > { %7883 = vst [vmem:[#allocation5 + $0x48] sm:$0xff] %v7835_v13  ;;  %v10391_v14 = vpop.f32.mrb[192].mxu1  ;;  %10771 = vmatprep.subr.bf16.mxu0 (!%p8910_p13), %v10770_v37  ;;  %10822 = vmatprep.subr.bf16.mxu1 (!%p8910_p13), %v10770_v37  ;;  %11533 = vrcp.f32 (!%p8910_p13), %v7902_v41  ;;  %v8141_v26 = vld [vmem:[#allocation5 + $0x30] sm:$0xff] (!%p8910_p13) }
 0xb2d   : > { %7882 = vst [vmem:[#allocation5 + $0x40] sm:$0xff] %v7834_v25  ;;  %v7805_v47 = vmul.f32 %v10391_v14, %v16288_v57  ;;  %v10417_v48 = vpop.f32.mrb[180].mxu0  ;;  %v7572_v34 = vpop.f32.mrb[193].mxu1  ;;  %10830 = vmatpush3.bf16.msra.mxu1 (!%p8910_p13), %v10770_v37  ;;  %10426 = vmatprep.mubr.msk.f32.mxu0 (!%p8910_p13), %vm1635_vm0, %v11518_v30  ;;  %v7903_v25 = vld [vmem:[#allocation4 + $0x48] sm:$0xff] (!%p8910_p13)  ;;  %v10778_v14 = vpack.c.bf16 (!%p8910_p13), %v8172_v4, %v8171_v55 }
 0xb2e   : > { %v7821_v31 = vmul.f32 %v10417_v48, %v16289_v52  ;;  %v7804_v0 = vmul.f32 %v7572_v34, %v16290_v2  ;;  %v7765_v63 = vpop.f32.mrb[181].mxu0  ;;  %10823 = vmatprep.subr.bf16.mxu1 (!%p8910_p13), %v10774_v6  ;;  %v11520_v58 = vpop.eup (!%p8910_p13), %11519  ;;  %v8173_v48 = vld [vmem:[%s15577_s6 + $0x30] sm:$0xff] (!%p8910_p13)  ;;  %v8174_v34 = vld [vmem:[%s15577_s6 + $0x38] sm:$0xff] (!%p8910_p13)  ;;  %11535 = vrcp.f32 (!%p8910_p13), %v7903_v25 }
 0xb2f   : > { %v7820_v44 = vmul.f32 %v16291_v60, %v7765_v63  ;;  %v11522_v13 = vpop.eup (!%p8910_p13), %11521  ;;  %10427 = vmatmul.mubr.msk.f32.vlgmr.msra.gmra.mrb[0].mxu0 (!%p8910_p13), %vm1635_vm0, %v11520_v58  ;;  %v10782_v2 = vpack.c.bf16 (!%p8910_p13), %v8174_v34, %v8173_v48  ;;  %v7906_v63 = vld [vmem:[#allocation4 + $0x60] sm:$0xff] (!%p8910_p13) }
 0xb30   : > { %v7837_v15 = vadd.f32 %v7821_v31, %v7805_v47  ;;  %v11524_v57 = vpop.eup (!%p8910_p13), %11523  ;;  %10429 = vmatprep.mubr.msk.f32.mxu0 (!%p8910_p13), %vm1635_vm0, %v11522_v13  ;;  %v7904_v47 = vld [vmem:[#allocation4 + $0x50] sm:$0xff] (!%p8910_p13)  ;;  %10773 = vmatpush3.bf16.msra.mxu0 (!%p8910_p13), %v10770_v37  ;;  %v7905_v31 = vld [vmem:[#allocation4 + $0x58] sm:$0xff] (!%p8910_p13)  ;;  %v8175_v60 = vld [vmem:[%s15577_s6 + $0x40] sm:$0xff] (!%p8910_p13) }
 0xb31   : > { %v7836_v28 = vadd.f32 %v7820_v44, %v7804_v0  ;;  %10831 = vmatpush3.bf16.msra.mxu1 (!%p8910_p13), %v10774_v6  ;;  %v11526_v52 = vpop.eup (!%p8910_p13), %11525  ;;  %10775 = vmatprep.subr.bf16.mxu0 (!%p8910_p13), %v10774_v6  ;;  %11537 = vrcp.f32 (!%p8910_p13), %v7904_v47  ;;  %v8176_v44 = vld [vmem:[%s15577_s6 + $0x48] sm:$0xff] (!%p8910_p13) }
 0xb32   : > { %v10394_v11 = vpop.f32.mrb[194].mxu1  ;;  %7885 = vst [vmem:[#allocation5 + $0x58] sm:$0xff] %v7837_v15  ;;  %10824 = vmatprep.subr.bf16.mxu1 (!%p8910_p13), %v10778_v14  ;;  %v11528_v0 = vpop.eup (!%p8910_p13), %11527  ;;  %11539 = vrcp.f32 (!%p8910_p13), %v7905_v31 }
 0xb33   : > { %v7807_v27 = vmul.f32 %v10394_v11, %v16292_v16  ;;  %v10420_v23 = vpop.f32.mrb[182].mxu0  ;;  %v7582_v17 = vpop.f32.mrb[195].mxu1  ;;  %7884 = vst [vmem:[#allocation5 + $0x50] sm:$0xff] %v7836_v28  ;;  %10430 = vmatmul.mubr.msk.f32.gmra.mrb[2].mxu0 (!%p8910_p13), %vm1635_vm0, %v11524_v57  ;;  %11541 = vrcp.f32 (!%p8910_p13), %v7906_v63  ;;  %v7907_v28 = vld [vmem:[#allocation4 + $0x68] sm:$0xff] (!%p8910_p13)  ;;  %v10786_v11 = vpack.c.bf16 (!%p8910_p13), %v8176_v44, %v8175_v60 }
 0xb34   : > { %v7823_v21 = vmul.f32 %v10420_v23, %v16293_v5  ;;  %v7806_v8 = vmul.f32 %v7582_v17, %v16294_v43  ;;  %v7775_v12 = vpop.f32.mrb[183].mxu0  ;;  %10432 = vmatprep.mubr.msk.f32.mxu0 (!%p8910_p13), %vm1635_vm0, %v11526_v52  ;;  %10777 = vmatpush3.bf16.msra.mxu0 (!%p8910_p13), %v10774_v6  ;;  %v11530_v15 = vpop.eup (!%p8910_p13), %11529  ;;  %v8177_v23 = vld [vmem:[%s15577_s6 + $0x50] sm:$0xff] (!%p8910_p13)  ;;  %v8178_v17 = vld [vmem:[%s15577_s6 + $0x58] sm:$0xff] (!%p8910_p13)  ;;  %11543 = vrcp.f32 (!%p8910_p13), %v7907_v28  ;;  %v8143_v4 = vld [vmem:[#allocation5 + $0x40] sm:$0xff] (!%p8910_p13) }
 0xb35   : > { %v7822_v24 = vmul.f32 %v16295_v33, %v7775_v12  ;;  %10832 = vmatpush3.bf16.msra.mxu1 (!%p8910_p13), %v10778_v14  ;;  %10779 = vmatprep.subr.bf16.mxu0 (!%p8910_p13), %v10778_v14  ;;  %v11532_v16 = vpop.eup (!%p8910_p13), %11531  ;;  %v10790_v43 = vpack.c.bf16 (!%p8910_p13), %v8178_v17, %v8177_v23  ;;  %v8179_v12 = vld [vmem:[%s15577_s6 + $0x60] sm:$0xff] (!%p8910_p13)  ;;  %v8180_v33 = vld [vmem:[%s15577_s6 + $0x68] sm:$0xff] (!%p8910_p13)  ;;  %v8142_v6 = vld [vmem:[#allocation5 + $0x38] sm:$0xff] (!%p8910_p13) }
 0xb36   : > { %v7839_v56 = vadd.f32 %v7823_v21, %v7807_v27  ;;  %10825 = vmatprep.subr.bf16.mxu1 (!%p8910_p13), %v10782_v2  ;;  %v7908_v27 = vld [vmem:[#allocation4 + $0x70] sm:$0xff] (!%p8910_p13)  ;;  %v11534_v5 = vpop.eup (!%p8910_p13), %11533  ;;  %v7909_v21 = vld [vmem:[#allocation4 + $0x78] sm:$0xff] (!%p8910_p13)  ;;  %v8144_v58 = vld [vmem:[#allocation5 + $0x48] sm:$0xff] (!%p8910_p13) }
 0xb37   : > { %v7838_v7 = vadd.f32 %v7822_v24, %v7806_v8  ;;  %10433 = vmatmul.mubr.msk.f32.gmra.mrb[4].mxu0 (!%p8910_p13), %vm1635_vm0, %v11528_v0  ;;  %11545 = vrcp.f32 (!%p8910_p13), %v7908_v27 }
 0xb38   : > { %7887 = vst [vmem:[#allocation5 + $0x68] sm:$0xff] %v7839_v56  ;;  %10435 = vmatprep.mubr.msk.f32.mxu0 (!%p8910_p13), %vm1635_vm0, %v11530_v15  ;;  %10781 = vmatpush3.bf16.msra.mxu0 (!%p8910_p13), %v10778_v14  ;;  %v11536_v8 = vpop.eup (!%p8910_p13), %11535  ;;  %11547 = vrcp.f32 (!%p8910_p13), %v7909_v21  ;;  %v10794_v56 = vpack.c.bf16 (!%p8910_p13), %v8180_v33, %v8179_v12 }
 0xb39   : > { %7886 = vst [vmem:[#allocation5 + $0x60] sm:$0xff] %v7838_v7  ;;  %10833 = vmatpush3.bf16.msra.mxu1 (!%p8910_p13), %v10782_v2  ;;  %10783 = vmatprep.subr.bf16.mxu0 (!%p8910_p13), %v10782_v2  ;;  %v8146_v48 = vld [vmem:[#allocation5 + $0x58] sm:$0xff] (!%p8910_p13) }
 0xb3a   : > { %10826 = vmatprep.subr.bf16.mxu1 (!%p8910_p13), %v10786_v11  ;;  %v8145_v57 = vld [vmem:[#allocation5 + $0x50] sm:$0xff] (!%p8910_p13) }
 0xb3b   : > { %v10397_v61 = vpop.f32.mrb[196].mxu1  ;;  %10436 = vmatmul.mubr.msk.f32.gmra.mrb[6].mxu0 (!%p8910_p13), %vm1635_vm0, %v11532_v16  ;;  %v11538_v24 = vpop.eup (!%p8910_p13), %11537 }
 0xb3c   : > { %v7809_v53 = vmul.f32 %v10397_v61, %v16296_v49  ;;  %v10423_v32 = vpop.f32.mrb[184].mxu0  ;;  %v7592_v40 = vpop.f32.mrb[197].mxu1  ;;  %7893 = sbr.rel (%p8910_p13) target bundleno = 3324 (0xcfc), region = 94  ;;  %10438 = vmatprep.mubr.msk.f32.mxu0 (!%p8910_p13), %vm1635_vm0, %v11534_v5  ;;  %10785 = vmatpush3.bf16.msra.mxu0 (!%p8910_p13), %v10782_v2 }
 0xb3d   : > { %v7825_v3 = vmul.f32 %v10423_v32, %v16297_v9  ;;  %v7808_v19 = vmul.f32 %v7592_v40, %v16298_v42  ;;  %v7785_v51 = vpop.f32.mrb[185].mxu0  ;;  %10834 = vmatpush3.bf16.msra.mxu1 (!%p8910_p13), %v10786_v11  ;;  %10787 = vmatprep.subr.bf16.mxu0 (!%p8910_p13), %v10786_v11  ;;  %v11540_v7 = vpop.eup (!%p8910_p13), %11539  ;;  %v8181_v40 = vld [vmem:[%s15577_s6 + $0x70] sm:$0xff] (!%p8910_p13)  ;;  %v8182_v9 = vld [vmem:[%s15577_s6 + $0x78] sm:$0xff] (!%p8910_p13)  ;;  %v8135_v42 = vld [vmem:[#allocation5] sm:$0xff] (!%p8910_p13) }
 0xb3e   : > { %v7824_v54 = vmul.f32 %v16299_v50, %v7785_v51  ;;  %10827 = vmatprep.subr.bf16.mxu1 (!%p8910_p13), %v10790_v43  ;;  %v11542_v61 = vpop.eup (!%p8910_p13), %11541  ;;  %v8136_v51 = vld [vmem:[#allocation5 + $0x8] sm:$0xff] (!%p8910_p13) }
 0xb3f   : > { %v7841_v22 = vadd.f32 %v7825_v3, %v7809_v53  ;;  %10439 = vmatmul.mubr.msk.f32.gmra.mrb[8].mxu0 (!%p8910_p13), %vm1635_vm0, %v11536_v8  ;;  %v11544_v49 = vpop.eup (!%p8910_p13), %11543  ;;  %v10798_v3 = vpack.c.bf16 (!%p8910_p13), %v8182_v9, %v8181_v40  ;;  %v8148_v63 = vld [vmem:[#allocation5 + $0x68] sm:$0xff] (!%p8910_p13) }
 0xb40   : > { %v7840_v36 = vadd.f32 %v7824_v54, %v7808_v19  ;;  %10441 = vmatprep.mubr.msk.f32.mxu0 (!%p8910_p13), %vm1635_vm0, %v11538_v24  ;;  %10789 = vmatpush3.bf16.msra.mxu0 (!%p8910_p13), %v10786_v11  ;;  %v8147_v2 = vld [vmem:[#allocation5 + $0x60] sm:$0xff] (!%p8910_p13) }
 0xb41   : > { %7889 = vst [vmem:[#allocation5 + $0x78] sm:$0xff] %v7841_v22  ;;  %10835 = vmatpush3.bf16.msra.mxu1 (!%p8910_p13), %v10790_v43  ;;  %10791 = vmatprep.subr.bf16.mxu0 (!%p8910_p13), %v10790_v43  ;;  %v11546_v53 = vpop.eup (!%p8910_p13), %11545 }
 0xb42   : > { %7888 = vst [vmem:[#allocation5 + $0x70] sm:$0xff] %v7840_v36  ;;  %10828 = vmatprep.subr.bf16.mxu1 (!%p8910_p13), %v10794_v56  ;;  %v11548_v32 = vpop.eup (!%p8910_p13), %11547  ;;  %v8137_v36 = vld [vmem:[#allocation5 + $0x10] sm:$0xff] (!%p8910_p13) }
 0xb43   : > { %10442 = vmatmul.mubr.msk.f32.gmra.mrb[10].mxu0 %vm1635_vm0, %v11540_v7 }
 0xb44   : > { %10444 = vmatprep.mubr.msk.f32.mxu0 %vm1635_vm0, %v11542_v61  ;;  %10793 = vmatpush3.bf16.msra.mxu0 %v10790_v43 }
 0xb45   : > { %10836 = vmatpush3.bf16.msra.mxu1 %v10794_v56  ;;  %10795 = vmatprep.subr.bf16.mxu0 %v10794_v56 }
 0xb46   : > { %10829 = vmatprep.subr.bf16.mxu1 %v10798_v3 }
 0xb47   : > { %10445 = vmatmul.mubr.msk.f32.gmra.mrb[12].mxu0 %vm1635_vm0, %v11544_v49 }
 0xb48   : > { %10447 = vmatprep.mubr.msk.f32.mxu0 %vm1635_vm0, %v11546_v53  ;;  %10797 = vmatpush3.bf16.msra.mxu0 %v10794_v56  ;;  %v8150_v16 = vld [vmem:[#allocation5 + $0x78] sm:$0xff] }
 0xb49   : > { %10799 = vmatprep.subr.bf16.mxu0 %v10798_v3  ;;  %10837 = vmatpush3.bf16.msra.mxu1 %v10798_v3  ;;  %v8149_v28 = vld [vmem:[#allocation5 + $0x70] sm:$0xff] }
 0xb4b   : > { %10448 = vmatmul.mubr.msk.f32.gmra.mrb[14].mxu0 %vm1635_vm0, %v11548_v32 }
 0xb4c   : > { %10801 = vmatpush3.bf16.msra.mxu0 %v10798_v3 }
 0xc02   : > { %v10428_v19 = vpop.f32.mrb[0].mxu0 }
 0xc03   : > { %v8056_v50 = vpop.f32.mrb[1].mxu0  ;;  %v8152_v22 = vmul.f32 %v10428_v19, %v8136_v51 }
 0xc04   : > { %v8151_v54 = vmul.f32 %v8135_v42, %v8056_v50 }
 0xc06   : > { %v10431_v38 = vpop.f32.mrb[2].mxu0  ;;  %10482 = vmatprep.mubr.f32.mxu0 %v8151_v54 }
 0xc07   : > { %v8066_v35 = vpop.f32.mrb[3].mxu0  ;;  %10483 = vmatmul.mubr.f32.vlgmr.msra.gmra.mrb[16].mxu0 %v8152_v22  ;;  %v8154_v29 = vmul.f32 %v10431_v38, %v8138_v62 }
 0xc08   : > { %v8153_v10 = vmul.f32 %v8137_v36, %v8066_v35 }
 0xc0a   : > { %v10434_v59 = vpop.f32.mrb[4].mxu0  ;;  %10485 = vmatprep.mubr.f32.mxu0 %v8153_v10 }
 0xc0b   : > { %v8076_v39 = vpop.f32.mrb[5].mxu0  ;;  %10486 = vmatmul.mubr.f32.gmra.mrb[18].mxu0 %v8154_v29  ;;  %v8156_v37 = vmul.f32 %v10434_v59, %v8140_v18 }
 0xc0c   : > { %v8155_v1 = vmul.f32 %v8139_v20, %v8076_v39 }
 0xc0e   : > { %v10437_v46 = vpop.f32.mrb[6].mxu0  ;;  %10488 = vmatprep.mubr.f32.mxu0 %v8155_v1 }
 0xc0f   : > { %v8086_v45 = vpop.f32.mrb[7].mxu0  ;;  %10489 = vmatmul.mubr.f32.gmra.mrb[20].mxu0 %v8156_v37  ;;  %v8158_v55 = vmul.f32 %v10437_v46, %v8142_v6 }
 0xc10   : > { %v8157_v41 = vmul.f32 %v8141_v26, %v8086_v45 }
 0xc12   : > { %v10440_v30 = vpop.f32.mrb[8].mxu0  ;;  %10491 = vmatprep.mubr.f32.mxu1 %v8157_v41 }
 0xc13   : > { %v8096_v13 = vpop.f32.mrb[9].mxu0  ;;  %10492 = vmatmul.mubr.f32.vlgmr.msra.gmra.mrb[0].mxu1 %v8158_v55  ;;  %v8160_v14 = vmul.f32 %v10440_v30, %v8144_v58 }
 0xc14   : > { %v8159_v25 = vmul.f32 %v8143_v4, %v8096_v13 }
 0xc16   : > { %v10443_v47 = vpop.f32.mrb[10].mxu0  ;;  %10494 = vmatprep.mubr.f32.mxu1 %v8159_v25 }
 0xc17   : > { %v8106_v34 = vpop.f32.mrb[11].mxu0  ;;  %10495 = vmatmul.mubr.f32.gmra.mrb[2].mxu1 %v8160_v14  ;;  %v8162_v31 = vmul.f32 %v10443_v47, %v8146_v48 }
 0xc18   : > { %v8161_v52 = vmul.f32 %v8145_v57, %v8106_v34 }
 0xc1a   : > { %v10446_v0 = vpop.f32.mrb[12].mxu0  ;;  %10497 = vmatprep.mubr.f32.mxu1 %v8161_v52 }
 0xc1b   : > { %v8116_v60 = vpop.f32.mrb[13].mxu0  ;;  %10498 = vmatmul.mubr.f32.gmra.mrb[4].mxu1 %v8162_v31  ;;  %v8164_v15 = vmul.f32 %v10446_v0, %v8148_v63 }
 0xc1c   : > { %v8163_v44 = vmul.f32 %v8147_v2, %v8116_v60 }
 0xc1e   : > { %v10449_v11 = vpop.f32.mrb[14].mxu0  ;;  %10500 = vmatprep.mubr.f32.mxu1 %v8163_v44 }
 0xc1f   : > { %v8126_v27 = vpop.f32.mrb[15].mxu0  ;;  %10501 = vmatmul.mubr.f32.gmra.mrb[6].mxu1 %v8164_v15  ;;  %v8166_v17 = vmul.f32 %v10449_v11, %v8150_v16 }
 0xc20   : > { %v8165_v23 = vmul.f32 %v8149_v28, %v8126_v27 }
 0xc22   : > { %10503 = vmatprep.mubr.f32.mxu1 %v8165_v23 }
 0xc23   : > { %10504 = vmatmul.mubr.f32.gmra.mrb[8].mxu1 %v8166_v17 }
 0xcda   : > { %v10484_v5 = vpop.f32.mrb[16].mxu0 }
 0xcdb   : > { %vm8329_vm2 = vcmp.ge.f32.partialorder %v10484_v5, 0.0  ;;  %v8345_v21 = vmul.f32 0.01, %v10484_v5  ;;  %v8249_v43 = vpop.f32.mrb[17].mxu0 }
 0xcdc   : > { %vm8328_vm0 = vcmp.ge.f32.partialorder %v8249_v43, 0.0  ;;  %v8344_v8 = vmul.f32 0.01, %v8249_v43 }
 0xcdd   : > { %v8361_v12 = vsel %vm8329_vm2, %v10484_v5, %v8345_v21 }
 0xcde   : > { %8377 = vst [vmem:[%s11986_s11 + $0x8] sm:$0xff] %v8361_v12  ;;  %v8360_v33 = vsel %vm8328_vm0, %v8249_v43, %v8344_v8  ;;  %v10487_v24 = vpop.f32.mrb[18].mxu0 }
 0xcdf   : > { %8376 = vst [vmem:[%s11986_s11] sm:$0xff] %v8360_v33  ;;  %vm8331_vm5 = vcmp.ge.f32.partialorder %v10487_v24, 0.0  ;;  %v8347_v56 = vmul.f32 0.01, %v10487_v24  ;;  %v8259_v7 = vpop.f32.mrb[19].mxu0 }
 0xce0   : > { %vm8330_vm6 = vcmp.ge.f32.partialorder %v8259_v7, 0.0  ;;  %v8346_v61 = vmul.f32 0.01, %v8259_v7 }
 0xce1   : > { %v8363_v49 = vsel %vm8331_vm5, %v10487_v24, %v8347_v56 }
 0xce2   : > { %8379 = vst [vmem:[%s11986_s11 + $0x18] sm:$0xff] %v8363_v49  ;;  %v8362_v53 = vsel %vm8330_vm6, %v8259_v7, %v8346_v61  ;;  %v10490_v32 = vpop.f32.mrb[20].mxu0 }
 0xce3   : > { %8378 = vst [vmem:[%s11986_s11 + $0x10] sm:$0xff] %v8362_v53  ;;  %vm8333_vm7 = vcmp.ge.f32.partialorder %v10490_v32, 0.0  ;;  %v8349_v40 = vmul.f32 0.01, %v10490_v32  ;;  %v8269_v9 = vpop.f32.mrb[21].mxu0 }
 0xce4   : > { %vm8332_vm8 = vcmp.ge.f32.partialorder %v8269_v9, 0.0  ;;  %v8348_v3 = vmul.f32 0.01, %v8269_v9 }
 0xce5   : > { %v8365_v42 = vsel %vm8333_vm7, %v10490_v32, %v8349_v40 }
 0xce6   : > { %8381 = vst [vmem:[%s11986_s11 + $0x28] sm:$0xff] %v8365_v42  ;;  %v8364_v19 = vsel %vm8332_vm8, %v8269_v9, %v8348_v3  ;;  %v10493_v51 = vpop.f32.mrb[0].mxu1 }
 0xce7   : > { %8380 = vst [vmem:[%s11986_s11 + $0x20] sm:$0xff] %v8364_v19  ;;  %vm8335_vm9 = vcmp.ge.f32.partialorder %v10493_v51, 0.0  ;;  %v8351_v50 = vmul.f32 0.01, %v10493_v51  ;;  %v8279_v54 = vpop.f32.mrb[1].mxu1 }
 0xce8   : > { %vm8334_vm10 = vcmp.ge.f32.partialorder %v8279_v54, 0.0  ;;  %v8350_v22 = vmul.f32 0.01, %v8279_v54 }
 0xce9   : > { %v8367_v36 = vsel %vm8335_vm9, %v10493_v51, %v8351_v50 }
 0xcea   : > { %8383 = vst [vmem:[%s11986_s11 + $0x38] sm:$0xff] %v8367_v36  ;;  %v8366_v38 = vsel %vm8334_vm10, %v8279_v54, %v8350_v22  ;;  %v10496_v62 = vpop.f32.mrb[2].mxu1 }
 0xceb   : > { %8382 = vst [vmem:[%s11986_s11 + $0x30] sm:$0xff] %v8366_v38  ;;  %vm8337_vm11 = vcmp.ge.f32.partialorder %v10496_v62, 0.0  ;;  %v8353_v35 = vmul.f32 0.01, %v10496_v62  ;;  %v8289_v10 = vpop.f32.mrb[3].mxu1 }
 0xcec   : > { %vm8336_vm12 = vcmp.ge.f32.partialorder %v8289_v10, 0.0  ;;  %v8352_v29 = vmul.f32 0.01, %v8289_v10 }
 0xced   : > { %v8369_v20 = vsel %vm8337_vm11, %v10496_v62, %v8353_v35 }
 0xcee   : > { %8385 = vst [vmem:[%s11986_s11 + $0x48] sm:$0xff] %v8369_v20  ;;  %v8368_v59 = vsel %vm8336_vm12, %v8289_v10, %v8352_v29  ;;  %v10499_v18 = vpop.f32.mrb[4].mxu1 }
 0xcef   : > { %8384 = vst [vmem:[%s11986_s11 + $0x40] sm:$0xff] %v8368_v59  ;;  %vm8339_vm13 = vcmp.ge.f32.partialorder %v10499_v18, 0.0  ;;  %v8355_v39 = vmul.f32 0.01, %v10499_v18  ;;  %v8299_v1 = vpop.f32.mrb[5].mxu1 }
 0xcf0   : > { %vm8338_vm14 = vcmp.ge.f32.partialorder %v8299_v1, 0.0  ;;  %v8354_v37 = vmul.f32 0.01, %v8299_v1 }
 0xcf1   : > { %v8371_v26 = vsel %vm8339_vm13, %v10499_v18, %v8355_v39 }
 0xcf2   : > { %8387 = vst [vmem:[%s11986_s11 + $0x58] sm:$0xff] %v8371_v26  ;;  %v8370_v46 = vsel %vm8338_vm14, %v8299_v1, %v8354_v37  ;;  %v10502_v6 = vpop.f32.mrb[6].mxu1 }
 0xcf3   : > { %8386 = vst [vmem:[%s11986_s11 + $0x50] sm:$0xff] %v8370_v46  ;;  %vm8341_vm15 = vcmp.ge.f32.partialorder %v10502_v6, 0.0  ;;  %v8357_v45 = vmul.f32 0.01, %v10502_v6  ;;  %v8309_v41 = vpop.f32.mrb[7].mxu1 }
 0xcf4   : > { %vm8340_vm1 = vcmp.ge.f32.partialorder %v8309_v41, 0.0  ;;  %v8356_v55 = vmul.f32 0.01, %v8309_v41 }
 0xcf5   : > { %v8373_v4 = vsel %vm8341_vm15, %v10502_v6, %v8357_v45 }
 0xcf6   : > { %8389 = vst [vmem:[%s11986_s11 + $0x68] sm:$0xff] %v8373_v4  ;;  %v8372_v30 = vsel %vm8340_vm1, %v8309_v41, %v8356_v55  ;;  %v10505_v58 = vpop.f32.mrb[8].mxu1 }
 0xcf7   : > { %8388 = vst [vmem:[%s11986_s11 + $0x60] sm:$0xff] %v8372_v30  ;;  %vm8343_vm3 = vcmp.ge.f32.partialorder %v10505_v58, 0.0  ;;  %v8359_v13 = vmul.f32 0.01, %v10505_v58  ;;  %v8319_v25 = vpop.f32.mrb[9].mxu1 }
 0xcf8   : > { %vm8342_vm4 = vcmp.ge.f32.partialorder %v8319_v25, 0.0  ;;  %v8358_v14 = vmul.f32 0.01, %v8319_v25 }
 0xcf9   : > { %v8375_v57 = vsel %vm8343_vm3, %v10505_v58, %v8359_v13 }
 0xcfa   : > { %8391 = vst [vmem:[%s11986_s11 + $0x78] sm:$0xff] %v8375_v57  ;;  %v8374_v47 = vsel %vm8342_vm4, %v8319_v25, %v8358_v14 }
 0xcfb   : > { %8390 = vst [vmem:[%s11986_s11 + $0x70] sm:$0xff] %v8374_v47 }
 0xcfc PF: > { %s17_s30 = sadd.s32 1, %s11603_s30   ;;  %s16301_s24 = smov %s11583_s25 }
 0xcfd   : > { %p14_p0 = scmp.ge.s32.totalorder %s17_s30, 6   ;;  %s16302_s25 = smov %s11698_s14 }
 0xcfe   : > { %s16303_s26 = smov %s11595_s28  ;;  %s16304_s27 = smov %s11599_s29 }
 0xcff   : > { %s16305_s28 = smov %s16308_s8  ;;  %s16306_s29 = smov %s16312_s9 }
 0xd00   :  { %16 = sbr.rel (!%p14_p0) target bundleno = 4 (0x4), region = 142 }

</bundles_post_ra>
